<compile_context>
chip_gen: v6e
topology: v6e:2x2x1
jax: 0.10.0
libtpu: 0.0.40
codegen_flags: <defaults>
</compile_context>

<pallas_src>
import jax
import jax.numpy as jnp
from jax.experimental import pallas as pl
from jax.experimental.pallas import tpu as pltpu

D_IN = 3 * 256 * 256            # 196608, fixed by the module
H1, H2, H3 = 128, 64, 1
NUM_SPLITS = 2                  # leading "parallel" grid axis (both v7x TCs);
                                # harmless serial iteration on v5e/v6e (1 TC)
TK = 24576                      # K tile for fc1: D_IN = NUM_SPLITS * 4 * TK
NK_PER_SPLIT = D_IN // (NUM_SPLITS * TK)   # 4 K-steps per split
assert D_IN % (NUM_SPLITS * TK) == 0
assert TK % 128 == 0

VMEM_LIMIT_BYTES = 40 * 1024 * 1024   # 2x 12 MiB w1 buffers + x tiles + slack


def fc1_partial_kernel(x_ref, w1_ref, part_ref, acc_ref):
    """Per-split partial of fc1: accumulate (B,TK)@(TK,H1) over the K axis."""
    k = pl.program_id(1)

    @pl.when(k == 0)
    def _():
        acc_ref[...] = jnp.zeros_like(acc_ref)

    acc_ref[...] += jnp.dot(x_ref[...], w1_ref[...],
                            preferred_element_type=jnp.float32)

    @pl.when(k == pl.num_programs(1) - 1)
    def _():
        # write this split's partial (pre-bias, pre-ReLU) fc1 result
        part_ref[...] = acc_ref[...][None].astype(part_ref.dtype)


def mlp_epilogue_kernel(part_ref, b1_ref, w2_ref, b2_ref, w3_ref, b3_ref,
                        o_ref):
    """Sum per-split partials, then bias+ReLU and the tiny fc2/fc3 layers."""
    h1 = jnp.sum(part_ref[...], axis=0) + b1_ref[...]     # sum BEFORE ReLU
    h1 = jnp.maximum(h1, 0.0)
    h2 = jnp.dot(h1, w2_ref[...], preferred_element_type=jnp.float32)
    h2 = jnp.maximum(h2 + b2_ref[...], 0.0)
    h3 = jnp.dot(h2, w3_ref[...], preferred_element_type=jnp.float32)
    h3 = jnp.maximum(h3 + b3_ref[...], 0.0)
    o_ref[...] = h3.astype(o_ref.dtype)


def baseline_mlp(x_nchw, params):
    w1, b1, w2, b2, w3, b3 = params
    B = x_nchw.shape[0]
    x = x_nchw.reshape(B, -1)            # nn.Flatten
    assert x.shape[1] == D_IN

    # --- kernel 1: HBM-bound fc1 partial sums, 2-D grid (split x K) ---------
    grid_spec = pltpu.PrefetchScalarGridSpec(
        num_scalar_prefetch=0,
        grid=(NUM_SPLITS, NK_PER_SPLIT),
        in_specs=[
            pl.BlockSpec((B, TK),
                         lambda c, k: (0, c * NK_PER_SPLIT + k)),   # x tile
            pl.BlockSpec((TK, H1),
                         lambda c, k: (c * NK_PER_SPLIT + k, 0)),   # w1 tile
        ],
        out_specs=pl.BlockSpec((1, B, H1), lambda c, k: (c, 0, 0)),
        scratch_shapes=[pltpu.VMEM((B, H1), jnp.float32)],
    )

    fc1_cost = pl.CostEstimate(
        flops=2 * B * D_IN * H1,
        transcendentals=0,
        bytes_accessed=D_IN * H1 * 4 + B * D_IN * 4 + NUM_SPLITS * B * H1 * 4,
    )

    partials = pl.pallas_call(
        fc1_partial_kernel,
        out_shape=jax.ShapeDtypeStruct((NUM_SPLITS, B, H1), jnp.float32),
        grid_spec=grid_spec,
        compiler_params=pltpu.CompilerParams(
            dimension_semantics=("parallel", "arbitrary"),
            vmem_limit_bytes=VMEM_LIMIT_BYTES),
        cost_estimate=fc1_cost,
    )(x, w1)

    # --- kernel 2: tiny epilogue (combine partials, bias/ReLU, fc2, fc3) ----
    out = pl.pallas_call(
        mlp_epilogue_kernel,
        out_shape=jax.ShapeDtypeStruct((B, H3), jnp.float32),
    )(partials, b1, w2, b2, w3, b3)
    return out


def init_params(key):
    k1, k2, k3, k4, k5, k6 = jax.random.split(key, 6)
    w1 = jax.random.normal(k1, (D_IN, H1), jnp.float32) * (1.0 / jnp.sqrt(D_IN))
    b1 = jax.random.normal(k2, (1, H1), jnp.float32) * 0.01
    w2 = jax.random.normal(k3, (H1, H2), jnp.float32) * (1.0 / jnp.sqrt(H1))
    b2 = jax.random.normal(k4, (1, H2), jnp.float32) * 0.01
    w3 = jax.random.normal(k5, (H2, H3), jnp.float32) * (1.0 / jnp.sqrt(H2))
    b3 = jax.random.normal(k6, (1, H3), jnp.float32) * 0.01
    return (w1, b1, w2, b2, w3, b3)


def reference_mlp(x_nchw, params):
    w1, b1, w2, b2, w3, b3 = params
    x = x_nchw.reshape(x_nchw.shape[0], -1)
    h = jnp.maximum(x @ w1 + b1, 0.0)
    h = jnp.maximum(h @ w2 + b2, 0.0)
    h = jnp.maximum(h @ w3 + b3, 0.0)
    return h


if __name__ == "__main__":
    key = jax.random.PRNGKey(0)
    kx, kp = jax.random.split(key)
    # module hard-codes 256*256*3 input features; keep batch small
    x = jax.random.normal(kx, (2, 3, 256, 256), jnp.float32)
    params = init_params(kp)

    out = baseline_mlp(x, params)
    out = jax.block_until_ready(out)

    ref = reference_mlp(x, params)
    assert out.shape == (2, 1)
    assert jnp.allclose(out, ref, rtol=1e-4, atol=1e-3), (out, ref)
    print("KERNEL_OK")
</pallas_src>

<mosaic_0001>
module attributes {stable_mosaic.version = 11 : i64} {
  func.func @fc1_partial_kernel(%arg0: i32, %arg1: i32, %arg2: memref<2x24576xf32, #tpu.memory_space<vmem>>, %arg3: memref<24576x128xf32, #tpu.memory_space<vmem>>, %arg4: memref<1x2x128xf32, #tpu.memory_space<vmem>>, %arg5: memref<2x128xf32, #tpu.memory_space<vmem>>) attributes {dimension_semantics = [#tpu.dimension_semantics<parallel>, #tpu.dimension_semantics<arbitrary>], iteration_bounds = array<i64: 2, 4>, scalar_prefetch = 0 : i64, scratch_operands = 1 : i64, tpu.core_type = #tpu.core_type<tc>, window_params = [{transform_indices = @transform_0, window_bounds = array<i64: 2, 24576>}, {transform_indices = @transform_1, window_bounds = array<i64: 24576, 128>}, {transform_indices = @transform_2, window_bounds = array<i64: 1, 2, 128>}]} {
    %c0_i32 = arith.constant 0 : i32
    %0 = arith.cmpi eq, %arg1, %c0_i32 : i32
    %1 = arith.extui %0 : i1 to i32
    %c0_i32_0 = arith.constant 0 : i32
    %2 = arith.cmpi ne, %1, %c0_i32_0 : i32
    scf.if %2 {
      %cst_9 = arith.constant 0.000000e+00 : f32
      %12 = vector.broadcast %cst_9 : f32 to vector<2x128xf32>
      %c0_10 = arith.constant 0 : index
      %c0_11 = arith.constant 0 : index
      %13 = vector.load %arg5[%c0_10, %c0_11] : memref<2x128xf32, #tpu.memory_space<vmem>>, vector<2x128xf32>
      tpu.vector_store %arg5[%c0_10, %c0_11], %12 {strides = array<i32>} : memref<2x128xf32, #tpu.memory_space<vmem>>, vector<2x128xf32>,
    } else {
    }
    %c0 = arith.constant 0 : index
    %c0_1 = arith.constant 0 : index
    %3 = vector.load %arg5[%c0, %c0_1] : memref<2x128xf32, #tpu.memory_space<vmem>>, vector<2x128xf32>
    %c0_2 = arith.constant 0 : index
    %c0_3 = arith.constant 0 : index
    %4 = vector.load %arg2[%c0_2, %c0_3] : memref<2x24576xf32, #tpu.memory_space<vmem>>, vector<2x24576xf32>
    %c0_4 = arith.constant 0 : index
    %c0_5 = arith.constant 0 : index
    %5 = vector.load %arg3[%c0_4, %c0_5] : memref<24576x128xf32, #tpu.memory_space<vmem>>, vector<24576x128xf32>
    %cst = arith.constant dense<0.000000e+00> : vector<2x128xf32>
    %6 = tpu.matmul %4, %5, %cst {dimension_numbers = #tpu.dot_dimension_numbers<[1], [0], [0], [1], [0, 0, 1, 1], [], []>} : vector<2x24576xf32>, vector<24576x128xf32>, vector<2x128xf32> -> vector<2x128xf32>
    %7 = arith.addf %3, %6 : vector<2x128xf32>
    %c0_6 = arith.constant 0 : index
    %c0_7 = arith.constant 0 : index
    %8 = vector.load %arg5[%c0_6, %c0_7] : memref<2x128xf32, #tpu.memory_space<vmem>>, vector<2x128xf32>
    tpu.vector_store %arg5[%c0_6, %c0_7], %7 {strides = array<i32>} : memref<2x128xf32, #tpu.memory_space<vmem>>, vector<2x128xf32>,
    %c3_i32 = arith.constant 3 : i32
    %9 = arith.cmpi eq, %arg1, %c3_i32 : i32
    %10 = arith.extui %9 : i1 to i32
    %c0_i32_8 = arith.constant 0 : i32
    %11 = arith.cmpi ne, %10, %c0_i32_8 : i32
    scf.if %11 {
      %c0_9 = arith.constant 0 : index
      %c0_10 = arith.constant 0 : index
      %12 = vector.load %arg5[%c0_9, %c0_10] : memref<2x128xf32, #tpu.memory_space<vmem>>, vector<2x128xf32>
      %13 = vector.shape_cast %12 : vector<2x128xf32> to vector<1x2x128xf32>
      %c0_11 = arith.constant 0 : index
      %c0_12 = arith.constant 0 : index
      %c0_13 = arith.constant 0 : index
      %14 = vector.load %arg4[%c0_11, %c0_12, %c0_13] : memref<1x2x128xf32, #tpu.memory_space<vmem>>, vector<1x2x128xf32>
      tpu.vector_store %arg4[%c0_11, %c0_12, %c0_13], %13 {strides = array<i32>} : memref<1x2x128xf32, #tpu.memory_space<vmem>>, vector<1x2x128xf32>,
    } else {
    }
    return
  }
  func.func @transform_0(%arg0: i32, %arg1: i32) -> (i32, i32) {
    %c4_i32 = arith.constant 4 : i32
    %0 = arith.muli %arg0, %c4_i32 : i32
    %1 = arith.addi %0, %arg1 : i32
    %c0_i32 = arith.constant 0 : i32
    %c0_i32_0 = arith.constant 0 : i32
    return %c0_i32, %1 : i32, i32
  }
  func.func @transform_1(%arg0: i32, %arg1: i32) -> (i32, i32) {
    %c4_i32 = arith.constant 4 : i32
    %0 = arith.muli %arg0, %c4_i32 : i32
    %1 = arith.addi %0, %arg1 : i32
    %c0_i32 = arith.constant 0 : i32
    %c0_i32_0 = arith.constant 0 : i32
    return %1, %c0_i32 : i32, i32
  }
  func.func @transform_2(%arg0: i32, %arg1: i32) -> (i32, i32, i32) {
    %c0_i32 = arith.constant 0 : i32
    %c0_i32_0 = arith.constant 0 : i32
    %c0_i32_1 = arith.constant 0 : i32
    return %arg0, %c0_i32, %c0_i32_0 : i32, i32, i32
  }
}

</mosaic_0001>

<bundles_post_ra>
// kernel: tpu_custom_call.1
= control target key start
LH: loop header
LB: loop body
LE: loop exit
PB: predicated region body
PF: predicated region fallthrough
CT: control target
= control target key end

     0   :  { %7 = vsyncpa [#allocation4], 0  ;;  %s18458_s0 = inlined_call_operand.hbm [shape: f32[2,196608], index: 0, kind: input, shape index: {}]   ;;  %s18459_s1 = inlined_call_operand.hbm [shape: f32[196608,128], index: 1, kind: input, shape index: {}]   ;;  %s18460_s2 = inlined_call_operand.hbm [shape: f32[2,2,128], index: 2, kind: output, shape index: {}]  }
   0x1   :  { %9 = vsyncpa [#allocation4 + $0x1], 0 }
   0x2   :  { %10 = vsyncpa [#allocation7], 0 }
   0x3   :  { %12 = vsyncpa [#allocation7 + $0x1], 0 }
   0x4   :  { %13 = vsyncpa [#allocation5], 0 }
   0x5   :  { %15 = vsyncpa [#allocation5 + $0x1], 0  ;;  %s15011_s9 = smov 0   ;;  %s15013_s10 = smov 0  }
   0x6   :  { %s15015_s11 = smov 0   ;;  %s15017_s12 = smov 0  }
   0x7   :  { %s15019_s13 = smov 0   ;;  %s15021_s14 = smov 0  }
   0x8   :  { %s15023_s15 = smov 0   ;;  %s15025_s16 = smov 0  }
   0x9   :  { %s15027_s17 = smov 0   ;;  %s15029_s18 = smov 0  }
   0xa   :  { %s15031_s19 = smov 0  }
   0xb LB: > { %18465 = sst [smem:[#allocation12_spill]] %s14979_s17  ;;  %s11262_s20 = sadd.s32 4294967295, %s14987_s19   ;;  %s14987_s19 = sphi %s15031_s19, %s21_s19   ;;  %s14983_s18 = sphi %s15029_s18, %s18480_s18   ;;  %s14979_s17 = sphi %s15027_s17, %s18479_s17   ;;  %s14975_s16 = sphi %s15025_s16, %s18478_s16   ;;  %s14971_s15 = sphi %s15023_s15, %s18477_s15   ;;  %s14967_s14 = sphi %s15021_s14, %s18486_s14   ;;  %s14963_s13 = sphi %s15019_s13, %s18485_s13   ;;  %s14959_s12 = sphi %s15017_s12, %s18484_s12   ;;  %s14955_s11 = sphi %s15015_s11, %s18483_s11   ;;  %s14951_s10 = sphi %s15013_s10, %s18482_s10   ;;  %s14947_s9 = sphi %s15011_s9, %s18481_s9  }
   0xc   : > { %18466 = sst [smem:[#allocation13_spill]] %s14983_s18  ;;  %s11263_s21 = sadd.s32 4294967294, %s14987_s19  }
   0xd   : > { %s30_s22 = sadd.s32 1, %s14979_s17  ;;  %s33_s23 = sadd.s32 1, %s14983_s18 }
   0xe   : > { %p31_p0 = scmp.ge.s32.totalorder %s30_s22, 4  ;;  %s11264_s24 = sshll.u32 %s14983_s18, 2 }
   0xf   : > { %s15070_s25 = sadd.s32 %s14979_s17, %s11264_s24  ;;  %s44_s26 = sadd.s32 1, %s14967_s14 }
  0x10   : > { %s18488_s22 = smov (%p31_p0, %s30_s22), 0  ;;  %s18490_s23 = smov (!%p31_p0, %s33_s23), %s14983_s18 }
  0x11   : > { %18467 = sst [smem:[#allocation14_spill]] %s18488_s22  ;;  %p51_p1 = scmp.ne.s32.totalorder %s14967_s14, %s14963_s13 }
  0x12   : > { %p52_p2 = scmp.eq.s32.totalorder %s14987_s19, 0  ;;  %p35_p3 = scmp.ge.s32.totalorder %s18490_s23, 2 }
  0x13   : > { %p57_p4 = scmp.ne.s32.totalorder %s14963_s13, %s14959_s12  ;;  %p58_p6 = scmp.eq.s32.totalorder %s11262_s20, 0 }
  0x14   : > { %p15080_p5 = por %p52_p2, %p51_p1  ;;  %s18492_s23 = smov (%p35_p3, %s18490_s23), 0 }
  0x15   : > { %18469 = sst [smem:[#allocation15_spill]] %s18492_s23  ;;  %p15086_p7 = por %p58_p6, %p57_p4 }
  0x16   : > { %s100_s29 = sadd.s32 1, %s14955_s11  ;;  %s11265_s30 = sshll.u32 %s18492_s23, 2 }
  0x17   : > { %s97_s3 = ssub.s32 %s14983_s18, %s18492_s23  ;;  %s40_s4 = sadd.s32 %s11265_s30, %s18488_s22 }
  0x18   : > { %p98_p8 = scmp.eq.s32.totalorder %s97_s3, 0  ;;  %s41_s5 = ssub.s32 %s15070_s25, %s40_s4 }
  0x19   : > { %p110_p9 = scmp.ne.s32.totalorder %s14955_s11, %s14951_s10  ;;  %p42_p10 = scmp.eq.s32.totalorder %s41_s5, 0 }
  0x1a   : > { %p111_p11 = scmp.eq.s32.totalorder %s11262_s20, 7  ;;  %p116_p13 = scmp.ne.s32.totalorder %s14951_s10, %s14947_s9 }
  0x1b   : > { %s15099_s6 = scalar_select %p98_p8, %s14955_s11, %s100_s29  }
  0x1c   : > { %s15102_s7 = scalar_select %p42_p10, %s14967_s14, %s44_s26  }
  0x1d   : > { %p15104_p12 = por %p111_p11, %p110_p9  ;;  %p117_p0 = scmp.eq.s32.totalorder %s11263_s21, 7 }
  0x1e   : > { %18471 = sst [smem:[#allocation16_spill]] %s15102_s7  ;;  %p14665_p1 = scmp.lt.s32.totalorder %s14987_s19, 8 }
  0x1f   : > { %s15114_s12 = sand.u32 1, %s14967_s14   ;;  %p15116_p2 = por %p117_p0, %p116_p13 }
  0x20   : > { %s14644_s20 = smul.u32 384, %s15114_s12  ;;  %p15123_p3 = pnand %p14665_p1, %p15080_p5 }
  0x21   : > { %s11282_s29 = smul.u32 6144, %s15070_s25  ;;  %p11274_p4 = scmp.ge.s32.totalorder %s14987_s19, 1 }
  0x22   : > { %s141_s4 = scalar_lea.vmem [#allocation3], %s14644_s20  ;;  %s11283_s23 = smul.u32 393216, %s15070_s25 }
  0x23   : > { %s149_s3 = scalar_lea.hbm %s18458_s0, %s11282_s29  ;;  %s151_s5 = sshll.u32 %s141_s4, 4  ;;  %s152_s5 = int_to_ptr.vmem [resolvable:$true] %s151_s5 }
  0x24   : > { %s138_s22 = scalar_lea.sflag [#allocation4], %s15114_s12  ;;  %p14809_p6 = pneg %p15123_p3 }
  0x25   : > { %s14820_s27 = scalar_lea.vmem %s152_s5, 6144  ;;  %s14989_s18 = smov [#allocation3]  }
  0x26   : > { %p14821_p5 = scmp.ne.s32.totalorder %s152_s5, %s14820_s27  ;;  %s14825_s17 = sshll.u32 %s14989_s18, 4  ;;  %s14826_s17 = int_to_ptr.vmem [resolvable:$false] %s14825_s17 }
  0x27   : > { %s14827_s7 = scalar_lea.vmem %s14826_s17, 12288  ;;  %p14828_p10 = scmp.lt.s32.totalorder %s152_s5, %s14826_s17 }
  0x28   : > { %p14823_p8 = pnand %p14821_p5, %p14809_p6  ;;  %p14829_p11 = scmp.lt.s32.totalorder %s14827_s7, %s14820_s27 }
  0x2a   : > { %p14824_p9 = pneg %p14823_p8  ;;  %p14830_p13 = por %p14829_p11, %p14828_p10 }
  0x2c   : > { %p14831_p0 = pnand %p14830_p13, %p14824_p9 }
  0x2e   : > { %14834 = shalt.err (!%p14831_p0)
}
  0x2f   : > { %14657 = dma.hbm_to_vmem [thread:$0]  (!%p15123_p3), %s149_s3, 6144, %s152_s5, %s138_s22  }
  0x30   : > { %p179_p1 = scmp.lt.s32.totalorder %s14987_s19, 9  ;;  %s14645_s25 = smul.u32 24576, %s15114_s12 }
  0x31   : > { %s170_s18 = scalar_lea.hbm %s18459_s1, %s11283_s23  ;;  %s159_s30 = scalar_lea.sflag [#allocation7], %s15114_s12 }
  0x32   : > { %p15148_p5 = pnand %p11274_p4, %p179_p1  ;;  %s162_s7 = scalar_lea.vmem [#allocation6], %s14645_s25 }
  0x33   : > { %s171_s21 = sshll.u32 %s162_s7, 4  ;;  %s14990_s22 = smov [#allocation6]   ;;  %s172_s21 = int_to_ptr.vmem [resolvable:$true] %s171_s21 }
  0x34   : > { %s14848_s4 = scalar_lea.vmem %s172_s21, 393216  ;;  %s14853_s3 = sshll.u32 %s14990_s22, 4  ;;  %s14854_s3 = int_to_ptr.vmem [resolvable:$false] %s14853_s3 }
  0x35   : > { %p14849_p8 = scmp.ne.s32.totalorder %s172_s21, %s14848_s4  ;;  %s14855_s5 = scalar_lea.vmem %s14854_s3, 786432 }
  0x36   : > { %p14856_p11 = scmp.lt.s32.totalorder %s172_s21, %s14854_s3  ;;  %p14857_p13 = scmp.lt.s32.totalorder %s14855_s5, %s14848_s4 }
  0x37   : > { %p14851_p9 = pnand %p14849_p8, %p14809_p6 }
  0x38   : > { %p14858_p4 = por %p14857_p13, %p14856_p11 }
  0x39   : > { %p14852_p10 = pneg %p14851_p9 }
  0x3b   : > { %p14859_p0 = pnand %p14858_p4, %p14852_p10 }
  0x3d   : > { %14862 = shalt.err (!%p14859_p0)
}
  0x3e   : > { %s14991_s23 = smov 128   ;;  %s14992_s27 = smov 8  }
  0x3f   : > { %14660 = dma.hbm_to_vmem [thread:$0]  (!%p15123_p3), %s170_s18, 393216, %s172_s21, %s159_s30, %s14991_s23, %s14991_s23, %s14992_s27  }
  0x40   : > { %183 = sbr.rel (%p15148_p5) target bundleno = 1951 (0x79f), region = 28  ;;  %s185_s12 = sand.u32 (!%p15148_p5), 1, %s14963_s13  }
  0x41   : > { %s14646_s25 = smul.u32 (!%p15148_p5), 384, %s185_s12  ;;  %s186_s20 = scalar_lea.sflag (!%p15148_p5), [#allocation4], %s185_s12 }
  0x43   : > { %s15161_s29 = scalar_lea.vmem (!%p15148_p5), [#allocation3], %s14646_s25 }
  0x45   : > { %14934 = dma.done.wait (%p15086_p7), %s186_s20, 6144  }
  0x46   : > { %14936 = vsyncadd (%p15086_p7), %s186_s20, 4294961152  ;;  %s14647_s7 = smul.u32 24576, %s185_s12  ;;  %s195_s4 = scalar_lea.sflag [#allocation7], %s185_s12 }
  0x48   : > { %s15167_s26 = scalar_lea.vmem [#allocation6], %s14647_s7 }
  0x49   : > { %14938 = dma.done.wait (%p15086_p7), %s195_s4, 393216  }
  0x4a   : > { %14940 = vsyncadd (%p15086_p7), %s195_s4, 4294574080  ;;  %s221_s18 = sand.u32 1, %s14951_s10   ;;  %p11276_p3 = scmp.ne.s32.totalorder %s14971_s15, 0 }
  0x4b   : > { %s15176_s17 = sshll.u32 %s221_s18, 1 }
  0x4c   : > { %s223_s21 = scalar_lea.vmem [#allocation8], %s15176_s17  ;;  %233 = sbr.rel (%p11276_p3) target bundleno = 83 (0x53), region = 40 }
  0x51   : > { %v14993_v0 = vmov 0.0  }
  0x52   : > { %234 = vst [vmem:[#allocation2] sm:$0x3] %v14993_v0 }
  0x53 PF: > { %v315_v1 = vld [vmem:[%s15167_s26 + $0xf8] sm:$0xff]  ;;  %v314_v5 = vld [vmem:[%s15167_s26 + $0xf0] sm:$0xff]  ;;  %v313_v9 = vld [vmem:[%s15167_s26 + $0xe8] sm:$0xff]  ;;  %v14994_v31 = vmov 1983009808   ;;  %v3408_v33 = vlaneseq  ;;  %p11277_p7 = scmp.ne.s32.totalorder %s14971_s15, 3 }
  0x54   : > { %v347_v2 = vld [vmem:[%s15167_s26 + $0x1f8] sm:$0xff]  ;;  %11284 = vmatprep.subr.mxu0 %v315_v1  ;;  %v346_v6 = vld [vmem:[%s15167_s26 + $0x1f0] sm:$0xff]  ;;  %v345_v10 = vld [vmem:[%s15167_s26 + $0x1e8] sm:$0xff]  ;;  %v3406_v32 = vunpack.c.l.s4 %v14994_v31 }
  0x55   : > { %v299_v3 = vld [vmem:[%s15167_s26 + $0x78] sm:$0xff]  ;;  %11319 = vmatprep.subr.mxu1 %v347_v2  ;;  %v298_v7 = vld [vmem:[%s15167_s26 + $0x70] sm:$0xff]  ;;  %v297_v11 = vld [vmem:[%s15167_s26 + $0x68] sm:$0xff]  ;;  %v3409_v43 = vshrl.u32 %v3408_v33, 7 }
  0x56   : > { %v331_v4 = vld [vmem:[%s15167_s26 + $0x178] sm:$0xff]  ;;  %11285 = vmatpush3.msra.mxu0 %v299_v3  ;;  %v330_v8 = vld [vmem:[%s15167_s26 + $0x170] sm:$0xff]  ;;  %v329_v12 = vld [vmem:[%s15167_s26 + $0x168] sm:$0xff]  ;;  %v3407_v42 = vunpack.c.0.s8 %v3406_v32 }
  0x57   : > { %11320 = vmatpush3.msra.mxu1 %v331_v4  ;;  %11286 = vmatprep.subr.mxu0 %v314_v5  ;;  %v312_v13 = vld [vmem:[%s15167_s26 + $0xe0] sm:$0xff]  ;;  %v311_v17 = vld [vmem:[%s15167_s26 + $0xd8] sm:$0xff]  ;;  %v310_v21 = vld [vmem:[%s15167_s26 + $0xd0] sm:$0xff] }
  0x58   : > { %11321 = vmatprep.subr.mxu1 %v346_v6  ;;  %11287 = vmatpush3.msra.mxu0 %v298_v7  ;;  %v344_v14 = vld [vmem:[%s15167_s26 + $0x1e0] sm:$0xff]  ;;  %v343_v18 = vld [vmem:[%s15167_s26 + $0x1d8] sm:$0xff]  ;;  %v342_v22 = vld [vmem:[%s15167_s26 + $0x1d0] sm:$0xff]  ;;  %v15226_v52 = vsub.s32 %v3407_v42, %v3409_v43 }
  0x59   : > { %11322 = vmatpush3.msra.mxu1 %v330_v8  ;;  %11288 = vmatprep.subr.mxu0 %v313_v9  ;;  %v296_v15 = vld [vmem:[%s15167_s26 + $0x60] sm:$0xff]  ;;  %v295_v19 = vld [vmem:[%s15167_s26 + $0x58] sm:$0xff]  ;;  %v294_v23 = vld [vmem:[%s15167_s26 + $0x50] sm:$0xff] }
  0x5a   : > { %11323 = vmatprep.subr.mxu1 %v345_v10  ;;  %v328_v16 = vld [vmem:[%s15167_s26 + $0x160] sm:$0xff]  ;;  %11289 = vmatpush3.msra.mxu0 %v297_v11  ;;  %v327_v20 = vld [vmem:[%s15167_s26 + $0x158] sm:$0xff]  ;;  %v326_v24 = vld [vmem:[%s15167_s26 + $0x150] sm:$0xff] }
  0x5b   : > { %11324 = vmatpush3.msra.mxu1 %v329_v12  ;;  %11290 = vmatprep.subr.mxu0 %v312_v13  ;;  %v309_v25 = vld [vmem:[%s15167_s26 + $0xc8] sm:$0xff]  ;;  %v308_v29 = vld [vmem:[%s15167_s26 + $0xc0] sm:$0xff]  ;;  %v307_v36 = vld [vmem:[%s15167_s26 + $0xb8] sm:$0xff] }
  0x5c   : > { %11325 = vmatprep.subr.mxu1 %v344_v14  ;;  %11291 = vmatpush3.msra.mxu0 %v296_v15  ;;  %v341_v26 = vld [vmem:[%s15167_s26 + $0x1c8] sm:$0xff]  ;;  %v340_v30 = vld [vmem:[%s15167_s26 + $0x1c0] sm:$0xff]  ;;  %v339_v37 = vld [vmem:[%s15167_s26 + $0x1b8] sm:$0xff] }
  0x5d   : > { %11326 = vmatpush3.msra.mxu1 %v328_v16  ;;  %11292 = vmatprep.subr.mxu0 %v311_v17  ;;  %v293_v27 = vld [vmem:[%s15167_s26 + $0x48] sm:$0xff]  ;;  %v292_v34 = vld [vmem:[%s15167_s26 + $0x40] sm:$0xff]  ;;  %v291_v38 = vld [vmem:[%s15167_s26 + $0x38] sm:$0xff] }
  0x5e   : > { %11327 = vmatprep.subr.mxu1 %v343_v18  ;;  %11293 = vmatpush3.msra.mxu0 %v295_v19  ;;  %v325_v28 = vld [vmem:[%s15167_s26 + $0x148] sm:$0xff]  ;;  %v324_v35 = vld [vmem:[%s15167_s26 + $0x140] sm:$0xff]  ;;  %v323_v39 = vld [vmem:[%s15167_s26 + $0x138] sm:$0xff] }
  0x5f   : > { %11328 = vmatpush3.msra.mxu1 %v327_v20  ;;  %11294 = vmatprep.subr.mxu0 %v310_v21  ;;  %v306_v40 = vld [vmem:[%s15167_s26 + $0xb0] sm:$0xff]  ;;  %v305_v46 = vld [vmem:[%s15167_s26 + $0xa8] sm:$0xff]  ;;  %v304_v50 = vld [vmem:[%s15167_s26 + $0xa0] sm:$0xff] }
  0x60   : > { %11329 = vmatprep.subr.mxu1 %v342_v22  ;;  %11295 = vmatpush3.msra.mxu0 %v294_v23  ;;  %v338_v41 = vld [vmem:[%s15167_s26 + $0x1b0] sm:$0xff]  ;;  %v337_v47 = vld [vmem:[%s15167_s26 + $0x1a8] sm:$0xff]  ;;  %v336_v51 = vld [vmem:[%s15167_s26 + $0x1a0] sm:$0xff] }
  0x61   : > { %11330 = vmatpush3.msra.mxu1 %v326_v24  ;;  %11296 = vmatprep.subr.mxu0 %v309_v25  ;;  %v290_v44 = vld [vmem:[%s15167_s26 + $0x30] sm:$0xff]  ;;  %v289_v48 = vld [vmem:[%s15167_s26 + $0x28] sm:$0xff]  ;;  %v288_v53 = vld [vmem:[%s15167_s26 + $0x20] sm:$0xff] }
  0x62   : > { %11331 = vmatprep.subr.mxu1 %v341_v26  ;;  %11297 = vmatpush3.msra.mxu0 %v293_v27  ;;  %v322_v45 = vld [vmem:[%s15167_s26 + $0x130] sm:$0xff]  ;;  %v321_v49 = vld [vmem:[%s15167_s26 + $0x128] sm:$0xff]  ;;  %v320_v54 = vld [vmem:[%s15167_s26 + $0x120] sm:$0xff] }
  0x63   : > { %11332 = vmatpush3.msra.mxu1 %v325_v28  ;;  %11298 = vmatprep.subr.mxu0 %v308_v29  ;;  %v236_v55 = vld [vmem:[%s15161_s29] sm:$0xff]  ;;  %v303_v56 = vld [vmem:[%s15167_s26 + $0x98] sm:$0xff]  ;;  %v302_v61 = vld [vmem:[%s15167_s26 + $0x90] sm:$0xff] }
  0x64   : > { %11333 = vmatprep.subr.mxu1 %v340_v30  ;;  %11299 = vmatpush3.msra.mxu0 %v292_v34  ;;  %v335_v57 = vld [vmem:[%s15167_s26 + $0x198] sm:$0xff]  ;;  %v3404_v58 = vcombine.high %v236_v55, %v236_v55  ;;  %v334_v62 = vld [vmem:[%s15167_s26 + $0x190] sm:$0xff]  ;;  %v3411_v63 = vrot.slane %v236_v55, %v15226_v52  ;;  %v301_v3 = vld [vmem:[%s15167_s26 + $0x88] sm:$0xff] }
  0x65   : > { %11334 = vmatpush3.msra.mxu1 %v324_v35  ;;  %11300 = vmatprep.subr.mxu0 %v307_v36  ;;  %v287_v59 = vld [vmem:[%s15167_s26 + $0x18] sm:$0xff]  ;;  %v286_v0 = vld [vmem:[%s15167_s26 + $0x10] sm:$0xff]  ;;  %v333_v4 = vld [vmem:[%s15167_s26 + $0x188] sm:$0xff] }
  0x66   : > { %11335 = vmatprep.subr.mxu1 %v339_v37  ;;  %11301 = vmatpush3.msra.mxu0 %v291_v38  ;;  %v319_v60 = vld [vmem:[%s15167_s26 + $0x118] sm:$0xff]  ;;  %v318_v1 = vld [vmem:[%s15167_s26 + $0x110] sm:$0xff]  ;;  %v3418_v2 = vrot.slane %v3404_v58, %v15226_v52  ;;  %v285_v5 = vld [vmem:[%s15167_s26 + $0x8] sm:$0xff]  ;;  %v3419_v9 = vcombine.high %v3411_v63, %v3411_v63 }
  0x67   : > { %11336 = vmatpush3.msra.mxu1 %v323_v39  ;;  %11302 = vmatprep.subr.mxu0 %v306_v40  ;;  %v317_v6 = vld [vmem:[%s15167_s26 + $0x108] sm:$0xff]  ;;  %v300_v7 = vld [vmem:[%s15167_s26 + $0x80] sm:$0xff]  ;;  %v379_v13 = vld [vmem:[%s15167_s26 + $0x2f8] sm:$0xff] }
  0x68   : > { %11337 = vmatprep.subr.mxu1 %v338_v41  ;;  %11303 = vmatpush3.msra.mxu0 %v290_v44  ;;  %v332_v8 = vld [vmem:[%s15167_s26 + $0x180] sm:$0xff]  ;;  %v3420_v11 = vcombine.high %v3418_v2, %v3418_v2  ;;  %v411_v14 = vld [vmem:[%s15167_s26 + $0x3f8] sm:$0xff]  ;;  %v378_v17 = vld [vmem:[%s15167_s26 + $0x2f0] sm:$0xff] }
  0x69   : > { %11338 = vmatpush3.msra.mxu1 %v322_v45  ;;  %11304 = vmatprep.subr.mxu0 %v305_v46  ;;  %v284_v10 = vld [vmem:[%s15167_s26] sm:$0xff]  ;;  %v363_v15 = vld [vmem:[%s15167_s26 + $0x278] sm:$0xff]  ;;  %v410_v18 = vld [vmem:[%s15167_s26 + $0x3f0] sm:$0xff] }
  0x6a   : > { %11339 = vmatprep.subr.mxu1 %v337_v47  ;;  %11305 = vmatpush3.msra.mxu0 %v289_v48  ;;  %v316_v12 = vld [vmem:[%s15167_s26 + $0x100] sm:$0xff]  ;;  %v395_v16 = vld [vmem:[%s15167_s26 + $0x378] sm:$0xff]  ;;  %v362_v19 = vld [vmem:[%s15167_s26 + $0x270] sm:$0xff] }
  0x6b   : > { %11340 = vmatpush3.msra.mxu1 %v321_v49  ;;  %11306 = vmatprep.subr.mxu0 %v304_v50  ;;  %v394_v20 = vld [vmem:[%s15167_s26 + $0x370] sm:$0xff]  ;;  %v377_v21 = vld [vmem:[%s15167_s26 + $0x2e8] sm:$0xff]  ;;  %v376_v25 = vld [vmem:[%s15167_s26 + $0x2e0] sm:$0xff] }
  0x6c   : > { %11341 = vmatprep.subr.mxu1 %v336_v51  ;;  %11307 = vmatpush3.msra.mxu0 %v288_v53  ;;  %v409_v22 = vld [vmem:[%s15167_s26 + $0x3e8] sm:$0xff]  ;;  %v408_v26 = vld [vmem:[%s15167_s26 + $0x3e0] sm:$0xff]  ;;  %v375_v29 = vld [vmem:[%s15167_s26 + $0x2d8] sm:$0xff] }
  0x6d   : > { %11342 = vmatpush3.msra.mxu1 %v320_v54  ;;  %11308 = vmatprep.subr.mxu0 %v303_v56  ;;  %v361_v23 = vld [vmem:[%s15167_s26 + $0x268] sm:$0xff]  ;;  %v360_v27 = vld [vmem:[%s15167_s26 + $0x260] sm:$0xff]  ;;  %v407_v30 = vld [vmem:[%s15167_s26 + $0x3d8] sm:$0xff] }
  0x6e   : > { %11343 = vmatprep.subr.mxu1 %v335_v57  ;;  %11309 = vmatpush3.msra.mxu0 %v287_v59  ;;  %v393_v24 = vld [vmem:[%s15167_s26 + $0x368] sm:$0xff]  ;;  %v392_v28 = vld [vmem:[%s15167_s26 + $0x360] sm:$0xff]  ;;  %v359_v31 = vld [vmem:[%s15167_s26 + $0x258] sm:$0xff] }
  0x6f   : > { %11344 = vmatpush3.msra.mxu1 %v319_v60  ;;  %11310 = vmatprep.subr.mxu0 %v302_v61  ;;  %v391_v32 = vld [vmem:[%s15167_s26 + $0x358] sm:$0xff]  ;;  %v374_v33 = vld [vmem:[%s15167_s26 + $0x2d0] sm:$0xff]  ;;  %v373_v37 = vld [vmem:[%s15167_s26 + $0x2c8] sm:$0xff] }
  0x70   : > { %11345 = vmatprep.subr.mxu1 %v334_v62  ;;  %11311 = vmatpush3.msra.mxu0 %v286_v0  ;;  %v406_v34 = vld [vmem:[%s15167_s26 + $0x3d0] sm:$0xff]  ;;  %v405_v38 = vld [vmem:[%s15167_s26 + $0x3c8] sm:$0xff]  ;;  %v372_v41 = vld [vmem:[%s15167_s26 + $0x2c0] sm:$0xff] }
  0x71   : > { %11346 = vmatpush3.msra.mxu1 %v318_v1  ;;  %11312 = vmatprep.subr.mxu0 %v301_v3  ;;  %v358_v35 = vld [vmem:[%s15167_s26 + $0x250] sm:$0xff]  ;;  %v357_v39 = vld [vmem:[%s15167_s26 + $0x248] sm:$0xff]  ;;  %v404_v42 = vld [vmem:[%s15167_s26 + $0x3c0] sm:$0xff] }
  0x72   : > { %11347 = vmatprep.subr.mxu1 %v333_v4  ;;  %11313 = vmatpush3.msra.mxu0 %v285_v5  ;;  %v390_v36 = vld [vmem:[%s15167_s26 + $0x350] sm:$0xff]  ;;  %v389_v40 = vld [vmem:[%s15167_s26 + $0x348] sm:$0xff]  ;;  %v356_v43 = vld [vmem:[%s15167_s26 + $0x240] sm:$0xff] }
  0x73   : > { %11348 = vmatpush3.msra.mxu1 %v317_v6  ;;  %11314 = vmatprep.subr.mxu0 %v300_v7  ;;  %v388_v44 = vld [vmem:[%s15167_s26 + $0x340] sm:$0xff]  ;;  %v371_v45 = vld [vmem:[%s15167_s26 + $0x2b8] sm:$0xff]  ;;  %v370_v49 = vld [vmem:[%s15167_s26 + $0x2b0] sm:$0xff] }
  0x74   : > { %11349 = vmatprep.subr.mxu1 %v332_v8  ;;  %11315 = vmatpush3.msra.mxu0 %v284_v10  ;;  %v403_v46 = vld [vmem:[%s15167_s26 + $0x3b8] sm:$0xff]  ;;  %v402_v50 = vld [vmem:[%s15167_s26 + $0x3b0] sm:$0xff]  ;;  %v369_v54 = vld [vmem:[%s15167_s26 + $0x2a8] sm:$0xff] }
  0x75   : > { %4476 = vmatprep.mubr.f32.mxu0 %v3419_v9  ;;  %11350 = vmatpush3.msra.mxu1 %v316_v12  ;;  %v355_v47 = vld [vmem:[%s15167_s26 + $0x238] sm:$0xff]  ;;  %v354_v51 = vld [vmem:[%s15167_s26 + $0x230] sm:$0xff]  ;;  %v401_v55 = vld [vmem:[%s15167_s26 + $0x3a8] sm:$0xff] }
  0x76   : > { %4546 = vmatprep.mubr.f32.mxu1 %v3420_v11  ;;  %4477 = vmatmul.mubr.f32.vlgmr.msra.gmra.mxu0 %v3411_v63  ;;  %v387_v48 = vld [vmem:[%s15167_s26 + $0x338] sm:$0xff]  ;;  %v386_v53 = vld [vmem:[%s15167_s26 + $0x330] sm:$0xff]  ;;  %v353_v56 = vld [vmem:[%s15167_s26 + $0x228] sm:$0xff] }
  0x77   : > { %4547 = vmatmul.mubr.f32.vlgmr.msra.gmra.mxu1 %v3418_v2  ;;  %11354 = vmatprep.subr.mxu0 %v379_v13  ;;  %v385_v57 = vld [vmem:[%s15167_s26 + $0x328] sm:$0xff]  ;;  %v368_v59 = vld [vmem:[%s15167_s26 + $0x2a0] sm:$0xff]  ;;  %v367_v63 = vld [vmem:[%s15167_s26 + $0x298] sm:$0xff] }
  0x78   : > { %11389 = vmatprep.subr.mxu1 %v411_v14  ;;  %11355 = vmatpush3.msra.mxu0 %v363_v15  ;;  %v237_v58 = vld [vmem:[%s15161_s29 + $0x8] sm:$0xff]  ;;  %v400_v60 = vld [vmem:[%s15167_s26 + $0x3a0] sm:$0xff]  ;;  %v399_v0 = vld [vmem:[%s15167_s26 + $0x398] sm:$0xff] }
  0x79   : > { %11390 = vmatpush3.msra.mxu1 %v395_v16  ;;  %11356 = vmatprep.subr.mxu0 %v378_v17  ;;  %v352_v61 = vld [vmem:[%s15167_s26 + $0x220] sm:$0xff]  ;;  %v3421_v1 = vcombine.high %v237_v58, %v237_v58  ;;  %v351_v2 = vld [vmem:[%s15167_s26 + $0x218] sm:$0xff]  ;;  %v366_v4 = vld [vmem:[%s15167_s26 + $0x290] sm:$0xff]  ;;  %v3428_v6 = vrot.slane %v237_v58, %v15226_v52 }
  0x7a   : > { %11391 = vmatprep.subr.mxu1 %v410_v18  ;;  %11357 = vmatpush3.msra.mxu0 %v362_v19  ;;  %v384_v62 = vld [vmem:[%s15167_s26 + $0x320] sm:$0xff]  ;;  %v383_v3 = vld [vmem:[%s15167_s26 + $0x318] sm:$0xff]  ;;  %v398_v5 = vld [vmem:[%s15167_s26 + $0x390] sm:$0xff] }
  0x7b   : > { %11392 = vmatpush3.msra.mxu1 %v394_v20  ;;  %11358 = vmatprep.subr.mxu0 %v377_v21  ;;  %v350_v7 = vld [vmem:[%s15167_s26 + $0x210] sm:$0xff]  ;;  %v365_v9 = vld [vmem:[%s15167_s26 + $0x288] sm:$0xff]  ;;  %v3435_v11 = vrot.slane %v3421_v1, %v15226_v52  ;;  %v364_v14 = vld [vmem:[%s15167_s26 + $0x280] sm:$0xff]  ;;  %v3436_v16 = vcombine.high %v3428_v6, %v3428_v6 }
  0x7c   : > { %11393 = vmatprep.subr.mxu1 %v409_v22  ;;  %11359 = vmatpush3.msra.mxu0 %v361_v23  ;;  %v382_v8 = vld [vmem:[%s15167_s26 + $0x310] sm:$0xff]  ;;  %v397_v10 = vld [vmem:[%s15167_s26 + $0x388] sm:$0xff]  ;;  %v396_v15 = vld [vmem:[%s15167_s26 + $0x380] sm:$0xff] }
  0x7d   : > { %11394 = vmatpush3.msra.mxu1 %v393_v24  ;;  %11360 = vmatprep.subr.mxu0 %v376_v25  ;;  %v349_v12 = vld [vmem:[%s15167_s26 + $0x208] sm:$0xff]  ;;  %v348_v17 = vld [vmem:[%s15167_s26 + $0x200] sm:$0xff]  ;;  %v3437_v19 = vcombine.high %v3435_v11, %v3435_v11  ;;  %v443_v20 = vld [vmem:[%s15167_s26 + $0x4f8] sm:$0xff] }
  0x7e   : > { %11395 = vmatprep.subr.mxu1 %v408_v26  ;;  %11361 = vmatpush3.msra.mxu0 %v360_v27  ;;  %v381_v13 = vld [vmem:[%s15167_s26 + $0x308] sm:$0xff]  ;;  %v380_v18 = vld [vmem:[%s15167_s26 + $0x300] sm:$0xff]  ;;  %v475_v21 = vld [vmem:[%s15167_s26 + $0x5f8] sm:$0xff] }
  0x7f   : > { %11396 = vmatpush3.msra.mxu1 %v392_v28  ;;  %11362 = vmatprep.subr.mxu0 %v375_v29  ;;  %v427_v22 = vld [vmem:[%s15167_s26 + $0x478] sm:$0xff]  ;;  %v442_v24 = vld [vmem:[%s15167_s26 + $0x4f0] sm:$0xff]  ;;  %v441_v28 = vld [vmem:[%s15167_s26 + $0x4e8] sm:$0xff] }
  0x80   : > { %11397 = vmatprep.subr.mxu1 %v407_v30  ;;  %11363 = vmatpush3.msra.mxu0 %v359_v31  ;;  %v459_v23 = vld [vmem:[%s15167_s26 + $0x578] sm:$0xff]  ;;  %v474_v25 = vld [vmem:[%s15167_s26 + $0x5f0] sm:$0xff]  ;;  %v473_v29 = vld [vmem:[%s15167_s26 + $0x5e8] sm:$0xff] }
  0x81   : > { %11398 = vmatpush3.msra.mxu1 %v391_v32  ;;  %11364 = vmatprep.subr.mxu0 %v374_v33  ;;  %v426_v26 = vld [vmem:[%s15167_s26 + $0x470] sm:$0xff]  ;;  %v425_v30 = vld [vmem:[%s15167_s26 + $0x468] sm:$0xff]  ;;  %v440_v32 = vld [vmem:[%s15167_s26 + $0x4e0] sm:$0xff] }
  0x82   : > { %11399 = vmatprep.subr.mxu1 %v406_v34  ;;  %11365 = vmatpush3.msra.mxu0 %v358_v35  ;;  %v458_v27 = vld [vmem:[%s15167_s26 + $0x570] sm:$0xff]  ;;  %v457_v31 = vld [vmem:[%s15167_s26 + $0x568] sm:$0xff]  ;;  %v472_v33 = vld [vmem:[%s15167_s26 + $0x5e0] sm:$0xff] }
  0x83   : > { %11400 = vmatpush3.msra.mxu1 %v390_v36  ;;  %11366 = vmatprep.subr.mxu0 %v373_v37  ;;  %v424_v34 = vld [vmem:[%s15167_s26 + $0x460] sm:$0xff]  ;;  %v439_v36 = vld [vmem:[%s15167_s26 + $0x4d8] sm:$0xff]  ;;  %v466_v58 = vld [vmem:[%s15167_s26 + $0x5b0] sm:$0xff] }
  0x84   : > { %11401 = vmatprep.subr.mxu1 %v405_v38  ;;  %11367 = vmatpush3.msra.mxu0 %v357_v39  ;;  %v456_v35 = vld [vmem:[%s15167_s26 + $0x560] sm:$0xff]  ;;  %v471_v37 = vld [vmem:[%s15167_s26 + $0x5d8] sm:$0xff]  ;;  %v238_v1 = vld [vmem:[%s15161_s29 + $0x10] sm:$0xff] }
  0x85   : > { %11402 = vmatpush3.msra.mxu1 %v389_v40  ;;  %11368 = vmatprep.subr.mxu0 %v372_v41  ;;  %v423_v38 = vld [vmem:[%s15167_s26 + $0x458] sm:$0xff]  ;;  %v438_v40 = vld [vmem:[%s15167_s26 + $0x4d0] sm:$0xff] }
  0x86   : > { %11403 = vmatprep.subr.mxu1 %v404_v42  ;;  %11369 = vmatpush3.msra.mxu0 %v356_v43  ;;  %v455_v39 = vld [vmem:[%s15167_s26 + $0x558] sm:$0xff]  ;;  %v470_v41 = vld [vmem:[%s15167_s26 + $0x5d0] sm:$0xff] }
  0x87   : > { %11404 = vmatpush3.msra.mxu1 %v388_v44  ;;  %11370 = vmatprep.subr.mxu0 %v371_v45  ;;  %v422_v42 = vld [vmem:[%s15167_s26 + $0x450] sm:$0xff]  ;;  %v437_v44 = vld [vmem:[%s15167_s26 + $0x4c8] sm:$0xff] }
  0x88   : > { %11405 = vmatprep.subr.mxu1 %v403_v46  ;;  %11371 = vmatpush3.msra.mxu0 %v355_v47  ;;  %v454_v43 = vld [vmem:[%s15167_s26 + $0x550] sm:$0xff]  ;;  %v469_v45 = vld [vmem:[%s15167_s26 + $0x5c8] sm:$0xff] }
  0x89   : > { %11406 = vmatpush3.msra.mxu1 %v387_v48  ;;  %11372 = vmatprep.subr.mxu0 %v370_v49  ;;  %v421_v46 = vld [vmem:[%s15167_s26 + $0x448] sm:$0xff]  ;;  %v436_v48 = vld [vmem:[%s15167_s26 + $0x4c0] sm:$0xff] }
  0x8a   : > { %11407 = vmatprep.subr.mxu1 %v402_v50  ;;  %11373 = vmatpush3.msra.mxu0 %v354_v51  ;;  %v453_v47 = vld [vmem:[%s15167_s26 + $0x548] sm:$0xff]  ;;  %v468_v49 = vld [vmem:[%s15167_s26 + $0x5c0] sm:$0xff] }
  0x8b   : > { %11408 = vmatpush3.msra.mxu1 %v386_v53  ;;  %11374 = vmatprep.subr.mxu0 %v369_v54  ;;  %v420_v50 = vld [vmem:[%s15167_s26 + $0x440] sm:$0xff]  ;;  %v435_v53 = vld [vmem:[%s15167_s26 + $0x4b8] sm:$0xff] }
  0x8c   : > { %11409 = vmatprep.subr.mxu1 %v401_v55  ;;  %11375 = vmatpush3.msra.mxu0 %v353_v56  ;;  %v452_v51 = vld [vmem:[%s15167_s26 + $0x540] sm:$0xff]  ;;  %v467_v54 = vld [vmem:[%s15167_s26 + $0x5b8] sm:$0xff] }
  0x8d   : > { %11410 = vmatpush3.msra.mxu1 %v385_v57  ;;  %11376 = vmatprep.subr.mxu0 %v368_v59  ;;  %v419_v55 = vld [vmem:[%s15167_s26 + $0x438] sm:$0xff]  ;;  %v434_v57 = vld [vmem:[%s15167_s26 + $0x4b0] sm:$0xff] }
  0x8e   : > { %11411 = vmatprep.subr.mxu1 %v400_v60  ;;  %11377 = vmatpush3.msra.mxu0 %v352_v61  ;;  %v451_v56 = vld [vmem:[%s15167_s26 + $0x538] sm:$0xff]  ;;  %v418_v59 = vld [vmem:[%s15167_s26 + $0x430] sm:$0xff]  ;;  %v433_v61 = vld [vmem:[%s15167_s26 + $0x4a8] sm:$0xff] }
  0x8f   : > { %11412 = vmatpush3.msra.mxu1 %v384_v62  ;;  %11378 = vmatprep.subr.mxu0 %v367_v63  ;;  %v450_v60 = vld [vmem:[%s15167_s26 + $0x530] sm:$0xff]  ;;  %v465_v62 = vld [vmem:[%s15167_s26 + $0x5a8] sm:$0xff] }
  0x90   : > { %11413 = vmatprep.subr.mxu1 %v399_v0  ;;  %11379 = vmatpush3.msra.mxu0 %v351_v2  ;;  %v417_v63 = vld [vmem:[%s15167_s26 + $0x428] sm:$0xff]  ;;  %v432_v2 = vld [vmem:[%s15167_s26 + $0x4a0] sm:$0xff] }
  0x91   : > { %11414 = vmatpush3.msra.mxu1 %v383_v3  ;;  %11380 = vmatprep.subr.mxu0 %v366_v4  ;;  %v449_v0 = vld [vmem:[%s15167_s26 + $0x528] sm:$0xff]  ;;  %v464_v3 = vld [vmem:[%s15167_s26 + $0x5a0] sm:$0xff] }
  0x92   : > { %11415 = vmatprep.subr.mxu1 %v398_v5  ;;  %11381 = vmatpush3.msra.mxu0 %v350_v7  ;;  %v416_v4 = vld [vmem:[%s15167_s26 + $0x420] sm:$0xff]  ;;  %v463_v7 = vld [vmem:[%s15167_s26 + $0x598] sm:$0xff] }
  0x93   : > { %11416 = vmatpush3.msra.mxu1 %v382_v8  ;;  %11382 = vmatprep.subr.mxu0 %v365_v9  ;;  %v448_v5 = vld [vmem:[%s15167_s26 + $0x520] sm:$0xff]  ;;  %v3438_v8 = vcombine.high %v238_v1, %v238_v1  ;;  %v415_v9 = vld [vmem:[%s15167_s26 + $0x418] sm:$0xff] }
  0x94   : > { %11417 = vmatprep.subr.mxu1 %v397_v10  ;;  %11383 = vmatpush3.msra.mxu0 %v349_v12  ;;  %v447_v10 = vld [vmem:[%s15167_s26 + $0x518] sm:$0xff]  ;;  %v462_v12 = vld [vmem:[%s15167_s26 + $0x590] sm:$0xff] }
  0x95   : > { %11418 = vmatpush3.msra.mxu1 %v381_v13  ;;  %11384 = vmatprep.subr.mxu0 %v364_v14  ;;  %v3445_v13 = vrot.slane %v238_v1, %v15226_v52  ;;  %v414_v14 = vld [vmem:[%s15167_s26 + $0x410] sm:$0xff] }
  0x96   : > { %11419 = vmatprep.subr.mxu1 %v396_v15  ;;  %11385 = vmatpush3.msra.mxu0 %v348_v17  ;;  %v446_v15 = vld [vmem:[%s15167_s26 + $0x510] sm:$0xff]  ;;  %v461_v17 = vld [vmem:[%s15167_s26 + $0x588] sm:$0xff] }
  0x97   : > { %4616 = vmatprep.mubr.f32.mxu0 %v3436_v16  ;;  %11420 = vmatpush3.msra.mxu1 %v380_v18  ;;  %v429_v16 = vld [vmem:[%s15167_s26 + $0x488] sm:$0xff]  ;;  %v3452_v18 = vrot.slane %v3438_v8, %v15226_v52  ;;  %v530_v1 = vld [vmem:[%s15167_s26 + $0x7b0] sm:$0xff]  ;;  %v239_v8 = vld [vmem:[%s15161_s29 + $0x18] sm:$0xff] }
  0x98   : > { %4617 = vmatmul.mubr.f32.vlgmr.msra.gmra.mxu0 %v3428_v6  ;;  %4686 = vmatprep.mubr.f32.mxu1 %v3437_v19  ;;  %v431_v6 = vld [vmem:[%s15167_s26 + $0x498] sm:$0xff]  ;;  %v413_v19 = vld [vmem:[%s15167_s26 + $0x408] sm:$0xff] }
  0x99   : > { %11424 = vmatprep.subr.mxu0 %v443_v20  ;;  %11459 = vmatprep.subr.mxu1 %v475_v21  ;;  %v445_v20 = vld [vmem:[%s15167_s26 + $0x508] sm:$0xff]  ;;  %v428_v21 = vld [vmem:[%s15167_s26 + $0x480] sm:$0xff] }
  0x9a   : > { %4687 = vmatmul.mubr.f32.vlgmr.msra.gmra.mxu1 %v3435_v11  ;;  %11425 = vmatpush3.msra.mxu0 %v427_v22  ;;  %v430_v11 = vld [vmem:[%s15167_s26 + $0x490] sm:$0xff]  ;;  %v460_v22 = vld [vmem:[%s15167_s26 + $0x580] sm:$0xff] }
  0x9b   : > { %11460 = vmatpush3.msra.mxu1 %v459_v23  ;;  %11426 = vmatprep.subr.mxu0 %v442_v24  ;;  %v3453_v23 = vcombine.high %v3445_v13, %v3445_v13  ;;  %v412_v24 = vld [vmem:[%s15167_s26 + $0x400] sm:$0xff] }
  0x9c   : > { %11461 = vmatprep.subr.mxu1 %v474_v25  ;;  %11427 = vmatpush3.msra.mxu0 %v426_v26  ;;  %v444_v25 = vld [vmem:[%s15167_s26 + $0x500] sm:$0xff]  ;;  %v3454_v26 = vcombine.high %v3452_v18, %v3452_v18 }
  0x9d   : > { %11462 = vmatpush3.msra.mxu1 %v458_v27  ;;  %11428 = vmatprep.subr.mxu0 %v441_v28  ;;  %v507_v27 = vld [vmem:[%s15167_s26 + $0x6f8] sm:$0xff] }
  0x9e   : > { %11463 = vmatprep.subr.mxu1 %v473_v29  ;;  %11429 = vmatpush3.msra.mxu0 %v425_v30  ;;  %v539_v28 = vld [vmem:[%s15167_s26 + $0x7f8] sm:$0xff] }
  0x9f   : > { %11464 = vmatpush3.msra.mxu1 %v457_v31  ;;  %11430 = vmatprep.subr.mxu0 %v440_v32  ;;  %v491_v29 = vld [vmem:[%s15167_s26 + $0x678] sm:$0xff]  ;;  %v506_v31 = vld [vmem:[%s15167_s26 + $0x6f0] sm:$0xff] }
  0xa0   : > { %11465 = vmatprep.subr.mxu1 %v472_v33  ;;  %11431 = vmatpush3.msra.mxu0 %v424_v34  ;;  %v523_v30 = vld [vmem:[%s15167_s26 + $0x778] sm:$0xff]  ;;  %v538_v32 = vld [vmem:[%s15167_s26 + $0x7f0] sm:$0xff] }
  0xa1   : > { %11466 = vmatpush3.msra.mxu1 %v456_v35  ;;  %11432 = vmatprep.subr.mxu0 %v439_v36  ;;  %v490_v33 = vld [vmem:[%s15167_s26 + $0x670] sm:$0xff]  ;;  %v505_v35 = vld [vmem:[%s15167_s26 + $0x6e8] sm:$0xff] }
  0xa2   : > { %11467 = vmatprep.subr.mxu1 %v471_v37  ;;  %11433 = vmatpush3.msra.mxu0 %v423_v38  ;;  %v522_v34 = vld [vmem:[%s15167_s26 + $0x770] sm:$0xff]  ;;  %v537_v36 = vld [vmem:[%s15167_s26 + $0x7e8] sm:$0xff] }
  0xa3   : > { %11468 = vmatpush3.msra.mxu1 %v455_v39  ;;  %11434 = vmatprep.subr.mxu0 %v438_v40  ;;  %v489_v37 = vld [vmem:[%s15167_s26 + $0x668] sm:$0xff]  ;;  %v504_v39 = vld [vmem:[%s15167_s26 + $0x6e0] sm:$0xff] }
  0xa4   : > { %11469 = vmatprep.subr.mxu1 %v470_v41  ;;  %11435 = vmatpush3.msra.mxu0 %v422_v42  ;;  %v521_v38 = vld [vmem:[%s15167_s26 + $0x768] sm:$0xff]  ;;  %v536_v40 = vld [vmem:[%s15167_s26 + $0x7e0] sm:$0xff] }
  0xa5   : > { %11470 = vmatpush3.msra.mxu1 %v454_v43  ;;  %11436 = vmatprep.subr.mxu0 %v437_v44  ;;  %v488_v41 = vld [vmem:[%s15167_s26 + $0x660] sm:$0xff]  ;;  %v503_v43 = vld [vmem:[%s15167_s26 + $0x6d8] sm:$0xff] }
  0xa6   : > { %11471 = vmatprep.subr.mxu1 %v469_v45  ;;  %11437 = vmatpush3.msra.mxu0 %v421_v46  ;;  %v520_v42 = vld [vmem:[%s15167_s26 + $0x760] sm:$0xff]  ;;  %v535_v44 = vld [vmem:[%s15167_s26 + $0x7d8] sm:$0xff] }
  0xa7   : > { %11472 = vmatpush3.msra.mxu1 %v453_v47  ;;  %11438 = vmatprep.subr.mxu0 %v436_v48  ;;  %v487_v45 = vld [vmem:[%s15167_s26 + $0x658] sm:$0xff]  ;;  %v502_v47 = vld [vmem:[%s15167_s26 + $0x6d0] sm:$0xff] }
  0xa8   : > { %11473 = vmatprep.subr.mxu1 %v468_v49  ;;  %11439 = vmatpush3.msra.mxu0 %v420_v50  ;;  %v519_v46 = vld [vmem:[%s15167_s26 + $0x758] sm:$0xff]  ;;  %v534_v48 = vld [vmem:[%s15167_s26 + $0x7d0] sm:$0xff] }
  0xa9   : > { %11474 = vmatpush3.msra.mxu1 %v452_v51  ;;  %11440 = vmatprep.subr.mxu0 %v435_v53  ;;  %v486_v49 = vld [vmem:[%s15167_s26 + $0x650] sm:$0xff]  ;;  %v501_v51 = vld [vmem:[%s15167_s26 + $0x6c8] sm:$0xff] }
  0xaa   : > { %11475 = vmatprep.subr.mxu1 %v467_v54  ;;  %11441 = vmatpush3.msra.mxu0 %v419_v55  ;;  %v518_v50 = vld [vmem:[%s15167_s26 + $0x750] sm:$0xff]  ;;  %v533_v53 = vld [vmem:[%s15167_s26 + $0x7c8] sm:$0xff] }
  0xab   : > { %11476 = vmatpush3.msra.mxu1 %v451_v56  ;;  %11442 = vmatprep.subr.mxu0 %v434_v57  ;;  %v485_v54 = vld [vmem:[%s15167_s26 + $0x648] sm:$0xff]  ;;  %v500_v56 = vld [vmem:[%s15167_s26 + $0x6c0] sm:$0xff] }
  0xac   : > { %11477 = vmatprep.subr.mxu1 %v466_v58  ;;  %11443 = vmatpush3.msra.mxu0 %v418_v59  ;;  %v517_v55 = vld [vmem:[%s15167_s26 + $0x748] sm:$0xff]  ;;  %v532_v57 = vld [vmem:[%s15167_s26 + $0x7c0] sm:$0xff] }
  0xad   : > { %11478 = vmatpush3.msra.mxu1 %v450_v60  ;;  %11444 = vmatprep.subr.mxu0 %v433_v61  ;;  %v484_v58 = vld [vmem:[%s15167_s26 + $0x640] sm:$0xff]  ;;  %v499_v60 = vld [vmem:[%s15167_s26 + $0x6b8] sm:$0xff] }
  0xae   : > { %11479 = vmatprep.subr.mxu1 %v465_v62  ;;  %11445 = vmatpush3.msra.mxu0 %v417_v63  ;;  %v516_v59 = vld [vmem:[%s15167_s26 + $0x740] sm:$0xff]  ;;  %v531_v61 = vld [vmem:[%s15167_s26 + $0x7b8] sm:$0xff] }
  0xaf   : > { %11480 = vmatpush3.msra.mxu1 %v449_v0  ;;  %11446 = vmatprep.subr.mxu0 %v432_v2  ;;  %v483_v62 = vld [vmem:[%s15167_s26 + $0x638] sm:$0xff]  ;;  %v498_v0 = vld [vmem:[%s15167_s26 + $0x6b0] sm:$0xff] }
  0xb0   : > { %11481 = vmatprep.subr.mxu1 %v464_v3  ;;  %11447 = vmatpush3.msra.mxu0 %v416_v4  ;;  %v515_v63 = vld [vmem:[%s15167_s26 + $0x738] sm:$0xff]  ;;  %v482_v2 = vld [vmem:[%s15167_s26 + $0x630] sm:$0xff]  ;;  %v497_v4 = vld [vmem:[%s15167_s26 + $0x6a8] sm:$0xff] }
  0xb1   : > { %11482 = vmatpush3.msra.mxu1 %v448_v5  ;;  %11448 = vmatprep.subr.mxu0 %v431_v6  ;;  %v514_v3 = vld [vmem:[%s15167_s26 + $0x730] sm:$0xff]  ;;  %v529_v5 = vld [vmem:[%s15167_s26 + $0x7a8] sm:$0xff] }
  0xb2   : > { %11483 = vmatprep.subr.mxu1 %v463_v7  ;;  %11449 = vmatpush3.msra.mxu0 %v415_v9  ;;  %v481_v6 = vld [vmem:[%s15167_s26 + $0x628] sm:$0xff]  ;;  %v496_v9 = vld [vmem:[%s15167_s26 + $0x6a0] sm:$0xff] }
  0xb3   : > { %11484 = vmatpush3.msra.mxu1 %v447_v10  ;;  %11450 = vmatprep.subr.mxu0 %v430_v11  ;;  %v513_v7 = vld [vmem:[%s15167_s26 + $0x728] sm:$0xff]  ;;  %v528_v10 = vld [vmem:[%s15167_s26 + $0x7a0] sm:$0xff] }
  0xb4   : > { %11485 = vmatprep.subr.mxu1 %v462_v12  ;;  %11451 = vmatpush3.msra.mxu0 %v414_v14  ;;  %v480_v11 = vld [vmem:[%s15167_s26 + $0x620] sm:$0xff]  ;;  %v527_v14 = vld [vmem:[%s15167_s26 + $0x798] sm:$0xff] }
  0xb5   : > { %11486 = vmatpush3.msra.mxu1 %v446_v15  ;;  %11452 = vmatprep.subr.mxu0 %v429_v16  ;;  %v512_v12 = vld [vmem:[%s15167_s26 + $0x720] sm:$0xff]  ;;  %v3455_v15 = vcombine.high %v239_v8, %v239_v8  ;;  %v479_v16 = vld [vmem:[%s15167_s26 + $0x618] sm:$0xff] }
  0xb6   : > { %11487 = vmatprep.subr.mxu1 %v461_v17  ;;  %11453 = vmatpush3.msra.mxu0 %v413_v19  ;;  %v511_v17 = vld [vmem:[%s15167_s26 + $0x718] sm:$0xff]  ;;  %v526_v19 = vld [vmem:[%s15167_s26 + $0x790] sm:$0xff] }
  0xb7   : > { %11488 = vmatpush3.msra.mxu1 %v445_v20  ;;  %11454 = vmatprep.subr.mxu0 %v428_v21  ;;  %v3462_v20 = vrot.slane %v239_v8, %v15226_v52  ;;  %v478_v21 = vld [vmem:[%s15167_s26 + $0x610] sm:$0xff] }
  0xb8   : > { %11489 = vmatprep.subr.mxu1 %v460_v22  ;;  %11455 = vmatpush3.msra.mxu0 %v412_v24  ;;  %v510_v22 = vld [vmem:[%s15167_s26 + $0x710] sm:$0xff]  ;;  %v525_v24 = vld [vmem:[%s15167_s26 + $0x788] sm:$0xff] }
  0xb9   : > { %4756 = vmatprep.mubr.f32.mxu0 %v3453_v23  ;;  %11490 = vmatpush3.msra.mxu1 %v444_v25  ;;  %v493_v23 = vld [vmem:[%s15167_s26 + $0x688] sm:$0xff]  ;;  %v3469_v25 = vrot.slane %v3455_v15, %v15226_v52  ;;  %v594_v8 = vld [vmem:[%s15167_s26 + $0x9b0] sm:$0xff]  ;;  %v240_v15 = vld [vmem:[%s15161_s29 + $0x20] sm:$0xff] }
  0xba   : > { %4757 = vmatmul.mubr.f32.vlgmr.msra.gmra.mxu0 %v3445_v13  ;;  %4826 = vmatprep.mubr.f32.mxu1 %v3454_v26  ;;  %v495_v13 = vld [vmem:[%s15167_s26 + $0x698] sm:$0xff]  ;;  %v477_v26 = vld [vmem:[%s15167_s26 + $0x608] sm:$0xff] }
  0xbb   : > { %11494 = vmatprep.subr.mxu0 %v507_v27  ;;  %11529 = vmatprep.subr.mxu1 %v539_v28  ;;  %v509_v27 = vld [vmem:[%s15167_s26 + $0x708] sm:$0xff]  ;;  %v492_v28 = vld [vmem:[%s15167_s26 + $0x680] sm:$0xff] }
  0xbc   : > { %4827 = vmatmul.mubr.f32.vlgmr.msra.gmra.mxu1 %v3452_v18  ;;  %11495 = vmatpush3.msra.mxu0 %v491_v29  ;;  %v494_v18 = vld [vmem:[%s15167_s26 + $0x690] sm:$0xff]  ;;  %v524_v29 = vld [vmem:[%s15167_s26 + $0x780] sm:$0xff] }
  0xbd   : > { %11530 = vmatpush3.msra.mxu1 %v523_v30  ;;  %11496 = vmatprep.subr.mxu0 %v506_v31  ;;  %v3470_v30 = vcombine.high %v3462_v20, %v3462_v20  ;;  %v476_v31 = vld [vmem:[%s15167_s26 + $0x600] sm:$0xff] }
  0xbe   : > { %11531 = vmatprep.subr.mxu1 %v538_v32  ;;  %11497 = vmatpush3.msra.mxu0 %v490_v33  ;;  %v508_v32 = vld [vmem:[%s15167_s26 + $0x700] sm:$0xff]  ;;  %v3471_v33 = vcombine.high %v3469_v25, %v3469_v25 }
  0xbf   : > { %11532 = vmatpush3.msra.mxu1 %v522_v34  ;;  %11498 = vmatprep.subr.mxu0 %v505_v35  ;;  %v571_v34 = vld [vmem:[%s15167_s26 + $0x8f8] sm:$0xff] }
  0xc0   : > { %11533 = vmatprep.subr.mxu1 %v537_v36  ;;  %11499 = vmatpush3.msra.mxu0 %v489_v37  ;;  %v603_v35 = vld [vmem:[%s15167_s26 + $0x9f8] sm:$0xff] }
  0xc1   : > { %11534 = vmatpush3.msra.mxu1 %v521_v38  ;;  %11500 = vmatprep.subr.mxu0 %v504_v39  ;;  %v555_v36 = vld [vmem:[%s15167_s26 + $0x878] sm:$0xff]  ;;  %v570_v38 = vld [vmem:[%s15167_s26 + $0x8f0] sm:$0xff] }
  0xc2   : > { %11535 = vmatprep.subr.mxu1 %v536_v40  ;;  %11501 = vmatpush3.msra.mxu0 %v488_v41  ;;  %v587_v37 = vld [vmem:[%s15167_s26 + $0x978] sm:$0xff]  ;;  %v602_v39 = vld [vmem:[%s15167_s26 + $0x9f0] sm:$0xff] }
  0xc3   : > { %11536 = vmatpush3.msra.mxu1 %v520_v42  ;;  %11502 = vmatprep.subr.mxu0 %v503_v43  ;;  %v554_v40 = vld [vmem:[%s15167_s26 + $0x870] sm:$0xff]  ;;  %v569_v42 = vld [vmem:[%s15167_s26 + $0x8e8] sm:$0xff] }
  0xc4   : > { %11537 = vmatprep.subr.mxu1 %v535_v44  ;;  %11503 = vmatpush3.msra.mxu0 %v487_v45  ;;  %v586_v41 = vld [vmem:[%s15167_s26 + $0x970] sm:$0xff]  ;;  %v601_v43 = vld [vmem:[%s15167_s26 + $0x9e8] sm:$0xff] }
  0xc5   : > { %11538 = vmatpush3.msra.mxu1 %v519_v46  ;;  %11504 = vmatprep.subr.mxu0 %v502_v47  ;;  %v553_v44 = vld [vmem:[%s15167_s26 + $0x868] sm:$0xff]  ;;  %v568_v46 = vld [vmem:[%s15167_s26 + $0x8e0] sm:$0xff] }
  0xc6   : > { %11539 = vmatprep.subr.mxu1 %v534_v48  ;;  %11505 = vmatpush3.msra.mxu0 %v486_v49  ;;  %v585_v45 = vld [vmem:[%s15167_s26 + $0x968] sm:$0xff]  ;;  %v600_v47 = vld [vmem:[%s15167_s26 + $0x9e0] sm:$0xff] }
  0xc7   : > { %11540 = vmatpush3.msra.mxu1 %v518_v50  ;;  %11506 = vmatprep.subr.mxu0 %v501_v51  ;;  %v552_v48 = vld [vmem:[%s15167_s26 + $0x860] sm:$0xff]  ;;  %v567_v50 = vld [vmem:[%s15167_s26 + $0x8d8] sm:$0xff] }
  0xc8   : > { %11541 = vmatprep.subr.mxu1 %v533_v53  ;;  %11507 = vmatpush3.msra.mxu0 %v485_v54  ;;  %v584_v49 = vld [vmem:[%s15167_s26 + $0x960] sm:$0xff]  ;;  %v599_v51 = vld [vmem:[%s15167_s26 + $0x9d8] sm:$0xff] }
  0xc9   : > { %11542 = vmatpush3.msra.mxu1 %v517_v55  ;;  %11508 = vmatprep.subr.mxu0 %v500_v56  ;;  %v551_v53 = vld [vmem:[%s15167_s26 + $0x858] sm:$0xff]  ;;  %v566_v55 = vld [vmem:[%s15167_s26 + $0x8d0] sm:$0xff] }
  0xca   : > { %11543 = vmatprep.subr.mxu1 %v532_v57  ;;  %11509 = vmatpush3.msra.mxu0 %v484_v58  ;;  %v583_v54 = vld [vmem:[%s15167_s26 + $0x958] sm:$0xff]  ;;  %v598_v56 = vld [vmem:[%s15167_s26 + $0x9d0] sm:$0xff] }
  0xcb   : > { %11544 = vmatpush3.msra.mxu1 %v516_v59  ;;  %11510 = vmatprep.subr.mxu0 %v499_v60  ;;  %v550_v57 = vld [vmem:[%s15167_s26 + $0x850] sm:$0xff]  ;;  %v565_v59 = vld [vmem:[%s15167_s26 + $0x8c8] sm:$0xff] }
  0xcc   : > { %11545 = vmatprep.subr.mxu1 %v531_v61  ;;  %11511 = vmatpush3.msra.mxu0 %v483_v62  ;;  %v582_v58 = vld [vmem:[%s15167_s26 + $0x950] sm:$0xff]  ;;  %v597_v60 = vld [vmem:[%s15167_s26 + $0x9c8] sm:$0xff] }
  0xcd   : > { %11546 = vmatpush3.msra.mxu1 %v515_v63  ;;  %11512 = vmatprep.subr.mxu0 %v498_v0  ;;  %v549_v61 = vld [vmem:[%s15167_s26 + $0x848] sm:$0xff]  ;;  %v564_v63 = vld [vmem:[%s15167_s26 + $0x8c0] sm:$0xff] }
  0xce   : > { %11547 = vmatprep.subr.mxu1 %v530_v1  ;;  %11513 = vmatpush3.msra.mxu0 %v482_v2  ;;  %v581_v62 = vld [vmem:[%s15167_s26 + $0x948] sm:$0xff]  ;;  %v596_v0 = vld [vmem:[%s15167_s26 + $0x9c0] sm:$0xff] }
  0xcf   : > { %11548 = vmatpush3.msra.mxu1 %v514_v3  ;;  %11514 = vmatprep.subr.mxu0 %v497_v4  ;;  %v548_v1 = vld [vmem:[%s15167_s26 + $0x840] sm:$0xff]  ;;  %v563_v3 = vld [vmem:[%s15167_s26 + $0x8b8] sm:$0xff] }
  0xd0   : > { %11549 = vmatprep.subr.mxu1 %v529_v5  ;;  %11515 = vmatpush3.msra.mxu0 %v481_v6  ;;  %v580_v2 = vld [vmem:[%s15167_s26 + $0x940] sm:$0xff]  ;;  %v595_v4 = vld [vmem:[%s15167_s26 + $0x9b8] sm:$0xff] }
  0xd1   : > { %11550 = vmatpush3.msra.mxu1 %v513_v7  ;;  %11516 = vmatprep.subr.mxu0 %v496_v9  ;;  %v547_v5 = vld [vmem:[%s15167_s26 + $0x838] sm:$0xff]  ;;  %v562_v7 = vld [vmem:[%s15167_s26 + $0x8b0] sm:$0xff] }
  0xd2   : > { %11551 = vmatprep.subr.mxu1 %v528_v10  ;;  %11517 = vmatpush3.msra.mxu0 %v480_v11  ;;  %v579_v6 = vld [vmem:[%s15167_s26 + $0x938] sm:$0xff]  ;;  %v546_v9 = vld [vmem:[%s15167_s26 + $0x830] sm:$0xff]  ;;  %v561_v11 = vld [vmem:[%s15167_s26 + $0x8a8] sm:$0xff] }
  0xd3   : > { %11552 = vmatpush3.msra.mxu1 %v512_v12  ;;  %11518 = vmatprep.subr.mxu0 %v495_v13  ;;  %v578_v10 = vld [vmem:[%s15167_s26 + $0x930] sm:$0xff]  ;;  %v593_v12 = vld [vmem:[%s15167_s26 + $0x9a8] sm:$0xff] }
  0xd4   : > { %11553 = vmatprep.subr.mxu1 %v527_v14  ;;  %11519 = vmatpush3.msra.mxu0 %v479_v16  ;;  %v545_v13 = vld [vmem:[%s15167_s26 + $0x828] sm:$0xff]  ;;  %v560_v16 = vld [vmem:[%s15167_s26 + $0x8a0] sm:$0xff] }
  0xd5   : > { %11554 = vmatpush3.msra.mxu1 %v511_v17  ;;  %11520 = vmatprep.subr.mxu0 %v494_v18  ;;  %v577_v14 = vld [vmem:[%s15167_s26 + $0x928] sm:$0xff]  ;;  %v592_v17 = vld [vmem:[%s15167_s26 + $0x9a0] sm:$0xff] }
  0xd6   : > { %11555 = vmatprep.subr.mxu1 %v526_v19  ;;  %11521 = vmatpush3.msra.mxu0 %v478_v21  ;;  %v544_v18 = vld [vmem:[%s15167_s26 + $0x820] sm:$0xff]  ;;  %v591_v21 = vld [vmem:[%s15167_s26 + $0x998] sm:$0xff] }
  0xd7   : > { %11556 = vmatpush3.msra.mxu1 %v510_v22  ;;  %11522 = vmatprep.subr.mxu0 %v493_v23  ;;  %v576_v19 = vld [vmem:[%s15167_s26 + $0x920] sm:$0xff]  ;;  %v3472_v22 = vcombine.high %v240_v15, %v240_v15  ;;  %v543_v23 = vld [vmem:[%s15167_s26 + $0x818] sm:$0xff] }
  0xd8   : > { %11557 = vmatprep.subr.mxu1 %v525_v24  ;;  %11523 = vmatpush3.msra.mxu0 %v477_v26  ;;  %v575_v24 = vld [vmem:[%s15167_s26 + $0x918] sm:$0xff]  ;;  %v590_v26 = vld [vmem:[%s15167_s26 + $0x990] sm:$0xff] }
  0xd9   : > { %11558 = vmatpush3.msra.mxu1 %v509_v27  ;;  %11524 = vmatprep.subr.mxu0 %v492_v28  ;;  %v3479_v27 = vrot.slane %v240_v15, %v15226_v52  ;;  %v542_v28 = vld [vmem:[%s15167_s26 + $0x810] sm:$0xff] }
  0xda   : > { %11559 = vmatprep.subr.mxu1 %v524_v29  ;;  %11525 = vmatpush3.msra.mxu0 %v476_v31  ;;  %v574_v29 = vld [vmem:[%s15167_s26 + $0x910] sm:$0xff]  ;;  %v589_v31 = vld [vmem:[%s15167_s26 + $0x988] sm:$0xff] }
  0xdb   : > { %4896 = vmatprep.mubr.f32.mxu0 %v3470_v30  ;;  %11560 = vmatpush3.msra.mxu1 %v508_v32  ;;  %v557_v30 = vld [vmem:[%s15167_s26 + $0x888] sm:$0xff]  ;;  %v3486_v32 = vrot.slane %v3472_v22, %v15226_v52  ;;  %v658_v15 = vld [vmem:[%s15167_s26 + $0xbb0] sm:$0xff] }
  0xdc   : > { %4897 = vmatmul.mubr.f32.vlgmr.msra.gmra.mxu0 %v3462_v20  ;;  %4966 = vmatprep.mubr.f32.mxu1 %v3471_v33  ;;  %v559_v20 = vld [vmem:[%s15167_s26 + $0x898] sm:$0xff]  ;;  %v541_v33 = vld [vmem:[%s15167_s26 + $0x808] sm:$0xff] }
  0xdd   : > { %11564 = vmatprep.subr.mxu0 %v571_v34  ;;  %11599 = vmatprep.subr.mxu1 %v603_v35  ;;  %v573_v34 = vld [vmem:[%s15167_s26 + $0x908] sm:$0xff]  ;;  %v556_v35 = vld [vmem:[%s15167_s26 + $0x880] sm:$0xff] }
  0xde   : > { %4967 = vmatmul.mubr.f32.vlgmr.msra.gmra.mxu1 %v3469_v25  ;;  %11565 = vmatpush3.msra.mxu0 %v555_v36  ;;  %v558_v25 = vld [vmem:[%s15167_s26 + $0x890] sm:$0xff]  ;;  %v588_v36 = vld [vmem:[%s15167_s26 + $0x980] sm:$0xff]  ;;  %v241_v22 = vld [vmem:[%s15161_s29 + $0x28] sm:$0xff] }
  0xdf   : > { %11600 = vmatpush3.msra.mxu1 %v587_v37  ;;  %11566 = vmatprep.subr.mxu0 %v570_v38  ;;  %v3487_v37 = vcombine.high %v3479_v27, %v3479_v27  ;;  %v540_v38 = vld [vmem:[%s15167_s26 + $0x800] sm:$0xff] }
  0xe0   : > { %11601 = vmatprep.subr.mxu1 %v602_v39  ;;  %11567 = vmatpush3.msra.mxu0 %v554_v40  ;;  %v572_v39 = vld [vmem:[%s15167_s26 + $0x900] sm:$0xff]  ;;  %v3488_v40 = vcombine.high %v3486_v32, %v3486_v32 }
  0xe1   : > { %11602 = vmatpush3.msra.mxu1 %v586_v41  ;;  %11568 = vmatprep.subr.mxu0 %v569_v42  ;;  %v635_v41 = vld [vmem:[%s15167_s26 + $0xaf8] sm:$0xff] }
  0xe2   : > { %11603 = vmatprep.subr.mxu1 %v601_v43  ;;  %11569 = vmatpush3.msra.mxu0 %v553_v44  ;;  %v667_v42 = vld [vmem:[%s15167_s26 + $0xbf8] sm:$0xff] }
  0xe3   : > { %11604 = vmatpush3.msra.mxu1 %v585_v45  ;;  %11570 = vmatprep.subr.mxu0 %v568_v46  ;;  %v619_v43 = vld [vmem:[%s15167_s26 + $0xa78] sm:$0xff]  ;;  %v634_v45 = vld [vmem:[%s15167_s26 + $0xaf0] sm:$0xff] }
  0xe4   : > { %11605 = vmatprep.subr.mxu1 %v600_v47  ;;  %11571 = vmatpush3.msra.mxu0 %v552_v48  ;;  %v651_v44 = vld [vmem:[%s15167_s26 + $0xb78] sm:$0xff]  ;;  %v666_v46 = vld [vmem:[%s15167_s26 + $0xbf0] sm:$0xff] }
  0xe5   : > { %11606 = vmatpush3.msra.mxu1 %v584_v49  ;;  %11572 = vmatprep.subr.mxu0 %v567_v50  ;;  %v618_v47 = vld [vmem:[%s15167_s26 + $0xa70] sm:$0xff]  ;;  %v633_v49 = vld [vmem:[%s15167_s26 + $0xae8] sm:$0xff] }
  0xe6   : > { %11607 = vmatprep.subr.mxu1 %v599_v51  ;;  %11573 = vmatpush3.msra.mxu0 %v551_v53  ;;  %v650_v48 = vld [vmem:[%s15167_s26 + $0xb70] sm:$0xff]  ;;  %v665_v50 = vld [vmem:[%s15167_s26 + $0xbe8] sm:$0xff] }
  0xe7   : > { %11608 = vmatpush3.msra.mxu1 %v583_v54  ;;  %11574 = vmatprep.subr.mxu0 %v566_v55  ;;  %v617_v51 = vld [vmem:[%s15167_s26 + $0xa68] sm:$0xff]  ;;  %v632_v54 = vld [vmem:[%s15167_s26 + $0xae0] sm:$0xff] }
  0xe8   : > { %11609 = vmatprep.subr.mxu1 %v598_v56  ;;  %11575 = vmatpush3.msra.mxu0 %v550_v57  ;;  %v649_v53 = vld [vmem:[%s15167_s26 + $0xb68] sm:$0xff]  ;;  %v664_v55 = vld [vmem:[%s15167_s26 + $0xbe0] sm:$0xff] }
  0xe9   : > { %11610 = vmatpush3.msra.mxu1 %v582_v58  ;;  %11576 = vmatprep.subr.mxu0 %v565_v59  ;;  %v616_v56 = vld [vmem:[%s15167_s26 + $0xa60] sm:$0xff]  ;;  %v631_v58 = vld [vmem:[%s15167_s26 + $0xad8] sm:$0xff] }
  0xea   : > { %11611 = vmatprep.subr.mxu1 %v597_v60  ;;  %11577 = vmatpush3.msra.mxu0 %v549_v61  ;;  %v648_v57 = vld [vmem:[%s15167_s26 + $0xb60] sm:$0xff]  ;;  %v663_v59 = vld [vmem:[%s15167_s26 + $0xbd8] sm:$0xff] }
  0xeb   : > { %11612 = vmatpush3.msra.mxu1 %v581_v62  ;;  %11578 = vmatprep.subr.mxu0 %v564_v63  ;;  %v615_v60 = vld [vmem:[%s15167_s26 + $0xa58] sm:$0xff]  ;;  %v630_v62 = vld [vmem:[%s15167_s26 + $0xad0] sm:$0xff] }
  0xec   : > { %11613 = vmatprep.subr.mxu1 %v596_v0  ;;  %11579 = vmatpush3.msra.mxu0 %v548_v1  ;;  %v647_v61 = vld [vmem:[%s15167_s26 + $0xb58] sm:$0xff]  ;;  %v662_v63 = vld [vmem:[%s15167_s26 + $0xbd0] sm:$0xff] }
  0xed   : > { %11614 = vmatpush3.msra.mxu1 %v580_v2  ;;  %11580 = vmatprep.subr.mxu0 %v563_v3  ;;  %v614_v0 = vld [vmem:[%s15167_s26 + $0xa50] sm:$0xff]  ;;  %v629_v2 = vld [vmem:[%s15167_s26 + $0xac8] sm:$0xff] }
  0xee   : > { %11615 = vmatprep.subr.mxu1 %v595_v4  ;;  %11581 = vmatpush3.msra.mxu0 %v547_v5  ;;  %v646_v1 = vld [vmem:[%s15167_s26 + $0xb50] sm:$0xff]  ;;  %v661_v3 = vld [vmem:[%s15167_s26 + $0xbc8] sm:$0xff] }
  0xef   : > { %11616 = vmatpush3.msra.mxu1 %v579_v6  ;;  %11582 = vmatprep.subr.mxu0 %v562_v7  ;;  %v613_v4 = vld [vmem:[%s15167_s26 + $0xa48] sm:$0xff]  ;;  %v628_v6 = vld [vmem:[%s15167_s26 + $0xac0] sm:$0xff] }
  0xf0   : > { %11617 = vmatprep.subr.mxu1 %v594_v8  ;;  %11583 = vmatpush3.msra.mxu0 %v546_v9  ;;  %v645_v5 = vld [vmem:[%s15167_s26 + $0xb48] sm:$0xff]  ;;  %v660_v7 = vld [vmem:[%s15167_s26 + $0xbc0] sm:$0xff] }
  0xf1   : > { %11618 = vmatpush3.msra.mxu1 %v578_v10  ;;  %11584 = vmatprep.subr.mxu0 %v561_v11  ;;  %v612_v8 = vld [vmem:[%s15167_s26 + $0xa40] sm:$0xff]  ;;  %v627_v10 = vld [vmem:[%s15167_s26 + $0xab8] sm:$0xff] }
  0xf2   : > { %11619 = vmatprep.subr.mxu1 %v593_v12  ;;  %11585 = vmatpush3.msra.mxu0 %v545_v13  ;;  %v644_v9 = vld [vmem:[%s15167_s26 + $0xb40] sm:$0xff]  ;;  %v659_v11 = vld [vmem:[%s15167_s26 + $0xbb8] sm:$0xff] }
  0xf3   : > { %11620 = vmatpush3.msra.mxu1 %v577_v14  ;;  %11586 = vmatprep.subr.mxu0 %v560_v16  ;;  %v611_v12 = vld [vmem:[%s15167_s26 + $0xa38] sm:$0xff]  ;;  %v626_v14 = vld [vmem:[%s15167_s26 + $0xab0] sm:$0xff] }
  0xf4   : > { %11621 = vmatprep.subr.mxu1 %v592_v17  ;;  %11587 = vmatpush3.msra.mxu0 %v544_v18  ;;  %v643_v13 = vld [vmem:[%s15167_s26 + $0xb38] sm:$0xff]  ;;  %v610_v16 = vld [vmem:[%s15167_s26 + $0xa30] sm:$0xff]  ;;  %v625_v18 = vld [vmem:[%s15167_s26 + $0xaa8] sm:$0xff] }
  0xf5   : > { %11622 = vmatpush3.msra.mxu1 %v576_v19  ;;  %11588 = vmatprep.subr.mxu0 %v559_v20  ;;  %v642_v17 = vld [vmem:[%s15167_s26 + $0xb30] sm:$0xff]  ;;  %v657_v19 = vld [vmem:[%s15167_s26 + $0xba8] sm:$0xff] }
  0xf6   : > { %11623 = vmatprep.subr.mxu1 %v591_v21  ;;  %11589 = vmatpush3.msra.mxu0 %v543_v23  ;;  %v609_v20 = vld [vmem:[%s15167_s26 + $0xa28] sm:$0xff]  ;;  %v624_v23 = vld [vmem:[%s15167_s26 + $0xaa0] sm:$0xff] }
  0xf7   : > { %11624 = vmatpush3.msra.mxu1 %v575_v24  ;;  %11590 = vmatprep.subr.mxu0 %v558_v25  ;;  %v641_v21 = vld [vmem:[%s15167_s26 + $0xb28] sm:$0xff]  ;;  %v656_v24 = vld [vmem:[%s15167_s26 + $0xba0] sm:$0xff] }
  0xf8   : > { %11625 = vmatprep.subr.mxu1 %v590_v26  ;;  %11591 = vmatpush3.msra.mxu0 %v542_v28  ;;  %v608_v25 = vld [vmem:[%s15167_s26 + $0xa20] sm:$0xff]  ;;  %v655_v28 = vld [vmem:[%s15167_s26 + $0xb98] sm:$0xff] }
  0xf9   : > { %11626 = vmatpush3.msra.mxu1 %v574_v29  ;;  %11592 = vmatprep.subr.mxu0 %v557_v30  ;;  %v640_v26 = vld [vmem:[%s15167_s26 + $0xb20] sm:$0xff]  ;;  %v3489_v29 = vcombine.high %v241_v22, %v241_v22  ;;  %v607_v30 = vld [vmem:[%s15167_s26 + $0xa18] sm:$0xff] }
  0xfa   : > { %11627 = vmatprep.subr.mxu1 %v589_v31  ;;  %11593 = vmatpush3.msra.mxu0 %v541_v33  ;;  %v639_v31 = vld [vmem:[%s15167_s26 + $0xb18] sm:$0xff]  ;;  %v654_v33 = vld [vmem:[%s15167_s26 + $0xb90] sm:$0xff] }
  0xfb   : > { %11628 = vmatpush3.msra.mxu1 %v573_v34  ;;  %11594 = vmatprep.subr.mxu0 %v556_v35  ;;  %v3496_v34 = vrot.slane %v241_v22, %v15226_v52  ;;  %v606_v35 = vld [vmem:[%s15167_s26 + $0xa10] sm:$0xff] }
  0xfc   : > { %11629 = vmatprep.subr.mxu1 %v588_v36  ;;  %11595 = vmatpush3.msra.mxu0 %v540_v38  ;;  %v638_v36 = vld [vmem:[%s15167_s26 + $0xb10] sm:$0xff]  ;;  %v653_v38 = vld [vmem:[%s15167_s26 + $0xb88] sm:$0xff] }
  0xfd   : > { %5036 = vmatprep.mubr.f32.mxu0 %v3487_v37  ;;  %11630 = vmatpush3.msra.mxu1 %v572_v39  ;;  %v621_v37 = vld [vmem:[%s15167_s26 + $0xa88] sm:$0xff]  ;;  %v3503_v39 = vrot.slane %v3489_v29, %v15226_v52  ;;  %v722_v22 = vld [vmem:[%s15167_s26 + $0xdb0] sm:$0xff] }
  0xfe   : > { %5037 = vmatmul.mubr.f32.vlgmr.msra.gmra.mxu0 %v3479_v27  ;;  %5106 = vmatprep.mubr.f32.mxu1 %v3488_v40  ;;  %v623_v27 = vld [vmem:[%s15167_s26 + $0xa98] sm:$0xff]  ;;  %v605_v40 = vld [vmem:[%s15167_s26 + $0xa08] sm:$0xff]  ;;  %v242_v29 = vld [vmem:[%s15161_s29 + $0x30] sm:$0xff] }
  0xff   : > { %11634 = vmatprep.subr.mxu0 %v635_v41  ;;  %11669 = vmatprep.subr.mxu1 %v667_v42  ;;  %v637_v41 = vld [vmem:[%s15167_s26 + $0xb08] sm:$0xff]  ;;  %v620_v42 = vld [vmem:[%s15167_s26 + $0xa80] sm:$0xff] }
 0x100   : > { %5107 = vmatmul.mubr.f32.vlgmr.msra.gmra.mxu1 %v3486_v32  ;;  %11635 = vmatpush3.msra.mxu0 %v619_v43  ;;  %v622_v32 = vld [vmem:[%s15167_s26 + $0xa90] sm:$0xff]  ;;  %v652_v43 = vld [vmem:[%s15167_s26 + $0xb80] sm:$0xff] }
 0x101   : > { %11670 = vmatpush3.msra.mxu1 %v651_v44  ;;  %11636 = vmatprep.subr.mxu0 %v634_v45  ;;  %v3504_v44 = vcombine.high %v3496_v34, %v3496_v34  ;;  %v604_v45 = vld [vmem:[%s15167_s26 + $0xa00] sm:$0xff] }
 0x102   : > { %11671 = vmatprep.subr.mxu1 %v666_v46  ;;  %11637 = vmatpush3.msra.mxu0 %v618_v47  ;;  %v636_v46 = vld [vmem:[%s15167_s26 + $0xb00] sm:$0xff]  ;;  %v3505_v47 = vcombine.high %v3503_v39, %v3503_v39 }
 0x103   : > { %11672 = vmatpush3.msra.mxu1 %v650_v48  ;;  %11638 = vmatprep.subr.mxu0 %v633_v49  ;;  %v699_v48 = vld [vmem:[%s15167_s26 + $0xcf8] sm:$0xff] }
 0x104   : > { %11673 = vmatprep.subr.mxu1 %v665_v50  ;;  %11639 = vmatpush3.msra.mxu0 %v617_v51  ;;  %v731_v49 = vld [vmem:[%s15167_s26 + $0xdf8] sm:$0xff] }
 0x105   : > { %11674 = vmatpush3.msra.mxu1 %v649_v53  ;;  %11640 = vmatprep.subr.mxu0 %v632_v54  ;;  %v683_v50 = vld [vmem:[%s15167_s26 + $0xc78] sm:$0xff]  ;;  %v698_v53 = vld [vmem:[%s15167_s26 + $0xcf0] sm:$0xff] }
 0x106   : > { %11675 = vmatprep.subr.mxu1 %v664_v55  ;;  %11641 = vmatpush3.msra.mxu0 %v616_v56  ;;  %v715_v51 = vld [vmem:[%s15167_s26 + $0xd78] sm:$0xff]  ;;  %v730_v54 = vld [vmem:[%s15167_s26 + $0xdf0] sm:$0xff] }
 0x107   : > { %11676 = vmatpush3.msra.mxu1 %v648_v57  ;;  %11642 = vmatprep.subr.mxu0 %v631_v58  ;;  %v682_v55 = vld [vmem:[%s15167_s26 + $0xc70] sm:$0xff]  ;;  %v697_v57 = vld [vmem:[%s15167_s26 + $0xce8] sm:$0xff] }
 0x108   : > { %11677 = vmatprep.subr.mxu1 %v663_v59  ;;  %11643 = vmatpush3.msra.mxu0 %v615_v60  ;;  %v714_v56 = vld [vmem:[%s15167_s26 + $0xd70] sm:$0xff]  ;;  %v729_v58 = vld [vmem:[%s15167_s26 + $0xde8] sm:$0xff] }
 0x109   : > { %11678 = vmatpush3.msra.mxu1 %v647_v61  ;;  %11644 = vmatprep.subr.mxu0 %v630_v62  ;;  %v681_v59 = vld [vmem:[%s15167_s26 + $0xc68] sm:$0xff]  ;;  %v696_v61 = vld [vmem:[%s15167_s26 + $0xce0] sm:$0xff] }
 0x10a   : > { %11679 = vmatprep.subr.mxu1 %v662_v63  ;;  %11645 = vmatpush3.msra.mxu0 %v614_v0  ;;  %v713_v60 = vld [vmem:[%s15167_s26 + $0xd68] sm:$0xff]  ;;  %v728_v62 = vld [vmem:[%s15167_s26 + $0xde0] sm:$0xff] }
 0x10b   : > { %11680 = vmatpush3.msra.mxu1 %v646_v1  ;;  %11646 = vmatprep.subr.mxu0 %v629_v2  ;;  %v680_v63 = vld [vmem:[%s15167_s26 + $0xc60] sm:$0xff]  ;;  %v695_v1 = vld [vmem:[%s15167_s26 + $0xcd8] sm:$0xff] }
 0x10c   : > { %11681 = vmatprep.subr.mxu1 %v661_v3  ;;  %11647 = vmatpush3.msra.mxu0 %v613_v4  ;;  %v712_v0 = vld [vmem:[%s15167_s26 + $0xd60] sm:$0xff]  ;;  %v727_v2 = vld [vmem:[%s15167_s26 + $0xdd8] sm:$0xff] }
 0x10d   : > { %11682 = vmatpush3.msra.mxu1 %v645_v5  ;;  %11648 = vmatprep.subr.mxu0 %v628_v6  ;;  %v679_v3 = vld [vmem:[%s15167_s26 + $0xc58] sm:$0xff]  ;;  %v694_v5 = vld [vmem:[%s15167_s26 + $0xcd0] sm:$0xff] }
 0x10e   : > { %11683 = vmatprep.subr.mxu1 %v660_v7  ;;  %11649 = vmatpush3.msra.mxu0 %v612_v8  ;;  %v711_v4 = vld [vmem:[%s15167_s26 + $0xd58] sm:$0xff]  ;;  %v726_v6 = vld [vmem:[%s15167_s26 + $0xdd0] sm:$0xff] }
 0x10f   : > { %11684 = vmatpush3.msra.mxu1 %v644_v9  ;;  %11650 = vmatprep.subr.mxu0 %v627_v10  ;;  %v678_v7 = vld [vmem:[%s15167_s26 + $0xc50] sm:$0xff]  ;;  %v693_v9 = vld [vmem:[%s15167_s26 + $0xcc8] sm:$0xff] }
 0x110   : > { %11685 = vmatprep.subr.mxu1 %v659_v11  ;;  %11651 = vmatpush3.msra.mxu0 %v611_v12  ;;  %v710_v8 = vld [vmem:[%s15167_s26 + $0xd50] sm:$0xff]  ;;  %v725_v10 = vld [vmem:[%s15167_s26 + $0xdc8] sm:$0xff] }
 0x111   : > { %11686 = vmatpush3.msra.mxu1 %v643_v13  ;;  %11652 = vmatprep.subr.mxu0 %v626_v14  ;;  %v677_v11 = vld [vmem:[%s15167_s26 + $0xc48] sm:$0xff]  ;;  %v692_v13 = vld [vmem:[%s15167_s26 + $0xcc0] sm:$0xff] }
 0x112   : > { %11687 = vmatprep.subr.mxu1 %v658_v15  ;;  %11653 = vmatpush3.msra.mxu0 %v610_v16  ;;  %v709_v12 = vld [vmem:[%s15167_s26 + $0xd48] sm:$0xff]  ;;  %v724_v14 = vld [vmem:[%s15167_s26 + $0xdc0] sm:$0xff] }
 0x113   : > { %11688 = vmatpush3.msra.mxu1 %v642_v17  ;;  %11654 = vmatprep.subr.mxu0 %v625_v18  ;;  %v676_v15 = vld [vmem:[%s15167_s26 + $0xc40] sm:$0xff]  ;;  %v691_v17 = vld [vmem:[%s15167_s26 + $0xcb8] sm:$0xff] }
 0x114   : > { %11689 = vmatprep.subr.mxu1 %v657_v19  ;;  %11655 = vmatpush3.msra.mxu0 %v609_v20  ;;  %v708_v16 = vld [vmem:[%s15167_s26 + $0xd40] sm:$0xff]  ;;  %v723_v18 = vld [vmem:[%s15167_s26 + $0xdb8] sm:$0xff] }
 0x115   : > { %11690 = vmatpush3.msra.mxu1 %v641_v21  ;;  %11656 = vmatprep.subr.mxu0 %v624_v23  ;;  %v675_v19 = vld [vmem:[%s15167_s26 + $0xc38] sm:$0xff]  ;;  %v690_v21 = vld [vmem:[%s15167_s26 + $0xcb0] sm:$0xff] }
 0x116   : > { %11691 = vmatprep.subr.mxu1 %v656_v24  ;;  %11657 = vmatpush3.msra.mxu0 %v608_v25  ;;  %v707_v20 = vld [vmem:[%s15167_s26 + $0xd38] sm:$0xff]  ;;  %v674_v23 = vld [vmem:[%s15167_s26 + $0xc30] sm:$0xff]  ;;  %v689_v25 = vld [vmem:[%s15167_s26 + $0xca8] sm:$0xff] }
 0x117   : > { %11692 = vmatpush3.msra.mxu1 %v640_v26  ;;  %11658 = vmatprep.subr.mxu0 %v623_v27  ;;  %v706_v24 = vld [vmem:[%s15167_s26 + $0xd30] sm:$0xff]  ;;  %v721_v26 = vld [vmem:[%s15167_s26 + $0xda8] sm:$0xff] }
 0x118   : > { %11693 = vmatprep.subr.mxu1 %v655_v28  ;;  %11659 = vmatpush3.msra.mxu0 %v607_v30  ;;  %v673_v27 = vld [vmem:[%s15167_s26 + $0xc28] sm:$0xff]  ;;  %v688_v30 = vld [vmem:[%s15167_s26 + $0xca0] sm:$0xff] }
 0x119   : > { %11694 = vmatpush3.msra.mxu1 %v639_v31  ;;  %11660 = vmatprep.subr.mxu0 %v622_v32  ;;  %v705_v28 = vld [vmem:[%s15167_s26 + $0xd28] sm:$0xff]  ;;  %v720_v31 = vld [vmem:[%s15167_s26 + $0xda0] sm:$0xff] }
 0x11a   : > { %11695 = vmatprep.subr.mxu1 %v654_v33  ;;  %11661 = vmatpush3.msra.mxu0 %v606_v35  ;;  %v672_v32 = vld [vmem:[%s15167_s26 + $0xc20] sm:$0xff]  ;;  %v719_v35 = vld [vmem:[%s15167_s26 + $0xd98] sm:$0xff] }
 0x11b   : > { %11696 = vmatpush3.msra.mxu1 %v638_v36  ;;  %11662 = vmatprep.subr.mxu0 %v621_v37  ;;  %v704_v33 = vld [vmem:[%s15167_s26 + $0xd20] sm:$0xff]  ;;  %v3506_v36 = vcombine.high %v242_v29, %v242_v29  ;;  %v671_v37 = vld [vmem:[%s15167_s26 + $0xc18] sm:$0xff] }
 0x11c   : > { %11697 = vmatprep.subr.mxu1 %v653_v38  ;;  %11663 = vmatpush3.msra.mxu0 %v605_v40  ;;  %v703_v38 = vld [vmem:[%s15167_s26 + $0xd18] sm:$0xff]  ;;  %v718_v40 = vld [vmem:[%s15167_s26 + $0xd90] sm:$0xff] }
 0x11d   : > { %11698 = vmatpush3.msra.mxu1 %v637_v41  ;;  %11664 = vmatprep.subr.mxu0 %v620_v42  ;;  %v3513_v41 = vrot.slane %v242_v29, %v15226_v52  ;;  %v670_v42 = vld [vmem:[%s15167_s26 + $0xc10] sm:$0xff] }
 0x11e   : > { %11699 = vmatprep.subr.mxu1 %v652_v43  ;;  %11665 = vmatpush3.msra.mxu0 %v604_v45  ;;  %v702_v43 = vld [vmem:[%s15167_s26 + $0xd10] sm:$0xff]  ;;  %v717_v45 = vld [vmem:[%s15167_s26 + $0xd88] sm:$0xff] }
 0x11f   : > { %5176 = vmatprep.mubr.f32.mxu0 %v3504_v44  ;;  %11700 = vmatpush3.msra.mxu1 %v636_v46  ;;  %v685_v44 = vld [vmem:[%s15167_s26 + $0xc88] sm:$0xff]  ;;  %v3520_v46 = vrot.slane %v3506_v36, %v15226_v52  ;;  %v786_v29 = vld [vmem:[%s15167_s26 + $0xfb0] sm:$0xff]  ;;  %v243_v36 = vld [vmem:[%s15161_s29 + $0x38] sm:$0xff] }
 0x120   : > { %5177 = vmatmul.mubr.f32.vlgmr.msra.gmra.mxu0 %v3496_v34  ;;  %5246 = vmatprep.mubr.f32.mxu1 %v3505_v47  ;;  %v687_v34 = vld [vmem:[%s15167_s26 + $0xc98] sm:$0xff]  ;;  %v669_v47 = vld [vmem:[%s15167_s26 + $0xc08] sm:$0xff] }
 0x121   : > { %11704 = vmatprep.subr.mxu0 %v699_v48  ;;  %11739 = vmatprep.subr.mxu1 %v731_v49  ;;  %v701_v48 = vld [vmem:[%s15167_s26 + $0xd08] sm:$0xff]  ;;  %v684_v49 = vld [vmem:[%s15167_s26 + $0xc80] sm:$0xff] }
 0x122   : > { %5247 = vmatmul.mubr.f32.vlgmr.msra.gmra.mxu1 %v3503_v39  ;;  %11705 = vmatpush3.msra.mxu0 %v683_v50  ;;  %v686_v39 = vld [vmem:[%s15167_s26 + $0xc90] sm:$0xff]  ;;  %v716_v50 = vld [vmem:[%s15167_s26 + $0xd80] sm:$0xff] }
 0x123   : > { %11740 = vmatpush3.msra.mxu1 %v715_v51  ;;  %11706 = vmatprep.subr.mxu0 %v698_v53  ;;  %v3521_v51 = vcombine.high %v3513_v41, %v3513_v41  ;;  %v668_v53 = vld [vmem:[%s15167_s26 + $0xc00] sm:$0xff] }
 0x124   : > { %11741 = vmatprep.subr.mxu1 %v730_v54  ;;  %11707 = vmatpush3.msra.mxu0 %v682_v55  ;;  %v700_v54 = vld [vmem:[%s15167_s26 + $0xd00] sm:$0xff]  ;;  %v3522_v55 = vcombine.high %v3520_v46, %v3520_v46 }
 0x125   : > { %11742 = vmatpush3.msra.mxu1 %v714_v56  ;;  %11708 = vmatprep.subr.mxu0 %v697_v57  ;;  %v763_v56 = vld [vmem:[%s15167_s26 + $0xef8] sm:$0xff] }
 0x126   : > { %11743 = vmatprep.subr.mxu1 %v729_v58  ;;  %11709 = vmatpush3.msra.mxu0 %v681_v59  ;;  %v795_v57 = vld [vmem:[%s15167_s26 + $0xff8] sm:$0xff] }
 0x127   : > { %11744 = vmatpush3.msra.mxu1 %v713_v60  ;;  %11710 = vmatprep.subr.mxu0 %v696_v61  ;;  %v747_v58 = vld [vmem:[%s15167_s26 + $0xe78] sm:$0xff]  ;;  %v762_v60 = vld [vmem:[%s15167_s26 + $0xef0] sm:$0xff] }
 0x128   : > { %11745 = vmatprep.subr.mxu1 %v728_v62  ;;  %11711 = vmatpush3.msra.mxu0 %v680_v63  ;;  %v779_v59 = vld [vmem:[%s15167_s26 + $0xf78] sm:$0xff]  ;;  %v794_v61 = vld [vmem:[%s15167_s26 + $0xff0] sm:$0xff] }
 0x129   : > { %11746 = vmatpush3.msra.mxu1 %v712_v0  ;;  %11712 = vmatprep.subr.mxu0 %v695_v1  ;;  %v746_v62 = vld [vmem:[%s15167_s26 + $0xe70] sm:$0xff]  ;;  %v761_v0 = vld [vmem:[%s15167_s26 + $0xee8] sm:$0xff] }
 0x12a   : > { %11747 = vmatprep.subr.mxu1 %v727_v2  ;;  %11713 = vmatpush3.msra.mxu0 %v679_v3  ;;  %v778_v63 = vld [vmem:[%s15167_s26 + $0xf70] sm:$0xff]  ;;  %v793_v1 = vld [vmem:[%s15167_s26 + $0xfe8] sm:$0xff] }
 0x12b   : > { %11748 = vmatpush3.msra.mxu1 %v711_v4  ;;  %11714 = vmatprep.subr.mxu0 %v694_v5  ;;  %v745_v2 = vld [vmem:[%s15167_s26 + $0xe68] sm:$0xff]  ;;  %v760_v4 = vld [vmem:[%s15167_s26 + $0xee0] sm:$0xff] }
 0x12c   : > { %11749 = vmatprep.subr.mxu1 %v726_v6  ;;  %11715 = vmatpush3.msra.mxu0 %v678_v7  ;;  %v777_v3 = vld [vmem:[%s15167_s26 + $0xf68] sm:$0xff]  ;;  %v792_v5 = vld [vmem:[%s15167_s26 + $0xfe0] sm:$0xff] }
 0x12d   : > { %11750 = vmatpush3.msra.mxu1 %v710_v8  ;;  %11716 = vmatprep.subr.mxu0 %v693_v9  ;;  %v744_v6 = vld [vmem:[%s15167_s26 + $0xe60] sm:$0xff]  ;;  %v759_v8 = vld [vmem:[%s15167_s26 + $0xed8] sm:$0xff] }
 0x12e   : > { %11751 = vmatprep.subr.mxu1 %v725_v10  ;;  %11717 = vmatpush3.msra.mxu0 %v677_v11  ;;  %v776_v7 = vld [vmem:[%s15167_s26 + $0xf60] sm:$0xff]  ;;  %v791_v9 = vld [vmem:[%s15167_s26 + $0xfd8] sm:$0xff] }
 0x12f   : > { %11752 = vmatpush3.msra.mxu1 %v709_v12  ;;  %11718 = vmatprep.subr.mxu0 %v692_v13  ;;  %v743_v10 = vld [vmem:[%s15167_s26 + $0xe58] sm:$0xff]  ;;  %v758_v12 = vld [vmem:[%s15167_s26 + $0xed0] sm:$0xff] }
 0x130   : > { %11753 = vmatprep.subr.mxu1 %v724_v14  ;;  %11719 = vmatpush3.msra.mxu0 %v676_v15  ;;  %v775_v11 = vld [vmem:[%s15167_s26 + $0xf58] sm:$0xff]  ;;  %v790_v13 = vld [vmem:[%s15167_s26 + $0xfd0] sm:$0xff] }
 0x131   : > { %11754 = vmatpush3.msra.mxu1 %v708_v16  ;;  %11720 = vmatprep.subr.mxu0 %v691_v17  ;;  %v742_v14 = vld [vmem:[%s15167_s26 + $0xe50] sm:$0xff]  ;;  %v757_v16 = vld [vmem:[%s15167_s26 + $0xec8] sm:$0xff] }
 0x132   : > { %11755 = vmatprep.subr.mxu1 %v723_v18  ;;  %11721 = vmatpush3.msra.mxu0 %v675_v19  ;;  %v774_v15 = vld [vmem:[%s15167_s26 + $0xf50] sm:$0xff]  ;;  %v789_v17 = vld [vmem:[%s15167_s26 + $0xfc8] sm:$0xff] }
 0x133   : > { %11756 = vmatpush3.msra.mxu1 %v707_v20  ;;  %11722 = vmatprep.subr.mxu0 %v690_v21  ;;  %v741_v18 = vld [vmem:[%s15167_s26 + $0xe48] sm:$0xff]  ;;  %v756_v20 = vld [vmem:[%s15167_s26 + $0xec0] sm:$0xff] }
 0x134   : > { %11757 = vmatprep.subr.mxu1 %v722_v22  ;;  %11723 = vmatpush3.msra.mxu0 %v674_v23  ;;  %v773_v19 = vld [vmem:[%s15167_s26 + $0xf48] sm:$0xff]  ;;  %v788_v21 = vld [vmem:[%s15167_s26 + $0xfc0] sm:$0xff] }
 0x135   : > { %11758 = vmatpush3.msra.mxu1 %v706_v24  ;;  %11724 = vmatprep.subr.mxu0 %v689_v25  ;;  %v740_v22 = vld [vmem:[%s15167_s26 + $0xe40] sm:$0xff]  ;;  %v755_v24 = vld [vmem:[%s15167_s26 + $0xeb8] sm:$0xff] }
 0x136   : > { %11759 = vmatprep.subr.mxu1 %v721_v26  ;;  %11725 = vmatpush3.msra.mxu0 %v673_v27  ;;  %v772_v23 = vld [vmem:[%s15167_s26 + $0xf40] sm:$0xff]  ;;  %v787_v25 = vld [vmem:[%s15167_s26 + $0xfb8] sm:$0xff] }
 0x137   : > { %11760 = vmatpush3.msra.mxu1 %v705_v28  ;;  %11726 = vmatprep.subr.mxu0 %v688_v30  ;;  %v739_v26 = vld [vmem:[%s15167_s26 + $0xe38] sm:$0xff]  ;;  %v754_v28 = vld [vmem:[%s15167_s26 + $0xeb0] sm:$0xff] }
 0x138   : > { %11761 = vmatprep.subr.mxu1 %v720_v31  ;;  %11727 = vmatpush3.msra.mxu0 %v672_v32  ;;  %v771_v27 = vld [vmem:[%s15167_s26 + $0xf38] sm:$0xff]  ;;  %v738_v30 = vld [vmem:[%s15167_s26 + $0xe30] sm:$0xff]  ;;  %v753_v32 = vld [vmem:[%s15167_s26 + $0xea8] sm:$0xff] }
 0x139   : > { %11762 = vmatpush3.msra.mxu1 %v704_v33  ;;  %11728 = vmatprep.subr.mxu0 %v687_v34  ;;  %v770_v31 = vld [vmem:[%s15167_s26 + $0xf30] sm:$0xff]  ;;  %v785_v33 = vld [vmem:[%s15167_s26 + $0xfa8] sm:$0xff] }
 0x13a   : > { %11763 = vmatprep.subr.mxu1 %v719_v35  ;;  %11729 = vmatpush3.msra.mxu0 %v671_v37  ;;  %v737_v34 = vld [vmem:[%s15167_s26 + $0xe28] sm:$0xff]  ;;  %v752_v37 = vld [vmem:[%s15167_s26 + $0xea0] sm:$0xff] }
 0x13b   : > { %11764 = vmatpush3.msra.mxu1 %v703_v38  ;;  %11730 = vmatprep.subr.mxu0 %v686_v39  ;;  %v769_v35 = vld [vmem:[%s15167_s26 + $0xf28] sm:$0xff]  ;;  %v784_v38 = vld [vmem:[%s15167_s26 + $0xfa0] sm:$0xff] }
 0x13c   : > { %11765 = vmatprep.subr.mxu1 %v718_v40  ;;  %11731 = vmatpush3.msra.mxu0 %v670_v42  ;;  %v736_v39 = vld [vmem:[%s15167_s26 + $0xe20] sm:$0xff]  ;;  %v783_v42 = vld [vmem:[%s15167_s26 + $0xf98] sm:$0xff] }
 0x13d   : > { %11766 = vmatpush3.msra.mxu1 %v702_v43  ;;  %11732 = vmatprep.subr.mxu0 %v685_v44  ;;  %v768_v40 = vld [vmem:[%s15167_s26 + $0xf20] sm:$0xff]  ;;  %v3523_v43 = vcombine.high %v243_v36, %v243_v36  ;;  %v735_v44 = vld [vmem:[%s15167_s26 + $0xe18] sm:$0xff] }
 0x13e   : > { %11767 = vmatprep.subr.mxu1 %v717_v45  ;;  %11733 = vmatpush3.msra.mxu0 %v669_v47  ;;  %v767_v45 = vld [vmem:[%s15167_s26 + $0xf18] sm:$0xff]  ;;  %v782_v47 = vld [vmem:[%s15167_s26 + $0xf90] sm:$0xff] }
 0x13f   : > { %11768 = vmatpush3.msra.mxu1 %v701_v48  ;;  %11734 = vmatprep.subr.mxu0 %v684_v49  ;;  %v3530_v48 = vrot.slane %v243_v36, %v15226_v52  ;;  %v734_v49 = vld [vmem:[%s15167_s26 + $0xe10] sm:$0xff] }
 0x140   : > { %11769 = vmatprep.subr.mxu1 %v716_v50  ;;  %11735 = vmatpush3.msra.mxu0 %v668_v53  ;;  %v766_v50 = vld [vmem:[%s15167_s26 + $0xf10] sm:$0xff]  ;;  %v781_v53 = vld [vmem:[%s15167_s26 + $0xf88] sm:$0xff] }
 0x141   : > { %5316 = vmatprep.mubr.f32.mxu0 %v3521_v51  ;;  %11770 = vmatpush3.msra.mxu1 %v700_v54  ;;  %v749_v51 = vld [vmem:[%s15167_s26 + $0xe88] sm:$0xff]  ;;  %v3537_v54 = vrot.slane %v3523_v43, %v15226_v52  ;;  %v850_v36 = vld [vmem:[%s15167_s26 + $0x11b0] sm:$0xff]  ;;  %v244_v43 = vld [vmem:[%s15161_s29 + $0x40] sm:$0xff] }
 0x142   : > { %5317 = vmatmul.mubr.f32.vlgmr.msra.gmra.mxu0 %v3513_v41  ;;  %5386 = vmatprep.mubr.f32.mxu1 %v3522_v55  ;;  %v751_v41 = vld [vmem:[%s15167_s26 + $0xe98] sm:$0xff]  ;;  %v733_v55 = vld [vmem:[%s15167_s26 + $0xe08] sm:$0xff] }
 0x143   : > { %11774 = vmatprep.subr.mxu0 %v763_v56  ;;  %11809 = vmatprep.subr.mxu1 %v795_v57  ;;  %v765_v56 = vld [vmem:[%s15167_s26 + $0xf08] sm:$0xff]  ;;  %v748_v57 = vld [vmem:[%s15167_s26 + $0xe80] sm:$0xff] }
 0x144   : > { %5387 = vmatmul.mubr.f32.vlgmr.msra.gmra.mxu1 %v3520_v46  ;;  %11775 = vmatpush3.msra.mxu0 %v747_v58  ;;  %v750_v46 = vld [vmem:[%s15167_s26 + $0xe90] sm:$0xff]  ;;  %v780_v58 = vld [vmem:[%s15167_s26 + $0xf80] sm:$0xff] }
 0x145   : > { %11810 = vmatpush3.msra.mxu1 %v779_v59  ;;  %11776 = vmatprep.subr.mxu0 %v762_v60  ;;  %v3538_v59 = vcombine.high %v3530_v48, %v3530_v48  ;;  %v732_v60 = vld [vmem:[%s15167_s26 + $0xe00] sm:$0xff] }
 0x146   : > { %11811 = vmatprep.subr.mxu1 %v794_v61  ;;  %11777 = vmatpush3.msra.mxu0 %v746_v62  ;;  %v764_v61 = vld [vmem:[%s15167_s26 + $0xf00] sm:$0xff]  ;;  %v3539_v62 = vcombine.high %v3537_v54, %v3537_v54 }
 0x147   : > { %11812 = vmatpush3.msra.mxu1 %v778_v63  ;;  %11778 = vmatprep.subr.mxu0 %v761_v0  ;;  %v827_v63 = vld [vmem:[%s15167_s26 + $0x10f8] sm:$0xff] }
 0x148   : > { %11813 = vmatprep.subr.mxu1 %v793_v1  ;;  %11779 = vmatpush3.msra.mxu0 %v745_v2  ;;  %v859_v0 = vld [vmem:[%s15167_s26 + $0x11f8] sm:$0xff] }
 0x149   : > { %11814 = vmatpush3.msra.mxu1 %v777_v3  ;;  %11780 = vmatprep.subr.mxu0 %v760_v4  ;;  %v811_v1 = vld [vmem:[%s15167_s26 + $0x1078] sm:$0xff]  ;;  %v826_v3 = vld [vmem:[%s15167_s26 + $0x10f0] sm:$0xff] }
 0x14a   : > { %11815 = vmatprep.subr.mxu1 %v792_v5  ;;  %11781 = vmatpush3.msra.mxu0 %v744_v6  ;;  %v843_v2 = vld [vmem:[%s15167_s26 + $0x1178] sm:$0xff]  ;;  %v858_v4 = vld [vmem:[%s15167_s26 + $0x11f0] sm:$0xff] }
 0x14b   : > { %11816 = vmatpush3.msra.mxu1 %v776_v7  ;;  %11782 = vmatprep.subr.mxu0 %v759_v8  ;;  %v810_v5 = vld [vmem:[%s15167_s26 + $0x1070] sm:$0xff]  ;;  %v825_v7 = vld [vmem:[%s15167_s26 + $0x10e8] sm:$0xff] }
 0x14c   : > { %11817 = vmatprep.subr.mxu1 %v791_v9  ;;  %11783 = vmatpush3.msra.mxu0 %v743_v10  ;;  %v842_v6 = vld [vmem:[%s15167_s26 + $0x1170] sm:$0xff]  ;;  %v857_v8 = vld [vmem:[%s15167_s26 + $0x11e8] sm:$0xff] }
 0x14d   : > { %11818 = vmatpush3.msra.mxu1 %v775_v11  ;;  %11784 = vmatprep.subr.mxu0 %v758_v12  ;;  %v809_v9 = vld [vmem:[%s15167_s26 + $0x1068] sm:$0xff]  ;;  %v824_v11 = vld [vmem:[%s15167_s26 + $0x10e0] sm:$0xff] }
 0x14e   : > { %11819 = vmatprep.subr.mxu1 %v790_v13  ;;  %11785 = vmatpush3.msra.mxu0 %v742_v14  ;;  %v841_v10 = vld [vmem:[%s15167_s26 + $0x1168] sm:$0xff]  ;;  %v856_v12 = vld [vmem:[%s15167_s26 + $0x11e0] sm:$0xff] }
 0x14f   : > { %11820 = vmatpush3.msra.mxu1 %v774_v15  ;;  %11786 = vmatprep.subr.mxu0 %v757_v16  ;;  %v808_v13 = vld [vmem:[%s15167_s26 + $0x1060] sm:$0xff]  ;;  %v823_v15 = vld [vmem:[%s15167_s26 + $0x10d8] sm:$0xff] }
 0x150   : > { %11821 = vmatprep.subr.mxu1 %v789_v17  ;;  %11787 = vmatpush3.msra.mxu0 %v741_v18  ;;  %v840_v14 = vld [vmem:[%s15167_s26 + $0x1160] sm:$0xff]  ;;  %v855_v16 = vld [vmem:[%s15167_s26 + $0x11d8] sm:$0xff] }
 0x151   : > { %11822 = vmatpush3.msra.mxu1 %v773_v19  ;;  %11788 = vmatprep.subr.mxu0 %v756_v20  ;;  %v807_v17 = vld [vmem:[%s15167_s26 + $0x1058] sm:$0xff]  ;;  %v822_v19 = vld [vmem:[%s15167_s26 + $0x10d0] sm:$0xff] }
 0x152   : > { %11823 = vmatprep.subr.mxu1 %v788_v21  ;;  %11789 = vmatpush3.msra.mxu0 %v740_v22  ;;  %v839_v18 = vld [vmem:[%s15167_s26 + $0x1158] sm:$0xff]  ;;  %v854_v20 = vld [vmem:[%s15167_s26 + $0x11d0] sm:$0xff] }
 0x153   : > { %11824 = vmatpush3.msra.mxu1 %v772_v23  ;;  %11790 = vmatprep.subr.mxu0 %v755_v24  ;;  %v806_v21 = vld [vmem:[%s15167_s26 + $0x1050] sm:$0xff]  ;;  %v821_v23 = vld [vmem:[%s15167_s26 + $0x10c8] sm:$0xff] }
 0x154   : > { %11825 = vmatprep.subr.mxu1 %v787_v25  ;;  %11791 = vmatpush3.msra.mxu0 %v739_v26  ;;  %v838_v22 = vld [vmem:[%s15167_s26 + $0x1150] sm:$0xff]  ;;  %v853_v24 = vld [vmem:[%s15167_s26 + $0x11c8] sm:$0xff] }
 0x155   : > { %11826 = vmatpush3.msra.mxu1 %v771_v27  ;;  %11792 = vmatprep.subr.mxu0 %v754_v28  ;;  %v805_v25 = vld [vmem:[%s15167_s26 + $0x1048] sm:$0xff]  ;;  %v820_v27 = vld [vmem:[%s15167_s26 + $0x10c0] sm:$0xff] }
 0x156   : > { %11827 = vmatprep.subr.mxu1 %v786_v29  ;;  %11793 = vmatpush3.msra.mxu0 %v738_v30  ;;  %v837_v26 = vld [vmem:[%s15167_s26 + $0x1148] sm:$0xff]  ;;  %v852_v28 = vld [vmem:[%s15167_s26 + $0x11c0] sm:$0xff] }
 0x157   : > { %11828 = vmatpush3.msra.mxu1 %v770_v31  ;;  %11794 = vmatprep.subr.mxu0 %v753_v32  ;;  %v804_v29 = vld [vmem:[%s15167_s26 + $0x1040] sm:$0xff]  ;;  %v819_v31 = vld [vmem:[%s15167_s26 + $0x10b8] sm:$0xff] }
 0x158   : > { %11829 = vmatprep.subr.mxu1 %v785_v33  ;;  %11795 = vmatpush3.msra.mxu0 %v737_v34  ;;  %v836_v30 = vld [vmem:[%s15167_s26 + $0x1140] sm:$0xff]  ;;  %v851_v32 = vld [vmem:[%s15167_s26 + $0x11b8] sm:$0xff] }
 0x159   : > { %11830 = vmatpush3.msra.mxu1 %v769_v35  ;;  %11796 = vmatprep.subr.mxu0 %v752_v37  ;;  %v803_v33 = vld [vmem:[%s15167_s26 + $0x1038] sm:$0xff]  ;;  %v818_v35 = vld [vmem:[%s15167_s26 + $0x10b0] sm:$0xff] }
 0x15a   : > { %11831 = vmatprep.subr.mxu1 %v784_v38  ;;  %11797 = vmatpush3.msra.mxu0 %v736_v39  ;;  %v835_v34 = vld [vmem:[%s15167_s26 + $0x1138] sm:$0xff]  ;;  %v802_v37 = vld [vmem:[%s15167_s26 + $0x1030] sm:$0xff]  ;;  %v817_v39 = vld [vmem:[%s15167_s26 + $0x10a8] sm:$0xff] }
 0x15b   : > { %11832 = vmatpush3.msra.mxu1 %v768_v40  ;;  %11798 = vmatprep.subr.mxu0 %v751_v41  ;;  %v834_v38 = vld [vmem:[%s15167_s26 + $0x1130] sm:$0xff]  ;;  %v849_v40 = vld [vmem:[%s15167_s26 + $0x11a8] sm:$0xff] }
 0x15c   : > { %11833 = vmatprep.subr.mxu1 %v783_v42  ;;  %11799 = vmatpush3.msra.mxu0 %v735_v44  ;;  %v801_v41 = vld [vmem:[%s15167_s26 + $0x1028] sm:$0xff]  ;;  %v816_v44 = vld [vmem:[%s15167_s26 + $0x10a0] sm:$0xff] }
 0x15d   : > { %11834 = vmatpush3.msra.mxu1 %v767_v45  ;;  %11800 = vmatprep.subr.mxu0 %v750_v46  ;;  %v833_v42 = vld [vmem:[%s15167_s26 + $0x1128] sm:$0xff]  ;;  %v848_v45 = vld [vmem:[%s15167_s26 + $0x11a0] sm:$0xff] }
 0x15e   : > { %11835 = vmatprep.subr.mxu1 %v782_v47  ;;  %11801 = vmatpush3.msra.mxu0 %v734_v49  ;;  %v800_v46 = vld [vmem:[%s15167_s26 + $0x1020] sm:$0xff]  ;;  %v847_v49 = vld [vmem:[%s15167_s26 + $0x1198] sm:$0xff] }
 0x15f   : > { %11836 = vmatpush3.msra.mxu1 %v766_v50  ;;  %11802 = vmatprep.subr.mxu0 %v749_v51  ;;  %v832_v47 = vld [vmem:[%s15167_s26 + $0x1120] sm:$0xff]  ;;  %v3540_v50 = vcombine.high %v244_v43, %v244_v43  ;;  %v799_v51 = vld [vmem:[%s15167_s26 + $0x1018] sm:$0xff] }
 0x160   : > { %11837 = vmatprep.subr.mxu1 %v781_v53  ;;  %11803 = vmatpush3.msra.mxu0 %v733_v55  ;;  %v831_v53 = vld [vmem:[%s15167_s26 + $0x1118] sm:$0xff]  ;;  %v846_v55 = vld [vmem:[%s15167_s26 + $0x1190] sm:$0xff] }
 0x161   : > { %11838 = vmatpush3.msra.mxu1 %v765_v56  ;;  %11804 = vmatprep.subr.mxu0 %v748_v57  ;;  %v3547_v56 = vrot.slane %v244_v43, %v15226_v52  ;;  %v798_v57 = vld [vmem:[%s15167_s26 + $0x1010] sm:$0xff] }
 0x162   : > { %11839 = vmatprep.subr.mxu1 %v780_v58  ;;  %11805 = vmatpush3.msra.mxu0 %v732_v60  ;;  %v830_v58 = vld [vmem:[%s15167_s26 + $0x1110] sm:$0xff]  ;;  %v845_v60 = vld [vmem:[%s15167_s26 + $0x1188] sm:$0xff] }
 0x163   : > { %5456 = vmatprep.mubr.f32.mxu0 %v3538_v59  ;;  %11840 = vmatpush3.msra.mxu1 %v764_v61  ;;  %v813_v59 = vld [vmem:[%s15167_s26 + $0x1088] sm:$0xff]  ;;  %v3554_v61 = vrot.slane %v3540_v50, %v15226_v52  ;;  %v914_v43 = vld [vmem:[%s15167_s26 + $0x13b0] sm:$0xff] }
 0x164   : > { %5457 = vmatmul.mubr.f32.vlgmr.msra.gmra.mxu0 %v3530_v48  ;;  %5526 = vmatprep.mubr.f32.mxu1 %v3539_v62  ;;  %v815_v48 = vld [vmem:[%s15167_s26 + $0x1098] sm:$0xff]  ;;  %v797_v62 = vld [vmem:[%s15167_s26 + $0x1008] sm:$0xff] }
 0x165   : > { %11844 = vmatprep.subr.mxu0 %v827_v63  ;;  %11879 = vmatprep.subr.mxu1 %v859_v0  ;;  %v829_v63 = vld [vmem:[%s15167_s26 + $0x1108] sm:$0xff]  ;;  %v812_v0 = vld [vmem:[%s15167_s26 + $0x1080] sm:$0xff] }
 0x166   : > { %5527 = vmatmul.mubr.f32.vlgmr.msra.gmra.mxu1 %v3537_v54  ;;  %11845 = vmatpush3.msra.mxu0 %v811_v1  ;;  %v814_v54 = vld [vmem:[%s15167_s26 + $0x1090] sm:$0xff]  ;;  %v844_v1 = vld [vmem:[%s15167_s26 + $0x1180] sm:$0xff]  ;;  %v245_v50 = vld [vmem:[%s15161_s29 + $0x48] sm:$0xff] }
 0x167   : > { %11880 = vmatpush3.msra.mxu1 %v843_v2  ;;  %11846 = vmatprep.subr.mxu0 %v826_v3  ;;  %v3555_v2 = vcombine.high %v3547_v56, %v3547_v56  ;;  %v796_v3 = vld [vmem:[%s15167_s26 + $0x1000] sm:$0xff] }
 0x168   : > { %11881 = vmatprep.subr.mxu1 %v858_v4  ;;  %11847 = vmatpush3.msra.mxu0 %v810_v5  ;;  %v828_v4 = vld [vmem:[%s15167_s26 + $0x1100] sm:$0xff]  ;;  %v3556_v5 = vcombine.high %v3554_v61, %v3554_v61 }
 0x169   : > { %11882 = vmatpush3.msra.mxu1 %v842_v6  ;;  %11848 = vmatprep.subr.mxu0 %v825_v7  ;;  %v891_v6 = vld [vmem:[%s15167_s26 + $0x12f8] sm:$0xff] }
 0x16a   : > { %11883 = vmatprep.subr.mxu1 %v857_v8  ;;  %11849 = vmatpush3.msra.mxu0 %v809_v9  ;;  %v923_v7 = vld [vmem:[%s15167_s26 + $0x13f8] sm:$0xff] }
 0x16b   : > { %11884 = vmatpush3.msra.mxu1 %v841_v10  ;;  %11850 = vmatprep.subr.mxu0 %v824_v11  ;;  %v875_v8 = vld [vmem:[%s15167_s26 + $0x1278] sm:$0xff]  ;;  %v890_v10 = vld [vmem:[%s15167_s26 + $0x12f0] sm:$0xff] }
 0x16c   : > { %11885 = vmatprep.subr.mxu1 %v856_v12  ;;  %11851 = vmatpush3.msra.mxu0 %v808_v13  ;;  %v907_v9 = vld [vmem:[%s15167_s26 + $0x1378] sm:$0xff]  ;;  %v922_v11 = vld [vmem:[%s15167_s26 + $0x13f0] sm:$0xff] }
 0x16d   : > { %11886 = vmatpush3.msra.mxu1 %v840_v14  ;;  %11852 = vmatprep.subr.mxu0 %v823_v15  ;;  %v874_v12 = vld [vmem:[%s15167_s26 + $0x1270] sm:$0xff]  ;;  %v889_v14 = vld [vmem:[%s15167_s26 + $0x12e8] sm:$0xff] }
 0x16e   : > { %11887 = vmatprep.subr.mxu1 %v855_v16  ;;  %11853 = vmatpush3.msra.mxu0 %v807_v17  ;;  %v906_v13 = vld [vmem:[%s15167_s26 + $0x1370] sm:$0xff]  ;;  %v921_v15 = vld [vmem:[%s15167_s26 + $0x13e8] sm:$0xff] }
 0x16f   : > { %11888 = vmatpush3.msra.mxu1 %v839_v18  ;;  %11854 = vmatprep.subr.mxu0 %v822_v19  ;;  %v873_v16 = vld [vmem:[%s15167_s26 + $0x1268] sm:$0xff]  ;;  %v888_v18 = vld [vmem:[%s15167_s26 + $0x12e0] sm:$0xff] }
 0x170   : > { %11889 = vmatprep.subr.mxu1 %v854_v20  ;;  %11855 = vmatpush3.msra.mxu0 %v806_v21  ;;  %v905_v17 = vld [vmem:[%s15167_s26 + $0x1368] sm:$0xff]  ;;  %v920_v19 = vld [vmem:[%s15167_s26 + $0x13e0] sm:$0xff] }
 0x171   : > { %11890 = vmatpush3.msra.mxu1 %v838_v22  ;;  %11856 = vmatprep.subr.mxu0 %v821_v23  ;;  %v872_v20 = vld [vmem:[%s15167_s26 + $0x1260] sm:$0xff]  ;;  %v887_v22 = vld [vmem:[%s15167_s26 + $0x12d8] sm:$0xff] }
 0x172   : > { %11891 = vmatprep.subr.mxu1 %v853_v24  ;;  %11857 = vmatpush3.msra.mxu0 %v805_v25  ;;  %v904_v21 = vld [vmem:[%s15167_s26 + $0x1360] sm:$0xff]  ;;  %v919_v23 = vld [vmem:[%s15167_s26 + $0x13d8] sm:$0xff] }
 0x173   : > { %11892 = vmatpush3.msra.mxu1 %v837_v26  ;;  %11858 = vmatprep.subr.mxu0 %v820_v27  ;;  %v871_v24 = vld [vmem:[%s15167_s26 + $0x1258] sm:$0xff]  ;;  %v886_v26 = vld [vmem:[%s15167_s26 + $0x12d0] sm:$0xff] }
 0x174   : > { %11893 = vmatprep.subr.mxu1 %v852_v28  ;;  %11859 = vmatpush3.msra.mxu0 %v804_v29  ;;  %v903_v25 = vld [vmem:[%s15167_s26 + $0x1358] sm:$0xff]  ;;  %v918_v27 = vld [vmem:[%s15167_s26 + $0x13d0] sm:$0xff] }
 0x175   : > { %11894 = vmatpush3.msra.mxu1 %v836_v30  ;;  %11860 = vmatprep.subr.mxu0 %v819_v31  ;;  %v870_v28 = vld [vmem:[%s15167_s26 + $0x1250] sm:$0xff]  ;;  %v885_v30 = vld [vmem:[%s15167_s26 + $0x12c8] sm:$0xff] }
 0x176   : > { %11895 = vmatprep.subr.mxu1 %v851_v32  ;;  %11861 = vmatpush3.msra.mxu0 %v803_v33  ;;  %v902_v29 = vld [vmem:[%s15167_s26 + $0x1350] sm:$0xff]  ;;  %v917_v31 = vld [vmem:[%s15167_s26 + $0x13c8] sm:$0xff] }
 0x177   : > { %11896 = vmatpush3.msra.mxu1 %v835_v34  ;;  %11862 = vmatprep.subr.mxu0 %v818_v35  ;;  %v869_v32 = vld [vmem:[%s15167_s26 + $0x1248] sm:$0xff]  ;;  %v884_v34 = vld [vmem:[%s15167_s26 + $0x12c0] sm:$0xff] }
 0x178   : > { %11897 = vmatprep.subr.mxu1 %v850_v36  ;;  %11863 = vmatpush3.msra.mxu0 %v802_v37  ;;  %v901_v33 = vld [vmem:[%s15167_s26 + $0x1348] sm:$0xff]  ;;  %v916_v35 = vld [vmem:[%s15167_s26 + $0x13c0] sm:$0xff] }
 0x179   : > { %11898 = vmatpush3.msra.mxu1 %v834_v38  ;;  %11864 = vmatprep.subr.mxu0 %v817_v39  ;;  %v868_v36 = vld [vmem:[%s15167_s26 + $0x1240] sm:$0xff]  ;;  %v883_v38 = vld [vmem:[%s15167_s26 + $0x12b8] sm:$0xff] }
 0x17a   : > { %11899 = vmatprep.subr.mxu1 %v849_v40  ;;  %11865 = vmatpush3.msra.mxu0 %v801_v41  ;;  %v900_v37 = vld [vmem:[%s15167_s26 + $0x1340] sm:$0xff]  ;;  %v915_v39 = vld [vmem:[%s15167_s26 + $0x13b8] sm:$0xff] }
 0x17b   : > { %11900 = vmatpush3.msra.mxu1 %v833_v42  ;;  %11866 = vmatprep.subr.mxu0 %v816_v44  ;;  %v867_v40 = vld [vmem:[%s15167_s26 + $0x1238] sm:$0xff]  ;;  %v882_v42 = vld [vmem:[%s15167_s26 + $0x12b0] sm:$0xff] }
 0x17c   : > { %11901 = vmatprep.subr.mxu1 %v848_v45  ;;  %11867 = vmatpush3.msra.mxu0 %v800_v46  ;;  %v899_v41 = vld [vmem:[%s15167_s26 + $0x1338] sm:$0xff]  ;;  %v866_v44 = vld [vmem:[%s15167_s26 + $0x1230] sm:$0xff]  ;;  %v881_v46 = vld [vmem:[%s15167_s26 + $0x12a8] sm:$0xff] }
 0x17d   : > { %11902 = vmatpush3.msra.mxu1 %v832_v47  ;;  %11868 = vmatprep.subr.mxu0 %v815_v48  ;;  %v898_v45 = vld [vmem:[%s15167_s26 + $0x1330] sm:$0xff]  ;;  %v913_v47 = vld [vmem:[%s15167_s26 + $0x13a8] sm:$0xff] }
 0x17e   : > { %11903 = vmatprep.subr.mxu1 %v847_v49  ;;  %11869 = vmatpush3.msra.mxu0 %v799_v51  ;;  %v865_v48 = vld [vmem:[%s15167_s26 + $0x1228] sm:$0xff]  ;;  %v880_v51 = vld [vmem:[%s15167_s26 + $0x12a0] sm:$0xff] }
 0x17f   : > { %11904 = vmatpush3.msra.mxu1 %v831_v53  ;;  %11870 = vmatprep.subr.mxu0 %v814_v54  ;;  %v897_v49 = vld [vmem:[%s15167_s26 + $0x1328] sm:$0xff]  ;;  %v912_v53 = vld [vmem:[%s15167_s26 + $0x13a0] sm:$0xff] }
 0x180   : > { %11905 = vmatprep.subr.mxu1 %v846_v55  ;;  %11871 = vmatpush3.msra.mxu0 %v798_v57  ;;  %v864_v54 = vld [vmem:[%s15167_s26 + $0x1220] sm:$0xff]  ;;  %v911_v57 = vld [vmem:[%s15167_s26 + $0x1398] sm:$0xff] }
 0x181   : > { %11906 = vmatpush3.msra.mxu1 %v830_v58  ;;  %11872 = vmatprep.subr.mxu0 %v813_v59  ;;  %v896_v55 = vld [vmem:[%s15167_s26 + $0x1320] sm:$0xff]  ;;  %v3557_v58 = vcombine.high %v245_v50, %v245_v50  ;;  %v863_v59 = vld [vmem:[%s15167_s26 + $0x1218] sm:$0xff] }
 0x182   : > { %11907 = vmatprep.subr.mxu1 %v845_v60  ;;  %11873 = vmatpush3.msra.mxu0 %v797_v62  ;;  %v895_v60 = vld [vmem:[%s15167_s26 + $0x1318] sm:$0xff]  ;;  %v910_v62 = vld [vmem:[%s15167_s26 + $0x1390] sm:$0xff] }
 0x183   : > { %11908 = vmatpush3.msra.mxu1 %v829_v63  ;;  %11874 = vmatprep.subr.mxu0 %v812_v0  ;;  %v3564_v63 = vrot.slane %v245_v50, %v15226_v52  ;;  %v862_v0 = vld [vmem:[%s15167_s26 + $0x1210] sm:$0xff] }
 0x184   : > { %11909 = vmatprep.subr.mxu1 %v844_v1  ;;  %11875 = vmatpush3.msra.mxu0 %v796_v3  ;;  %v894_v1 = vld [vmem:[%s15167_s26 + $0x1310] sm:$0xff]  ;;  %v909_v3 = vld [vmem:[%s15167_s26 + $0x1388] sm:$0xff] }
 0x185   : > { %5596 = vmatprep.mubr.f32.mxu0 %v3555_v2  ;;  %11910 = vmatpush3.msra.mxu1 %v828_v4  ;;  %v877_v2 = vld [vmem:[%s15167_s26 + $0x1288] sm:$0xff]  ;;  %v3571_v4 = vrot.slane %v3557_v58, %v15226_v52  ;;  %v978_v50 = vld [vmem:[%s15167_s26 + $0x15b0] sm:$0xff] }
 0x186   : > { %5597 = vmatmul.mubr.f32.vlgmr.msra.gmra.mxu0 %v3547_v56  ;;  %5666 = vmatprep.mubr.f32.mxu1 %v3556_v5  ;;  %v879_v56 = vld [vmem:[%s15167_s26 + $0x1298] sm:$0xff]  ;;  %v861_v5 = vld [vmem:[%s15167_s26 + $0x1208] sm:$0xff]  ;;  %v246_v58 = vld [vmem:[%s15161_s29 + $0x50] sm:$0xff] }
 0x187   : > { %11914 = vmatprep.subr.mxu0 %v891_v6  ;;  %11949 = vmatprep.subr.mxu1 %v923_v7  ;;  %v893_v6 = vld [vmem:[%s15167_s26 + $0x1308] sm:$0xff]  ;;  %v876_v7 = vld [vmem:[%s15167_s26 + $0x1280] sm:$0xff] }
 0x188   : > { %5667 = vmatmul.mubr.f32.vlgmr.msra.gmra.mxu1 %v3554_v61  ;;  %11915 = vmatpush3.msra.mxu0 %v875_v8  ;;  %v878_v61 = vld [vmem:[%s15167_s26 + $0x1290] sm:$0xff]  ;;  %v908_v8 = vld [vmem:[%s15167_s26 + $0x1380] sm:$0xff] }
 0x189   : > { %11950 = vmatpush3.msra.mxu1 %v907_v9  ;;  %11916 = vmatprep.subr.mxu0 %v890_v10  ;;  %v3572_v9 = vcombine.high %v3564_v63, %v3564_v63  ;;  %v860_v10 = vld [vmem:[%s15167_s26 + $0x1200] sm:$0xff] }
 0x18a   : > { %11951 = vmatprep.subr.mxu1 %v922_v11  ;;  %11917 = vmatpush3.msra.mxu0 %v874_v12  ;;  %v892_v11 = vld [vmem:[%s15167_s26 + $0x1300] sm:$0xff]  ;;  %v3573_v12 = vcombine.high %v3571_v4, %v3571_v4 }
 0x18b   : > { %11952 = vmatpush3.msra.mxu1 %v906_v13  ;;  %11918 = vmatprep.subr.mxu0 %v889_v14  ;;  %v955_v13 = vld [vmem:[%s15167_s26 + $0x14f8] sm:$0xff] }
 0x18c   : > { %11953 = vmatprep.subr.mxu1 %v921_v15  ;;  %11919 = vmatpush3.msra.mxu0 %v873_v16  ;;  %v987_v14 = vld [vmem:[%s15167_s26 + $0x15f8] sm:$0xff] }
 0x18d   : > { %11954 = vmatpush3.msra.mxu1 %v905_v17  ;;  %11920 = vmatprep.subr.mxu0 %v888_v18  ;;  %v939_v15 = vld [vmem:[%s15167_s26 + $0x1478] sm:$0xff]  ;;  %v954_v17 = vld [vmem:[%s15167_s26 + $0x14f0] sm:$0xff] }
 0x18e   : > { %11955 = vmatprep.subr.mxu1 %v920_v19  ;;  %11921 = vmatpush3.msra.mxu0 %v872_v20  ;;  %v971_v16 = vld [vmem:[%s15167_s26 + $0x1578] sm:$0xff]  ;;  %v986_v18 = vld [vmem:[%s15167_s26 + $0x15f0] sm:$0xff] }
 0x18f   : > { %11956 = vmatpush3.msra.mxu1 %v904_v21  ;;  %11922 = vmatprep.subr.mxu0 %v887_v22  ;;  %v938_v19 = vld [vmem:[%s15167_s26 + $0x1470] sm:$0xff]  ;;  %v953_v21 = vld [vmem:[%s15167_s26 + $0x14e8] sm:$0xff] }
 0x190   : > { %11957 = vmatprep.subr.mxu1 %v919_v23  ;;  %11923 = vmatpush3.msra.mxu0 %v871_v24  ;;  %v970_v20 = vld [vmem:[%s15167_s26 + $0x1570] sm:$0xff]  ;;  %v985_v22 = vld [vmem:[%s15167_s26 + $0x15e8] sm:$0xff] }
 0x191   : > { %11958 = vmatpush3.msra.mxu1 %v903_v25  ;;  %11924 = vmatprep.subr.mxu0 %v886_v26  ;;  %v937_v23 = vld [vmem:[%s15167_s26 + $0x1468] sm:$0xff]  ;;  %v952_v25 = vld [vmem:[%s15167_s26 + $0x14e0] sm:$0xff] }
 0x192   : > { %11959 = vmatprep.subr.mxu1 %v918_v27  ;;  %11925 = vmatpush3.msra.mxu0 %v870_v28  ;;  %v969_v24 = vld [vmem:[%s15167_s26 + $0x1568] sm:$0xff]  ;;  %v984_v26 = vld [vmem:[%s15167_s26 + $0x15e0] sm:$0xff] }
 0x193   : > { %11960 = vmatpush3.msra.mxu1 %v902_v29  ;;  %11926 = vmatprep.subr.mxu0 %v885_v30  ;;  %v936_v27 = vld [vmem:[%s15167_s26 + $0x1460] sm:$0xff]  ;;  %v951_v29 = vld [vmem:[%s15167_s26 + $0x14d8] sm:$0xff] }
 0x194   : > { %11961 = vmatprep.subr.mxu1 %v917_v31  ;;  %11927 = vmatpush3.msra.mxu0 %v869_v32  ;;  %v968_v28 = vld [vmem:[%s15167_s26 + $0x1560] sm:$0xff]  ;;  %v983_v30 = vld [vmem:[%s15167_s26 + $0x15d8] sm:$0xff] }
 0x195   : > { %11962 = vmatpush3.msra.mxu1 %v901_v33  ;;  %11928 = vmatprep.subr.mxu0 %v884_v34  ;;  %v935_v31 = vld [vmem:[%s15167_s26 + $0x1458] sm:$0xff]  ;;  %v950_v33 = vld [vmem:[%s15167_s26 + $0x14d0] sm:$0xff] }
 0x196   : > { %11963 = vmatprep.subr.mxu1 %v916_v35  ;;  %11929 = vmatpush3.msra.mxu0 %v868_v36  ;;  %v967_v32 = vld [vmem:[%s15167_s26 + $0x1558] sm:$0xff]  ;;  %v982_v34 = vld [vmem:[%s15167_s26 + $0x15d0] sm:$0xff] }
 0x197   : > { %11964 = vmatpush3.msra.mxu1 %v900_v37  ;;  %11930 = vmatprep.subr.mxu0 %v883_v38  ;;  %v934_v35 = vld [vmem:[%s15167_s26 + $0x1450] sm:$0xff]  ;;  %v949_v37 = vld [vmem:[%s15167_s26 + $0x14c8] sm:$0xff] }
 0x198   : > { %11965 = vmatprep.subr.mxu1 %v915_v39  ;;  %11931 = vmatpush3.msra.mxu0 %v867_v40  ;;  %v966_v36 = vld [vmem:[%s15167_s26 + $0x1550] sm:$0xff]  ;;  %v981_v38 = vld [vmem:[%s15167_s26 + $0x15c8] sm:$0xff] }
 0x199   : > { %11966 = vmatpush3.msra.mxu1 %v899_v41  ;;  %11932 = vmatprep.subr.mxu0 %v882_v42  ;;  %v933_v39 = vld [vmem:[%s15167_s26 + $0x1448] sm:$0xff]  ;;  %v948_v41 = vld [vmem:[%s15167_s26 + $0x14c0] sm:$0xff] }
 0x19a   : > { %11967 = vmatprep.subr.mxu1 %v914_v43  ;;  %11933 = vmatpush3.msra.mxu0 %v866_v44  ;;  %v965_v40 = vld [vmem:[%s15167_s26 + $0x1548] sm:$0xff]  ;;  %v980_v42 = vld [vmem:[%s15167_s26 + $0x15c0] sm:$0xff] }
 0x19b   : > { %11968 = vmatpush3.msra.mxu1 %v898_v45  ;;  %11934 = vmatprep.subr.mxu0 %v881_v46  ;;  %v932_v43 = vld [vmem:[%s15167_s26 + $0x1440] sm:$0xff]  ;;  %v947_v45 = vld [vmem:[%s15167_s26 + $0x14b8] sm:$0xff] }
 0x19c   : > { %11969 = vmatprep.subr.mxu1 %v913_v47  ;;  %11935 = vmatpush3.msra.mxu0 %v865_v48  ;;  %v964_v44 = vld [vmem:[%s15167_s26 + $0x1540] sm:$0xff]  ;;  %v979_v46 = vld [vmem:[%s15167_s26 + $0x15b8] sm:$0xff] }
 0x19d   : > { %11970 = vmatpush3.msra.mxu1 %v897_v49  ;;  %11936 = vmatprep.subr.mxu0 %v880_v51  ;;  %v931_v47 = vld [vmem:[%s15167_s26 + $0x1438] sm:$0xff]  ;;  %v946_v49 = vld [vmem:[%s15167_s26 + $0x14b0] sm:$0xff] }
 0x19e   : > { %11971 = vmatprep.subr.mxu1 %v912_v53  ;;  %11937 = vmatpush3.msra.mxu0 %v864_v54  ;;  %v963_v48 = vld [vmem:[%s15167_s26 + $0x1538] sm:$0xff]  ;;  %v930_v51 = vld [vmem:[%s15167_s26 + $0x1430] sm:$0xff]  ;;  %v945_v54 = vld [vmem:[%s15167_s26 + $0x14a8] sm:$0xff] }
 0x19f   : > { %11972 = vmatpush3.msra.mxu1 %v896_v55  ;;  %11938 = vmatprep.subr.mxu0 %v879_v56  ;;  %v962_v53 = vld [vmem:[%s15167_s26 + $0x1530] sm:$0xff]  ;;  %v977_v55 = vld [vmem:[%s15167_s26 + $0x15a8] sm:$0xff] }
 0x1a0   : > { %11973 = vmatprep.subr.mxu1 %v911_v57  ;;  %11939 = vmatpush3.msra.mxu0 %v863_v59  ;;  %v929_v56 = vld [vmem:[%s15167_s26 + $0x1428] sm:$0xff]  ;;  %v944_v59 = vld [vmem:[%s15167_s26 + $0x14a0] sm:$0xff] }
 0x1a1   : > { %11974 = vmatpush3.msra.mxu1 %v895_v60  ;;  %11940 = vmatprep.subr.mxu0 %v878_v61  ;;  %v961_v57 = vld [vmem:[%s15167_s26 + $0x1528] sm:$0xff]  ;;  %v976_v60 = vld [vmem:[%s15167_s26 + $0x15a0] sm:$0xff] }
 0x1a2   : > { %11975 = vmatprep.subr.mxu1 %v910_v62  ;;  %11941 = vmatpush3.msra.mxu0 %v862_v0  ;;  %v928_v61 = vld [vmem:[%s15167_s26 + $0x1420] sm:$0xff]  ;;  %v975_v0 = vld [vmem:[%s15167_s26 + $0x1598] sm:$0xff] }
 0x1a3   : > { %11976 = vmatpush3.msra.mxu1 %v894_v1  ;;  %11942 = vmatprep.subr.mxu0 %v877_v2  ;;  %v960_v62 = vld [vmem:[%s15167_s26 + $0x1520] sm:$0xff]  ;;  %v3574_v1 = vcombine.high %v246_v58, %v246_v58  ;;  %v927_v2 = vld [vmem:[%s15167_s26 + $0x1418] sm:$0xff] }
 0x1a4   : > { %11977 = vmatprep.subr.mxu1 %v909_v3  ;;  %11943 = vmatpush3.msra.mxu0 %v861_v5  ;;  %v959_v3 = vld [vmem:[%s15167_s26 + $0x1518] sm:$0xff]  ;;  %v974_v5 = vld [vmem:[%s15167_s26 + $0x1590] sm:$0xff] }
 0x1a5   : > { %11978 = vmatpush3.msra.mxu1 %v893_v6  ;;  %11944 = vmatprep.subr.mxu0 %v876_v7  ;;  %v3581_v6 = vrot.slane %v246_v58, %v15226_v52  ;;  %v926_v7 = vld [vmem:[%s15167_s26 + $0x1410] sm:$0xff] }
 0x1a6   : > { %11979 = vmatprep.subr.mxu1 %v908_v8  ;;  %11945 = vmatpush3.msra.mxu0 %v860_v10  ;;  %v958_v8 = vld [vmem:[%s15167_s26 + $0x1510] sm:$0xff]  ;;  %v973_v10 = vld [vmem:[%s15167_s26 + $0x1588] sm:$0xff] }
 0x1a7   : > { %5736 = vmatprep.mubr.f32.mxu0 %v3572_v9  ;;  %11980 = vmatpush3.msra.mxu1 %v892_v11  ;;  %v941_v9 = vld [vmem:[%s15167_s26 + $0x1488] sm:$0xff]  ;;  %v3588_v11 = vrot.slane %v3574_v1, %v15226_v52  ;;  %v1042_v58 = vld [vmem:[%s15167_s26 + $0x17b0] sm:$0xff]  ;;  %v247_v1 = vld [vmem:[%s15161_s29 + $0x58] sm:$0xff] }
 0x1a8   : > { %5737 = vmatmul.mubr.f32.vlgmr.msra.gmra.mxu0 %v3564_v63  ;;  %5806 = vmatprep.mubr.f32.mxu1 %v3573_v12  ;;  %v943_v63 = vld [vmem:[%s15167_s26 + $0x1498] sm:$0xff]  ;;  %v925_v12 = vld [vmem:[%s15167_s26 + $0x1408] sm:$0xff] }
 0x1a9   : > { %11984 = vmatprep.subr.mxu0 %v955_v13  ;;  %12019 = vmatprep.subr.mxu1 %v987_v14  ;;  %v957_v13 = vld [vmem:[%s15167_s26 + $0x1508] sm:$0xff]  ;;  %v940_v14 = vld [vmem:[%s15167_s26 + $0x1480] sm:$0xff] }
 0x1aa   : > { %5807 = vmatmul.mubr.f32.vlgmr.msra.gmra.mxu1 %v3571_v4  ;;  %11985 = vmatpush3.msra.mxu0 %v939_v15  ;;  %v942_v4 = vld [vmem:[%s15167_s26 + $0x1490] sm:$0xff]  ;;  %v972_v15 = vld [vmem:[%s15167_s26 + $0x1580] sm:$0xff] }
 0x1ab   : > { %12020 = vmatpush3.msra.mxu1 %v971_v16  ;;  %11986 = vmatprep.subr.mxu0 %v954_v17  ;;  %v3589_v16 = vcombine.high %v3581_v6, %v3581_v6  ;;  %v924_v17 = vld [vmem:[%s15167_s26 + $0x1400] sm:$0xff] }
 0x1ac   : > { %12021 = vmatprep.subr.mxu1 %v986_v18  ;;  %11987 = vmatpush3.msra.mxu0 %v938_v19  ;;  %v956_v18 = vld [vmem:[%s15167_s26 + $0x1500] sm:$0xff]  ;;  %v3590_v19 = vcombine.high %v3588_v11, %v3588_v11 }
 0x1ad   : > { %12022 = vmatpush3.msra.mxu1 %v970_v20  ;;  %11988 = vmatprep.subr.mxu0 %v953_v21  ;;  %v1019_v20 = vld [vmem:[%s15167_s26 + $0x16f8] sm:$0xff] }
 0x1ae   : > { %12023 = vmatprep.subr.mxu1 %v985_v22  ;;  %11989 = vmatpush3.msra.mxu0 %v937_v23  ;;  %v1051_v21 = vld [vmem:[%s15167_s26 + $0x17f8] sm:$0xff] }
 0x1af   : > { %12024 = vmatpush3.msra.mxu1 %v969_v24  ;;  %11990 = vmatprep.subr.mxu0 %v952_v25  ;;  %v1003_v22 = vld [vmem:[%s15167_s26 + $0x1678] sm:$0xff]  ;;  %v1018_v24 = vld [vmem:[%s15167_s26 + $0x16f0] sm:$0xff] }
 0x1b0   : > { %12025 = vmatprep.subr.mxu1 %v984_v26  ;;  %11991 = vmatpush3.msra.mxu0 %v936_v27  ;;  %v1035_v23 = vld [vmem:[%s15167_s26 + $0x1778] sm:$0xff]  ;;  %v1050_v25 = vld [vmem:[%s15167_s26 + $0x17f0] sm:$0xff] }
 0x1b1   : > { %12026 = vmatpush3.msra.mxu1 %v968_v28  ;;  %11992 = vmatprep.subr.mxu0 %v951_v29  ;;  %v1002_v26 = vld [vmem:[%s15167_s26 + $0x1670] sm:$0xff]  ;;  %v1017_v28 = vld [vmem:[%s15167_s26 + $0x16e8] sm:$0xff] }
 0x1b2   : > { %12027 = vmatprep.subr.mxu1 %v983_v30  ;;  %11993 = vmatpush3.msra.mxu0 %v935_v31  ;;  %v1034_v27 = vld [vmem:[%s15167_s26 + $0x1770] sm:$0xff]  ;;  %v1049_v29 = vld [vmem:[%s15167_s26 + $0x17e8] sm:$0xff] }
 0x1b3   : > { %12028 = vmatpush3.msra.mxu1 %v967_v32  ;;  %11994 = vmatprep.subr.mxu0 %v950_v33  ;;  %v1001_v30 = vld [vmem:[%s15167_s26 + $0x1668] sm:$0xff]  ;;  %v1016_v32 = vld [vmem:[%s15167_s26 + $0x16e0] sm:$0xff] }
 0x1b4   : > { %12029 = vmatprep.subr.mxu1 %v982_v34  ;;  %11995 = vmatpush3.msra.mxu0 %v934_v35  ;;  %v1033_v31 = vld [vmem:[%s15167_s26 + $0x1768] sm:$0xff]  ;;  %v1048_v33 = vld [vmem:[%s15167_s26 + $0x17e0] sm:$0xff] }
 0x1b5   : > { %12030 = vmatpush3.msra.mxu1 %v966_v36  ;;  %11996 = vmatprep.subr.mxu0 %v949_v37  ;;  %v1000_v34 = vld [vmem:[%s15167_s26 + $0x1660] sm:$0xff]  ;;  %v1015_v36 = vld [vmem:[%s15167_s26 + $0x16d8] sm:$0xff] }
 0x1b6   : > { %12031 = vmatprep.subr.mxu1 %v981_v38  ;;  %11997 = vmatpush3.msra.mxu0 %v933_v39  ;;  %v1032_v35 = vld [vmem:[%s15167_s26 + $0x1760] sm:$0xff]  ;;  %v1047_v37 = vld [vmem:[%s15167_s26 + $0x17d8] sm:$0xff] }
 0x1b7   : > { %12032 = vmatpush3.msra.mxu1 %v965_v40  ;;  %11998 = vmatprep.subr.mxu0 %v948_v41  ;;  %v999_v38 = vld [vmem:[%s15167_s26 + $0x1658] sm:$0xff]  ;;  %v1014_v40 = vld [vmem:[%s15167_s26 + $0x16d0] sm:$0xff] }
 0x1b8   : > { %12033 = vmatprep.subr.mxu1 %v980_v42  ;;  %11999 = vmatpush3.msra.mxu0 %v932_v43  ;;  %v1031_v39 = vld [vmem:[%s15167_s26 + $0x1758] sm:$0xff]  ;;  %v1046_v41 = vld [vmem:[%s15167_s26 + $0x17d0] sm:$0xff] }
 0x1b9   : > { %12034 = vmatpush3.msra.mxu1 %v964_v44  ;;  %12000 = vmatprep.subr.mxu0 %v947_v45  ;;  %v998_v42 = vld [vmem:[%s15167_s26 + $0x1650] sm:$0xff]  ;;  %v1013_v44 = vld [vmem:[%s15167_s26 + $0x16c8] sm:$0xff] }
 0x1ba   : > { %12035 = vmatprep.subr.mxu1 %v979_v46  ;;  %12001 = vmatpush3.msra.mxu0 %v931_v47  ;;  %v1030_v43 = vld [vmem:[%s15167_s26 + $0x1750] sm:$0xff]  ;;  %v1045_v45 = vld [vmem:[%s15167_s26 + $0x17c8] sm:$0xff] }
 0x1bb   : > { %12036 = vmatpush3.msra.mxu1 %v963_v48  ;;  %12002 = vmatprep.subr.mxu0 %v946_v49  ;;  %v997_v46 = vld [vmem:[%s15167_s26 + $0x1648] sm:$0xff]  ;;  %v1012_v48 = vld [vmem:[%s15167_s26 + $0x16c0] sm:$0xff] }
 0x1bc   : > { %12037 = vmatprep.subr.mxu1 %v978_v50  ;;  %12003 = vmatpush3.msra.mxu0 %v930_v51  ;;  %v1029_v47 = vld [vmem:[%s15167_s26 + $0x1748] sm:$0xff]  ;;  %v1044_v49 = vld [vmem:[%s15167_s26 + $0x17c0] sm:$0xff] }
 0x1bd   : > { %12038 = vmatpush3.msra.mxu1 %v962_v53  ;;  %12004 = vmatprep.subr.mxu0 %v945_v54  ;;  %v996_v50 = vld [vmem:[%s15167_s26 + $0x1640] sm:$0xff]  ;;  %v1011_v53 = vld [vmem:[%s15167_s26 + $0x16b8] sm:$0xff] }
 0x1be   : > { %12039 = vmatprep.subr.mxu1 %v977_v55  ;;  %12005 = vmatpush3.msra.mxu0 %v929_v56  ;;  %v1028_v51 = vld [vmem:[%s15167_s26 + $0x1740] sm:$0xff]  ;;  %v1043_v54 = vld [vmem:[%s15167_s26 + $0x17b8] sm:$0xff] }
 0x1bf   : > { %12040 = vmatpush3.msra.mxu1 %v961_v57  ;;  %12006 = vmatprep.subr.mxu0 %v944_v59  ;;  %v995_v55 = vld [vmem:[%s15167_s26 + $0x1638] sm:$0xff]  ;;  %v1010_v57 = vld [vmem:[%s15167_s26 + $0x16b0] sm:$0xff] }
 0x1c0   : > { %12041 = vmatprep.subr.mxu1 %v976_v60  ;;  %12007 = vmatpush3.msra.mxu0 %v928_v61  ;;  %v1027_v56 = vld [vmem:[%s15167_s26 + $0x1738] sm:$0xff]  ;;  %v994_v59 = vld [vmem:[%s15167_s26 + $0x1630] sm:$0xff]  ;;  %v1009_v61 = vld [vmem:[%s15167_s26 + $0x16a8] sm:$0xff] }
 0x1c1   : > { %12042 = vmatpush3.msra.mxu1 %v960_v62  ;;  %12008 = vmatprep.subr.mxu0 %v943_v63  ;;  %v1026_v60 = vld [vmem:[%s15167_s26 + $0x1730] sm:$0xff]  ;;  %v1041_v62 = vld [vmem:[%s15167_s26 + $0x17a8] sm:$0xff] }
 0x1c2   : > { %12043 = vmatprep.subr.mxu1 %v975_v0  ;;  %12009 = vmatpush3.msra.mxu0 %v927_v2  ;;  %v993_v63 = vld [vmem:[%s15167_s26 + $0x1628] sm:$0xff]  ;;  %v1008_v2 = vld [vmem:[%s15167_s26 + $0x16a0] sm:$0xff] }
 0x1c3   : > { %12044 = vmatpush3.msra.mxu1 %v959_v3  ;;  %12010 = vmatprep.subr.mxu0 %v942_v4  ;;  %v1025_v0 = vld [vmem:[%s15167_s26 + $0x1728] sm:$0xff]  ;;  %v1040_v3 = vld [vmem:[%s15167_s26 + $0x17a0] sm:$0xff] }
 0x1c4   : > { %12045 = vmatprep.subr.mxu1 %v974_v5  ;;  %12011 = vmatpush3.msra.mxu0 %v926_v7  ;;  %v992_v4 = vld [vmem:[%s15167_s26 + $0x1620] sm:$0xff]  ;;  %v1039_v7 = vld [vmem:[%s15167_s26 + $0x1798] sm:$0xff] }
 0x1c5   : > { %12046 = vmatpush3.msra.mxu1 %v958_v8  ;;  %12012 = vmatprep.subr.mxu0 %v941_v9  ;;  %v1024_v5 = vld [vmem:[%s15167_s26 + $0x1720] sm:$0xff]  ;;  %v3591_v8 = vcombine.high %v247_v1, %v247_v1  ;;  %v991_v9 = vld [vmem:[%s15167_s26 + $0x1618] sm:$0xff] }
 0x1c6   : > { %12047 = vmatprep.subr.mxu1 %v973_v10  ;;  %12013 = vmatpush3.msra.mxu0 %v925_v12  ;;  %v1023_v10 = vld [vmem:[%s15167_s26 + $0x1718] sm:$0xff]  ;;  %v1038_v12 = vld [vmem:[%s15167_s26 + $0x1790] sm:$0xff] }
 0x1c7   : > { %12048 = vmatpush3.msra.mxu1 %v957_v13  ;;  %12014 = vmatprep.subr.mxu0 %v940_v14  ;;  %v3598_v13 = vrot.slane %v247_v1, %v15226_v52  ;;  %v990_v14 = vld [vmem:[%s15167_s26 + $0x1610] sm:$0xff] }
 0x1c8   : > { %12049 = vmatprep.subr.mxu1 %v972_v15  ;;  %12015 = vmatpush3.msra.mxu0 %v924_v17  ;;  %v1022_v15 = vld [vmem:[%s15167_s26 + $0x1710] sm:$0xff]  ;;  %v1037_v17 = vld [vmem:[%s15167_s26 + $0x1788] sm:$0xff] }
 0x1c9   : > { %5876 = vmatprep.mubr.f32.mxu0 %v3589_v16  ;;  %12050 = vmatpush3.msra.mxu1 %v956_v18  ;;  %v1005_v16 = vld [vmem:[%s15167_s26 + $0x1688] sm:$0xff]  ;;  %v3605_v18 = vrot.slane %v3591_v8, %v15226_v52  ;;  %v1106_v1 = vld [vmem:[%s15167_s26 + $0x19b0] sm:$0xff]  ;;  %v248_v8 = vld [vmem:[%s15161_s29 + $0x60] sm:$0xff] }
 0x1ca   : > { %5877 = vmatmul.mubr.f32.vlgmr.msra.gmra.mxu0 %v3581_v6  ;;  %5946 = vmatprep.mubr.f32.mxu1 %v3590_v19  ;;  %v1007_v6 = vld [vmem:[%s15167_s26 + $0x1698] sm:$0xff]  ;;  %v989_v19 = vld [vmem:[%s15167_s26 + $0x1608] sm:$0xff] }
 0x1cb   : > { %12054 = vmatprep.subr.mxu0 %v1019_v20  ;;  %12089 = vmatprep.subr.mxu1 %v1051_v21  ;;  %v1021_v20 = vld [vmem:[%s15167_s26 + $0x1708] sm:$0xff]  ;;  %v1004_v21 = vld [vmem:[%s15167_s26 + $0x1680] sm:$0xff] }
 0x1cc   : > { %5947 = vmatmul.mubr.f32.vlgmr.msra.gmra.mxu1 %v3588_v11  ;;  %12055 = vmatpush3.msra.mxu0 %v1003_v22  ;;  %v1006_v11 = vld [vmem:[%s15167_s26 + $0x1690] sm:$0xff]  ;;  %v1036_v22 = vld [vmem:[%s15167_s26 + $0x1780] sm:$0xff] }
 0x1cd   : > { %12090 = vmatpush3.msra.mxu1 %v1035_v23  ;;  %12056 = vmatprep.subr.mxu0 %v1018_v24  ;;  %v3606_v23 = vcombine.high %v3598_v13, %v3598_v13  ;;  %v988_v24 = vld [vmem:[%s15167_s26 + $0x1600] sm:$0xff] }
 0x1ce   : > { %12091 = vmatprep.subr.mxu1 %v1050_v25  ;;  %12057 = vmatpush3.msra.mxu0 %v1002_v26  ;;  %v1020_v25 = vld [vmem:[%s15167_s26 + $0x1700] sm:$0xff]  ;;  %v3607_v26 = vcombine.high %v3605_v18, %v3605_v18 }
 0x1cf   : > { %12092 = vmatpush3.msra.mxu1 %v1034_v27  ;;  %12058 = vmatprep.subr.mxu0 %v1017_v28  ;;  %v1083_v27 = vld [vmem:[%s15167_s26 + $0x18f8] sm:$0xff] }
 0x1d0   : > { %12093 = vmatprep.subr.mxu1 %v1049_v29  ;;  %12059 = vmatpush3.msra.mxu0 %v1001_v30  ;;  %v1115_v28 = vld [vmem:[%s15167_s26 + $0x19f8] sm:$0xff] }
 0x1d1   : > { %12094 = vmatpush3.msra.mxu1 %v1033_v31  ;;  %12060 = vmatprep.subr.mxu0 %v1016_v32  ;;  %v1067_v29 = vld [vmem:[%s15167_s26 + $0x1878] sm:$0xff]  ;;  %v1082_v31 = vld [vmem:[%s15167_s26 + $0x18f0] sm:$0xff] }
 0x1d2   : > { %12095 = vmatprep.subr.mxu1 %v1048_v33  ;;  %12061 = vmatpush3.msra.mxu0 %v1000_v34  ;;  %v1099_v30 = vld [vmem:[%s15167_s26 + $0x1978] sm:$0xff]  ;;  %v1114_v32 = vld [vmem:[%s15167_s26 + $0x19f0] sm:$0xff] }
 0x1d3   : > { %12096 = vmatpush3.msra.mxu1 %v1032_v35  ;;  %12062 = vmatprep.subr.mxu0 %v1015_v36  ;;  %v1066_v33 = vld [vmem:[%s15167_s26 + $0x1870] sm:$0xff]  ;;  %v1081_v35 = vld [vmem:[%s15167_s26 + $0x18e8] sm:$0xff] }
 0x1d4   : > { %12097 = vmatprep.subr.mxu1 %v1047_v37  ;;  %12063 = vmatpush3.msra.mxu0 %v999_v38  ;;  %v1098_v34 = vld [vmem:[%s15167_s26 + $0x1970] sm:$0xff]  ;;  %v1113_v36 = vld [vmem:[%s15167_s26 + $0x19e8] sm:$0xff] }
 0x1d5   : > { %12098 = vmatpush3.msra.mxu1 %v1031_v39  ;;  %12064 = vmatprep.subr.mxu0 %v1014_v40  ;;  %v1065_v37 = vld [vmem:[%s15167_s26 + $0x1868] sm:$0xff]  ;;  %v1080_v39 = vld [vmem:[%s15167_s26 + $0x18e0] sm:$0xff] }
 0x1d6   : > { %12099 = vmatprep.subr.mxu1 %v1046_v41  ;;  %12065 = vmatpush3.msra.mxu0 %v998_v42  ;;  %v1097_v38 = vld [vmem:[%s15167_s26 + $0x1968] sm:$0xff]  ;;  %v1112_v40 = vld [vmem:[%s15167_s26 + $0x19e0] sm:$0xff] }
 0x1d7   : > { %12100 = vmatpush3.msra.mxu1 %v1030_v43  ;;  %12066 = vmatprep.subr.mxu0 %v1013_v44  ;;  %v1064_v41 = vld [vmem:[%s15167_s26 + $0x1860] sm:$0xff]  ;;  %v1079_v43 = vld [vmem:[%s15167_s26 + $0x18d8] sm:$0xff] }
 0x1d8   : > { %12101 = vmatprep.subr.mxu1 %v1045_v45  ;;  %12067 = vmatpush3.msra.mxu0 %v997_v46  ;;  %v1096_v42 = vld [vmem:[%s15167_s26 + $0x1960] sm:$0xff]  ;;  %v1111_v44 = vld [vmem:[%s15167_s26 + $0x19d8] sm:$0xff] }
 0x1d9   : > { %12102 = vmatpush3.msra.mxu1 %v1029_v47  ;;  %12068 = vmatprep.subr.mxu0 %v1012_v48  ;;  %v1063_v45 = vld [vmem:[%s15167_s26 + $0x1858] sm:$0xff]  ;;  %v1078_v47 = vld [vmem:[%s15167_s26 + $0x18d0] sm:$0xff] }
 0x1da   : > { %12103 = vmatprep.subr.mxu1 %v1044_v49  ;;  %12069 = vmatpush3.msra.mxu0 %v996_v50  ;;  %v1095_v46 = vld [vmem:[%s15167_s26 + $0x1958] sm:$0xff]  ;;  %v1110_v48 = vld [vmem:[%s15167_s26 + $0x19d0] sm:$0xff] }
 0x1db   : > { %12104 = vmatpush3.msra.mxu1 %v1028_v51  ;;  %12070 = vmatprep.subr.mxu0 %v1011_v53  ;;  %v1062_v49 = vld [vmem:[%s15167_s26 + $0x1850] sm:$0xff]  ;;  %v1077_v51 = vld [vmem:[%s15167_s26 + $0x18c8] sm:$0xff] }
 0x1dc   : > { %12105 = vmatprep.subr.mxu1 %v1043_v54  ;;  %12071 = vmatpush3.msra.mxu0 %v995_v55  ;;  %v1094_v50 = vld [vmem:[%s15167_s26 + $0x1950] sm:$0xff]  ;;  %v1109_v53 = vld [vmem:[%s15167_s26 + $0x19c8] sm:$0xff] }
 0x1dd   : > { %12106 = vmatpush3.msra.mxu1 %v1027_v56  ;;  %12072 = vmatprep.subr.mxu0 %v1010_v57  ;;  %v1061_v54 = vld [vmem:[%s15167_s26 + $0x1848] sm:$0xff]  ;;  %v1076_v56 = vld [vmem:[%s15167_s26 + $0x18c0] sm:$0xff] }
 0x1de   : > { %12107 = vmatprep.subr.mxu1 %v1042_v58  ;;  %12073 = vmatpush3.msra.mxu0 %v994_v59  ;;  %v1093_v55 = vld [vmem:[%s15167_s26 + $0x1948] sm:$0xff]  ;;  %v1108_v57 = vld [vmem:[%s15167_s26 + $0x19c0] sm:$0xff] }
 0x1df   : > { %12108 = vmatpush3.msra.mxu1 %v1026_v60  ;;  %12074 = vmatprep.subr.mxu0 %v1009_v61  ;;  %v1060_v58 = vld [vmem:[%s15167_s26 + $0x1840] sm:$0xff]  ;;  %v1075_v60 = vld [vmem:[%s15167_s26 + $0x18b8] sm:$0xff] }
 0x1e0   : > { %12109 = vmatprep.subr.mxu1 %v1041_v62  ;;  %12075 = vmatpush3.msra.mxu0 %v993_v63  ;;  %v1092_v59 = vld [vmem:[%s15167_s26 + $0x1940] sm:$0xff]  ;;  %v1107_v61 = vld [vmem:[%s15167_s26 + $0x19b8] sm:$0xff] }
 0x1e1   : > { %12110 = vmatpush3.msra.mxu1 %v1025_v0  ;;  %12076 = vmatprep.subr.mxu0 %v1008_v2  ;;  %v1059_v62 = vld [vmem:[%s15167_s26 + $0x1838] sm:$0xff]  ;;  %v1074_v0 = vld [vmem:[%s15167_s26 + $0x18b0] sm:$0xff] }
 0x1e2   : > { %12111 = vmatprep.subr.mxu1 %v1040_v3  ;;  %12077 = vmatpush3.msra.mxu0 %v992_v4  ;;  %v1091_v63 = vld [vmem:[%s15167_s26 + $0x1938] sm:$0xff]  ;;  %v1058_v2 = vld [vmem:[%s15167_s26 + $0x1830] sm:$0xff]  ;;  %v1073_v4 = vld [vmem:[%s15167_s26 + $0x18a8] sm:$0xff] }
 0x1e3   : > { %12112 = vmatpush3.msra.mxu1 %v1024_v5  ;;  %12078 = vmatprep.subr.mxu0 %v1007_v6  ;;  %v1090_v3 = vld [vmem:[%s15167_s26 + $0x1930] sm:$0xff]  ;;  %v1105_v5 = vld [vmem:[%s15167_s26 + $0x19a8] sm:$0xff] }
 0x1e4   : > { %12113 = vmatprep.subr.mxu1 %v1039_v7  ;;  %12079 = vmatpush3.msra.mxu0 %v991_v9  ;;  %v1057_v6 = vld [vmem:[%s15167_s26 + $0x1828] sm:$0xff]  ;;  %v1072_v9 = vld [vmem:[%s15167_s26 + $0x18a0] sm:$0xff] }
 0x1e5   : > { %12114 = vmatpush3.msra.mxu1 %v1023_v10  ;;  %12080 = vmatprep.subr.mxu0 %v1006_v11  ;;  %v1089_v7 = vld [vmem:[%s15167_s26 + $0x1928] sm:$0xff]  ;;  %v1104_v10 = vld [vmem:[%s15167_s26 + $0x19a0] sm:$0xff] }
 0x1e6   : > { %12115 = vmatprep.subr.mxu1 %v1038_v12  ;;  %12081 = vmatpush3.msra.mxu0 %v990_v14  ;;  %v1056_v11 = vld [vmem:[%s15167_s26 + $0x1820] sm:$0xff]  ;;  %v1103_v14 = vld [vmem:[%s15167_s26 + $0x1998] sm:$0xff] }
 0x1e7   : > { %12116 = vmatpush3.msra.mxu1 %v1022_v15  ;;  %12082 = vmatprep.subr.mxu0 %v1005_v16  ;;  %v1088_v12 = vld [vmem:[%s15167_s26 + $0x1920] sm:$0xff]  ;;  %v3608_v15 = vcombine.high %v248_v8, %v248_v8  ;;  %v1055_v16 = vld [vmem:[%s15167_s26 + $0x1818] sm:$0xff] }
 0x1e8   : > { %12117 = vmatprep.subr.mxu1 %v1037_v17  ;;  %12083 = vmatpush3.msra.mxu0 %v989_v19  ;;  %v1087_v17 = vld [vmem:[%s15167_s26 + $0x1918] sm:$0xff]  ;;  %v1102_v19 = vld [vmem:[%s15167_s26 + $0x1990] sm:$0xff] }
 0x1e9   : > { %12118 = vmatpush3.msra.mxu1 %v1021_v20  ;;  %12084 = vmatprep.subr.mxu0 %v1004_v21  ;;  %v3615_v20 = vrot.slane %v248_v8, %v15226_v52  ;;  %v1054_v21 = vld [vmem:[%s15167_s26 + $0x1810] sm:$0xff] }
 0x1ea   : > { %12119 = vmatprep.subr.mxu1 %v1036_v22  ;;  %12085 = vmatpush3.msra.mxu0 %v988_v24  ;;  %v1086_v22 = vld [vmem:[%s15167_s26 + $0x1910] sm:$0xff]  ;;  %v1101_v24 = vld [vmem:[%s15167_s26 + $0x1988] sm:$0xff] }
 0x1eb   : > { %6016 = vmatprep.mubr.f32.mxu0 %v3606_v23  ;;  %12120 = vmatpush3.msra.mxu1 %v1020_v25  ;;  %v1069_v23 = vld [vmem:[%s15167_s26 + $0x1888] sm:$0xff]  ;;  %v3622_v25 = vrot.slane %v3608_v15, %v15226_v52  ;;  %v1170_v8 = vld [vmem:[%s15167_s26 + $0x1bb0] sm:$0xff] }
 0x1ec   : > { %6017 = vmatmul.mubr.f32.vlgmr.msra.gmra.mxu0 %v3598_v13  ;;  %6086 = vmatprep.mubr.f32.mxu1 %v3607_v26  ;;  %v1071_v13 = vld [vmem:[%s15167_s26 + $0x1898] sm:$0xff]  ;;  %v1053_v26 = vld [vmem:[%s15167_s26 + $0x1808] sm:$0xff] }
 0x1ed   : > { %12124 = vmatprep.subr.mxu0 %v1083_v27  ;;  %12159 = vmatprep.subr.mxu1 %v1115_v28  ;;  %v1085_v27 = vld [vmem:[%s15167_s26 + $0x1908] sm:$0xff]  ;;  %v1068_v28 = vld [vmem:[%s15167_s26 + $0x1880] sm:$0xff] }
 0x1ee   : > { %6087 = vmatmul.mubr.f32.vlgmr.msra.gmra.mxu1 %v3605_v18  ;;  %12125 = vmatpush3.msra.mxu0 %v1067_v29  ;;  %v1070_v18 = vld [vmem:[%s15167_s26 + $0x1890] sm:$0xff]  ;;  %v1100_v29 = vld [vmem:[%s15167_s26 + $0x1980] sm:$0xff]  ;;  %v249_v15 = vld [vmem:[%s15161_s29 + $0x68] sm:$0xff] }
 0x1ef   : > { %12160 = vmatpush3.msra.mxu1 %v1099_v30  ;;  %12126 = vmatprep.subr.mxu0 %v1082_v31  ;;  %v3623_v30 = vcombine.high %v3615_v20, %v3615_v20  ;;  %v1052_v31 = vld [vmem:[%s15167_s26 + $0x1800] sm:$0xff] }
 0x1f0   : > { %12161 = vmatprep.subr.mxu1 %v1114_v32  ;;  %12127 = vmatpush3.msra.mxu0 %v1066_v33  ;;  %v1084_v32 = vld [vmem:[%s15167_s26 + $0x1900] sm:$0xff]  ;;  %v3624_v33 = vcombine.high %v3622_v25, %v3622_v25 }
 0x1f1   : > { %12162 = vmatpush3.msra.mxu1 %v1098_v34  ;;  %12128 = vmatprep.subr.mxu0 %v1081_v35  ;;  %v1147_v34 = vld [vmem:[%s15167_s26 + $0x1af8] sm:$0xff] }
 0x1f2   : > { %12163 = vmatprep.subr.mxu1 %v1113_v36  ;;  %12129 = vmatpush3.msra.mxu0 %v1065_v37  ;;  %v1179_v35 = vld [vmem:[%s15167_s26 + $0x1bf8] sm:$0xff] }
 0x1f3   : > { %12164 = vmatpush3.msra.mxu1 %v1097_v38  ;;  %12130 = vmatprep.subr.mxu0 %v1080_v39  ;;  %v1131_v36 = vld [vmem:[%s15167_s26 + $0x1a78] sm:$0xff]  ;;  %v1146_v38 = vld [vmem:[%s15167_s26 + $0x1af0] sm:$0xff] }
 0x1f4   : > { %12165 = vmatprep.subr.mxu1 %v1112_v40  ;;  %12131 = vmatpush3.msra.mxu0 %v1064_v41  ;;  %v1163_v37 = vld [vmem:[%s15167_s26 + $0x1b78] sm:$0xff]  ;;  %v1178_v39 = vld [vmem:[%s15167_s26 + $0x1bf0] sm:$0xff] }
 0x1f5   : > { %12166 = vmatpush3.msra.mxu1 %v1096_v42  ;;  %12132 = vmatprep.subr.mxu0 %v1079_v43  ;;  %v1130_v40 = vld [vmem:[%s15167_s26 + $0x1a70] sm:$0xff]  ;;  %v1145_v42 = vld [vmem:[%s15167_s26 + $0x1ae8] sm:$0xff] }
 0x1f6   : > { %12167 = vmatprep.subr.mxu1 %v1111_v44  ;;  %12133 = vmatpush3.msra.mxu0 %v1063_v45  ;;  %v1162_v41 = vld [vmem:[%s15167_s26 + $0x1b70] sm:$0xff]  ;;  %v1177_v43 = vld [vmem:[%s15167_s26 + $0x1be8] sm:$0xff] }
 0x1f7   : > { %12168 = vmatpush3.msra.mxu1 %v1095_v46  ;;  %12134 = vmatprep.subr.mxu0 %v1078_v47  ;;  %v1129_v44 = vld [vmem:[%s15167_s26 + $0x1a68] sm:$0xff]  ;;  %v1144_v46 = vld [vmem:[%s15167_s26 + $0x1ae0] sm:$0xff] }
 0x1f8   : > { %12169 = vmatprep.subr.mxu1 %v1110_v48  ;;  %12135 = vmatpush3.msra.mxu0 %v1062_v49  ;;  %v1161_v45 = vld [vmem:[%s15167_s26 + $0x1b68] sm:$0xff]  ;;  %v1176_v47 = vld [vmem:[%s15167_s26 + $0x1be0] sm:$0xff] }
 0x1f9   : > { %12170 = vmatpush3.msra.mxu1 %v1094_v50  ;;  %12136 = vmatprep.subr.mxu0 %v1077_v51  ;;  %v1128_v48 = vld [vmem:[%s15167_s26 + $0x1a60] sm:$0xff]  ;;  %v1143_v50 = vld [vmem:[%s15167_s26 + $0x1ad8] sm:$0xff] }
 0x1fa   : > { %12171 = vmatprep.subr.mxu1 %v1109_v53  ;;  %12137 = vmatpush3.msra.mxu0 %v1061_v54  ;;  %v1160_v49 = vld [vmem:[%s15167_s26 + $0x1b60] sm:$0xff]  ;;  %v1175_v51 = vld [vmem:[%s15167_s26 + $0x1bd8] sm:$0xff] }
 0x1fb   : > { %12172 = vmatpush3.msra.mxu1 %v1093_v55  ;;  %12138 = vmatprep.subr.mxu0 %v1076_v56  ;;  %v1127_v53 = vld [vmem:[%s15167_s26 + $0x1a58] sm:$0xff]  ;;  %v1142_v55 = vld [vmem:[%s15167_s26 + $0x1ad0] sm:$0xff] }
 0x1fc   : > { %12173 = vmatprep.subr.mxu1 %v1108_v57  ;;  %12139 = vmatpush3.msra.mxu0 %v1060_v58  ;;  %v1159_v54 = vld [vmem:[%s15167_s26 + $0x1b58] sm:$0xff]  ;;  %v1174_v56 = vld [vmem:[%s15167_s26 + $0x1bd0] sm:$0xff] }
 0x1fd   : > { %12174 = vmatpush3.msra.mxu1 %v1092_v59  ;;  %12140 = vmatprep.subr.mxu0 %v1075_v60  ;;  %v1126_v57 = vld [vmem:[%s15167_s26 + $0x1a50] sm:$0xff]  ;;  %v1141_v59 = vld [vmem:[%s15167_s26 + $0x1ac8] sm:$0xff] }
 0x1fe   : > { %12175 = vmatprep.subr.mxu1 %v1107_v61  ;;  %12141 = vmatpush3.msra.mxu0 %v1059_v62  ;;  %v1158_v58 = vld [vmem:[%s15167_s26 + $0x1b50] sm:$0xff]  ;;  %v1173_v60 = vld [vmem:[%s15167_s26 + $0x1bc8] sm:$0xff] }
 0x1ff   : > { %12176 = vmatpush3.msra.mxu1 %v1091_v63  ;;  %12142 = vmatprep.subr.mxu0 %v1074_v0  ;;  %v1125_v61 = vld [vmem:[%s15167_s26 + $0x1a48] sm:$0xff]  ;;  %v1140_v63 = vld [vmem:[%s15167_s26 + $0x1ac0] sm:$0xff] }
 0x200   : > { %12177 = vmatprep.subr.mxu1 %v1106_v1  ;;  %12143 = vmatpush3.msra.mxu0 %v1058_v2  ;;  %v1157_v62 = vld [vmem:[%s15167_s26 + $0x1b48] sm:$0xff]  ;;  %v1172_v0 = vld [vmem:[%s15167_s26 + $0x1bc0] sm:$0xff] }
 0x201   : > { %12178 = vmatpush3.msra.mxu1 %v1090_v3  ;;  %12144 = vmatprep.subr.mxu0 %v1073_v4  ;;  %v1124_v1 = vld [vmem:[%s15167_s26 + $0x1a40] sm:$0xff]  ;;  %v1139_v3 = vld [vmem:[%s15167_s26 + $0x1ab8] sm:$0xff] }
 0x202   : > { %12179 = vmatprep.subr.mxu1 %v1105_v5  ;;  %12145 = vmatpush3.msra.mxu0 %v1057_v6  ;;  %v1156_v2 = vld [vmem:[%s15167_s26 + $0x1b40] sm:$0xff]  ;;  %v1171_v4 = vld [vmem:[%s15167_s26 + $0x1bb8] sm:$0xff] }
 0x203   : > { %12180 = vmatpush3.msra.mxu1 %v1089_v7  ;;  %12146 = vmatprep.subr.mxu0 %v1072_v9  ;;  %v1123_v5 = vld [vmem:[%s15167_s26 + $0x1a38] sm:$0xff]  ;;  %v1138_v7 = vld [vmem:[%s15167_s26 + $0x1ab0] sm:$0xff] }
 0x204   : > { %12181 = vmatprep.subr.mxu1 %v1104_v10  ;;  %12147 = vmatpush3.msra.mxu0 %v1056_v11  ;;  %v1155_v6 = vld [vmem:[%s15167_s26 + $0x1b38] sm:$0xff]  ;;  %v1122_v9 = vld [vmem:[%s15167_s26 + $0x1a30] sm:$0xff]  ;;  %v1137_v11 = vld [vmem:[%s15167_s26 + $0x1aa8] sm:$0xff] }
 0x205   : > { %12182 = vmatpush3.msra.mxu1 %v1088_v12  ;;  %12148 = vmatprep.subr.mxu0 %v1071_v13  ;;  %v1154_v10 = vld [vmem:[%s15167_s26 + $0x1b30] sm:$0xff]  ;;  %v1169_v12 = vld [vmem:[%s15167_s26 + $0x1ba8] sm:$0xff] }
 0x206   : > { %12183 = vmatprep.subr.mxu1 %v1103_v14  ;;  %12149 = vmatpush3.msra.mxu0 %v1055_v16  ;;  %v1121_v13 = vld [vmem:[%s15167_s26 + $0x1a28] sm:$0xff]  ;;  %v1136_v16 = vld [vmem:[%s15167_s26 + $0x1aa0] sm:$0xff] }
 0x207   : > { %12184 = vmatpush3.msra.mxu1 %v1087_v17  ;;  %12150 = vmatprep.subr.mxu0 %v1070_v18  ;;  %v1153_v14 = vld [vmem:[%s15167_s26 + $0x1b28] sm:$0xff]  ;;  %v1168_v17 = vld [vmem:[%s15167_s26 + $0x1ba0] sm:$0xff] }
 0x208   : > { %12185 = vmatprep.subr.mxu1 %v1102_v19  ;;  %12151 = vmatpush3.msra.mxu0 %v1054_v21  ;;  %v1120_v18 = vld [vmem:[%s15167_s26 + $0x1a20] sm:$0xff]  ;;  %v1167_v21 = vld [vmem:[%s15167_s26 + $0x1b98] sm:$0xff] }
 0x209   : > { %12186 = vmatpush3.msra.mxu1 %v1086_v22  ;;  %12152 = vmatprep.subr.mxu0 %v1069_v23  ;;  %v1152_v19 = vld [vmem:[%s15167_s26 + $0x1b20] sm:$0xff]  ;;  %v3625_v22 = vcombine.high %v249_v15, %v249_v15  ;;  %v1119_v23 = vld [vmem:[%s15167_s26 + $0x1a18] sm:$0xff] }
 0x20a   : > { %12187 = vmatprep.subr.mxu1 %v1101_v24  ;;  %12153 = vmatpush3.msra.mxu0 %v1053_v26  ;;  %v1151_v24 = vld [vmem:[%s15167_s26 + $0x1b18] sm:$0xff]  ;;  %v1166_v26 = vld [vmem:[%s15167_s26 + $0x1b90] sm:$0xff] }
 0x20b   : > { %12188 = vmatpush3.msra.mxu1 %v1085_v27  ;;  %12154 = vmatprep.subr.mxu0 %v1068_v28  ;;  %v3632_v27 = vrot.slane %v249_v15, %v15226_v52  ;;  %v1118_v28 = vld [vmem:[%s15167_s26 + $0x1a10] sm:$0xff] }
 0x20c   : > { %12189 = vmatprep.subr.mxu1 %v1100_v29  ;;  %12155 = vmatpush3.msra.mxu0 %v1052_v31  ;;  %v1150_v29 = vld [vmem:[%s15167_s26 + $0x1b10] sm:$0xff]  ;;  %v1165_v31 = vld [vmem:[%s15167_s26 + $0x1b88] sm:$0xff] }
 0x20d   : > { %6156 = vmatprep.mubr.f32.mxu0 %v3623_v30  ;;  %12190 = vmatpush3.msra.mxu1 %v1084_v32  ;;  %v1133_v30 = vld [vmem:[%s15167_s26 + $0x1a88] sm:$0xff]  ;;  %v3639_v32 = vrot.slane %v3625_v22, %v15226_v52  ;;  %v1234_v15 = vld [vmem:[%s15167_s26 + $0x1db0] sm:$0xff] }
 0x20e   : > { %6157 = vmatmul.mubr.f32.vlgmr.msra.gmra.mxu0 %v3615_v20  ;;  %6226 = vmatprep.mubr.f32.mxu1 %v3624_v33  ;;  %v1135_v20 = vld [vmem:[%s15167_s26 + $0x1a98] sm:$0xff]  ;;  %v1117_v33 = vld [vmem:[%s15167_s26 + $0x1a08] sm:$0xff]  ;;  %v250_v22 = vld [vmem:[%s15161_s29 + $0x70] sm:$0xff] }
 0x20f   : > { %12194 = vmatprep.subr.mxu0 %v1147_v34  ;;  %12229 = vmatprep.subr.mxu1 %v1179_v35  ;;  %v1149_v34 = vld [vmem:[%s15167_s26 + $0x1b08] sm:$0xff]  ;;  %v1132_v35 = vld [vmem:[%s15167_s26 + $0x1a80] sm:$0xff] }
 0x210   : > { %6227 = vmatmul.mubr.f32.vlgmr.msra.gmra.mxu1 %v3622_v25  ;;  %12195 = vmatpush3.msra.mxu0 %v1131_v36  ;;  %v1134_v25 = vld [vmem:[%s15167_s26 + $0x1a90] sm:$0xff]  ;;  %v1164_v36 = vld [vmem:[%s15167_s26 + $0x1b80] sm:$0xff] }
 0x211   : > { %12230 = vmatpush3.msra.mxu1 %v1163_v37  ;;  %12196 = vmatprep.subr.mxu0 %v1146_v38  ;;  %v3640_v37 = vcombine.high %v3632_v27, %v3632_v27  ;;  %v1116_v38 = vld [vmem:[%s15167_s26 + $0x1a00] sm:$0xff] }
 0x212   : > { %12231 = vmatprep.subr.mxu1 %v1178_v39  ;;  %12197 = vmatpush3.msra.mxu0 %v1130_v40  ;;  %v1148_v39 = vld [vmem:[%s15167_s26 + $0x1b00] sm:$0xff]  ;;  %v3641_v40 = vcombine.high %v3639_v32, %v3639_v32 }
 0x213   : > { %12232 = vmatpush3.msra.mxu1 %v1162_v41  ;;  %12198 = vmatprep.subr.mxu0 %v1145_v42  ;;  %v1211_v41 = vld [vmem:[%s15167_s26 + $0x1cf8] sm:$0xff] }
 0x214   : > { %12233 = vmatprep.subr.mxu1 %v1177_v43  ;;  %12199 = vmatpush3.msra.mxu0 %v1129_v44  ;;  %v1243_v42 = vld [vmem:[%s15167_s26 + $0x1df8] sm:$0xff] }
 0x215   : > { %12234 = vmatpush3.msra.mxu1 %v1161_v45  ;;  %12200 = vmatprep.subr.mxu0 %v1144_v46  ;;  %v1195_v43 = vld [vmem:[%s15167_s26 + $0x1c78] sm:$0xff]  ;;  %v1210_v45 = vld [vmem:[%s15167_s26 + $0x1cf0] sm:$0xff] }
 0x216   : > { %12235 = vmatprep.subr.mxu1 %v1176_v47  ;;  %12201 = vmatpush3.msra.mxu0 %v1128_v48  ;;  %v1227_v44 = vld [vmem:[%s15167_s26 + $0x1d78] sm:$0xff]  ;;  %v1242_v46 = vld [vmem:[%s15167_s26 + $0x1df0] sm:$0xff] }
 0x217   : > { %12236 = vmatpush3.msra.mxu1 %v1160_v49  ;;  %12202 = vmatprep.subr.mxu0 %v1143_v50  ;;  %v1194_v47 = vld [vmem:[%s15167_s26 + $0x1c70] sm:$0xff]  ;;  %v1209_v49 = vld [vmem:[%s15167_s26 + $0x1ce8] sm:$0xff] }
 0x218   : > { %12237 = vmatprep.subr.mxu1 %v1175_v51  ;;  %12203 = vmatpush3.msra.mxu0 %v1127_v53  ;;  %v1226_v48 = vld [vmem:[%s15167_s26 + $0x1d70] sm:$0xff]  ;;  %v1241_v50 = vld [vmem:[%s15167_s26 + $0x1de8] sm:$0xff] }
 0x219   : > { %12238 = vmatpush3.msra.mxu1 %v1159_v54  ;;  %12204 = vmatprep.subr.mxu0 %v1142_v55  ;;  %v1193_v51 = vld [vmem:[%s15167_s26 + $0x1c68] sm:$0xff]  ;;  %v1208_v54 = vld [vmem:[%s15167_s26 + $0x1ce0] sm:$0xff] }
 0x21a   : > { %12239 = vmatprep.subr.mxu1 %v1174_v56  ;;  %12205 = vmatpush3.msra.mxu0 %v1126_v57  ;;  %v1225_v53 = vld [vmem:[%s15167_s26 + $0x1d68] sm:$0xff]  ;;  %v1240_v55 = vld [vmem:[%s15167_s26 + $0x1de0] sm:$0xff] }
 0x21b   : > { %12240 = vmatpush3.msra.mxu1 %v1158_v58  ;;  %12206 = vmatprep.subr.mxu0 %v1141_v59  ;;  %v1192_v56 = vld [vmem:[%s15167_s26 + $0x1c60] sm:$0xff]  ;;  %v1207_v58 = vld [vmem:[%s15167_s26 + $0x1cd8] sm:$0xff] }
 0x21c   : > { %12241 = vmatprep.subr.mxu1 %v1173_v60  ;;  %12207 = vmatpush3.msra.mxu0 %v1125_v61  ;;  %v1224_v57 = vld [vmem:[%s15167_s26 + $0x1d60] sm:$0xff]  ;;  %v1239_v59 = vld [vmem:[%s15167_s26 + $0x1dd8] sm:$0xff] }
 0x21d   : > { %12242 = vmatpush3.msra.mxu1 %v1157_v62  ;;  %12208 = vmatprep.subr.mxu0 %v1140_v63  ;;  %v1191_v60 = vld [vmem:[%s15167_s26 + $0x1c58] sm:$0xff]  ;;  %v1206_v62 = vld [vmem:[%s15167_s26 + $0x1cd0] sm:$0xff] }
 0x21e   : > { %12243 = vmatprep.subr.mxu1 %v1172_v0  ;;  %12209 = vmatpush3.msra.mxu0 %v1124_v1  ;;  %v1223_v61 = vld [vmem:[%s15167_s26 + $0x1d58] sm:$0xff]  ;;  %v1238_v63 = vld [vmem:[%s15167_s26 + $0x1dd0] sm:$0xff] }
 0x21f   : > { %12244 = vmatpush3.msra.mxu1 %v1156_v2  ;;  %12210 = vmatprep.subr.mxu0 %v1139_v3  ;;  %v1190_v0 = vld [vmem:[%s15167_s26 + $0x1c50] sm:$0xff]  ;;  %v1205_v2 = vld [vmem:[%s15167_s26 + $0x1cc8] sm:$0xff] }
 0x220   : > { %12245 = vmatprep.subr.mxu1 %v1171_v4  ;;  %12211 = vmatpush3.msra.mxu0 %v1123_v5  ;;  %v1222_v1 = vld [vmem:[%s15167_s26 + $0x1d50] sm:$0xff]  ;;  %v1237_v3 = vld [vmem:[%s15167_s26 + $0x1dc8] sm:$0xff] }
 0x221   : > { %12246 = vmatpush3.msra.mxu1 %v1155_v6  ;;  %12212 = vmatprep.subr.mxu0 %v1138_v7  ;;  %v1189_v4 = vld [vmem:[%s15167_s26 + $0x1c48] sm:$0xff]  ;;  %v1204_v6 = vld [vmem:[%s15167_s26 + $0x1cc0] sm:$0xff] }
 0x222   : > { %12247 = vmatprep.subr.mxu1 %v1170_v8  ;;  %12213 = vmatpush3.msra.mxu0 %v1122_v9  ;;  %v1221_v5 = vld [vmem:[%s15167_s26 + $0x1d48] sm:$0xff]  ;;  %v1236_v7 = vld [vmem:[%s15167_s26 + $0x1dc0] sm:$0xff] }
 0x223   : > { %12248 = vmatpush3.msra.mxu1 %v1154_v10  ;;  %12214 = vmatprep.subr.mxu0 %v1137_v11  ;;  %v1188_v8 = vld [vmem:[%s15167_s26 + $0x1c40] sm:$0xff]  ;;  %v1203_v10 = vld [vmem:[%s15167_s26 + $0x1cb8] sm:$0xff] }
 0x224   : > { %12249 = vmatprep.subr.mxu1 %v1169_v12  ;;  %12215 = vmatpush3.msra.mxu0 %v1121_v13  ;;  %v1220_v9 = vld [vmem:[%s15167_s26 + $0x1d40] sm:$0xff]  ;;  %v1235_v11 = vld [vmem:[%s15167_s26 + $0x1db8] sm:$0xff] }
 0x225   : > { %12250 = vmatpush3.msra.mxu1 %v1153_v14  ;;  %12216 = vmatprep.subr.mxu0 %v1136_v16  ;;  %v1187_v12 = vld [vmem:[%s15167_s26 + $0x1c38] sm:$0xff]  ;;  %v1202_v14 = vld [vmem:[%s15167_s26 + $0x1cb0] sm:$0xff] }
 0x226   : > { %12251 = vmatprep.subr.mxu1 %v1168_v17  ;;  %12217 = vmatpush3.msra.mxu0 %v1120_v18  ;;  %v1219_v13 = vld [vmem:[%s15167_s26 + $0x1d38] sm:$0xff]  ;;  %v1186_v16 = vld [vmem:[%s15167_s26 + $0x1c30] sm:$0xff]  ;;  %v1201_v18 = vld [vmem:[%s15167_s26 + $0x1ca8] sm:$0xff] }
 0x227   : > { %12252 = vmatpush3.msra.mxu1 %v1152_v19  ;;  %12218 = vmatprep.subr.mxu0 %v1135_v20  ;;  %v1218_v17 = vld [vmem:[%s15167_s26 + $0x1d30] sm:$0xff]  ;;  %v1233_v19 = vld [vmem:[%s15167_s26 + $0x1da8] sm:$0xff] }
 0x228   : > { %12253 = vmatprep.subr.mxu1 %v1167_v21  ;;  %12219 = vmatpush3.msra.mxu0 %v1119_v23  ;;  %v1185_v20 = vld [vmem:[%s15167_s26 + $0x1c28] sm:$0xff]  ;;  %v1200_v23 = vld [vmem:[%s15167_s26 + $0x1ca0] sm:$0xff] }
 0x229   : > { %12254 = vmatpush3.msra.mxu1 %v1151_v24  ;;  %12220 = vmatprep.subr.mxu0 %v1134_v25  ;;  %v1217_v21 = vld [vmem:[%s15167_s26 + $0x1d28] sm:$0xff]  ;;  %v1232_v24 = vld [vmem:[%s15167_s26 + $0x1da0] sm:$0xff] }
 0x22a   : > { %12255 = vmatprep.subr.mxu1 %v1166_v26  ;;  %12221 = vmatpush3.msra.mxu0 %v1118_v28  ;;  %v1184_v25 = vld [vmem:[%s15167_s26 + $0x1c20] sm:$0xff]  ;;  %v1231_v28 = vld [vmem:[%s15167_s26 + $0x1d98] sm:$0xff] }
 0x22b   : > { %12256 = vmatpush3.msra.mxu1 %v1150_v29  ;;  %12222 = vmatprep.subr.mxu0 %v1133_v30  ;;  %v1216_v26 = vld [vmem:[%s15167_s26 + $0x1d20] sm:$0xff]  ;;  %v3642_v29 = vcombine.high %v250_v22, %v250_v22  ;;  %v1183_v30 = vld [vmem:[%s15167_s26 + $0x1c18] sm:$0xff] }
 0x22c   : > { %12257 = vmatprep.subr.mxu1 %v1165_v31  ;;  %12223 = vmatpush3.msra.mxu0 %v1117_v33  ;;  %v1215_v31 = vld [vmem:[%s15167_s26 + $0x1d18] sm:$0xff]  ;;  %v1230_v33 = vld [vmem:[%s15167_s26 + $0x1d90] sm:$0xff] }
 0x22d   : > { %12258 = vmatpush3.msra.mxu1 %v1149_v34  ;;  %12224 = vmatprep.subr.mxu0 %v1132_v35  ;;  %v3649_v34 = vrot.slane %v250_v22, %v15226_v52  ;;  %v1182_v35 = vld [vmem:[%s15167_s26 + $0x1c10] sm:$0xff] }
 0x22e   : > { %12259 = vmatprep.subr.mxu1 %v1164_v36  ;;  %12225 = vmatpush3.msra.mxu0 %v1116_v38  ;;  %v1214_v36 = vld [vmem:[%s15167_s26 + $0x1d10] sm:$0xff]  ;;  %v1229_v38 = vld [vmem:[%s15167_s26 + $0x1d88] sm:$0xff] }
 0x22f   : > { %6296 = vmatprep.mubr.f32.mxu0 %v3640_v37  ;;  %12260 = vmatpush3.msra.mxu1 %v1148_v39  ;;  %v1197_v37 = vld [vmem:[%s15167_s26 + $0x1c88] sm:$0xff]  ;;  %v3656_v39 = vrot.slane %v3642_v29, %v15226_v52  ;;  %v1298_v22 = vld [vmem:[%s15167_s26 + $0x1fb0] sm:$0xff]  ;;  %v251_v29 = vld [vmem:[%s15161_s29 + $0x78] sm:$0xff] }
 0x230   : > { %6297 = vmatmul.mubr.f32.vlgmr.msra.gmra.mxu0 %v3632_v27  ;;  %6366 = vmatprep.mubr.f32.mxu1 %v3641_v40  ;;  %v1199_v27 = vld [vmem:[%s15167_s26 + $0x1c98] sm:$0xff]  ;;  %v1181_v40 = vld [vmem:[%s15167_s26 + $0x1c08] sm:$0xff] }
 0x231   : > { %12264 = vmatprep.subr.mxu0 %v1211_v41  ;;  %12299 = vmatprep.subr.mxu1 %v1243_v42  ;;  %v1213_v41 = vld [vmem:[%s15167_s26 + $0x1d08] sm:$0xff]  ;;  %v1196_v42 = vld [vmem:[%s15167_s26 + $0x1c80] sm:$0xff] }
 0x232   : > { %6367 = vmatmul.mubr.f32.vlgmr.msra.gmra.mxu1 %v3639_v32  ;;  %12265 = vmatpush3.msra.mxu0 %v1195_v43  ;;  %v1198_v32 = vld [vmem:[%s15167_s26 + $0x1c90] sm:$0xff]  ;;  %v1228_v43 = vld [vmem:[%s15167_s26 + $0x1d80] sm:$0xff] }
 0x233   : > { %12300 = vmatpush3.msra.mxu1 %v1227_v44  ;;  %12266 = vmatprep.subr.mxu0 %v1210_v45  ;;  %v3657_v44 = vcombine.high %v3649_v34, %v3649_v34  ;;  %v1180_v45 = vld [vmem:[%s15167_s26 + $0x1c00] sm:$0xff] }
 0x234   : > { %12301 = vmatprep.subr.mxu1 %v1242_v46  ;;  %12267 = vmatpush3.msra.mxu0 %v1194_v47  ;;  %v1212_v46 = vld [vmem:[%s15167_s26 + $0x1d00] sm:$0xff]  ;;  %v3658_v47 = vcombine.high %v3656_v39, %v3656_v39 }
 0x235   : > { %12302 = vmatpush3.msra.mxu1 %v1226_v48  ;;  %12268 = vmatprep.subr.mxu0 %v1209_v49  ;;  %v1275_v48 = vld [vmem:[%s15167_s26 + $0x1ef8] sm:$0xff] }
 0x236   : > { %12303 = vmatprep.subr.mxu1 %v1241_v50  ;;  %12269 = vmatpush3.msra.mxu0 %v1193_v51  ;;  %v1307_v49 = vld [vmem:[%s15167_s26 + $0x1ff8] sm:$0xff] }
 0x237   : > { %12304 = vmatpush3.msra.mxu1 %v1225_v53  ;;  %12270 = vmatprep.subr.mxu0 %v1208_v54  ;;  %v1259_v50 = vld [vmem:[%s15167_s26 + $0x1e78] sm:$0xff]  ;;  %v1274_v53 = vld [vmem:[%s15167_s26 + $0x1ef0] sm:$0xff] }
 0x238   : > { %12305 = vmatprep.subr.mxu1 %v1240_v55  ;;  %12271 = vmatpush3.msra.mxu0 %v1192_v56  ;;  %v1291_v51 = vld [vmem:[%s15167_s26 + $0x1f78] sm:$0xff]  ;;  %v1306_v54 = vld [vmem:[%s15167_s26 + $0x1ff0] sm:$0xff] }
 0x239   : > { %12306 = vmatpush3.msra.mxu1 %v1224_v57  ;;  %12272 = vmatprep.subr.mxu0 %v1207_v58  ;;  %v1258_v55 = vld [vmem:[%s15167_s26 + $0x1e70] sm:$0xff]  ;;  %v1273_v57 = vld [vmem:[%s15167_s26 + $0x1ee8] sm:$0xff] }
 0x23a   : > { %12307 = vmatprep.subr.mxu1 %v1239_v59  ;;  %12273 = vmatpush3.msra.mxu0 %v1191_v60  ;;  %v1290_v56 = vld [vmem:[%s15167_s26 + $0x1f70] sm:$0xff]  ;;  %v1305_v58 = vld [vmem:[%s15167_s26 + $0x1fe8] sm:$0xff] }
 0x23b   : > { %12308 = vmatpush3.msra.mxu1 %v1223_v61  ;;  %12274 = vmatprep.subr.mxu0 %v1206_v62  ;;  %v1257_v59 = vld [vmem:[%s15167_s26 + $0x1e68] sm:$0xff]  ;;  %v1272_v61 = vld [vmem:[%s15167_s26 + $0x1ee0] sm:$0xff] }
 0x23c   : > { %12309 = vmatprep.subr.mxu1 %v1238_v63  ;;  %12275 = vmatpush3.msra.mxu0 %v1190_v0  ;;  %v1289_v60 = vld [vmem:[%s15167_s26 + $0x1f68] sm:$0xff]  ;;  %v1304_v62 = vld [vmem:[%s15167_s26 + $0x1fe0] sm:$0xff] }
 0x23d   : > { %12310 = vmatpush3.msra.mxu1 %v1222_v1  ;;  %12276 = vmatprep.subr.mxu0 %v1205_v2  ;;  %v1256_v63 = vld [vmem:[%s15167_s26 + $0x1e60] sm:$0xff]  ;;  %v1271_v1 = vld [vmem:[%s15167_s26 + $0x1ed8] sm:$0xff] }
 0x23e   : > { %12311 = vmatprep.subr.mxu1 %v1237_v3  ;;  %12277 = vmatpush3.msra.mxu0 %v1189_v4  ;;  %v1288_v0 = vld [vmem:[%s15167_s26 + $0x1f60] sm:$0xff]  ;;  %v1303_v2 = vld [vmem:[%s15167_s26 + $0x1fd8] sm:$0xff] }
 0x23f   : > { %12312 = vmatpush3.msra.mxu1 %v1221_v5  ;;  %12278 = vmatprep.subr.mxu0 %v1204_v6  ;;  %v1255_v3 = vld [vmem:[%s15167_s26 + $0x1e58] sm:$0xff]  ;;  %v1270_v5 = vld [vmem:[%s15167_s26 + $0x1ed0] sm:$0xff] }
 0x240   : > { %12313 = vmatprep.subr.mxu1 %v1236_v7  ;;  %12279 = vmatpush3.msra.mxu0 %v1188_v8  ;;  %v1287_v4 = vld [vmem:[%s15167_s26 + $0x1f58] sm:$0xff]  ;;  %v1302_v6 = vld [vmem:[%s15167_s26 + $0x1fd0] sm:$0xff] }
 0x241   : > { %12314 = vmatpush3.msra.mxu1 %v1220_v9  ;;  %12280 = vmatprep.subr.mxu0 %v1203_v10  ;;  %v1254_v7 = vld [vmem:[%s15167_s26 + $0x1e50] sm:$0xff]  ;;  %v1269_v9 = vld [vmem:[%s15167_s26 + $0x1ec8] sm:$0xff] }
 0x242   : > { %12315 = vmatprep.subr.mxu1 %v1235_v11  ;;  %12281 = vmatpush3.msra.mxu0 %v1187_v12  ;;  %v1286_v8 = vld [vmem:[%s15167_s26 + $0x1f50] sm:$0xff]  ;;  %v1301_v10 = vld [vmem:[%s15167_s26 + $0x1fc8] sm:$0xff] }
 0x243   : > { %12316 = vmatpush3.msra.mxu1 %v1219_v13  ;;  %12282 = vmatprep.subr.mxu0 %v1202_v14  ;;  %v1253_v11 = vld [vmem:[%s15167_s26 + $0x1e48] sm:$0xff]  ;;  %v1268_v13 = vld [vmem:[%s15167_s26 + $0x1ec0] sm:$0xff] }
 0x244   : > { %12317 = vmatprep.subr.mxu1 %v1234_v15  ;;  %12283 = vmatpush3.msra.mxu0 %v1186_v16  ;;  %v1285_v12 = vld [vmem:[%s15167_s26 + $0x1f48] sm:$0xff]  ;;  %v1300_v14 = vld [vmem:[%s15167_s26 + $0x1fc0] sm:$0xff] }
 0x245   : > { %12318 = vmatpush3.msra.mxu1 %v1218_v17  ;;  %12284 = vmatprep.subr.mxu0 %v1201_v18  ;;  %v1252_v15 = vld [vmem:[%s15167_s26 + $0x1e40] sm:$0xff]  ;;  %v1267_v17 = vld [vmem:[%s15167_s26 + $0x1eb8] sm:$0xff] }
 0x246   : > { %12319 = vmatprep.subr.mxu1 %v1233_v19  ;;  %12285 = vmatpush3.msra.mxu0 %v1185_v20  ;;  %v1284_v16 = vld [vmem:[%s15167_s26 + $0x1f40] sm:$0xff]  ;;  %v1299_v18 = vld [vmem:[%s15167_s26 + $0x1fb8] sm:$0xff] }
 0x247   : > { %12320 = vmatpush3.msra.mxu1 %v1217_v21  ;;  %12286 = vmatprep.subr.mxu0 %v1200_v23  ;;  %v1251_v19 = vld [vmem:[%s15167_s26 + $0x1e38] sm:$0xff]  ;;  %v1266_v21 = vld [vmem:[%s15167_s26 + $0x1eb0] sm:$0xff] }
 0x248   : > { %12321 = vmatprep.subr.mxu1 %v1232_v24  ;;  %12287 = vmatpush3.msra.mxu0 %v1184_v25  ;;  %v1283_v20 = vld [vmem:[%s15167_s26 + $0x1f38] sm:$0xff]  ;;  %v1250_v23 = vld [vmem:[%s15167_s26 + $0x1e30] sm:$0xff]  ;;  %v1265_v25 = vld [vmem:[%s15167_s26 + $0x1ea8] sm:$0xff] }
 0x249   : > { %12322 = vmatpush3.msra.mxu1 %v1216_v26  ;;  %12288 = vmatprep.subr.mxu0 %v1199_v27  ;;  %v1282_v24 = vld [vmem:[%s15167_s26 + $0x1f30] sm:$0xff]  ;;  %v1297_v26 = vld [vmem:[%s15167_s26 + $0x1fa8] sm:$0xff] }
 0x24a   : > { %12323 = vmatprep.subr.mxu1 %v1231_v28  ;;  %12289 = vmatpush3.msra.mxu0 %v1183_v30  ;;  %v1249_v27 = vld [vmem:[%s15167_s26 + $0x1e28] sm:$0xff]  ;;  %v1264_v30 = vld [vmem:[%s15167_s26 + $0x1ea0] sm:$0xff] }
 0x24b   : > { %12324 = vmatpush3.msra.mxu1 %v1215_v31  ;;  %12290 = vmatprep.subr.mxu0 %v1198_v32  ;;  %v1281_v28 = vld [vmem:[%s15167_s26 + $0x1f28] sm:$0xff]  ;;  %v1296_v31 = vld [vmem:[%s15167_s26 + $0x1fa0] sm:$0xff] }
 0x24c   : > { %12325 = vmatprep.subr.mxu1 %v1230_v33  ;;  %12291 = vmatpush3.msra.mxu0 %v1182_v35  ;;  %v1248_v32 = vld [vmem:[%s15167_s26 + $0x1e20] sm:$0xff]  ;;  %v1295_v35 = vld [vmem:[%s15167_s26 + $0x1f98] sm:$0xff] }
 0x24d   : > { %12326 = vmatpush3.msra.mxu1 %v1214_v36  ;;  %12292 = vmatprep.subr.mxu0 %v1197_v37  ;;  %v1280_v33 = vld [vmem:[%s15167_s26 + $0x1f20] sm:$0xff]  ;;  %v3659_v36 = vcombine.high %v251_v29, %v251_v29  ;;  %v1247_v37 = vld [vmem:[%s15167_s26 + $0x1e18] sm:$0xff] }
 0x24e   : > { %12327 = vmatprep.subr.mxu1 %v1229_v38  ;;  %12293 = vmatpush3.msra.mxu0 %v1181_v40  ;;  %v1279_v38 = vld [vmem:[%s15167_s26 + $0x1f18] sm:$0xff]  ;;  %v1294_v40 = vld [vmem:[%s15167_s26 + $0x1f90] sm:$0xff] }
 0x24f   : > { %12328 = vmatpush3.msra.mxu1 %v1213_v41  ;;  %12294 = vmatprep.subr.mxu0 %v1196_v42  ;;  %v3666_v41 = vrot.slane %v251_v29, %v15226_v52  ;;  %v1246_v42 = vld [vmem:[%s15167_s26 + $0x1e10] sm:$0xff] }
 0x250   : > { %12329 = vmatprep.subr.mxu1 %v1228_v43  ;;  %12295 = vmatpush3.msra.mxu0 %v1180_v45  ;;  %v1278_v43 = vld [vmem:[%s15167_s26 + $0x1f10] sm:$0xff]  ;;  %v1293_v45 = vld [vmem:[%s15167_s26 + $0x1f88] sm:$0xff] }
 0x251   : > { %6436 = vmatprep.mubr.f32.mxu0 %v3657_v44  ;;  %12330 = vmatpush3.msra.mxu1 %v1212_v46  ;;  %v1261_v44 = vld [vmem:[%s15167_s26 + $0x1e88] sm:$0xff]  ;;  %v3673_v46 = vrot.slane %v3659_v36, %v15226_v52  ;;  %v1362_v29 = vld [vmem:[%s15167_s26 + $0x21b0] sm:$0xff]  ;;  %v252_v36 = vld [vmem:[%s15161_s29 + $0x80] sm:$0xff] }
 0x252   : > { %6437 = vmatmul.mubr.f32.vlgmr.msra.gmra.mxu0 %v3649_v34  ;;  %6506 = vmatprep.mubr.f32.mxu1 %v3658_v47  ;;  %v1263_v34 = vld [vmem:[%s15167_s26 + $0x1e98] sm:$0xff]  ;;  %v1245_v47 = vld [vmem:[%s15167_s26 + $0x1e08] sm:$0xff] }
 0x253   : > { %12334 = vmatprep.subr.mxu0 %v1275_v48  ;;  %12369 = vmatprep.subr.mxu1 %v1307_v49  ;;  %v1277_v48 = vld [vmem:[%s15167_s26 + $0x1f08] sm:$0xff]  ;;  %v1260_v49 = vld [vmem:[%s15167_s26 + $0x1e80] sm:$0xff] }
 0x254   : > { %6507 = vmatmul.mubr.f32.vlgmr.msra.gmra.mxu1 %v3656_v39  ;;  %12335 = vmatpush3.msra.mxu0 %v1259_v50  ;;  %v1262_v39 = vld [vmem:[%s15167_s26 + $0x1e90] sm:$0xff]  ;;  %v1292_v50 = vld [vmem:[%s15167_s26 + $0x1f80] sm:$0xff] }
 0x255   : > { %12370 = vmatpush3.msra.mxu1 %v1291_v51  ;;  %12336 = vmatprep.subr.mxu0 %v1274_v53  ;;  %v3674_v51 = vcombine.high %v3666_v41, %v3666_v41  ;;  %v1244_v53 = vld [vmem:[%s15167_s26 + $0x1e00] sm:$0xff] }
 0x256   : > { %12371 = vmatprep.subr.mxu1 %v1306_v54  ;;  %12337 = vmatpush3.msra.mxu0 %v1258_v55  ;;  %v1276_v54 = vld [vmem:[%s15167_s26 + $0x1f00] sm:$0xff]  ;;  %v3675_v55 = vcombine.high %v3673_v46, %v3673_v46 }
 0x257   : > { %12372 = vmatpush3.msra.mxu1 %v1290_v56  ;;  %12338 = vmatprep.subr.mxu0 %v1273_v57  ;;  %v1339_v56 = vld [vmem:[%s15167_s26 + $0x20f8] sm:$0xff] }
 0x258   : > { %12373 = vmatprep.subr.mxu1 %v1305_v58  ;;  %12339 = vmatpush3.msra.mxu0 %v1257_v59  ;;  %v1371_v57 = vld [vmem:[%s15167_s26 + $0x21f8] sm:$0xff] }
 0x259   : > { %12374 = vmatpush3.msra.mxu1 %v1289_v60  ;;  %12340 = vmatprep.subr.mxu0 %v1272_v61  ;;  %v1323_v58 = vld [vmem:[%s15167_s26 + $0x2078] sm:$0xff]  ;;  %v1338_v60 = vld [vmem:[%s15167_s26 + $0x20f0] sm:$0xff] }
 0x25a   : > { %12375 = vmatprep.subr.mxu1 %v1304_v62  ;;  %12341 = vmatpush3.msra.mxu0 %v1256_v63  ;;  %v1355_v59 = vld [vmem:[%s15167_s26 + $0x2178] sm:$0xff]  ;;  %v1370_v61 = vld [vmem:[%s15167_s26 + $0x21f0] sm:$0xff] }
 0x25b   : > { %12376 = vmatpush3.msra.mxu1 %v1288_v0  ;;  %12342 = vmatprep.subr.mxu0 %v1271_v1  ;;  %v1322_v62 = vld [vmem:[%s15167_s26 + $0x2070] sm:$0xff]  ;;  %v1337_v0 = vld [vmem:[%s15167_s26 + $0x20e8] sm:$0xff] }
 0x25c   : > { %12377 = vmatprep.subr.mxu1 %v1303_v2  ;;  %12343 = vmatpush3.msra.mxu0 %v1255_v3  ;;  %v1354_v63 = vld [vmem:[%s15167_s26 + $0x2170] sm:$0xff]  ;;  %v1369_v1 = vld [vmem:[%s15167_s26 + $0x21e8] sm:$0xff] }
 0x25d   : > { %12378 = vmatpush3.msra.mxu1 %v1287_v4  ;;  %12344 = vmatprep.subr.mxu0 %v1270_v5  ;;  %v1321_v2 = vld [vmem:[%s15167_s26 + $0x2068] sm:$0xff]  ;;  %v1336_v4 = vld [vmem:[%s15167_s26 + $0x20e0] sm:$0xff] }
 0x25e   : > { %12379 = vmatprep.subr.mxu1 %v1302_v6  ;;  %12345 = vmatpush3.msra.mxu0 %v1254_v7  ;;  %v1353_v3 = vld [vmem:[%s15167_s26 + $0x2168] sm:$0xff]  ;;  %v1368_v5 = vld [vmem:[%s15167_s26 + $0x21e0] sm:$0xff] }
 0x25f   : > { %12380 = vmatpush3.msra.mxu1 %v1286_v8  ;;  %12346 = vmatprep.subr.mxu0 %v1269_v9  ;;  %v1320_v6 = vld [vmem:[%s15167_s26 + $0x2060] sm:$0xff]  ;;  %v1335_v8 = vld [vmem:[%s15167_s26 + $0x20d8] sm:$0xff] }
 0x260   : > { %12381 = vmatprep.subr.mxu1 %v1301_v10  ;;  %12347 = vmatpush3.msra.mxu0 %v1253_v11  ;;  %v1352_v7 = vld [vmem:[%s15167_s26 + $0x2160] sm:$0xff]  ;;  %v1367_v9 = vld [vmem:[%s15167_s26 + $0x21d8] sm:$0xff] }
 0x261   : > { %12382 = vmatpush3.msra.mxu1 %v1285_v12  ;;  %12348 = vmatprep.subr.mxu0 %v1268_v13  ;;  %v1319_v10 = vld [vmem:[%s15167_s26 + $0x2058] sm:$0xff]  ;;  %v1334_v12 = vld [vmem:[%s15167_s26 + $0x20d0] sm:$0xff] }
 0x262   : > { %12383 = vmatprep.subr.mxu1 %v1300_v14  ;;  %12349 = vmatpush3.msra.mxu0 %v1252_v15  ;;  %v1351_v11 = vld [vmem:[%s15167_s26 + $0x2158] sm:$0xff]  ;;  %v1366_v13 = vld [vmem:[%s15167_s26 + $0x21d0] sm:$0xff] }
 0x263   : > { %12384 = vmatpush3.msra.mxu1 %v1284_v16  ;;  %12350 = vmatprep.subr.mxu0 %v1267_v17  ;;  %v1318_v14 = vld [vmem:[%s15167_s26 + $0x2050] sm:$0xff]  ;;  %v1333_v16 = vld [vmem:[%s15167_s26 + $0x20c8] sm:$0xff] }
 0x264   : > { %12385 = vmatprep.subr.mxu1 %v1299_v18  ;;  %12351 = vmatpush3.msra.mxu0 %v1251_v19  ;;  %v1350_v15 = vld [vmem:[%s15167_s26 + $0x2150] sm:$0xff]  ;;  %v1365_v17 = vld [vmem:[%s15167_s26 + $0x21c8] sm:$0xff] }
 0x265   : > { %12386 = vmatpush3.msra.mxu1 %v1283_v20  ;;  %12352 = vmatprep.subr.mxu0 %v1266_v21  ;;  %v1317_v18 = vld [vmem:[%s15167_s26 + $0x2048] sm:$0xff]  ;;  %v1332_v20 = vld [vmem:[%s15167_s26 + $0x20c0] sm:$0xff] }
 0x266   : > { %12387 = vmatprep.subr.mxu1 %v1298_v22  ;;  %12353 = vmatpush3.msra.mxu0 %v1250_v23  ;;  %v1349_v19 = vld [vmem:[%s15167_s26 + $0x2148] sm:$0xff]  ;;  %v1364_v21 = vld [vmem:[%s15167_s26 + $0x21c0] sm:$0xff] }
 0x267   : > { %12388 = vmatpush3.msra.mxu1 %v1282_v24  ;;  %12354 = vmatprep.subr.mxu0 %v1265_v25  ;;  %v1316_v22 = vld [vmem:[%s15167_s26 + $0x2040] sm:$0xff]  ;;  %v1331_v24 = vld [vmem:[%s15167_s26 + $0x20b8] sm:$0xff] }
 0x268   : > { %12389 = vmatprep.subr.mxu1 %v1297_v26  ;;  %12355 = vmatpush3.msra.mxu0 %v1249_v27  ;;  %v1348_v23 = vld [vmem:[%s15167_s26 + $0x2140] sm:$0xff]  ;;  %v1363_v25 = vld [vmem:[%s15167_s26 + $0x21b8] sm:$0xff] }
 0x269   : > { %12390 = vmatpush3.msra.mxu1 %v1281_v28  ;;  %12356 = vmatprep.subr.mxu0 %v1264_v30  ;;  %v1315_v26 = vld [vmem:[%s15167_s26 + $0x2038] sm:$0xff]  ;;  %v1330_v28 = vld [vmem:[%s15167_s26 + $0x20b0] sm:$0xff] }
 0x26a   : > { %12391 = vmatprep.subr.mxu1 %v1296_v31  ;;  %12357 = vmatpush3.msra.mxu0 %v1248_v32  ;;  %v1347_v27 = vld [vmem:[%s15167_s26 + $0x2138] sm:$0xff]  ;;  %v1314_v30 = vld [vmem:[%s15167_s26 + $0x2030] sm:$0xff]  ;;  %v1329_v32 = vld [vmem:[%s15167_s26 + $0x20a8] sm:$0xff] }
 0x26b   : > { %12392 = vmatpush3.msra.mxu1 %v1280_v33  ;;  %12358 = vmatprep.subr.mxu0 %v1263_v34  ;;  %v1346_v31 = vld [vmem:[%s15167_s26 + $0x2130] sm:$0xff]  ;;  %v1361_v33 = vld [vmem:[%s15167_s26 + $0x21a8] sm:$0xff] }
 0x26c   : > { %12393 = vmatprep.subr.mxu1 %v1295_v35  ;;  %12359 = vmatpush3.msra.mxu0 %v1247_v37  ;;  %v1313_v34 = vld [vmem:[%s15167_s26 + $0x2028] sm:$0xff]  ;;  %v1328_v37 = vld [vmem:[%s15167_s26 + $0x20a0] sm:$0xff] }
 0x26d   : > { %12394 = vmatpush3.msra.mxu1 %v1279_v38  ;;  %12360 = vmatprep.subr.mxu0 %v1262_v39  ;;  %v1345_v35 = vld [vmem:[%s15167_s26 + $0x2128] sm:$0xff]  ;;  %v1360_v38 = vld [vmem:[%s15167_s26 + $0x21a0] sm:$0xff] }
 0x26e   : > { %12395 = vmatprep.subr.mxu1 %v1294_v40  ;;  %12361 = vmatpush3.msra.mxu0 %v1246_v42  ;;  %v1312_v39 = vld [vmem:[%s15167_s26 + $0x2020] sm:$0xff]  ;;  %v1359_v42 = vld [vmem:[%s15167_s26 + $0x2198] sm:$0xff] }
 0x26f   : > { %12396 = vmatpush3.msra.mxu1 %v1278_v43  ;;  %12362 = vmatprep.subr.mxu0 %v1261_v44  ;;  %v1344_v40 = vld [vmem:[%s15167_s26 + $0x2120] sm:$0xff]  ;;  %v3676_v43 = vcombine.high %v252_v36, %v252_v36  ;;  %v1311_v44 = vld [vmem:[%s15167_s26 + $0x2018] sm:$0xff] }
 0x270   : > { %12397 = vmatprep.subr.mxu1 %v1293_v45  ;;  %12363 = vmatpush3.msra.mxu0 %v1245_v47  ;;  %v1343_v45 = vld [vmem:[%s15167_s26 + $0x2118] sm:$0xff]  ;;  %v1358_v47 = vld [vmem:[%s15167_s26 + $0x2190] sm:$0xff] }
 0x271   : > { %12398 = vmatpush3.msra.mxu1 %v1277_v48  ;;  %12364 = vmatprep.subr.mxu0 %v1260_v49  ;;  %v3683_v48 = vrot.slane %v252_v36, %v15226_v52  ;;  %v1310_v49 = vld [vmem:[%s15167_s26 + $0x2010] sm:$0xff] }
 0x272   : > { %12399 = vmatprep.subr.mxu1 %v1292_v50  ;;  %12365 = vmatpush3.msra.mxu0 %v1244_v53  ;;  %v1342_v50 = vld [vmem:[%s15167_s26 + $0x2110] sm:$0xff]  ;;  %v1357_v53 = vld [vmem:[%s15167_s26 + $0x2188] sm:$0xff] }
 0x273   : > { %6576 = vmatprep.mubr.f32.mxu0 %v3674_v51  ;;  %12400 = vmatpush3.msra.mxu1 %v1276_v54  ;;  %v1325_v51 = vld [vmem:[%s15167_s26 + $0x2088] sm:$0xff]  ;;  %v3690_v54 = vrot.slane %v3676_v43, %v15226_v52  ;;  %v1426_v36 = vld [vmem:[%s15167_s26 + $0x23b0] sm:$0xff] }
 0x274   : > { %6577 = vmatmul.mubr.f32.vlgmr.msra.gmra.mxu0 %v3666_v41  ;;  %6646 = vmatprep.mubr.f32.mxu1 %v3675_v55  ;;  %v1327_v41 = vld [vmem:[%s15167_s26 + $0x2098] sm:$0xff]  ;;  %v1309_v55 = vld [vmem:[%s15167_s26 + $0x2008] sm:$0xff] }
 0x275   : > { %12404 = vmatprep.subr.mxu0 %v1339_v56  ;;  %12439 = vmatprep.subr.mxu1 %v1371_v57  ;;  %v1341_v56 = vld [vmem:[%s15167_s26 + $0x2108] sm:$0xff]  ;;  %v1324_v57 = vld [vmem:[%s15167_s26 + $0x2080] sm:$0xff] }
 0x276   : > { %6647 = vmatmul.mubr.f32.vlgmr.msra.gmra.mxu1 %v3673_v46  ;;  %12405 = vmatpush3.msra.mxu0 %v1323_v58  ;;  %v1326_v46 = vld [vmem:[%s15167_s26 + $0x2090] sm:$0xff]  ;;  %v1356_v58 = vld [vmem:[%s15167_s26 + $0x2180] sm:$0xff]  ;;  %v253_v43 = vld [vmem:[%s15161_s29 + $0x88] sm:$0xff] }
 0x277   : > { %12440 = vmatpush3.msra.mxu1 %v1355_v59  ;;  %12406 = vmatprep.subr.mxu0 %v1338_v60  ;;  %v3691_v59 = vcombine.high %v3683_v48, %v3683_v48  ;;  %v1308_v60 = vld [vmem:[%s15167_s26 + $0x2000] sm:$0xff] }
 0x278   : > { %12441 = vmatprep.subr.mxu1 %v1370_v61  ;;  %12407 = vmatpush3.msra.mxu0 %v1322_v62  ;;  %v1340_v61 = vld [vmem:[%s15167_s26 + $0x2100] sm:$0xff]  ;;  %v3692_v62 = vcombine.high %v3690_v54, %v3690_v54 }
 0x279   : > { %12442 = vmatpush3.msra.mxu1 %v1354_v63  ;;  %12408 = vmatprep.subr.mxu0 %v1337_v0  ;;  %v1403_v63 = vld [vmem:[%s15167_s26 + $0x22f8] sm:$0xff] }
 0x27a   : > { %12443 = vmatprep.subr.mxu1 %v1369_v1  ;;  %12409 = vmatpush3.msra.mxu0 %v1321_v2  ;;  %v1435_v0 = vld [vmem:[%s15167_s26 + $0x23f8] sm:$0xff] }
 0x27b   : > { %12444 = vmatpush3.msra.mxu1 %v1353_v3  ;;  %12410 = vmatprep.subr.mxu0 %v1336_v4  ;;  %v1387_v1 = vld [vmem:[%s15167_s26 + $0x2278] sm:$0xff]  ;;  %v1402_v3 = vld [vmem:[%s15167_s26 + $0x22f0] sm:$0xff] }
 0x27c   : > { %12445 = vmatprep.subr.mxu1 %v1368_v5  ;;  %12411 = vmatpush3.msra.mxu0 %v1320_v6  ;;  %v1419_v2 = vld [vmem:[%s15167_s26 + $0x2378] sm:$0xff]  ;;  %v1434_v4 = vld [vmem:[%s15167_s26 + $0x23f0] sm:$0xff] }
 0x27d   : > { %12446 = vmatpush3.msra.mxu1 %v1352_v7  ;;  %12412 = vmatprep.subr.mxu0 %v1335_v8  ;;  %v1386_v5 = vld [vmem:[%s15167_s26 + $0x2270] sm:$0xff]  ;;  %v1401_v7 = vld [vmem:[%s15167_s26 + $0x22e8] sm:$0xff] }
 0x27e   : > { %12447 = vmatprep.subr.mxu1 %v1367_v9  ;;  %12413 = vmatpush3.msra.mxu0 %v1319_v10  ;;  %v1418_v6 = vld [vmem:[%s15167_s26 + $0x2370] sm:$0xff]  ;;  %v1433_v8 = vld [vmem:[%s15167_s26 + $0x23e8] sm:$0xff] }
 0x27f   : > { %12448 = vmatpush3.msra.mxu1 %v1351_v11  ;;  %12414 = vmatprep.subr.mxu0 %v1334_v12  ;;  %v1385_v9 = vld [vmem:[%s15167_s26 + $0x2268] sm:$0xff]  ;;  %v1400_v11 = vld [vmem:[%s15167_s26 + $0x22e0] sm:$0xff] }
 0x280   : > { %12449 = vmatprep.subr.mxu1 %v1366_v13  ;;  %12415 = vmatpush3.msra.mxu0 %v1318_v14  ;;  %v1417_v10 = vld [vmem:[%s15167_s26 + $0x2368] sm:$0xff]  ;;  %v1432_v12 = vld [vmem:[%s15167_s26 + $0x23e0] sm:$0xff] }
 0x281   : > { %12450 = vmatpush3.msra.mxu1 %v1350_v15  ;;  %12416 = vmatprep.subr.mxu0 %v1333_v16  ;;  %v1384_v13 = vld [vmem:[%s15167_s26 + $0x2260] sm:$0xff]  ;;  %v1399_v15 = vld [vmem:[%s15167_s26 + $0x22d8] sm:$0xff] }
 0x282   : > { %12451 = vmatprep.subr.mxu1 %v1365_v17  ;;  %12417 = vmatpush3.msra.mxu0 %v1317_v18  ;;  %v1416_v14 = vld [vmem:[%s15167_s26 + $0x2360] sm:$0xff]  ;;  %v1431_v16 = vld [vmem:[%s15167_s26 + $0x23d8] sm:$0xff] }
 0x283   : > { %12452 = vmatpush3.msra.mxu1 %v1349_v19  ;;  %12418 = vmatprep.subr.mxu0 %v1332_v20  ;;  %v1383_v17 = vld [vmem:[%s15167_s26 + $0x2258] sm:$0xff]  ;;  %v1398_v19 = vld [vmem:[%s15167_s26 + $0x22d0] sm:$0xff] }
 0x284   : > { %12453 = vmatprep.subr.mxu1 %v1364_v21  ;;  %12419 = vmatpush3.msra.mxu0 %v1316_v22  ;;  %v1415_v18 = vld [vmem:[%s15167_s26 + $0x2358] sm:$0xff]  ;;  %v1430_v20 = vld [vmem:[%s15167_s26 + $0x23d0] sm:$0xff] }
 0x285   : > { %12454 = vmatpush3.msra.mxu1 %v1348_v23  ;;  %12420 = vmatprep.subr.mxu0 %v1331_v24  ;;  %v1382_v21 = vld [vmem:[%s15167_s26 + $0x2250] sm:$0xff]  ;;  %v1397_v23 = vld [vmem:[%s15167_s26 + $0x22c8] sm:$0xff] }
 0x286   : > { %12455 = vmatprep.subr.mxu1 %v1363_v25  ;;  %12421 = vmatpush3.msra.mxu0 %v1315_v26  ;;  %v1414_v22 = vld [vmem:[%s15167_s26 + $0x2350] sm:$0xff]  ;;  %v1429_v24 = vld [vmem:[%s15167_s26 + $0x23c8] sm:$0xff] }
 0x287   : > { %12456 = vmatpush3.msra.mxu1 %v1347_v27  ;;  %12422 = vmatprep.subr.mxu0 %v1330_v28  ;;  %v1381_v25 = vld [vmem:[%s15167_s26 + $0x2248] sm:$0xff]  ;;  %v1396_v27 = vld [vmem:[%s15167_s26 + $0x22c0] sm:$0xff] }
 0x288   : > { %12457 = vmatprep.subr.mxu1 %v1362_v29  ;;  %12423 = vmatpush3.msra.mxu0 %v1314_v30  ;;  %v1413_v26 = vld [vmem:[%s15167_s26 + $0x2348] sm:$0xff]  ;;  %v1428_v28 = vld [vmem:[%s15167_s26 + $0x23c0] sm:$0xff] }
 0x289   : > { %12458 = vmatpush3.msra.mxu1 %v1346_v31  ;;  %12424 = vmatprep.subr.mxu0 %v1329_v32  ;;  %v1380_v29 = vld [vmem:[%s15167_s26 + $0x2240] sm:$0xff]  ;;  %v1395_v31 = vld [vmem:[%s15167_s26 + $0x22b8] sm:$0xff] }
 0x28a   : > { %12459 = vmatprep.subr.mxu1 %v1361_v33  ;;  %12425 = vmatpush3.msra.mxu0 %v1313_v34  ;;  %v1412_v30 = vld [vmem:[%s15167_s26 + $0x2340] sm:$0xff]  ;;  %v1427_v32 = vld [vmem:[%s15167_s26 + $0x23b8] sm:$0xff] }
 0x28b   : > { %12460 = vmatpush3.msra.mxu1 %v1345_v35  ;;  %12426 = vmatprep.subr.mxu0 %v1328_v37  ;;  %v1379_v33 = vld [vmem:[%s15167_s26 + $0x2238] sm:$0xff]  ;;  %v1394_v35 = vld [vmem:[%s15167_s26 + $0x22b0] sm:$0xff] }
 0x28c   : > { %12461 = vmatprep.subr.mxu1 %v1360_v38  ;;  %12427 = vmatpush3.msra.mxu0 %v1312_v39  ;;  %v1411_v34 = vld [vmem:[%s15167_s26 + $0x2338] sm:$0xff]  ;;  %v1378_v37 = vld [vmem:[%s15167_s26 + $0x2230] sm:$0xff]  ;;  %v1393_v39 = vld [vmem:[%s15167_s26 + $0x22a8] sm:$0xff] }
 0x28d   : > { %12462 = vmatpush3.msra.mxu1 %v1344_v40  ;;  %12428 = vmatprep.subr.mxu0 %v1327_v41  ;;  %v1410_v38 = vld [vmem:[%s15167_s26 + $0x2330] sm:$0xff]  ;;  %v1425_v40 = vld [vmem:[%s15167_s26 + $0x23a8] sm:$0xff] }
 0x28e   : > { %12463 = vmatprep.subr.mxu1 %v1359_v42  ;;  %12429 = vmatpush3.msra.mxu0 %v1311_v44  ;;  %v1377_v41 = vld [vmem:[%s15167_s26 + $0x2228] sm:$0xff]  ;;  %v1392_v44 = vld [vmem:[%s15167_s26 + $0x22a0] sm:$0xff] }
 0x28f   : > { %12464 = vmatpush3.msra.mxu1 %v1343_v45  ;;  %12430 = vmatprep.subr.mxu0 %v1326_v46  ;;  %v1409_v42 = vld [vmem:[%s15167_s26 + $0x2328] sm:$0xff]  ;;  %v1424_v45 = vld [vmem:[%s15167_s26 + $0x23a0] sm:$0xff] }
 0x290   : > { %12465 = vmatprep.subr.mxu1 %v1358_v47  ;;  %12431 = vmatpush3.msra.mxu0 %v1310_v49  ;;  %v1376_v46 = vld [vmem:[%s15167_s26 + $0x2220] sm:$0xff]  ;;  %v1423_v49 = vld [vmem:[%s15167_s26 + $0x2398] sm:$0xff] }
 0x291   : > { %12466 = vmatpush3.msra.mxu1 %v1342_v50  ;;  %12432 = vmatprep.subr.mxu0 %v1325_v51  ;;  %v1408_v47 = vld [vmem:[%s15167_s26 + $0x2320] sm:$0xff]  ;;  %v3693_v50 = vcombine.high %v253_v43, %v253_v43  ;;  %v1375_v51 = vld [vmem:[%s15167_s26 + $0x2218] sm:$0xff] }
 0x292   : > { %12467 = vmatprep.subr.mxu1 %v1357_v53  ;;  %12433 = vmatpush3.msra.mxu0 %v1309_v55  ;;  %v1407_v53 = vld [vmem:[%s15167_s26 + $0x2318] sm:$0xff]  ;;  %v1422_v55 = vld [vmem:[%s15167_s26 + $0x2390] sm:$0xff] }
 0x293   : > { %12468 = vmatpush3.msra.mxu1 %v1341_v56  ;;  %12434 = vmatprep.subr.mxu0 %v1324_v57  ;;  %v3700_v56 = vrot.slane %v253_v43, %v15226_v52  ;;  %v1374_v57 = vld [vmem:[%s15167_s26 + $0x2210] sm:$0xff] }
 0x294   : > { %12469 = vmatprep.subr.mxu1 %v1356_v58  ;;  %12435 = vmatpush3.msra.mxu0 %v1308_v60  ;;  %v1406_v58 = vld [vmem:[%s15167_s26 + $0x2310] sm:$0xff]  ;;  %v1421_v60 = vld [vmem:[%s15167_s26 + $0x2388] sm:$0xff] }
 0x295   : > { %6716 = vmatprep.mubr.f32.mxu0 %v3691_v59  ;;  %12470 = vmatpush3.msra.mxu1 %v1340_v61  ;;  %v1389_v59 = vld [vmem:[%s15167_s26 + $0x2288] sm:$0xff]  ;;  %v3707_v61 = vrot.slane %v3693_v50, %v15226_v52  ;;  %v1490_v43 = vld [vmem:[%s15167_s26 + $0x25b0] sm:$0xff] }
 0x296   : > { %6717 = vmatmul.mubr.f32.vlgmr.msra.gmra.mxu0 %v3683_v48  ;;  %6786 = vmatprep.mubr.f32.mxu1 %v3692_v62  ;;  %v1391_v48 = vld [vmem:[%s15167_s26 + $0x2298] sm:$0xff]  ;;  %v1373_v62 = vld [vmem:[%s15167_s26 + $0x2208] sm:$0xff]  ;;  %v254_v50 = vld [vmem:[%s15161_s29 + $0x90] sm:$0xff] }
 0x297   : > { %12474 = vmatprep.subr.mxu0 %v1403_v63  ;;  %12509 = vmatprep.subr.mxu1 %v1435_v0  ;;  %v1405_v63 = vld [vmem:[%s15167_s26 + $0x2308] sm:$0xff]  ;;  %v1388_v0 = vld [vmem:[%s15167_s26 + $0x2280] sm:$0xff] }
 0x298   : > { %6787 = vmatmul.mubr.f32.vlgmr.msra.gmra.mxu1 %v3690_v54  ;;  %12475 = vmatpush3.msra.mxu0 %v1387_v1  ;;  %v1390_v54 = vld [vmem:[%s15167_s26 + $0x2290] sm:$0xff]  ;;  %v1420_v1 = vld [vmem:[%s15167_s26 + $0x2380] sm:$0xff] }
 0x299   : > { %12510 = vmatpush3.msra.mxu1 %v1419_v2  ;;  %12476 = vmatprep.subr.mxu0 %v1402_v3  ;;  %v3708_v2 = vcombine.high %v3700_v56, %v3700_v56  ;;  %v1372_v3 = vld [vmem:[%s15167_s26 + $0x2200] sm:$0xff] }
 0x29a   : > { %12511 = vmatprep.subr.mxu1 %v1434_v4  ;;  %12477 = vmatpush3.msra.mxu0 %v1386_v5  ;;  %v1404_v4 = vld [vmem:[%s15167_s26 + $0x2300] sm:$0xff]  ;;  %v3709_v5 = vcombine.high %v3707_v61, %v3707_v61 }
 0x29b   : > { %12512 = vmatpush3.msra.mxu1 %v1418_v6  ;;  %12478 = vmatprep.subr.mxu0 %v1401_v7  ;;  %v1467_v6 = vld [vmem:[%s15167_s26 + $0x24f8] sm:$0xff] }
 0x29c   : > { %12513 = vmatprep.subr.mxu1 %v1433_v8  ;;  %12479 = vmatpush3.msra.mxu0 %v1385_v9  ;;  %v1499_v7 = vld [vmem:[%s15167_s26 + $0x25f8] sm:$0xff] }
 0x29d   : > { %12514 = vmatpush3.msra.mxu1 %v1417_v10  ;;  %12480 = vmatprep.subr.mxu0 %v1400_v11  ;;  %v1451_v8 = vld [vmem:[%s15167_s26 + $0x2478] sm:$0xff]  ;;  %v1466_v10 = vld [vmem:[%s15167_s26 + $0x24f0] sm:$0xff] }
 0x29e   : > { %12515 = vmatprep.subr.mxu1 %v1432_v12  ;;  %12481 = vmatpush3.msra.mxu0 %v1384_v13  ;;  %v1483_v9 = vld [vmem:[%s15167_s26 + $0x2578] sm:$0xff]  ;;  %v1498_v11 = vld [vmem:[%s15167_s26 + $0x25f0] sm:$0xff] }
 0x29f   : > { %12516 = vmatpush3.msra.mxu1 %v1416_v14  ;;  %12482 = vmatprep.subr.mxu0 %v1399_v15  ;;  %v1450_v12 = vld [vmem:[%s15167_s26 + $0x2470] sm:$0xff]  ;;  %v1465_v14 = vld [vmem:[%s15167_s26 + $0x24e8] sm:$0xff] }
 0x2a0   : > { %12517 = vmatprep.subr.mxu1 %v1431_v16  ;;  %12483 = vmatpush3.msra.mxu0 %v1383_v17  ;;  %v1482_v13 = vld [vmem:[%s15167_s26 + $0x2570] sm:$0xff]  ;;  %v1497_v15 = vld [vmem:[%s15167_s26 + $0x25e8] sm:$0xff] }
 0x2a1   : > { %12518 = vmatpush3.msra.mxu1 %v1415_v18  ;;  %12484 = vmatprep.subr.mxu0 %v1398_v19  ;;  %v1449_v16 = vld [vmem:[%s15167_s26 + $0x2468] sm:$0xff]  ;;  %v1464_v18 = vld [vmem:[%s15167_s26 + $0x24e0] sm:$0xff] }
 0x2a2   : > { %12519 = vmatprep.subr.mxu1 %v1430_v20  ;;  %12485 = vmatpush3.msra.mxu0 %v1382_v21  ;;  %v1481_v17 = vld [vmem:[%s15167_s26 + $0x2568] sm:$0xff]  ;;  %v1496_v19 = vld [vmem:[%s15167_s26 + $0x25e0] sm:$0xff] }
 0x2a3   : > { %12520 = vmatpush3.msra.mxu1 %v1414_v22  ;;  %12486 = vmatprep.subr.mxu0 %v1397_v23  ;;  %v1448_v20 = vld [vmem:[%s15167_s26 + $0x2460] sm:$0xff]  ;;  %v1463_v22 = vld [vmem:[%s15167_s26 + $0x24d8] sm:$0xff] }
 0x2a4   : > { %12521 = vmatprep.subr.mxu1 %v1429_v24  ;;  %12487 = vmatpush3.msra.mxu0 %v1381_v25  ;;  %v1480_v21 = vld [vmem:[%s15167_s26 + $0x2560] sm:$0xff]  ;;  %v1495_v23 = vld [vmem:[%s15167_s26 + $0x25d8] sm:$0xff] }
 0x2a5   : > { %12522 = vmatpush3.msra.mxu1 %v1413_v26  ;;  %12488 = vmatprep.subr.mxu0 %v1396_v27  ;;  %v1447_v24 = vld [vmem:[%s15167_s26 + $0x2458] sm:$0xff]  ;;  %v1462_v26 = vld [vmem:[%s15167_s26 + $0x24d0] sm:$0xff] }
 0x2a6   : > { %12523 = vmatprep.subr.mxu1 %v1428_v28  ;;  %12489 = vmatpush3.msra.mxu0 %v1380_v29  ;;  %v1479_v25 = vld [vmem:[%s15167_s26 + $0x2558] sm:$0xff]  ;;  %v1494_v27 = vld [vmem:[%s15167_s26 + $0x25d0] sm:$0xff] }
 0x2a7   : > { %12524 = vmatpush3.msra.mxu1 %v1412_v30  ;;  %12490 = vmatprep.subr.mxu0 %v1395_v31  ;;  %v1446_v28 = vld [vmem:[%s15167_s26 + $0x2450] sm:$0xff]  ;;  %v1461_v30 = vld [vmem:[%s15167_s26 + $0x24c8] sm:$0xff] }
 0x2a8   : > { %12525 = vmatprep.subr.mxu1 %v1427_v32  ;;  %12491 = vmatpush3.msra.mxu0 %v1379_v33  ;;  %v1478_v29 = vld [vmem:[%s15167_s26 + $0x2550] sm:$0xff]  ;;  %v1493_v31 = vld [vmem:[%s15167_s26 + $0x25c8] sm:$0xff] }
 0x2a9   : > { %12526 = vmatpush3.msra.mxu1 %v1411_v34  ;;  %12492 = vmatprep.subr.mxu0 %v1394_v35  ;;  %v1445_v32 = vld [vmem:[%s15167_s26 + $0x2448] sm:$0xff]  ;;  %v1460_v34 = vld [vmem:[%s15167_s26 + $0x24c0] sm:$0xff] }
 0x2aa   : > { %12527 = vmatprep.subr.mxu1 %v1426_v36  ;;  %12493 = vmatpush3.msra.mxu0 %v1378_v37  ;;  %v1477_v33 = vld [vmem:[%s15167_s26 + $0x2548] sm:$0xff]  ;;  %v1492_v35 = vld [vmem:[%s15167_s26 + $0x25c0] sm:$0xff] }
 0x2ab   : > { %12528 = vmatpush3.msra.mxu1 %v1410_v38  ;;  %12494 = vmatprep.subr.mxu0 %v1393_v39  ;;  %v1444_v36 = vld [vmem:[%s15167_s26 + $0x2440] sm:$0xff]  ;;  %v1459_v38 = vld [vmem:[%s15167_s26 + $0x24b8] sm:$0xff] }
 0x2ac   : > { %12529 = vmatprep.subr.mxu1 %v1425_v40  ;;  %12495 = vmatpush3.msra.mxu0 %v1377_v41  ;;  %v1476_v37 = vld [vmem:[%s15167_s26 + $0x2540] sm:$0xff]  ;;  %v1491_v39 = vld [vmem:[%s15167_s26 + $0x25b8] sm:$0xff] }
 0x2ad   : > { %12530 = vmatpush3.msra.mxu1 %v1409_v42  ;;  %12496 = vmatprep.subr.mxu0 %v1392_v44  ;;  %v1443_v40 = vld [vmem:[%s15167_s26 + $0x2438] sm:$0xff]  ;;  %v1458_v42 = vld [vmem:[%s15167_s26 + $0x24b0] sm:$0xff] }
 0x2ae   : > { %12531 = vmatprep.subr.mxu1 %v1424_v45  ;;  %12497 = vmatpush3.msra.mxu0 %v1376_v46  ;;  %v1475_v41 = vld [vmem:[%s15167_s26 + $0x2538] sm:$0xff]  ;;  %v1442_v44 = vld [vmem:[%s15167_s26 + $0x2430] sm:$0xff]  ;;  %v1457_v46 = vld [vmem:[%s15167_s26 + $0x24a8] sm:$0xff] }
 0x2af   : > { %12532 = vmatpush3.msra.mxu1 %v1408_v47  ;;  %12498 = vmatprep.subr.mxu0 %v1391_v48  ;;  %v1474_v45 = vld [vmem:[%s15167_s26 + $0x2530] sm:$0xff]  ;;  %v1489_v47 = vld [vmem:[%s15167_s26 + $0x25a8] sm:$0xff] }
 0x2b0   : > { %12533 = vmatprep.subr.mxu1 %v1423_v49  ;;  %12499 = vmatpush3.msra.mxu0 %v1375_v51  ;;  %v1441_v48 = vld [vmem:[%s15167_s26 + $0x2428] sm:$0xff]  ;;  %v1456_v51 = vld [vmem:[%s15167_s26 + $0x24a0] sm:$0xff] }
 0x2b1   : > { %12534 = vmatpush3.msra.mxu1 %v1407_v53  ;;  %12500 = vmatprep.subr.mxu0 %v1390_v54  ;;  %v1473_v49 = vld [vmem:[%s15167_s26 + $0x2528] sm:$0xff]  ;;  %v1488_v53 = vld [vmem:[%s15167_s26 + $0x25a0] sm:$0xff] }
 0x2b2   : > { %12535 = vmatprep.subr.mxu1 %v1422_v55  ;;  %12501 = vmatpush3.msra.mxu0 %v1374_v57  ;;  %v1440_v54 = vld [vmem:[%s15167_s26 + $0x2420] sm:$0xff]  ;;  %v1487_v57 = vld [vmem:[%s15167_s26 + $0x2598] sm:$0xff] }
 0x2b3   : > { %12536 = vmatpush3.msra.mxu1 %v1406_v58  ;;  %12502 = vmatprep.subr.mxu0 %v1389_v59  ;;  %v1472_v55 = vld [vmem:[%s15167_s26 + $0x2520] sm:$0xff]  ;;  %v3710_v58 = vcombine.high %v254_v50, %v254_v50  ;;  %v1439_v59 = vld [vmem:[%s15167_s26 + $0x2418] sm:$0xff] }
 0x2b4   : > { %12537 = vmatprep.subr.mxu1 %v1421_v60  ;;  %12503 = vmatpush3.msra.mxu0 %v1373_v62  ;;  %v1471_v60 = vld [vmem:[%s15167_s26 + $0x2518] sm:$0xff]  ;;  %v1486_v62 = vld [vmem:[%s15167_s26 + $0x2590] sm:$0xff] }
 0x2b5   : > { %12538 = vmatpush3.msra.mxu1 %v1405_v63  ;;  %12504 = vmatprep.subr.mxu0 %v1388_v0  ;;  %v3717_v63 = vrot.slane %v254_v50, %v15226_v52  ;;  %v1438_v0 = vld [vmem:[%s15167_s26 + $0x2410] sm:$0xff] }
 0x2b6   : > { %12539 = vmatprep.subr.mxu1 %v1420_v1  ;;  %12505 = vmatpush3.msra.mxu0 %v1372_v3  ;;  %v1470_v1 = vld [vmem:[%s15167_s26 + $0x2510] sm:$0xff]  ;;  %v1485_v3 = vld [vmem:[%s15167_s26 + $0x2588] sm:$0xff] }
 0x2b7   : > { %6856 = vmatprep.mubr.f32.mxu0 %v3708_v2  ;;  %12540 = vmatpush3.msra.mxu1 %v1404_v4  ;;  %v1453_v2 = vld [vmem:[%s15167_s26 + $0x2488] sm:$0xff]  ;;  %v3724_v4 = vrot.slane %v3710_v58, %v15226_v52  ;;  %v1554_v50 = vld [vmem:[%s15167_s26 + $0x27b0] sm:$0xff]  ;;  %v255_v58 = vld [vmem:[%s15161_s29 + $0x98] sm:$0xff] }
 0x2b8   : > { %6857 = vmatmul.mubr.f32.vlgmr.msra.gmra.mxu0 %v3700_v56  ;;  %6926 = vmatprep.mubr.f32.mxu1 %v3709_v5  ;;  %v1455_v56 = vld [vmem:[%s15167_s26 + $0x2498] sm:$0xff]  ;;  %v1437_v5 = vld [vmem:[%s15167_s26 + $0x2408] sm:$0xff] }
 0x2b9   : > { %12544 = vmatprep.subr.mxu0 %v1467_v6  ;;  %12579 = vmatprep.subr.mxu1 %v1499_v7  ;;  %v1469_v6 = vld [vmem:[%s15167_s26 + $0x2508] sm:$0xff]  ;;  %v1452_v7 = vld [vmem:[%s15167_s26 + $0x2480] sm:$0xff] }
 0x2ba   : > { %6927 = vmatmul.mubr.f32.vlgmr.msra.gmra.mxu1 %v3707_v61  ;;  %12545 = vmatpush3.msra.mxu0 %v1451_v8  ;;  %v1454_v61 = vld [vmem:[%s15167_s26 + $0x2490] sm:$0xff]  ;;  %v1484_v8 = vld [vmem:[%s15167_s26 + $0x2580] sm:$0xff] }
 0x2bb   : > { %12580 = vmatpush3.msra.mxu1 %v1483_v9  ;;  %12546 = vmatprep.subr.mxu0 %v1466_v10  ;;  %v3725_v9 = vcombine.high %v3717_v63, %v3717_v63  ;;  %v1436_v10 = vld [vmem:[%s15167_s26 + $0x2400] sm:$0xff] }
 0x2bc   : > { %12581 = vmatprep.subr.mxu1 %v1498_v11  ;;  %12547 = vmatpush3.msra.mxu0 %v1450_v12  ;;  %v1468_v11 = vld [vmem:[%s15167_s26 + $0x2500] sm:$0xff]  ;;  %v3726_v12 = vcombine.high %v3724_v4, %v3724_v4 }
 0x2bd   : > { %12582 = vmatpush3.msra.mxu1 %v1482_v13  ;;  %12548 = vmatprep.subr.mxu0 %v1465_v14  ;;  %v1531_v13 = vld [vmem:[%s15167_s26 + $0x26f8] sm:$0xff] }
 0x2be   : > { %12583 = vmatprep.subr.mxu1 %v1497_v15  ;;  %12549 = vmatpush3.msra.mxu0 %v1449_v16  ;;  %v1563_v14 = vld [vmem:[%s15167_s26 + $0x27f8] sm:$0xff] }
 0x2bf   : > { %12584 = vmatpush3.msra.mxu1 %v1481_v17  ;;  %12550 = vmatprep.subr.mxu0 %v1464_v18  ;;  %v1515_v15 = vld [vmem:[%s15167_s26 + $0x2678] sm:$0xff]  ;;  %v1530_v17 = vld [vmem:[%s15167_s26 + $0x26f0] sm:$0xff] }
 0x2c0   : > { %12585 = vmatprep.subr.mxu1 %v1496_v19  ;;  %12551 = vmatpush3.msra.mxu0 %v1448_v20  ;;  %v1547_v16 = vld [vmem:[%s15167_s26 + $0x2778] sm:$0xff]  ;;  %v1562_v18 = vld [vmem:[%s15167_s26 + $0x27f0] sm:$0xff] }
 0x2c1   : > { %12586 = vmatpush3.msra.mxu1 %v1480_v21  ;;  %12552 = vmatprep.subr.mxu0 %v1463_v22  ;;  %v1514_v19 = vld [vmem:[%s15167_s26 + $0x2670] sm:$0xff]  ;;  %v1529_v21 = vld [vmem:[%s15167_s26 + $0x26e8] sm:$0xff] }
 0x2c2   : > { %12587 = vmatprep.subr.mxu1 %v1495_v23  ;;  %12553 = vmatpush3.msra.mxu0 %v1447_v24  ;;  %v1546_v20 = vld [vmem:[%s15167_s26 + $0x2770] sm:$0xff]  ;;  %v1561_v22 = vld [vmem:[%s15167_s26 + $0x27e8] sm:$0xff] }
 0x2c3   : > { %12588 = vmatpush3.msra.mxu1 %v1479_v25  ;;  %12554 = vmatprep.subr.mxu0 %v1462_v26  ;;  %v1513_v23 = vld [vmem:[%s15167_s26 + $0x2668] sm:$0xff]  ;;  %v1528_v25 = vld [vmem:[%s15167_s26 + $0x26e0] sm:$0xff] }
 0x2c4   : > { %12589 = vmatprep.subr.mxu1 %v1494_v27  ;;  %12555 = vmatpush3.msra.mxu0 %v1446_v28  ;;  %v1545_v24 = vld [vmem:[%s15167_s26 + $0x2768] sm:$0xff]  ;;  %v1560_v26 = vld [vmem:[%s15167_s26 + $0x27e0] sm:$0xff] }
 0x2c5   : > { %12590 = vmatpush3.msra.mxu1 %v1478_v29  ;;  %12556 = vmatprep.subr.mxu0 %v1461_v30  ;;  %v1512_v27 = vld [vmem:[%s15167_s26 + $0x2660] sm:$0xff]  ;;  %v1527_v29 = vld [vmem:[%s15167_s26 + $0x26d8] sm:$0xff] }
 0x2c6   : > { %12591 = vmatprep.subr.mxu1 %v1493_v31  ;;  %12557 = vmatpush3.msra.mxu0 %v1445_v32  ;;  %v1544_v28 = vld [vmem:[%s15167_s26 + $0x2760] sm:$0xff]  ;;  %v1559_v30 = vld [vmem:[%s15167_s26 + $0x27d8] sm:$0xff] }
 0x2c7   : > { %12592 = vmatpush3.msra.mxu1 %v1477_v33  ;;  %12558 = vmatprep.subr.mxu0 %v1460_v34  ;;  %v1511_v31 = vld [vmem:[%s15167_s26 + $0x2658] sm:$0xff]  ;;  %v1526_v33 = vld [vmem:[%s15167_s26 + $0x26d0] sm:$0xff] }
 0x2c8   : > { %12593 = vmatprep.subr.mxu1 %v1492_v35  ;;  %12559 = vmatpush3.msra.mxu0 %v1444_v36  ;;  %v1543_v32 = vld [vmem:[%s15167_s26 + $0x2758] sm:$0xff]  ;;  %v1558_v34 = vld [vmem:[%s15167_s26 + $0x27d0] sm:$0xff] }
 0x2c9   : > { %12594 = vmatpush3.msra.mxu1 %v1476_v37  ;;  %12560 = vmatprep.subr.mxu0 %v1459_v38  ;;  %v1510_v35 = vld [vmem:[%s15167_s26 + $0x2650] sm:$0xff]  ;;  %v1525_v37 = vld [vmem:[%s15167_s26 + $0x26c8] sm:$0xff] }
 0x2ca   : > { %12595 = vmatprep.subr.mxu1 %v1491_v39  ;;  %12561 = vmatpush3.msra.mxu0 %v1443_v40  ;;  %v1542_v36 = vld [vmem:[%s15167_s26 + $0x2750] sm:$0xff]  ;;  %v1557_v38 = vld [vmem:[%s15167_s26 + $0x27c8] sm:$0xff] }
 0x2cb   : > { %12596 = vmatpush3.msra.mxu1 %v1475_v41  ;;  %12562 = vmatprep.subr.mxu0 %v1458_v42  ;;  %v1509_v39 = vld [vmem:[%s15167_s26 + $0x2648] sm:$0xff]  ;;  %v1524_v41 = vld [vmem:[%s15167_s26 + $0x26c0] sm:$0xff] }
 0x2cc   : > { %12597 = vmatprep.subr.mxu1 %v1490_v43  ;;  %12563 = vmatpush3.msra.mxu0 %v1442_v44  ;;  %v1541_v40 = vld [vmem:[%s15167_s26 + $0x2748] sm:$0xff]  ;;  %v1556_v42 = vld [vmem:[%s15167_s26 + $0x27c0] sm:$0xff] }
 0x2cd   : > { %12598 = vmatpush3.msra.mxu1 %v1474_v45  ;;  %12564 = vmatprep.subr.mxu0 %v1457_v46  ;;  %v1508_v43 = vld [vmem:[%s15167_s26 + $0x2640] sm:$0xff]  ;;  %v1523_v45 = vld [vmem:[%s15167_s26 + $0x26b8] sm:$0xff] }
 0x2ce   : > { %12599 = vmatprep.subr.mxu1 %v1489_v47  ;;  %12565 = vmatpush3.msra.mxu0 %v1441_v48  ;;  %v1540_v44 = vld [vmem:[%s15167_s26 + $0x2740] sm:$0xff]  ;;  %v1555_v46 = vld [vmem:[%s15167_s26 + $0x27b8] sm:$0xff] }
 0x2cf   : > { %12600 = vmatpush3.msra.mxu1 %v1473_v49  ;;  %12566 = vmatprep.subr.mxu0 %v1456_v51  ;;  %v1507_v47 = vld [vmem:[%s15167_s26 + $0x2638] sm:$0xff]  ;;  %v1522_v49 = vld [vmem:[%s15167_s26 + $0x26b0] sm:$0xff] }
 0x2d0   : > { %12601 = vmatprep.subr.mxu1 %v1488_v53  ;;  %12567 = vmatpush3.msra.mxu0 %v1440_v54  ;;  %v1539_v48 = vld [vmem:[%s15167_s26 + $0x2738] sm:$0xff]  ;;  %v1506_v51 = vld [vmem:[%s15167_s26 + $0x2630] sm:$0xff]  ;;  %v1521_v54 = vld [vmem:[%s15167_s26 + $0x26a8] sm:$0xff] }
 0x2d1   : > { %12602 = vmatpush3.msra.mxu1 %v1472_v55  ;;  %12568 = vmatprep.subr.mxu0 %v1455_v56  ;;  %v1538_v53 = vld [vmem:[%s15167_s26 + $0x2730] sm:$0xff]  ;;  %v1553_v55 = vld [vmem:[%s15167_s26 + $0x27a8] sm:$0xff] }
 0x2d2   : > { %12603 = vmatprep.subr.mxu1 %v1487_v57  ;;  %12569 = vmatpush3.msra.mxu0 %v1439_v59  ;;  %v1505_v56 = vld [vmem:[%s15167_s26 + $0x2628] sm:$0xff]  ;;  %v1520_v59 = vld [vmem:[%s15167_s26 + $0x26a0] sm:$0xff] }
 0x2d3   : > { %12604 = vmatpush3.msra.mxu1 %v1471_v60  ;;  %12570 = vmatprep.subr.mxu0 %v1454_v61  ;;  %v1537_v57 = vld [vmem:[%s15167_s26 + $0x2728] sm:$0xff]  ;;  %v1552_v60 = vld [vmem:[%s15167_s26 + $0x27a0] sm:$0xff] }
 0x2d4   : > { %12605 = vmatprep.subr.mxu1 %v1486_v62  ;;  %12571 = vmatpush3.msra.mxu0 %v1438_v0  ;;  %v1504_v61 = vld [vmem:[%s15167_s26 + $0x2620] sm:$0xff]  ;;  %v1551_v0 = vld [vmem:[%s15167_s26 + $0x2798] sm:$0xff] }
 0x2d5   : > { %12606 = vmatpush3.msra.mxu1 %v1470_v1  ;;  %12572 = vmatprep.subr.mxu0 %v1453_v2  ;;  %v1536_v62 = vld [vmem:[%s15167_s26 + $0x2720] sm:$0xff]  ;;  %v3727_v1 = vcombine.high %v255_v58, %v255_v58  ;;  %v1503_v2 = vld [vmem:[%s15167_s26 + $0x2618] sm:$0xff] }
 0x2d6   : > { %12607 = vmatprep.subr.mxu1 %v1485_v3  ;;  %12573 = vmatpush3.msra.mxu0 %v1437_v5  ;;  %v1535_v3 = vld [vmem:[%s15167_s26 + $0x2718] sm:$0xff]  ;;  %v1550_v5 = vld [vmem:[%s15167_s26 + $0x2790] sm:$0xff] }
 0x2d7   : > { %12608 = vmatpush3.msra.mxu1 %v1469_v6  ;;  %12574 = vmatprep.subr.mxu0 %v1452_v7  ;;  %v3734_v6 = vrot.slane %v255_v58, %v15226_v52  ;;  %v1502_v7 = vld [vmem:[%s15167_s26 + $0x2610] sm:$0xff] }
 0x2d8   : > { %12609 = vmatprep.subr.mxu1 %v1484_v8  ;;  %12575 = vmatpush3.msra.mxu0 %v1436_v10  ;;  %v1534_v8 = vld [vmem:[%s15167_s26 + $0x2710] sm:$0xff]  ;;  %v1549_v10 = vld [vmem:[%s15167_s26 + $0x2788] sm:$0xff] }
 0x2d9   : > { %6996 = vmatprep.mubr.f32.mxu0 %v3725_v9  ;;  %12610 = vmatpush3.msra.mxu1 %v1468_v11  ;;  %v1517_v9 = vld [vmem:[%s15167_s26 + $0x2688] sm:$0xff]  ;;  %v3741_v11 = vrot.slane %v3727_v1, %v15226_v52  ;;  %v1618_v58 = vld [vmem:[%s15167_s26 + $0x29b0] sm:$0xff]  ;;  %v256_v1 = vld [vmem:[%s15161_s29 + $0xa0] sm:$0xff] }
 0x2da   : > { %6997 = vmatmul.mubr.f32.vlgmr.msra.gmra.mxu0 %v3717_v63  ;;  %7066 = vmatprep.mubr.f32.mxu1 %v3726_v12  ;;  %v1519_v63 = vld [vmem:[%s15167_s26 + $0x2698] sm:$0xff]  ;;  %v1501_v12 = vld [vmem:[%s15167_s26 + $0x2608] sm:$0xff] }
 0x2db   : > { %12614 = vmatprep.subr.mxu0 %v1531_v13  ;;  %12649 = vmatprep.subr.mxu1 %v1563_v14  ;;  %v1533_v13 = vld [vmem:[%s15167_s26 + $0x2708] sm:$0xff]  ;;  %v1516_v14 = vld [vmem:[%s15167_s26 + $0x2680] sm:$0xff] }
 0x2dc   : > { %7067 = vmatmul.mubr.f32.vlgmr.msra.gmra.mxu1 %v3724_v4  ;;  %12615 = vmatpush3.msra.mxu0 %v1515_v15  ;;  %v1518_v4 = vld [vmem:[%s15167_s26 + $0x2690] sm:$0xff]  ;;  %v1548_v15 = vld [vmem:[%s15167_s26 + $0x2780] sm:$0xff] }
 0x2dd   : > { %12650 = vmatpush3.msra.mxu1 %v1547_v16  ;;  %12616 = vmatprep.subr.mxu0 %v1530_v17  ;;  %v3742_v16 = vcombine.high %v3734_v6, %v3734_v6  ;;  %v1500_v17 = vld [vmem:[%s15167_s26 + $0x2600] sm:$0xff] }
 0x2de   : > { %12651 = vmatprep.subr.mxu1 %v1562_v18  ;;  %12617 = vmatpush3.msra.mxu0 %v1514_v19  ;;  %v1532_v18 = vld [vmem:[%s15167_s26 + $0x2700] sm:$0xff]  ;;  %v3743_v19 = vcombine.high %v3741_v11, %v3741_v11 }
 0x2df   : > { %12652 = vmatpush3.msra.mxu1 %v1546_v20  ;;  %12618 = vmatprep.subr.mxu0 %v1529_v21  ;;  %v1595_v20 = vld [vmem:[%s15167_s26 + $0x28f8] sm:$0xff] }
 0x2e0   : > { %12653 = vmatprep.subr.mxu1 %v1561_v22  ;;  %12619 = vmatpush3.msra.mxu0 %v1513_v23  ;;  %v1627_v21 = vld [vmem:[%s15167_s26 + $0x29f8] sm:$0xff] }
 0x2e1   : > { %12654 = vmatpush3.msra.mxu1 %v1545_v24  ;;  %12620 = vmatprep.subr.mxu0 %v1528_v25  ;;  %v1579_v22 = vld [vmem:[%s15167_s26 + $0x2878] sm:$0xff]  ;;  %v1594_v24 = vld [vmem:[%s15167_s26 + $0x28f0] sm:$0xff] }
 0x2e2   : > { %12655 = vmatprep.subr.mxu1 %v1560_v26  ;;  %12621 = vmatpush3.msra.mxu0 %v1512_v27  ;;  %v1611_v23 = vld [vmem:[%s15167_s26 + $0x2978] sm:$0xff]  ;;  %v1626_v25 = vld [vmem:[%s15167_s26 + $0x29f0] sm:$0xff] }
 0x2e3   : > { %12656 = vmatpush3.msra.mxu1 %v1544_v28  ;;  %12622 = vmatprep.subr.mxu0 %v1527_v29  ;;  %v1578_v26 = vld [vmem:[%s15167_s26 + $0x2870] sm:$0xff]  ;;  %v1593_v28 = vld [vmem:[%s15167_s26 + $0x28e8] sm:$0xff] }
 0x2e4   : > { %12657 = vmatprep.subr.mxu1 %v1559_v30  ;;  %12623 = vmatpush3.msra.mxu0 %v1511_v31  ;;  %v1610_v27 = vld [vmem:[%s15167_s26 + $0x2970] sm:$0xff]  ;;  %v1625_v29 = vld [vmem:[%s15167_s26 + $0x29e8] sm:$0xff] }
 0x2e5   : > { %12658 = vmatpush3.msra.mxu1 %v1543_v32  ;;  %12624 = vmatprep.subr.mxu0 %v1526_v33  ;;  %v1577_v30 = vld [vmem:[%s15167_s26 + $0x2868] sm:$0xff]  ;;  %v1592_v32 = vld [vmem:[%s15167_s26 + $0x28e0] sm:$0xff] }
 0x2e6   : > { %12659 = vmatprep.subr.mxu1 %v1558_v34  ;;  %12625 = vmatpush3.msra.mxu0 %v1510_v35  ;;  %v1609_v31 = vld [vmem:[%s15167_s26 + $0x2968] sm:$0xff]  ;;  %v1624_v33 = vld [vmem:[%s15167_s26 + $0x29e0] sm:$0xff] }
 0x2e7   : > { %12660 = vmatpush3.msra.mxu1 %v1542_v36  ;;  %12626 = vmatprep.subr.mxu0 %v1525_v37  ;;  %v1576_v34 = vld [vmem:[%s15167_s26 + $0x2860] sm:$0xff]  ;;  %v1591_v36 = vld [vmem:[%s15167_s26 + $0x28d8] sm:$0xff] }
 0x2e8   : > { %12661 = vmatprep.subr.mxu1 %v1557_v38  ;;  %12627 = vmatpush3.msra.mxu0 %v1509_v39  ;;  %v1608_v35 = vld [vmem:[%s15167_s26 + $0x2960] sm:$0xff]  ;;  %v1623_v37 = vld [vmem:[%s15167_s26 + $0x29d8] sm:$0xff] }
 0x2e9   : > { %12662 = vmatpush3.msra.mxu1 %v1541_v40  ;;  %12628 = vmatprep.subr.mxu0 %v1524_v41  ;;  %v1575_v38 = vld [vmem:[%s15167_s26 + $0x2858] sm:$0xff]  ;;  %v1590_v40 = vld [vmem:[%s15167_s26 + $0x28d0] sm:$0xff] }
 0x2ea   : > { %12663 = vmatprep.subr.mxu1 %v1556_v42  ;;  %12629 = vmatpush3.msra.mxu0 %v1508_v43  ;;  %v1607_v39 = vld [vmem:[%s15167_s26 + $0x2958] sm:$0xff]  ;;  %v1622_v41 = vld [vmem:[%s15167_s26 + $0x29d0] sm:$0xff] }
 0x2eb   : > { %12664 = vmatpush3.msra.mxu1 %v1540_v44  ;;  %12630 = vmatprep.subr.mxu0 %v1523_v45  ;;  %v1574_v42 = vld [vmem:[%s15167_s26 + $0x2850] sm:$0xff]  ;;  %v1589_v44 = vld [vmem:[%s15167_s26 + $0x28c8] sm:$0xff] }
 0x2ec   : > { %12665 = vmatprep.subr.mxu1 %v1555_v46  ;;  %12631 = vmatpush3.msra.mxu0 %v1507_v47  ;;  %v1606_v43 = vld [vmem:[%s15167_s26 + $0x2950] sm:$0xff]  ;;  %v1621_v45 = vld [vmem:[%s15167_s26 + $0x29c8] sm:$0xff] }
 0x2ed   : > { %12666 = vmatpush3.msra.mxu1 %v1539_v48  ;;  %12632 = vmatprep.subr.mxu0 %v1522_v49  ;;  %v1573_v46 = vld [vmem:[%s15167_s26 + $0x2848] sm:$0xff]  ;;  %v1588_v48 = vld [vmem:[%s15167_s26 + $0x28c0] sm:$0xff] }
 0x2ee   : > { %12667 = vmatprep.subr.mxu1 %v1554_v50  ;;  %12633 = vmatpush3.msra.mxu0 %v1506_v51  ;;  %v1605_v47 = vld [vmem:[%s15167_s26 + $0x2948] sm:$0xff]  ;;  %v1620_v49 = vld [vmem:[%s15167_s26 + $0x29c0] sm:$0xff] }
 0x2ef   : > { %12668 = vmatpush3.msra.mxu1 %v1538_v53  ;;  %12634 = vmatprep.subr.mxu0 %v1521_v54  ;;  %v1572_v50 = vld [vmem:[%s15167_s26 + $0x2840] sm:$0xff]  ;;  %v1587_v53 = vld [vmem:[%s15167_s26 + $0x28b8] sm:$0xff] }
 0x2f0   : > { %12669 = vmatprep.subr.mxu1 %v1553_v55  ;;  %12635 = vmatpush3.msra.mxu0 %v1505_v56  ;;  %v1604_v51 = vld [vmem:[%s15167_s26 + $0x2940] sm:$0xff]  ;;  %v1619_v54 = vld [vmem:[%s15167_s26 + $0x29b8] sm:$0xff] }
 0x2f1   : > { %12670 = vmatpush3.msra.mxu1 %v1537_v57  ;;  %12636 = vmatprep.subr.mxu0 %v1520_v59  ;;  %v1571_v55 = vld [vmem:[%s15167_s26 + $0x2838] sm:$0xff]  ;;  %v1586_v57 = vld [vmem:[%s15167_s26 + $0x28b0] sm:$0xff] }
 0x2f2   : > { %12671 = vmatprep.subr.mxu1 %v1552_v60  ;;  %12637 = vmatpush3.msra.mxu0 %v1504_v61  ;;  %v1603_v56 = vld [vmem:[%s15167_s26 + $0x2938] sm:$0xff]  ;;  %v1570_v59 = vld [vmem:[%s15167_s26 + $0x2830] sm:$0xff]  ;;  %v1585_v61 = vld [vmem:[%s15167_s26 + $0x28a8] sm:$0xff] }
 0x2f3   : > { %12672 = vmatpush3.msra.mxu1 %v1536_v62  ;;  %12638 = vmatprep.subr.mxu0 %v1519_v63  ;;  %v1602_v60 = vld [vmem:[%s15167_s26 + $0x2930] sm:$0xff]  ;;  %v1617_v62 = vld [vmem:[%s15167_s26 + $0x29a8] sm:$0xff] }
 0x2f4   : > { %12673 = vmatprep.subr.mxu1 %v1551_v0  ;;  %12639 = vmatpush3.msra.mxu0 %v1503_v2  ;;  %v1569_v63 = vld [vmem:[%s15167_s26 + $0x2828] sm:$0xff]  ;;  %v1584_v2 = vld [vmem:[%s15167_s26 + $0x28a0] sm:$0xff] }
 0x2f5   : > { %12674 = vmatpush3.msra.mxu1 %v1535_v3  ;;  %12640 = vmatprep.subr.mxu0 %v1518_v4  ;;  %v1601_v0 = vld [vmem:[%s15167_s26 + $0x2928] sm:$0xff]  ;;  %v1616_v3 = vld [vmem:[%s15167_s26 + $0x29a0] sm:$0xff] }
 0x2f6   : > { %12675 = vmatprep.subr.mxu1 %v1550_v5  ;;  %12641 = vmatpush3.msra.mxu0 %v1502_v7  ;;  %v1568_v4 = vld [vmem:[%s15167_s26 + $0x2820] sm:$0xff]  ;;  %v1615_v7 = vld [vmem:[%s15167_s26 + $0x2998] sm:$0xff] }
 0x2f7   : > { %12676 = vmatpush3.msra.mxu1 %v1534_v8  ;;  %12642 = vmatprep.subr.mxu0 %v1517_v9  ;;  %v1600_v5 = vld [vmem:[%s15167_s26 + $0x2920] sm:$0xff]  ;;  %v3744_v8 = vcombine.high %v256_v1, %v256_v1  ;;  %v1567_v9 = vld [vmem:[%s15167_s26 + $0x2818] sm:$0xff] }
 0x2f8   : > { %12677 = vmatprep.subr.mxu1 %v1549_v10  ;;  %12643 = vmatpush3.msra.mxu0 %v1501_v12  ;;  %v1599_v10 = vld [vmem:[%s15167_s26 + $0x2918] sm:$0xff]  ;;  %v1614_v12 = vld [vmem:[%s15167_s26 + $0x2990] sm:$0xff] }
 0x2f9   : > { %12678 = vmatpush3.msra.mxu1 %v1533_v13  ;;  %12644 = vmatprep.subr.mxu0 %v1516_v14  ;;  %v3751_v13 = vrot.slane %v256_v1, %v15226_v52  ;;  %v1566_v14 = vld [vmem:[%s15167_s26 + $0x2810] sm:$0xff] }
 0x2fa   : > { %12679 = vmatprep.subr.mxu1 %v1548_v15  ;;  %12645 = vmatpush3.msra.mxu0 %v1500_v17  ;;  %v1598_v15 = vld [vmem:[%s15167_s26 + $0x2910] sm:$0xff]  ;;  %v1613_v17 = vld [vmem:[%s15167_s26 + $0x2988] sm:$0xff] }
 0x2fb   : > { %7136 = vmatprep.mubr.f32.mxu0 %v3742_v16  ;;  %12680 = vmatpush3.msra.mxu1 %v1532_v18  ;;  %v1581_v16 = vld [vmem:[%s15167_s26 + $0x2888] sm:$0xff]  ;;  %v3758_v18 = vrot.slane %v3744_v8, %v15226_v52  ;;  %v1682_v1 = vld [vmem:[%s15167_s26 + $0x2bb0] sm:$0xff] }
 0x2fc   : > { %7137 = vmatmul.mubr.f32.vlgmr.msra.gmra.mxu0 %v3734_v6  ;;  %7206 = vmatprep.mubr.f32.mxu1 %v3743_v19  ;;  %v1583_v6 = vld [vmem:[%s15167_s26 + $0x2898] sm:$0xff]  ;;  %v1565_v19 = vld [vmem:[%s15167_s26 + $0x2808] sm:$0xff] }
 0x2fd   : > { %12684 = vmatprep.subr.mxu0 %v1595_v20  ;;  %12719 = vmatprep.subr.mxu1 %v1627_v21  ;;  %v1597_v20 = vld [vmem:[%s15167_s26 + $0x2908] sm:$0xff]  ;;  %v1580_v21 = vld [vmem:[%s15167_s26 + $0x2880] sm:$0xff] }
 0x2fe   : > { %7207 = vmatmul.mubr.f32.vlgmr.msra.gmra.mxu1 %v3741_v11  ;;  %12685 = vmatpush3.msra.mxu0 %v1579_v22  ;;  %v1582_v11 = vld [vmem:[%s15167_s26 + $0x2890] sm:$0xff]  ;;  %v1612_v22 = vld [vmem:[%s15167_s26 + $0x2980] sm:$0xff]  ;;  %v257_v8 = vld [vmem:[%s15161_s29 + $0xa8] sm:$0xff] }
 0x2ff   : > { %12720 = vmatpush3.msra.mxu1 %v1611_v23  ;;  %12686 = vmatprep.subr.mxu0 %v1594_v24  ;;  %v3759_v23 = vcombine.high %v3751_v13, %v3751_v13  ;;  %v1564_v24 = vld [vmem:[%s15167_s26 + $0x2800] sm:$0xff] }
 0x300   : > { %12721 = vmatprep.subr.mxu1 %v1626_v25  ;;  %12687 = vmatpush3.msra.mxu0 %v1578_v26  ;;  %v1596_v25 = vld [vmem:[%s15167_s26 + $0x2900] sm:$0xff]  ;;  %v3760_v26 = vcombine.high %v3758_v18, %v3758_v18 }
 0x301   : > { %12722 = vmatpush3.msra.mxu1 %v1610_v27  ;;  %12688 = vmatprep.subr.mxu0 %v1593_v28  ;;  %v1659_v27 = vld [vmem:[%s15167_s26 + $0x2af8] sm:$0xff] }
 0x302   : > { %12723 = vmatprep.subr.mxu1 %v1625_v29  ;;  %12689 = vmatpush3.msra.mxu0 %v1577_v30  ;;  %v1691_v28 = vld [vmem:[%s15167_s26 + $0x2bf8] sm:$0xff] }
 0x303   : > { %12724 = vmatpush3.msra.mxu1 %v1609_v31  ;;  %12690 = vmatprep.subr.mxu0 %v1592_v32  ;;  %v1643_v29 = vld [vmem:[%s15167_s26 + $0x2a78] sm:$0xff]  ;;  %v1658_v31 = vld [vmem:[%s15167_s26 + $0x2af0] sm:$0xff] }
 0x304   : > { %12725 = vmatprep.subr.mxu1 %v1624_v33  ;;  %12691 = vmatpush3.msra.mxu0 %v1576_v34  ;;  %v1675_v30 = vld [vmem:[%s15167_s26 + $0x2b78] sm:$0xff]  ;;  %v1690_v32 = vld [vmem:[%s15167_s26 + $0x2bf0] sm:$0xff] }
 0x305   : > { %12726 = vmatpush3.msra.mxu1 %v1608_v35  ;;  %12692 = vmatprep.subr.mxu0 %v1591_v36  ;;  %v1642_v33 = vld [vmem:[%s15167_s26 + $0x2a70] sm:$0xff]  ;;  %v1657_v35 = vld [vmem:[%s15167_s26 + $0x2ae8] sm:$0xff] }
 0x306   : > { %12727 = vmatprep.subr.mxu1 %v1623_v37  ;;  %12693 = vmatpush3.msra.mxu0 %v1575_v38  ;;  %v1674_v34 = vld [vmem:[%s15167_s26 + $0x2b70] sm:$0xff]  ;;  %v1689_v36 = vld [vmem:[%s15167_s26 + $0x2be8] sm:$0xff] }
 0x307   : > { %12728 = vmatpush3.msra.mxu1 %v1607_v39  ;;  %12694 = vmatprep.subr.mxu0 %v1590_v40  ;;  %v1641_v37 = vld [vmem:[%s15167_s26 + $0x2a68] sm:$0xff]  ;;  %v1656_v39 = vld [vmem:[%s15167_s26 + $0x2ae0] sm:$0xff] }
 0x308   : > { %12729 = vmatprep.subr.mxu1 %v1622_v41  ;;  %12695 = vmatpush3.msra.mxu0 %v1574_v42  ;;  %v1673_v38 = vld [vmem:[%s15167_s26 + $0x2b68] sm:$0xff]  ;;  %v1688_v40 = vld [vmem:[%s15167_s26 + $0x2be0] sm:$0xff] }
 0x309   : > { %12730 = vmatpush3.msra.mxu1 %v1606_v43  ;;  %12696 = vmatprep.subr.mxu0 %v1589_v44  ;;  %v1640_v41 = vld [vmem:[%s15167_s26 + $0x2a60] sm:$0xff]  ;;  %v1655_v43 = vld [vmem:[%s15167_s26 + $0x2ad8] sm:$0xff] }
 0x30a   : > { %12731 = vmatprep.subr.mxu1 %v1621_v45  ;;  %12697 = vmatpush3.msra.mxu0 %v1573_v46  ;;  %v1672_v42 = vld [vmem:[%s15167_s26 + $0x2b60] sm:$0xff]  ;;  %v1687_v44 = vld [vmem:[%s15167_s26 + $0x2bd8] sm:$0xff] }
 0x30b   : > { %12732 = vmatpush3.msra.mxu1 %v1605_v47  ;;  %12698 = vmatprep.subr.mxu0 %v1588_v48  ;;  %v1639_v45 = vld [vmem:[%s15167_s26 + $0x2a58] sm:$0xff]  ;;  %v1654_v47 = vld [vmem:[%s15167_s26 + $0x2ad0] sm:$0xff] }
 0x30c   : > { %12733 = vmatprep.subr.mxu1 %v1620_v49  ;;  %12699 = vmatpush3.msra.mxu0 %v1572_v50  ;;  %v1671_v46 = vld [vmem:[%s15167_s26 + $0x2b58] sm:$0xff]  ;;  %v1686_v48 = vld [vmem:[%s15167_s26 + $0x2bd0] sm:$0xff] }
 0x30d   : > { %12734 = vmatpush3.msra.mxu1 %v1604_v51  ;;  %12700 = vmatprep.subr.mxu0 %v1587_v53  ;;  %v1638_v49 = vld [vmem:[%s15167_s26 + $0x2a50] sm:$0xff]  ;;  %v1653_v51 = vld [vmem:[%s15167_s26 + $0x2ac8] sm:$0xff] }
 0x30e   : > { %12735 = vmatprep.subr.mxu1 %v1619_v54  ;;  %12701 = vmatpush3.msra.mxu0 %v1571_v55  ;;  %v1670_v50 = vld [vmem:[%s15167_s26 + $0x2b50] sm:$0xff]  ;;  %v1685_v53 = vld [vmem:[%s15167_s26 + $0x2bc8] sm:$0xff] }
 0x30f   : > { %12736 = vmatpush3.msra.mxu1 %v1603_v56  ;;  %12702 = vmatprep.subr.mxu0 %v1586_v57  ;;  %v1637_v54 = vld [vmem:[%s15167_s26 + $0x2a48] sm:$0xff]  ;;  %v1652_v56 = vld [vmem:[%s15167_s26 + $0x2ac0] sm:$0xff] }
 0x310   : > { %12737 = vmatprep.subr.mxu1 %v1618_v58  ;;  %12703 = vmatpush3.msra.mxu0 %v1570_v59  ;;  %v1669_v55 = vld [vmem:[%s15167_s26 + $0x2b48] sm:$0xff]  ;;  %v1684_v57 = vld [vmem:[%s15167_s26 + $0x2bc0] sm:$0xff] }
 0x311   : > { %12738 = vmatpush3.msra.mxu1 %v1602_v60  ;;  %12704 = vmatprep.subr.mxu0 %v1585_v61  ;;  %v1636_v58 = vld [vmem:[%s15167_s26 + $0x2a40] sm:$0xff]  ;;  %v1651_v60 = vld [vmem:[%s15167_s26 + $0x2ab8] sm:$0xff] }
 0x312   : > { %12739 = vmatprep.subr.mxu1 %v1617_v62  ;;  %12705 = vmatpush3.msra.mxu0 %v1569_v63  ;;  %v1668_v59 = vld [vmem:[%s15167_s26 + $0x2b40] sm:$0xff]  ;;  %v1683_v61 = vld [vmem:[%s15167_s26 + $0x2bb8] sm:$0xff] }
 0x313   : > { %12740 = vmatpush3.msra.mxu1 %v1601_v0  ;;  %12706 = vmatprep.subr.mxu0 %v1584_v2  ;;  %v1635_v62 = vld [vmem:[%s15167_s26 + $0x2a38] sm:$0xff]  ;;  %v1650_v0 = vld [vmem:[%s15167_s26 + $0x2ab0] sm:$0xff] }
 0x314   : > { %12741 = vmatprep.subr.mxu1 %v1616_v3  ;;  %12707 = vmatpush3.msra.mxu0 %v1568_v4  ;;  %v1667_v63 = vld [vmem:[%s15167_s26 + $0x2b38] sm:$0xff]  ;;  %v1634_v2 = vld [vmem:[%s15167_s26 + $0x2a30] sm:$0xff]  ;;  %v1649_v4 = vld [vmem:[%s15167_s26 + $0x2aa8] sm:$0xff] }
 0x315   : > { %12742 = vmatpush3.msra.mxu1 %v1600_v5  ;;  %12708 = vmatprep.subr.mxu0 %v1583_v6  ;;  %v1666_v3 = vld [vmem:[%s15167_s26 + $0x2b30] sm:$0xff]  ;;  %v1681_v5 = vld [vmem:[%s15167_s26 + $0x2ba8] sm:$0xff] }
 0x316   : > { %12743 = vmatprep.subr.mxu1 %v1615_v7  ;;  %12709 = vmatpush3.msra.mxu0 %v1567_v9  ;;  %v1633_v6 = vld [vmem:[%s15167_s26 + $0x2a28] sm:$0xff]  ;;  %v1648_v9 = vld [vmem:[%s15167_s26 + $0x2aa0] sm:$0xff] }
 0x317   : > { %12744 = vmatpush3.msra.mxu1 %v1599_v10  ;;  %12710 = vmatprep.subr.mxu0 %v1582_v11  ;;  %v1665_v7 = vld [vmem:[%s15167_s26 + $0x2b28] sm:$0xff]  ;;  %v1680_v10 = vld [vmem:[%s15167_s26 + $0x2ba0] sm:$0xff] }
 0x318   : > { %12745 = vmatprep.subr.mxu1 %v1614_v12  ;;  %12711 = vmatpush3.msra.mxu0 %v1566_v14  ;;  %v1632_v11 = vld [vmem:[%s15167_s26 + $0x2a20] sm:$0xff]  ;;  %v1679_v14 = vld [vmem:[%s15167_s26 + $0x2b98] sm:$0xff] }
 0x319   : > { %12746 = vmatpush3.msra.mxu1 %v1598_v15  ;;  %12712 = vmatprep.subr.mxu0 %v1581_v16  ;;  %v1664_v12 = vld [vmem:[%s15167_s26 + $0x2b20] sm:$0xff]  ;;  %v3761_v15 = vcombine.high %v257_v8, %v257_v8  ;;  %v1631_v16 = vld [vmem:[%s15167_s26 + $0x2a18] sm:$0xff] }
 0x31a   : > { %12747 = vmatprep.subr.mxu1 %v1613_v17  ;;  %12713 = vmatpush3.msra.mxu0 %v1565_v19  ;;  %v1663_v17 = vld [vmem:[%s15167_s26 + $0x2b18] sm:$0xff]  ;;  %v1678_v19 = vld [vmem:[%s15167_s26 + $0x2b90] sm:$0xff] }
 0x31b   : > { %12748 = vmatpush3.msra.mxu1 %v1597_v20  ;;  %12714 = vmatprep.subr.mxu0 %v1580_v21  ;;  %v3768_v20 = vrot.slane %v257_v8, %v15226_v52  ;;  %v1630_v21 = vld [vmem:[%s15167_s26 + $0x2a10] sm:$0xff] }
 0x31c   : > { %12749 = vmatprep.subr.mxu1 %v1612_v22  ;;  %12715 = vmatpush3.msra.mxu0 %v1564_v24  ;;  %v1662_v22 = vld [vmem:[%s15167_s26 + $0x2b10] sm:$0xff]  ;;  %v1677_v24 = vld [vmem:[%s15167_s26 + $0x2b88] sm:$0xff] }
 0x31d   : > { %7276 = vmatprep.mubr.f32.mxu0 %v3759_v23  ;;  %12750 = vmatpush3.msra.mxu1 %v1596_v25  ;;  %v1645_v23 = vld [vmem:[%s15167_s26 + $0x2a88] sm:$0xff]  ;;  %v3775_v25 = vrot.slane %v3761_v15, %v15226_v52  ;;  %v1746_v8 = vld [vmem:[%s15167_s26 + $0x2db0] sm:$0xff] }
 0x31e   : > { %7277 = vmatmul.mubr.f32.vlgmr.msra.gmra.mxu0 %v3751_v13  ;;  %7346 = vmatprep.mubr.f32.mxu1 %v3760_v26  ;;  %v1647_v13 = vld [vmem:[%s15167_s26 + $0x2a98] sm:$0xff]  ;;  %v1629_v26 = vld [vmem:[%s15167_s26 + $0x2a08] sm:$0xff]  ;;  %v258_v15 = vld [vmem:[%s15161_s29 + $0xb0] sm:$0xff] }
 0x31f   : > { %12754 = vmatprep.subr.mxu0 %v1659_v27  ;;  %12789 = vmatprep.subr.mxu1 %v1691_v28  ;;  %v1661_v27 = vld [vmem:[%s15167_s26 + $0x2b08] sm:$0xff]  ;;  %v1644_v28 = vld [vmem:[%s15167_s26 + $0x2a80] sm:$0xff] }
 0x320   : > { %7347 = vmatmul.mubr.f32.vlgmr.msra.gmra.mxu1 %v3758_v18  ;;  %12755 = vmatpush3.msra.mxu0 %v1643_v29  ;;  %v1646_v18 = vld [vmem:[%s15167_s26 + $0x2a90] sm:$0xff]  ;;  %v1676_v29 = vld [vmem:[%s15167_s26 + $0x2b80] sm:$0xff] }
 0x321   : > { %12790 = vmatpush3.msra.mxu1 %v1675_v30  ;;  %12756 = vmatprep.subr.mxu0 %v1658_v31  ;;  %v3776_v30 = vcombine.high %v3768_v20, %v3768_v20  ;;  %v1628_v31 = vld [vmem:[%s15167_s26 + $0x2a00] sm:$0xff] }
 0x322   : > { %12791 = vmatprep.subr.mxu1 %v1690_v32  ;;  %12757 = vmatpush3.msra.mxu0 %v1642_v33  ;;  %v1660_v32 = vld [vmem:[%s15167_s26 + $0x2b00] sm:$0xff]  ;;  %v3777_v33 = vcombine.high %v3775_v25, %v3775_v25 }
 0x323   : > { %12792 = vmatpush3.msra.mxu1 %v1674_v34  ;;  %12758 = vmatprep.subr.mxu0 %v1657_v35  ;;  %v1723_v34 = vld [vmem:[%s15167_s26 + $0x2cf8] sm:$0xff] }
 0x324   : > { %12793 = vmatprep.subr.mxu1 %v1689_v36  ;;  %12759 = vmatpush3.msra.mxu0 %v1641_v37  ;;  %v1755_v35 = vld [vmem:[%s15167_s26 + $0x2df8] sm:$0xff] }
 0x325   : > { %12794 = vmatpush3.msra.mxu1 %v1673_v38  ;;  %12760 = vmatprep.subr.mxu0 %v1656_v39  ;;  %v1707_v36 = vld [vmem:[%s15167_s26 + $0x2c78] sm:$0xff]  ;;  %v1722_v38 = vld [vmem:[%s15167_s26 + $0x2cf0] sm:$0xff] }
 0x326   : > { %12795 = vmatprep.subr.mxu1 %v1688_v40  ;;  %12761 = vmatpush3.msra.mxu0 %v1640_v41  ;;  %v1739_v37 = vld [vmem:[%s15167_s26 + $0x2d78] sm:$0xff]  ;;  %v1754_v39 = vld [vmem:[%s15167_s26 + $0x2df0] sm:$0xff] }
 0x327   : > { %12796 = vmatpush3.msra.mxu1 %v1672_v42  ;;  %12762 = vmatprep.subr.mxu0 %v1655_v43  ;;  %v1706_v40 = vld [vmem:[%s15167_s26 + $0x2c70] sm:$0xff]  ;;  %v1721_v42 = vld [vmem:[%s15167_s26 + $0x2ce8] sm:$0xff] }
 0x328   : > { %12797 = vmatprep.subr.mxu1 %v1687_v44  ;;  %12763 = vmatpush3.msra.mxu0 %v1639_v45  ;;  %v1738_v41 = vld [vmem:[%s15167_s26 + $0x2d70] sm:$0xff]  ;;  %v1753_v43 = vld [vmem:[%s15167_s26 + $0x2de8] sm:$0xff] }
 0x329   : > { %12798 = vmatpush3.msra.mxu1 %v1671_v46  ;;  %12764 = vmatprep.subr.mxu0 %v1654_v47  ;;  %v1705_v44 = vld [vmem:[%s15167_s26 + $0x2c68] sm:$0xff]  ;;  %v1720_v46 = vld [vmem:[%s15167_s26 + $0x2ce0] sm:$0xff] }
 0x32a   : > { %12799 = vmatprep.subr.mxu1 %v1686_v48  ;;  %12765 = vmatpush3.msra.mxu0 %v1638_v49  ;;  %v1737_v45 = vld [vmem:[%s15167_s26 + $0x2d68] sm:$0xff]  ;;  %v1752_v47 = vld [vmem:[%s15167_s26 + $0x2de0] sm:$0xff] }
 0x32b   : > { %12800 = vmatpush3.msra.mxu1 %v1670_v50  ;;  %12766 = vmatprep.subr.mxu0 %v1653_v51  ;;  %v1704_v48 = vld [vmem:[%s15167_s26 + $0x2c60] sm:$0xff]  ;;  %v1719_v50 = vld [vmem:[%s15167_s26 + $0x2cd8] sm:$0xff] }
 0x32c   : > { %12801 = vmatprep.subr.mxu1 %v1685_v53  ;;  %12767 = vmatpush3.msra.mxu0 %v1637_v54  ;;  %v1736_v49 = vld [vmem:[%s15167_s26 + $0x2d60] sm:$0xff]  ;;  %v1751_v51 = vld [vmem:[%s15167_s26 + $0x2dd8] sm:$0xff] }
 0x32d   : > { %12802 = vmatpush3.msra.mxu1 %v1669_v55  ;;  %12768 = vmatprep.subr.mxu0 %v1652_v56  ;;  %v1703_v53 = vld [vmem:[%s15167_s26 + $0x2c58] sm:$0xff]  ;;  %v1718_v55 = vld [vmem:[%s15167_s26 + $0x2cd0] sm:$0xff] }
 0x32e   : > { %12803 = vmatprep.subr.mxu1 %v1684_v57  ;;  %12769 = vmatpush3.msra.mxu0 %v1636_v58  ;;  %v1735_v54 = vld [vmem:[%s15167_s26 + $0x2d58] sm:$0xff]  ;;  %v1750_v56 = vld [vmem:[%s15167_s26 + $0x2dd0] sm:$0xff] }
 0x32f   : > { %12804 = vmatpush3.msra.mxu1 %v1668_v59  ;;  %12770 = vmatprep.subr.mxu0 %v1651_v60  ;;  %v1702_v57 = vld [vmem:[%s15167_s26 + $0x2c50] sm:$0xff]  ;;  %v1717_v59 = vld [vmem:[%s15167_s26 + $0x2cc8] sm:$0xff] }
 0x330   : > { %12805 = vmatprep.subr.mxu1 %v1683_v61  ;;  %12771 = vmatpush3.msra.mxu0 %v1635_v62  ;;  %v1734_v58 = vld [vmem:[%s15167_s26 + $0x2d50] sm:$0xff]  ;;  %v1749_v60 = vld [vmem:[%s15167_s26 + $0x2dc8] sm:$0xff] }
 0x331   : > { %12806 = vmatpush3.msra.mxu1 %v1667_v63  ;;  %12772 = vmatprep.subr.mxu0 %v1650_v0  ;;  %v1701_v61 = vld [vmem:[%s15167_s26 + $0x2c48] sm:$0xff]  ;;  %v1716_v63 = vld [vmem:[%s15167_s26 + $0x2cc0] sm:$0xff] }
 0x332   : > { %12807 = vmatprep.subr.mxu1 %v1682_v1  ;;  %12773 = vmatpush3.msra.mxu0 %v1634_v2  ;;  %v1733_v62 = vld [vmem:[%s15167_s26 + $0x2d48] sm:$0xff]  ;;  %v1748_v0 = vld [vmem:[%s15167_s26 + $0x2dc0] sm:$0xff] }
 0x333   : > { %12808 = vmatpush3.msra.mxu1 %v1666_v3  ;;  %12774 = vmatprep.subr.mxu0 %v1649_v4  ;;  %v1700_v1 = vld [vmem:[%s15167_s26 + $0x2c40] sm:$0xff]  ;;  %v1715_v3 = vld [vmem:[%s15167_s26 + $0x2cb8] sm:$0xff] }
 0x334   : > { %12809 = vmatprep.subr.mxu1 %v1681_v5  ;;  %12775 = vmatpush3.msra.mxu0 %v1633_v6  ;;  %v1732_v2 = vld [vmem:[%s15167_s26 + $0x2d40] sm:$0xff]  ;;  %v1747_v4 = vld [vmem:[%s15167_s26 + $0x2db8] sm:$0xff] }
 0x335   : > { %12810 = vmatpush3.msra.mxu1 %v1665_v7  ;;  %12776 = vmatprep.subr.mxu0 %v1648_v9  ;;  %v1699_v5 = vld [vmem:[%s15167_s26 + $0x2c38] sm:$0xff]  ;;  %v1714_v7 = vld [vmem:[%s15167_s26 + $0x2cb0] sm:$0xff] }
 0x336   : > { %12811 = vmatprep.subr.mxu1 %v1680_v10  ;;  %12777 = vmatpush3.msra.mxu0 %v1632_v11  ;;  %v1731_v6 = vld [vmem:[%s15167_s26 + $0x2d38] sm:$0xff]  ;;  %v1698_v9 = vld [vmem:[%s15167_s26 + $0x2c30] sm:$0xff]  ;;  %v1713_v11 = vld [vmem:[%s15167_s26 + $0x2ca8] sm:$0xff] }
 0x337   : > { %12812 = vmatpush3.msra.mxu1 %v1664_v12  ;;  %12778 = vmatprep.subr.mxu0 %v1647_v13  ;;  %v1730_v10 = vld [vmem:[%s15167_s26 + $0x2d30] sm:$0xff]  ;;  %v1745_v12 = vld [vmem:[%s15167_s26 + $0x2da8] sm:$0xff] }
 0x338   : > { %12813 = vmatprep.subr.mxu1 %v1679_v14  ;;  %12779 = vmatpush3.msra.mxu0 %v1631_v16  ;;  %v1697_v13 = vld [vmem:[%s15167_s26 + $0x2c28] sm:$0xff]  ;;  %v1712_v16 = vld [vmem:[%s15167_s26 + $0x2ca0] sm:$0xff] }
 0x339   : > { %12814 = vmatpush3.msra.mxu1 %v1663_v17  ;;  %12780 = vmatprep.subr.mxu0 %v1646_v18  ;;  %v1729_v14 = vld [vmem:[%s15167_s26 + $0x2d28] sm:$0xff]  ;;  %v1744_v17 = vld [vmem:[%s15167_s26 + $0x2da0] sm:$0xff] }
 0x33a   : > { %12815 = vmatprep.subr.mxu1 %v1678_v19  ;;  %12781 = vmatpush3.msra.mxu0 %v1630_v21  ;;  %v1696_v18 = vld [vmem:[%s15167_s26 + $0x2c20] sm:$0xff]  ;;  %v1743_v21 = vld [vmem:[%s15167_s26 + $0x2d98] sm:$0xff] }
 0x33b   : > { %12816 = vmatpush3.msra.mxu1 %v1662_v22  ;;  %12782 = vmatprep.subr.mxu0 %v1645_v23  ;;  %v1728_v19 = vld [vmem:[%s15167_s26 + $0x2d20] sm:$0xff]  ;;  %v3778_v22 = vcombine.high %v258_v15, %v258_v15  ;;  %v1695_v23 = vld [vmem:[%s15167_s26 + $0x2c18] sm:$0xff] }
 0x33c   : > { %12817 = vmatprep.subr.mxu1 %v1677_v24  ;;  %12783 = vmatpush3.msra.mxu0 %v1629_v26  ;;  %v1727_v24 = vld [vmem:[%s15167_s26 + $0x2d18] sm:$0xff]  ;;  %v1742_v26 = vld [vmem:[%s15167_s26 + $0x2d90] sm:$0xff] }
 0x33d   : > { %12818 = vmatpush3.msra.mxu1 %v1661_v27  ;;  %12784 = vmatprep.subr.mxu0 %v1644_v28  ;;  %v3785_v27 = vrot.slane %v258_v15, %v15226_v52  ;;  %v1694_v28 = vld [vmem:[%s15167_s26 + $0x2c10] sm:$0xff] }
 0x33e   : > { %12819 = vmatprep.subr.mxu1 %v1676_v29  ;;  %12785 = vmatpush3.msra.mxu0 %v1628_v31  ;;  %v1726_v29 = vld [vmem:[%s15167_s26 + $0x2d10] sm:$0xff]  ;;  %v1741_v31 = vld [vmem:[%s15167_s26 + $0x2d88] sm:$0xff] }
 0x33f   : > { %7416 = vmatprep.mubr.f32.mxu0 %v3776_v30  ;;  %12820 = vmatpush3.msra.mxu1 %v1660_v32  ;;  %v1709_v30 = vld [vmem:[%s15167_s26 + $0x2c88] sm:$0xff]  ;;  %v3792_v32 = vrot.slane %v3778_v22, %v15226_v52  ;;  %v1810_v15 = vld [vmem:[%s15167_s26 + $0x2fb0] sm:$0xff]  ;;  %v259_v22 = vld [vmem:[%s15161_s29 + $0xb8] sm:$0xff] }
 0x340   : > { %7417 = vmatmul.mubr.f32.vlgmr.msra.gmra.mxu0 %v3768_v20  ;;  %7486 = vmatprep.mubr.f32.mxu1 %v3777_v33  ;;  %v1711_v20 = vld [vmem:[%s15167_s26 + $0x2c98] sm:$0xff]  ;;  %v1693_v33 = vld [vmem:[%s15167_s26 + $0x2c08] sm:$0xff] }
 0x341   : > { %12824 = vmatprep.subr.mxu0 %v1723_v34  ;;  %12859 = vmatprep.subr.mxu1 %v1755_v35  ;;  %v1725_v34 = vld [vmem:[%s15167_s26 + $0x2d08] sm:$0xff]  ;;  %v1708_v35 = vld [vmem:[%s15167_s26 + $0x2c80] sm:$0xff] }
 0x342   : > { %7487 = vmatmul.mubr.f32.vlgmr.msra.gmra.mxu1 %v3775_v25  ;;  %12825 = vmatpush3.msra.mxu0 %v1707_v36  ;;  %v1710_v25 = vld [vmem:[%s15167_s26 + $0x2c90] sm:$0xff]  ;;  %v1740_v36 = vld [vmem:[%s15167_s26 + $0x2d80] sm:$0xff] }
 0x343   : > { %12860 = vmatpush3.msra.mxu1 %v1739_v37  ;;  %12826 = vmatprep.subr.mxu0 %v1722_v38  ;;  %v3793_v37 = vcombine.high %v3785_v27, %v3785_v27  ;;  %v1692_v38 = vld [vmem:[%s15167_s26 + $0x2c00] sm:$0xff] }
 0x344   : > { %12861 = vmatprep.subr.mxu1 %v1754_v39  ;;  %12827 = vmatpush3.msra.mxu0 %v1706_v40  ;;  %v1724_v39 = vld [vmem:[%s15167_s26 + $0x2d00] sm:$0xff]  ;;  %v3794_v40 = vcombine.high %v3792_v32, %v3792_v32 }
 0x345   : > { %12862 = vmatpush3.msra.mxu1 %v1738_v41  ;;  %12828 = vmatprep.subr.mxu0 %v1721_v42  ;;  %v1787_v41 = vld [vmem:[%s15167_s26 + $0x2ef8] sm:$0xff] }
 0x346   : > { %12863 = vmatprep.subr.mxu1 %v1753_v43  ;;  %12829 = vmatpush3.msra.mxu0 %v1705_v44  ;;  %v1819_v42 = vld [vmem:[%s15167_s26 + $0x2ff8] sm:$0xff] }
 0x347   : > { %12864 = vmatpush3.msra.mxu1 %v1737_v45  ;;  %12830 = vmatprep.subr.mxu0 %v1720_v46  ;;  %v1771_v43 = vld [vmem:[%s15167_s26 + $0x2e78] sm:$0xff]  ;;  %v1786_v45 = vld [vmem:[%s15167_s26 + $0x2ef0] sm:$0xff] }
 0x348   : > { %12865 = vmatprep.subr.mxu1 %v1752_v47  ;;  %12831 = vmatpush3.msra.mxu0 %v1704_v48  ;;  %v1803_v44 = vld [vmem:[%s15167_s26 + $0x2f78] sm:$0xff]  ;;  %v1818_v46 = vld [vmem:[%s15167_s26 + $0x2ff0] sm:$0xff] }
 0x349   : > { %12866 = vmatpush3.msra.mxu1 %v1736_v49  ;;  %12832 = vmatprep.subr.mxu0 %v1719_v50  ;;  %v1770_v47 = vld [vmem:[%s15167_s26 + $0x2e70] sm:$0xff]  ;;  %v1785_v49 = vld [vmem:[%s15167_s26 + $0x2ee8] sm:$0xff] }
 0x34a   : > { %12867 = vmatprep.subr.mxu1 %v1751_v51  ;;  %12833 = vmatpush3.msra.mxu0 %v1703_v53  ;;  %v1802_v48 = vld [vmem:[%s15167_s26 + $0x2f70] sm:$0xff]  ;;  %v1817_v50 = vld [vmem:[%s15167_s26 + $0x2fe8] sm:$0xff] }
 0x34b   : > { %12868 = vmatpush3.msra.mxu1 %v1735_v54  ;;  %12834 = vmatprep.subr.mxu0 %v1718_v55  ;;  %v1769_v51 = vld [vmem:[%s15167_s26 + $0x2e68] sm:$0xff]  ;;  %v1784_v54 = vld [vmem:[%s15167_s26 + $0x2ee0] sm:$0xff] }
 0x34c   : > { %12869 = vmatprep.subr.mxu1 %v1750_v56  ;;  %12835 = vmatpush3.msra.mxu0 %v1702_v57  ;;  %v1801_v53 = vld [vmem:[%s15167_s26 + $0x2f68] sm:$0xff]  ;;  %v1816_v55 = vld [vmem:[%s15167_s26 + $0x2fe0] sm:$0xff] }
 0x34d   : > { %12870 = vmatpush3.msra.mxu1 %v1734_v58  ;;  %12836 = vmatprep.subr.mxu0 %v1717_v59  ;;  %v1768_v56 = vld [vmem:[%s15167_s26 + $0x2e60] sm:$0xff]  ;;  %v1783_v58 = vld [vmem:[%s15167_s26 + $0x2ed8] sm:$0xff] }
 0x34e   : > { %12871 = vmatprep.subr.mxu1 %v1749_v60  ;;  %12837 = vmatpush3.msra.mxu0 %v1701_v61  ;;  %v1800_v57 = vld [vmem:[%s15167_s26 + $0x2f60] sm:$0xff]  ;;  %v1815_v59 = vld [vmem:[%s15167_s26 + $0x2fd8] sm:$0xff] }
 0x34f   : > { %12872 = vmatpush3.msra.mxu1 %v1733_v62  ;;  %12838 = vmatprep.subr.mxu0 %v1716_v63  ;;  %v1767_v60 = vld [vmem:[%s15167_s26 + $0x2e58] sm:$0xff]  ;;  %v1782_v62 = vld [vmem:[%s15167_s26 + $0x2ed0] sm:$0xff] }
 0x350   : > { %12873 = vmatprep.subr.mxu1 %v1748_v0  ;;  %12839 = vmatpush3.msra.mxu0 %v1700_v1  ;;  %v1799_v61 = vld [vmem:[%s15167_s26 + $0x2f58] sm:$0xff]  ;;  %v1814_v63 = vld [vmem:[%s15167_s26 + $0x2fd0] sm:$0xff] }
 0x351   : > { %12874 = vmatpush3.msra.mxu1 %v1732_v2  ;;  %12840 = vmatprep.subr.mxu0 %v1715_v3  ;;  %v1766_v0 = vld [vmem:[%s15167_s26 + $0x2e50] sm:$0xff]  ;;  %v1781_v2 = vld [vmem:[%s15167_s26 + $0x2ec8] sm:$0xff] }
 0x352   : > { %12875 = vmatprep.subr.mxu1 %v1747_v4  ;;  %12841 = vmatpush3.msra.mxu0 %v1699_v5  ;;  %v1798_v1 = vld [vmem:[%s15167_s26 + $0x2f50] sm:$0xff]  ;;  %v1813_v3 = vld [vmem:[%s15167_s26 + $0x2fc8] sm:$0xff] }
 0x353   : > { %12876 = vmatpush3.msra.mxu1 %v1731_v6  ;;  %12842 = vmatprep.subr.mxu0 %v1714_v7  ;;  %v1765_v4 = vld [vmem:[%s15167_s26 + $0x2e48] sm:$0xff]  ;;  %v1780_v6 = vld [vmem:[%s15167_s26 + $0x2ec0] sm:$0xff] }
 0x354   : > { %12877 = vmatprep.subr.mxu1 %v1746_v8  ;;  %12843 = vmatpush3.msra.mxu0 %v1698_v9  ;;  %v1797_v5 = vld [vmem:[%s15167_s26 + $0x2f48] sm:$0xff]  ;;  %v1812_v7 = vld [vmem:[%s15167_s26 + $0x2fc0] sm:$0xff] }
 0x355   : > { %12878 = vmatpush3.msra.mxu1 %v1730_v10  ;;  %12844 = vmatprep.subr.mxu0 %v1713_v11  ;;  %v1764_v8 = vld [vmem:[%s15167_s26 + $0x2e40] sm:$0xff]  ;;  %v1779_v10 = vld [vmem:[%s15167_s26 + $0x2eb8] sm:$0xff] }
 0x356   : > { %12879 = vmatprep.subr.mxu1 %v1745_v12  ;;  %12845 = vmatpush3.msra.mxu0 %v1697_v13  ;;  %v1796_v9 = vld [vmem:[%s15167_s26 + $0x2f40] sm:$0xff]  ;;  %v1811_v11 = vld [vmem:[%s15167_s26 + $0x2fb8] sm:$0xff] }
 0x357   : > { %12880 = vmatpush3.msra.mxu1 %v1729_v14  ;;  %12846 = vmatprep.subr.mxu0 %v1712_v16  ;;  %v1763_v12 = vld [vmem:[%s15167_s26 + $0x2e38] sm:$0xff]  ;;  %v1778_v14 = vld [vmem:[%s15167_s26 + $0x2eb0] sm:$0xff] }
 0x358   : > { %12881 = vmatprep.subr.mxu1 %v1744_v17  ;;  %12847 = vmatpush3.msra.mxu0 %v1696_v18  ;;  %v1795_v13 = vld [vmem:[%s15167_s26 + $0x2f38] sm:$0xff]  ;;  %v1762_v16 = vld [vmem:[%s15167_s26 + $0x2e30] sm:$0xff]  ;;  %v1777_v18 = vld [vmem:[%s15167_s26 + $0x2ea8] sm:$0xff] }
 0x359   : > { %12882 = vmatpush3.msra.mxu1 %v1728_v19  ;;  %12848 = vmatprep.subr.mxu0 %v1711_v20  ;;  %v1794_v17 = vld [vmem:[%s15167_s26 + $0x2f30] sm:$0xff]  ;;  %v1809_v19 = vld [vmem:[%s15167_s26 + $0x2fa8] sm:$0xff] }
 0x35a   : > { %12883 = vmatprep.subr.mxu1 %v1743_v21  ;;  %12849 = vmatpush3.msra.mxu0 %v1695_v23  ;;  %v1761_v20 = vld [vmem:[%s15167_s26 + $0x2e28] sm:$0xff]  ;;  %v1776_v23 = vld [vmem:[%s15167_s26 + $0x2ea0] sm:$0xff] }
 0x35b   : > { %12884 = vmatpush3.msra.mxu1 %v1727_v24  ;;  %12850 = vmatprep.subr.mxu0 %v1710_v25  ;;  %v1793_v21 = vld [vmem:[%s15167_s26 + $0x2f28] sm:$0xff]  ;;  %v1808_v24 = vld [vmem:[%s15167_s26 + $0x2fa0] sm:$0xff] }
 0x35c   : > { %12885 = vmatprep.subr.mxu1 %v1742_v26  ;;  %12851 = vmatpush3.msra.mxu0 %v1694_v28  ;;  %v1760_v25 = vld [vmem:[%s15167_s26 + $0x2e20] sm:$0xff]  ;;  %v1807_v28 = vld [vmem:[%s15167_s26 + $0x2f98] sm:$0xff] }
 0x35d   : > { %12886 = vmatpush3.msra.mxu1 %v1726_v29  ;;  %12852 = vmatprep.subr.mxu0 %v1709_v30  ;;  %v1792_v26 = vld [vmem:[%s15167_s26 + $0x2f20] sm:$0xff]  ;;  %v3795_v29 = vcombine.high %v259_v22, %v259_v22  ;;  %v1759_v30 = vld [vmem:[%s15167_s26 + $0x2e18] sm:$0xff] }
 0x35e   : > { %12887 = vmatprep.subr.mxu1 %v1741_v31  ;;  %12853 = vmatpush3.msra.mxu0 %v1693_v33  ;;  %v1791_v31 = vld [vmem:[%s15167_s26 + $0x2f18] sm:$0xff]  ;;  %v1806_v33 = vld [vmem:[%s15167_s26 + $0x2f90] sm:$0xff] }
 0x35f   : > { %12888 = vmatpush3.msra.mxu1 %v1725_v34  ;;  %12854 = vmatprep.subr.mxu0 %v1708_v35  ;;  %v3802_v34 = vrot.slane %v259_v22, %v15226_v52  ;;  %v1758_v35 = vld [vmem:[%s15167_s26 + $0x2e10] sm:$0xff] }
 0x360   : > { %12889 = vmatprep.subr.mxu1 %v1740_v36  ;;  %12855 = vmatpush3.msra.mxu0 %v1692_v38  ;;  %v1790_v36 = vld [vmem:[%s15167_s26 + $0x2f10] sm:$0xff]  ;;  %v1805_v38 = vld [vmem:[%s15167_s26 + $0x2f88] sm:$0xff] }
 0x361   : > { %7556 = vmatprep.mubr.f32.mxu0 %v3793_v37  ;;  %12890 = vmatpush3.msra.mxu1 %v1724_v39  ;;  %v1773_v37 = vld [vmem:[%s15167_s26 + $0x2e88] sm:$0xff]  ;;  %v3809_v39 = vrot.slane %v3795_v29, %v15226_v52  ;;  %v1874_v22 = vld [vmem:[%s15167_s26 + $0x31b0] sm:$0xff]  ;;  %v260_v29 = vld [vmem:[%s15161_s29 + $0xc0] sm:$0xff] }
 0x362   : > { %7557 = vmatmul.mubr.f32.vlgmr.msra.gmra.mxu0 %v3785_v27  ;;  %7626 = vmatprep.mubr.f32.mxu1 %v3794_v40  ;;  %v1775_v27 = vld [vmem:[%s15167_s26 + $0x2e98] sm:$0xff]  ;;  %v1757_v40 = vld [vmem:[%s15167_s26 + $0x2e08] sm:$0xff] }
 0x363   : > { %12894 = vmatprep.subr.mxu0 %v1787_v41  ;;  %12929 = vmatprep.subr.mxu1 %v1819_v42  ;;  %v1789_v41 = vld [vmem:[%s15167_s26 + $0x2f08] sm:$0xff]  ;;  %v1772_v42 = vld [vmem:[%s15167_s26 + $0x2e80] sm:$0xff] }
 0x364   : > { %7627 = vmatmul.mubr.f32.vlgmr.msra.gmra.mxu1 %v3792_v32  ;;  %12895 = vmatpush3.msra.mxu0 %v1771_v43  ;;  %v1774_v32 = vld [vmem:[%s15167_s26 + $0x2e90] sm:$0xff]  ;;  %v1804_v43 = vld [vmem:[%s15167_s26 + $0x2f80] sm:$0xff] }
 0x365   : > { %12930 = vmatpush3.msra.mxu1 %v1803_v44  ;;  %12896 = vmatprep.subr.mxu0 %v1786_v45  ;;  %v3810_v44 = vcombine.high %v3802_v34, %v3802_v34  ;;  %v1756_v45 = vld [vmem:[%s15167_s26 + $0x2e00] sm:$0xff] }
 0x366   : > { %12931 = vmatprep.subr.mxu1 %v1818_v46  ;;  %12897 = vmatpush3.msra.mxu0 %v1770_v47  ;;  %v1788_v46 = vld [vmem:[%s15167_s26 + $0x2f00] sm:$0xff]  ;;  %v3811_v47 = vcombine.high %v3809_v39, %v3809_v39 }
 0x367   : > { %12932 = vmatpush3.msra.mxu1 %v1802_v48  ;;  %12898 = vmatprep.subr.mxu0 %v1785_v49  ;;  %v1851_v48 = vld [vmem:[%s15167_s26 + $0x30f8] sm:$0xff] }
 0x368   : > { %12933 = vmatprep.subr.mxu1 %v1817_v50  ;;  %12899 = vmatpush3.msra.mxu0 %v1769_v51  ;;  %v1883_v49 = vld [vmem:[%s15167_s26 + $0x31f8] sm:$0xff] }
 0x369   : > { %12934 = vmatpush3.msra.mxu1 %v1801_v53  ;;  %12900 = vmatprep.subr.mxu0 %v1784_v54  ;;  %v1835_v50 = vld [vmem:[%s15167_s26 + $0x3078] sm:$0xff]  ;;  %v1850_v53 = vld [vmem:[%s15167_s26 + $0x30f0] sm:$0xff] }
 0x36a   : > { %12935 = vmatprep.subr.mxu1 %v1816_v55  ;;  %12901 = vmatpush3.msra.mxu0 %v1768_v56  ;;  %v1867_v51 = vld [vmem:[%s15167_s26 + $0x3178] sm:$0xff]  ;;  %v1882_v54 = vld [vmem:[%s15167_s26 + $0x31f0] sm:$0xff] }
 0x36b   : > { %12936 = vmatpush3.msra.mxu1 %v1800_v57  ;;  %12902 = vmatprep.subr.mxu0 %v1783_v58  ;;  %v1834_v55 = vld [vmem:[%s15167_s26 + $0x3070] sm:$0xff]  ;;  %v1849_v57 = vld [vmem:[%s15167_s26 + $0x30e8] sm:$0xff] }
 0x36c   : > { %12937 = vmatprep.subr.mxu1 %v1815_v59  ;;  %12903 = vmatpush3.msra.mxu0 %v1767_v60  ;;  %v1866_v56 = vld [vmem:[%s15167_s26 + $0x3170] sm:$0xff]  ;;  %v1881_v58 = vld [vmem:[%s15167_s26 + $0x31e8] sm:$0xff] }
 0x36d   : > { %12938 = vmatpush3.msra.mxu1 %v1799_v61  ;;  %12904 = vmatprep.subr.mxu0 %v1782_v62  ;;  %v1833_v59 = vld [vmem:[%s15167_s26 + $0x3068] sm:$0xff]  ;;  %v1848_v61 = vld [vmem:[%s15167_s26 + $0x30e0] sm:$0xff] }
 0x36e   : > { %12939 = vmatprep.subr.mxu1 %v1814_v63  ;;  %12905 = vmatpush3.msra.mxu0 %v1766_v0  ;;  %v1865_v60 = vld [vmem:[%s15167_s26 + $0x3168] sm:$0xff]  ;;  %v1880_v62 = vld [vmem:[%s15167_s26 + $0x31e0] sm:$0xff] }
 0x36f   : > { %12940 = vmatpush3.msra.mxu1 %v1798_v1  ;;  %12906 = vmatprep.subr.mxu0 %v1781_v2  ;;  %v1832_v63 = vld [vmem:[%s15167_s26 + $0x3060] sm:$0xff]  ;;  %v1847_v1 = vld [vmem:[%s15167_s26 + $0x30d8] sm:$0xff] }
 0x370   : > { %12941 = vmatprep.subr.mxu1 %v1813_v3  ;;  %12907 = vmatpush3.msra.mxu0 %v1765_v4  ;;  %v1864_v0 = vld [vmem:[%s15167_s26 + $0x3160] sm:$0xff]  ;;  %v1879_v2 = vld [vmem:[%s15167_s26 + $0x31d8] sm:$0xff] }
 0x371   : > { %12942 = vmatpush3.msra.mxu1 %v1797_v5  ;;  %12908 = vmatprep.subr.mxu0 %v1780_v6  ;;  %v1831_v3 = vld [vmem:[%s15167_s26 + $0x3058] sm:$0xff]  ;;  %v1846_v5 = vld [vmem:[%s15167_s26 + $0x30d0] sm:$0xff] }
 0x372   : > { %12943 = vmatprep.subr.mxu1 %v1812_v7  ;;  %12909 = vmatpush3.msra.mxu0 %v1764_v8  ;;  %v1863_v4 = vld [vmem:[%s15167_s26 + $0x3158] sm:$0xff]  ;;  %v1878_v6 = vld [vmem:[%s15167_s26 + $0x31d0] sm:$0xff] }
 0x373   : > { %12944 = vmatpush3.msra.mxu1 %v1796_v9  ;;  %12910 = vmatprep.subr.mxu0 %v1779_v10  ;;  %v1830_v7 = vld [vmem:[%s15167_s26 + $0x3050] sm:$0xff]  ;;  %v1845_v9 = vld [vmem:[%s15167_s26 + $0x30c8] sm:$0xff] }
 0x374   : > { %12945 = vmatprep.subr.mxu1 %v1811_v11  ;;  %12911 = vmatpush3.msra.mxu0 %v1763_v12  ;;  %v1862_v8 = vld [vmem:[%s15167_s26 + $0x3150] sm:$0xff]  ;;  %v1877_v10 = vld [vmem:[%s15167_s26 + $0x31c8] sm:$0xff] }
 0x375   : > { %12946 = vmatpush3.msra.mxu1 %v1795_v13  ;;  %12912 = vmatprep.subr.mxu0 %v1778_v14  ;;  %v1829_v11 = vld [vmem:[%s15167_s26 + $0x3048] sm:$0xff]  ;;  %v1844_v13 = vld [vmem:[%s15167_s26 + $0x30c0] sm:$0xff] }
 0x376   : > { %12947 = vmatprep.subr.mxu1 %v1810_v15  ;;  %12913 = vmatpush3.msra.mxu0 %v1762_v16  ;;  %v1861_v12 = vld [vmem:[%s15167_s26 + $0x3148] sm:$0xff]  ;;  %v1876_v14 = vld [vmem:[%s15167_s26 + $0x31c0] sm:$0xff] }
 0x377   : > { %12948 = vmatpush3.msra.mxu1 %v1794_v17  ;;  %12914 = vmatprep.subr.mxu0 %v1777_v18  ;;  %v1828_v15 = vld [vmem:[%s15167_s26 + $0x3040] sm:$0xff]  ;;  %v1843_v17 = vld [vmem:[%s15167_s26 + $0x30b8] sm:$0xff] }
 0x378   : > { %12949 = vmatprep.subr.mxu1 %v1809_v19  ;;  %12915 = vmatpush3.msra.mxu0 %v1761_v20  ;;  %v1860_v16 = vld [vmem:[%s15167_s26 + $0x3140] sm:$0xff]  ;;  %v1875_v18 = vld [vmem:[%s15167_s26 + $0x31b8] sm:$0xff] }
 0x379   : > { %12950 = vmatpush3.msra.mxu1 %v1793_v21  ;;  %12916 = vmatprep.subr.mxu0 %v1776_v23  ;;  %v1827_v19 = vld [vmem:[%s15167_s26 + $0x3038] sm:$0xff]  ;;  %v1842_v21 = vld [vmem:[%s15167_s26 + $0x30b0] sm:$0xff] }
 0x37a   : > { %12951 = vmatprep.subr.mxu1 %v1808_v24  ;;  %12917 = vmatpush3.msra.mxu0 %v1760_v25  ;;  %v1859_v20 = vld [vmem:[%s15167_s26 + $0x3138] sm:$0xff]  ;;  %v1826_v23 = vld [vmem:[%s15167_s26 + $0x3030] sm:$0xff]  ;;  %v1841_v25 = vld [vmem:[%s15167_s26 + $0x30a8] sm:$0xff] }
 0x37b   : > { %12952 = vmatpush3.msra.mxu1 %v1792_v26  ;;  %12918 = vmatprep.subr.mxu0 %v1775_v27  ;;  %v1858_v24 = vld [vmem:[%s15167_s26 + $0x3130] sm:$0xff]  ;;  %v1873_v26 = vld [vmem:[%s15167_s26 + $0x31a8] sm:$0xff] }
 0x37c   : > { %12953 = vmatprep.subr.mxu1 %v1807_v28  ;;  %12919 = vmatpush3.msra.mxu0 %v1759_v30  ;;  %v1825_v27 = vld [vmem:[%s15167_s26 + $0x3028] sm:$0xff]  ;;  %v1840_v30 = vld [vmem:[%s15167_s26 + $0x30a0] sm:$0xff] }
 0x37d   : > { %12954 = vmatpush3.msra.mxu1 %v1791_v31  ;;  %12920 = vmatprep.subr.mxu0 %v1774_v32  ;;  %v1857_v28 = vld [vmem:[%s15167_s26 + $0x3128] sm:$0xff]  ;;  %v1872_v31 = vld [vmem:[%s15167_s26 + $0x31a0] sm:$0xff] }
 0x37e   : > { %12955 = vmatprep.subr.mxu1 %v1806_v33  ;;  %12921 = vmatpush3.msra.mxu0 %v1758_v35  ;;  %v1824_v32 = vld [vmem:[%s15167_s26 + $0x3020] sm:$0xff]  ;;  %v1871_v35 = vld [vmem:[%s15167_s26 + $0x3198] sm:$0xff] }
 0x37f   : > { %12956 = vmatpush3.msra.mxu1 %v1790_v36  ;;  %12922 = vmatprep.subr.mxu0 %v1773_v37  ;;  %v1856_v33 = vld [vmem:[%s15167_s26 + $0x3120] sm:$0xff]  ;;  %v3812_v36 = vcombine.high %v260_v29, %v260_v29  ;;  %v1823_v37 = vld [vmem:[%s15167_s26 + $0x3018] sm:$0xff] }
 0x380   : > { %12957 = vmatprep.subr.mxu1 %v1805_v38  ;;  %12923 = vmatpush3.msra.mxu0 %v1757_v40  ;;  %v1855_v38 = vld [vmem:[%s15167_s26 + $0x3118] sm:$0xff]  ;;  %v1870_v40 = vld [vmem:[%s15167_s26 + $0x3190] sm:$0xff] }
 0x381   : > { %12958 = vmatpush3.msra.mxu1 %v1789_v41  ;;  %12924 = vmatprep.subr.mxu0 %v1772_v42  ;;  %v3819_v41 = vrot.slane %v260_v29, %v15226_v52  ;;  %v1822_v42 = vld [vmem:[%s15167_s26 + $0x3010] sm:$0xff] }
 0x382   : > { %12959 = vmatprep.subr.mxu1 %v1804_v43  ;;  %12925 = vmatpush3.msra.mxu0 %v1756_v45  ;;  %v1854_v43 = vld [vmem:[%s15167_s26 + $0x3110] sm:$0xff]  ;;  %v1869_v45 = vld [vmem:[%s15167_s26 + $0x3188] sm:$0xff] }
 0x383   : > { %7696 = vmatprep.mubr.f32.mxu0 %v3810_v44  ;;  %12960 = vmatpush3.msra.mxu1 %v1788_v46  ;;  %v1837_v44 = vld [vmem:[%s15167_s26 + $0x3088] sm:$0xff]  ;;  %v3826_v46 = vrot.slane %v3812_v36, %v15226_v52  ;;  %v1938_v29 = vld [vmem:[%s15167_s26 + $0x33b0] sm:$0xff] }
 0x384   : > { %7697 = vmatmul.mubr.f32.vlgmr.msra.gmra.mxu0 %v3802_v34  ;;  %7766 = vmatprep.mubr.f32.mxu1 %v3811_v47  ;;  %v1839_v34 = vld [vmem:[%s15167_s26 + $0x3098] sm:$0xff]  ;;  %v1821_v47 = vld [vmem:[%s15167_s26 + $0x3008] sm:$0xff] }
 0x385   : > { %12964 = vmatprep.subr.mxu0 %v1851_v48  ;;  %12999 = vmatprep.subr.mxu1 %v1883_v49  ;;  %v1853_v48 = vld [vmem:[%s15167_s26 + $0x3108] sm:$0xff]  ;;  %v1836_v49 = vld [vmem:[%s15167_s26 + $0x3080] sm:$0xff] }
 0x386   : > { %7767 = vmatmul.mubr.f32.vlgmr.msra.gmra.mxu1 %v3809_v39  ;;  %12965 = vmatpush3.msra.mxu0 %v1835_v50  ;;  %v1838_v39 = vld [vmem:[%s15167_s26 + $0x3090] sm:$0xff]  ;;  %v1868_v50 = vld [vmem:[%s15167_s26 + $0x3180] sm:$0xff]  ;;  %v261_v36 = vld [vmem:[%s15161_s29 + $0xc8] sm:$0xff] }
 0x387   : > { %13000 = vmatpush3.msra.mxu1 %v1867_v51  ;;  %12966 = vmatprep.subr.mxu0 %v1850_v53  ;;  %v3827_v51 = vcombine.high %v3819_v41, %v3819_v41  ;;  %v1820_v53 = vld [vmem:[%s15167_s26 + $0x3000] sm:$0xff] }
 0x388   : > { %13001 = vmatprep.subr.mxu1 %v1882_v54  ;;  %12967 = vmatpush3.msra.mxu0 %v1834_v55  ;;  %v1852_v54 = vld [vmem:[%s15167_s26 + $0x3100] sm:$0xff]  ;;  %v3828_v55 = vcombine.high %v3826_v46, %v3826_v46 }
 0x389   : > { %13002 = vmatpush3.msra.mxu1 %v1866_v56  ;;  %12968 = vmatprep.subr.mxu0 %v1849_v57  ;;  %v1915_v56 = vld [vmem:[%s15167_s26 + $0x32f8] sm:$0xff] }
 0x38a   : > { %13003 = vmatprep.subr.mxu1 %v1881_v58  ;;  %12969 = vmatpush3.msra.mxu0 %v1833_v59  ;;  %v1947_v57 = vld [vmem:[%s15167_s26 + $0x33f8] sm:$0xff] }
 0x38b   : > { %13004 = vmatpush3.msra.mxu1 %v1865_v60  ;;  %12970 = vmatprep.subr.mxu0 %v1848_v61  ;;  %v1899_v58 = vld [vmem:[%s15167_s26 + $0x3278] sm:$0xff]  ;;  %v1914_v60 = vld [vmem:[%s15167_s26 + $0x32f0] sm:$0xff] }
 0x38c   : > { %13005 = vmatprep.subr.mxu1 %v1880_v62  ;;  %12971 = vmatpush3.msra.mxu0 %v1832_v63  ;;  %v1931_v59 = vld [vmem:[%s15167_s26 + $0x3378] sm:$0xff]  ;;  %v1946_v61 = vld [vmem:[%s15167_s26 + $0x33f0] sm:$0xff] }
 0x38d   : > { %13006 = vmatpush3.msra.mxu1 %v1864_v0  ;;  %12972 = vmatprep.subr.mxu0 %v1847_v1  ;;  %v1898_v62 = vld [vmem:[%s15167_s26 + $0x3270] sm:$0xff]  ;;  %v1913_v0 = vld [vmem:[%s15167_s26 + $0x32e8] sm:$0xff] }
 0x38e   : > { %13007 = vmatprep.subr.mxu1 %v1879_v2  ;;  %12973 = vmatpush3.msra.mxu0 %v1831_v3  ;;  %v1930_v63 = vld [vmem:[%s15167_s26 + $0x3370] sm:$0xff]  ;;  %v1945_v1 = vld [vmem:[%s15167_s26 + $0x33e8] sm:$0xff] }
 0x38f   : > { %13008 = vmatpush3.msra.mxu1 %v1863_v4  ;;  %12974 = vmatprep.subr.mxu0 %v1846_v5  ;;  %v1897_v2 = vld [vmem:[%s15167_s26 + $0x3268] sm:$0xff]  ;;  %v1912_v4 = vld [vmem:[%s15167_s26 + $0x32e0] sm:$0xff] }
 0x390   : > { %13009 = vmatprep.subr.mxu1 %v1878_v6  ;;  %12975 = vmatpush3.msra.mxu0 %v1830_v7  ;;  %v1929_v3 = vld [vmem:[%s15167_s26 + $0x3368] sm:$0xff]  ;;  %v1944_v5 = vld [vmem:[%s15167_s26 + $0x33e0] sm:$0xff] }
 0x391   : > { %13010 = vmatpush3.msra.mxu1 %v1862_v8  ;;  %12976 = vmatprep.subr.mxu0 %v1845_v9  ;;  %v1896_v6 = vld [vmem:[%s15167_s26 + $0x3260] sm:$0xff]  ;;  %v1911_v8 = vld [vmem:[%s15167_s26 + $0x32d8] sm:$0xff] }
 0x392   : > { %13011 = vmatprep.subr.mxu1 %v1877_v10  ;;  %12977 = vmatpush3.msra.mxu0 %v1829_v11  ;;  %v1928_v7 = vld [vmem:[%s15167_s26 + $0x3360] sm:$0xff]  ;;  %v1943_v9 = vld [vmem:[%s15167_s26 + $0x33d8] sm:$0xff] }
 0x393   : > { %13012 = vmatpush3.msra.mxu1 %v1861_v12  ;;  %12978 = vmatprep.subr.mxu0 %v1844_v13  ;;  %v1895_v10 = vld [vmem:[%s15167_s26 + $0x3258] sm:$0xff]  ;;  %v1910_v12 = vld [vmem:[%s15167_s26 + $0x32d0] sm:$0xff] }
 0x394   : > { %13013 = vmatprep.subr.mxu1 %v1876_v14  ;;  %12979 = vmatpush3.msra.mxu0 %v1828_v15  ;;  %v1927_v11 = vld [vmem:[%s15167_s26 + $0x3358] sm:$0xff]  ;;  %v1942_v13 = vld [vmem:[%s15167_s26 + $0x33d0] sm:$0xff] }
 0x395   : > { %13014 = vmatpush3.msra.mxu1 %v1860_v16  ;;  %12980 = vmatprep.subr.mxu0 %v1843_v17  ;;  %v1894_v14 = vld [vmem:[%s15167_s26 + $0x3250] sm:$0xff]  ;;  %v1909_v16 = vld [vmem:[%s15167_s26 + $0x32c8] sm:$0xff] }
 0x396   : > { %13015 = vmatprep.subr.mxu1 %v1875_v18  ;;  %12981 = vmatpush3.msra.mxu0 %v1827_v19  ;;  %v1926_v15 = vld [vmem:[%s15167_s26 + $0x3350] sm:$0xff]  ;;  %v1941_v17 = vld [vmem:[%s15167_s26 + $0x33c8] sm:$0xff] }
 0x397   : > { %13016 = vmatpush3.msra.mxu1 %v1859_v20  ;;  %12982 = vmatprep.subr.mxu0 %v1842_v21  ;;  %v1893_v18 = vld [vmem:[%s15167_s26 + $0x3248] sm:$0xff]  ;;  %v1908_v20 = vld [vmem:[%s15167_s26 + $0x32c0] sm:$0xff] }
 0x398   : > { %13017 = vmatprep.subr.mxu1 %v1874_v22  ;;  %12983 = vmatpush3.msra.mxu0 %v1826_v23  ;;  %v1925_v19 = vld [vmem:[%s15167_s26 + $0x3348] sm:$0xff]  ;;  %v1940_v21 = vld [vmem:[%s15167_s26 + $0x33c0] sm:$0xff] }
 0x399   : > { %13018 = vmatpush3.msra.mxu1 %v1858_v24  ;;  %12984 = vmatprep.subr.mxu0 %v1841_v25  ;;  %v1892_v22 = vld [vmem:[%s15167_s26 + $0x3240] sm:$0xff]  ;;  %v1907_v24 = vld [vmem:[%s15167_s26 + $0x32b8] sm:$0xff] }
 0x39a   : > { %13019 = vmatprep.subr.mxu1 %v1873_v26  ;;  %12985 = vmatpush3.msra.mxu0 %v1825_v27  ;;  %v1924_v23 = vld [vmem:[%s15167_s26 + $0x3340] sm:$0xff]  ;;  %v1939_v25 = vld [vmem:[%s15167_s26 + $0x33b8] sm:$0xff] }
 0x39b   : > { %13020 = vmatpush3.msra.mxu1 %v1857_v28  ;;  %12986 = vmatprep.subr.mxu0 %v1840_v30  ;;  %v1891_v26 = vld [vmem:[%s15167_s26 + $0x3238] sm:$0xff]  ;;  %v1906_v28 = vld [vmem:[%s15167_s26 + $0x32b0] sm:$0xff] }
 0x39c   : > { %13021 = vmatprep.subr.mxu1 %v1872_v31  ;;  %12987 = vmatpush3.msra.mxu0 %v1824_v32  ;;  %v1923_v27 = vld [vmem:[%s15167_s26 + $0x3338] sm:$0xff]  ;;  %v1890_v30 = vld [vmem:[%s15167_s26 + $0x3230] sm:$0xff]  ;;  %v1905_v32 = vld [vmem:[%s15167_s26 + $0x32a8] sm:$0xff] }
 0x39d   : > { %13022 = vmatpush3.msra.mxu1 %v1856_v33  ;;  %12988 = vmatprep.subr.mxu0 %v1839_v34  ;;  %v1922_v31 = vld [vmem:[%s15167_s26 + $0x3330] sm:$0xff]  ;;  %v1937_v33 = vld [vmem:[%s15167_s26 + $0x33a8] sm:$0xff] }
 0x39e   : > { %13023 = vmatprep.subr.mxu1 %v1871_v35  ;;  %12989 = vmatpush3.msra.mxu0 %v1823_v37  ;;  %v1889_v34 = vld [vmem:[%s15167_s26 + $0x3228] sm:$0xff]  ;;  %v1904_v37 = vld [vmem:[%s15167_s26 + $0x32a0] sm:$0xff] }
 0x39f   : > { %13024 = vmatpush3.msra.mxu1 %v1855_v38  ;;  %12990 = vmatprep.subr.mxu0 %v1838_v39  ;;  %v1921_v35 = vld [vmem:[%s15167_s26 + $0x3328] sm:$0xff]  ;;  %v1936_v38 = vld [vmem:[%s15167_s26 + $0x33a0] sm:$0xff] }
 0x3a0   : > { %13025 = vmatprep.subr.mxu1 %v1870_v40  ;;  %12991 = vmatpush3.msra.mxu0 %v1822_v42  ;;  %v1888_v39 = vld [vmem:[%s15167_s26 + $0x3220] sm:$0xff]  ;;  %v1935_v42 = vld [vmem:[%s15167_s26 + $0x3398] sm:$0xff] }
 0x3a1   : > { %13026 = vmatpush3.msra.mxu1 %v1854_v43  ;;  %12992 = vmatprep.subr.mxu0 %v1837_v44  ;;  %v1920_v40 = vld [vmem:[%s15167_s26 + $0x3320] sm:$0xff]  ;;  %v3829_v43 = vcombine.high %v261_v36, %v261_v36  ;;  %v1887_v44 = vld [vmem:[%s15167_s26 + $0x3218] sm:$0xff] }
 0x3a2   : > { %13027 = vmatprep.subr.mxu1 %v1869_v45  ;;  %12993 = vmatpush3.msra.mxu0 %v1821_v47  ;;  %v1919_v45 = vld [vmem:[%s15167_s26 + $0x3318] sm:$0xff]  ;;  %v1934_v47 = vld [vmem:[%s15167_s26 + $0x3390] sm:$0xff] }
 0x3a3   : > { %13028 = vmatpush3.msra.mxu1 %v1853_v48  ;;  %12994 = vmatprep.subr.mxu0 %v1836_v49  ;;  %v3836_v48 = vrot.slane %v261_v36, %v15226_v52  ;;  %v1886_v49 = vld [vmem:[%s15167_s26 + $0x3210] sm:$0xff] }
 0x3a4   : > { %13029 = vmatprep.subr.mxu1 %v1868_v50  ;;  %12995 = vmatpush3.msra.mxu0 %v1820_v53  ;;  %v1918_v50 = vld [vmem:[%s15167_s26 + $0x3310] sm:$0xff]  ;;  %v1933_v53 = vld [vmem:[%s15167_s26 + $0x3388] sm:$0xff] }
 0x3a5   : > { %7836 = vmatprep.mubr.f32.mxu0 %v3827_v51  ;;  %13030 = vmatpush3.msra.mxu1 %v1852_v54  ;;  %v1901_v51 = vld [vmem:[%s15167_s26 + $0x3288] sm:$0xff]  ;;  %v3843_v54 = vrot.slane %v3829_v43, %v15226_v52  ;;  %v2002_v36 = vld [vmem:[%s15167_s26 + $0x35b0] sm:$0xff] }
 0x3a6   : > { %7837 = vmatmul.mubr.f32.vlgmr.msra.gmra.mxu0 %v3819_v41  ;;  %7906 = vmatprep.mubr.f32.mxu1 %v3828_v55  ;;  %v1903_v41 = vld [vmem:[%s15167_s26 + $0x3298] sm:$0xff]  ;;  %v1885_v55 = vld [vmem:[%s15167_s26 + $0x3208] sm:$0xff]  ;;  %v262_v43 = vld [vmem:[%s15161_s29 + $0xd0] sm:$0xff] }
 0x3a7   : > { %13034 = vmatprep.subr.mxu0 %v1915_v56  ;;  %13069 = vmatprep.subr.mxu1 %v1947_v57  ;;  %v1917_v56 = vld [vmem:[%s15167_s26 + $0x3308] sm:$0xff]  ;;  %v1900_v57 = vld [vmem:[%s15167_s26 + $0x3280] sm:$0xff] }
 0x3a8   : > { %7907 = vmatmul.mubr.f32.vlgmr.msra.gmra.mxu1 %v3826_v46  ;;  %13035 = vmatpush3.msra.mxu0 %v1899_v58  ;;  %v1902_v46 = vld [vmem:[%s15167_s26 + $0x3290] sm:$0xff]  ;;  %v1932_v58 = vld [vmem:[%s15167_s26 + $0x3380] sm:$0xff] }
 0x3a9   : > { %13070 = vmatpush3.msra.mxu1 %v1931_v59  ;;  %13036 = vmatprep.subr.mxu0 %v1914_v60  ;;  %v3844_v59 = vcombine.high %v3836_v48, %v3836_v48  ;;  %v1884_v60 = vld [vmem:[%s15167_s26 + $0x3200] sm:$0xff] }
 0x3aa   : > { %13071 = vmatprep.subr.mxu1 %v1946_v61  ;;  %13037 = vmatpush3.msra.mxu0 %v1898_v62  ;;  %v1916_v61 = vld [vmem:[%s15167_s26 + $0x3300] sm:$0xff]  ;;  %v3845_v62 = vcombine.high %v3843_v54, %v3843_v54 }
 0x3ab   : > { %13072 = vmatpush3.msra.mxu1 %v1930_v63  ;;  %13038 = vmatprep.subr.mxu0 %v1913_v0  ;;  %v1979_v63 = vld [vmem:[%s15167_s26 + $0x34f8] sm:$0xff] }
 0x3ac   : > { %13073 = vmatprep.subr.mxu1 %v1945_v1  ;;  %13039 = vmatpush3.msra.mxu0 %v1897_v2  ;;  %v2011_v0 = vld [vmem:[%s15167_s26 + $0x35f8] sm:$0xff] }
 0x3ad   : > { %13074 = vmatpush3.msra.mxu1 %v1929_v3  ;;  %13040 = vmatprep.subr.mxu0 %v1912_v4  ;;  %v1963_v1 = vld [vmem:[%s15167_s26 + $0x3478] sm:$0xff]  ;;  %v1978_v3 = vld [vmem:[%s15167_s26 + $0x34f0] sm:$0xff] }
 0x3ae   : > { %13075 = vmatprep.subr.mxu1 %v1944_v5  ;;  %13041 = vmatpush3.msra.mxu0 %v1896_v6  ;;  %v1995_v2 = vld [vmem:[%s15167_s26 + $0x3578] sm:$0xff]  ;;  %v2010_v4 = vld [vmem:[%s15167_s26 + $0x35f0] sm:$0xff] }
 0x3af   : > { %13076 = vmatpush3.msra.mxu1 %v1928_v7  ;;  %13042 = vmatprep.subr.mxu0 %v1911_v8  ;;  %v1962_v5 = vld [vmem:[%s15167_s26 + $0x3470] sm:$0xff]  ;;  %v1977_v7 = vld [vmem:[%s15167_s26 + $0x34e8] sm:$0xff] }
 0x3b0   : > { %13077 = vmatprep.subr.mxu1 %v1943_v9  ;;  %13043 = vmatpush3.msra.mxu0 %v1895_v10  ;;  %v1994_v6 = vld [vmem:[%s15167_s26 + $0x3570] sm:$0xff]  ;;  %v2009_v8 = vld [vmem:[%s15167_s26 + $0x35e8] sm:$0xff] }
 0x3b1   : > { %13078 = vmatpush3.msra.mxu1 %v1927_v11  ;;  %13044 = vmatprep.subr.mxu0 %v1910_v12  ;;  %v1961_v9 = vld [vmem:[%s15167_s26 + $0x3468] sm:$0xff]  ;;  %v1976_v11 = vld [vmem:[%s15167_s26 + $0x34e0] sm:$0xff] }
 0x3b2   : > { %13079 = vmatprep.subr.mxu1 %v1942_v13  ;;  %13045 = vmatpush3.msra.mxu0 %v1894_v14  ;;  %v1993_v10 = vld [vmem:[%s15167_s26 + $0x3568] sm:$0xff]  ;;  %v2008_v12 = vld [vmem:[%s15167_s26 + $0x35e0] sm:$0xff] }
 0x3b3   : > { %13080 = vmatpush3.msra.mxu1 %v1926_v15  ;;  %13046 = vmatprep.subr.mxu0 %v1909_v16  ;;  %v1960_v13 = vld [vmem:[%s15167_s26 + $0x3460] sm:$0xff]  ;;  %v1975_v15 = vld [vmem:[%s15167_s26 + $0x34d8] sm:$0xff] }
 0x3b4   : > { %13081 = vmatprep.subr.mxu1 %v1941_v17  ;;  %13047 = vmatpush3.msra.mxu0 %v1893_v18  ;;  %v1992_v14 = vld [vmem:[%s15167_s26 + $0x3560] sm:$0xff]  ;;  %v2007_v16 = vld [vmem:[%s15167_s26 + $0x35d8] sm:$0xff] }
 0x3b5   : > { %13082 = vmatpush3.msra.mxu1 %v1925_v19  ;;  %13048 = vmatprep.subr.mxu0 %v1908_v20  ;;  %v1959_v17 = vld [vmem:[%s15167_s26 + $0x3458] sm:$0xff]  ;;  %v1974_v19 = vld [vmem:[%s15167_s26 + $0x34d0] sm:$0xff] }
 0x3b6   : > { %13083 = vmatprep.subr.mxu1 %v1940_v21  ;;  %13049 = vmatpush3.msra.mxu0 %v1892_v22  ;;  %v1991_v18 = vld [vmem:[%s15167_s26 + $0x3558] sm:$0xff]  ;;  %v2006_v20 = vld [vmem:[%s15167_s26 + $0x35d0] sm:$0xff] }
 0x3b7   : > { %13084 = vmatpush3.msra.mxu1 %v1924_v23  ;;  %13050 = vmatprep.subr.mxu0 %v1907_v24  ;;  %v1958_v21 = vld [vmem:[%s15167_s26 + $0x3450] sm:$0xff]  ;;  %v1973_v23 = vld [vmem:[%s15167_s26 + $0x34c8] sm:$0xff] }
 0x3b8   : > { %13085 = vmatprep.subr.mxu1 %v1939_v25  ;;  %13051 = vmatpush3.msra.mxu0 %v1891_v26  ;;  %v1990_v22 = vld [vmem:[%s15167_s26 + $0x3550] sm:$0xff]  ;;  %v2005_v24 = vld [vmem:[%s15167_s26 + $0x35c8] sm:$0xff] }
 0x3b9   : > { %13086 = vmatpush3.msra.mxu1 %v1923_v27  ;;  %13052 = vmatprep.subr.mxu0 %v1906_v28  ;;  %v1957_v25 = vld [vmem:[%s15167_s26 + $0x3448] sm:$0xff]  ;;  %v1972_v27 = vld [vmem:[%s15167_s26 + $0x34c0] sm:$0xff] }
 0x3ba   : > { %13087 = vmatprep.subr.mxu1 %v1938_v29  ;;  %13053 = vmatpush3.msra.mxu0 %v1890_v30  ;;  %v1989_v26 = vld [vmem:[%s15167_s26 + $0x3548] sm:$0xff]  ;;  %v2004_v28 = vld [vmem:[%s15167_s26 + $0x35c0] sm:$0xff] }
 0x3bb   : > { %13088 = vmatpush3.msra.mxu1 %v1922_v31  ;;  %13054 = vmatprep.subr.mxu0 %v1905_v32  ;;  %v1956_v29 = vld [vmem:[%s15167_s26 + $0x3440] sm:$0xff]  ;;  %v1971_v31 = vld [vmem:[%s15167_s26 + $0x34b8] sm:$0xff] }
 0x3bc   : > { %13089 = vmatprep.subr.mxu1 %v1937_v33  ;;  %13055 = vmatpush3.msra.mxu0 %v1889_v34  ;;  %v1988_v30 = vld [vmem:[%s15167_s26 + $0x3540] sm:$0xff]  ;;  %v2003_v32 = vld [vmem:[%s15167_s26 + $0x35b8] sm:$0xff] }
 0x3bd   : > { %13090 = vmatpush3.msra.mxu1 %v1921_v35  ;;  %13056 = vmatprep.subr.mxu0 %v1904_v37  ;;  %v1955_v33 = vld [vmem:[%s15167_s26 + $0x3438] sm:$0xff]  ;;  %v1970_v35 = vld [vmem:[%s15167_s26 + $0x34b0] sm:$0xff] }
 0x3be   : > { %13091 = vmatprep.subr.mxu1 %v1936_v38  ;;  %13057 = vmatpush3.msra.mxu0 %v1888_v39  ;;  %v1987_v34 = vld [vmem:[%s15167_s26 + $0x3538] sm:$0xff]  ;;  %v1954_v37 = vld [vmem:[%s15167_s26 + $0x3430] sm:$0xff]  ;;  %v1969_v39 = vld [vmem:[%s15167_s26 + $0x34a8] sm:$0xff] }
 0x3bf   : > { %13092 = vmatpush3.msra.mxu1 %v1920_v40  ;;  %13058 = vmatprep.subr.mxu0 %v1903_v41  ;;  %v1986_v38 = vld [vmem:[%s15167_s26 + $0x3530] sm:$0xff]  ;;  %v2001_v40 = vld [vmem:[%s15167_s26 + $0x35a8] sm:$0xff] }
 0x3c0   : > { %13093 = vmatprep.subr.mxu1 %v1935_v42  ;;  %13059 = vmatpush3.msra.mxu0 %v1887_v44  ;;  %v1953_v41 = vld [vmem:[%s15167_s26 + $0x3428] sm:$0xff]  ;;  %v1968_v44 = vld [vmem:[%s15167_s26 + $0x34a0] sm:$0xff] }
 0x3c1   : > { %13094 = vmatpush3.msra.mxu1 %v1919_v45  ;;  %13060 = vmatprep.subr.mxu0 %v1902_v46  ;;  %v1985_v42 = vld [vmem:[%s15167_s26 + $0x3528] sm:$0xff]  ;;  %v2000_v45 = vld [vmem:[%s15167_s26 + $0x35a0] sm:$0xff] }
 0x3c2   : > { %13095 = vmatprep.subr.mxu1 %v1934_v47  ;;  %13061 = vmatpush3.msra.mxu0 %v1886_v49  ;;  %v1952_v46 = vld [vmem:[%s15167_s26 + $0x3420] sm:$0xff]  ;;  %v1999_v49 = vld [vmem:[%s15167_s26 + $0x3598] sm:$0xff] }
 0x3c3   : > { %13096 = vmatpush3.msra.mxu1 %v1918_v50  ;;  %13062 = vmatprep.subr.mxu0 %v1901_v51  ;;  %v1984_v47 = vld [vmem:[%s15167_s26 + $0x3520] sm:$0xff]  ;;  %v3846_v50 = vcombine.high %v262_v43, %v262_v43  ;;  %v1951_v51 = vld [vmem:[%s15167_s26 + $0x3418] sm:$0xff] }
 0x3c4   : > { %13097 = vmatprep.subr.mxu1 %v1933_v53  ;;  %13063 = vmatpush3.msra.mxu0 %v1885_v55  ;;  %v1983_v53 = vld [vmem:[%s15167_s26 + $0x3518] sm:$0xff]  ;;  %v1998_v55 = vld [vmem:[%s15167_s26 + $0x3590] sm:$0xff] }
 0x3c5   : > { %13098 = vmatpush3.msra.mxu1 %v1917_v56  ;;  %13064 = vmatprep.subr.mxu0 %v1900_v57  ;;  %v3853_v56 = vrot.slane %v262_v43, %v15226_v52  ;;  %v1950_v57 = vld [vmem:[%s15167_s26 + $0x3410] sm:$0xff] }
 0x3c6   : > { %13099 = vmatprep.subr.mxu1 %v1932_v58  ;;  %13065 = vmatpush3.msra.mxu0 %v1884_v60  ;;  %v1982_v58 = vld [vmem:[%s15167_s26 + $0x3510] sm:$0xff]  ;;  %v1997_v60 = vld [vmem:[%s15167_s26 + $0x3588] sm:$0xff] }
 0x3c7   : > { %7976 = vmatprep.mubr.f32.mxu0 %v3844_v59  ;;  %13100 = vmatpush3.msra.mxu1 %v1916_v61  ;;  %v1965_v59 = vld [vmem:[%s15167_s26 + $0x3488] sm:$0xff]  ;;  %v3860_v61 = vrot.slane %v3846_v50, %v15226_v52  ;;  %v2066_v43 = vld [vmem:[%s15167_s26 + $0x37b0] sm:$0xff]  ;;  %v263_v50 = vld [vmem:[%s15161_s29 + $0xd8] sm:$0xff] }
 0x3c8   : > { %7977 = vmatmul.mubr.f32.vlgmr.msra.gmra.mxu0 %v3836_v48  ;;  %8046 = vmatprep.mubr.f32.mxu1 %v3845_v62  ;;  %v1967_v48 = vld [vmem:[%s15167_s26 + $0x3498] sm:$0xff]  ;;  %v1949_v62 = vld [vmem:[%s15167_s26 + $0x3408] sm:$0xff] }
 0x3c9   : > { %13104 = vmatprep.subr.mxu0 %v1979_v63  ;;  %13139 = vmatprep.subr.mxu1 %v2011_v0  ;;  %v1981_v63 = vld [vmem:[%s15167_s26 + $0x3508] sm:$0xff]  ;;  %v1964_v0 = vld [vmem:[%s15167_s26 + $0x3480] sm:$0xff] }
 0x3ca   : > { %8047 = vmatmul.mubr.f32.vlgmr.msra.gmra.mxu1 %v3843_v54  ;;  %13105 = vmatpush3.msra.mxu0 %v1963_v1  ;;  %v1966_v54 = vld [vmem:[%s15167_s26 + $0x3490] sm:$0xff]  ;;  %v1996_v1 = vld [vmem:[%s15167_s26 + $0x3580] sm:$0xff] }
 0x3cb   : > { %13140 = vmatpush3.msra.mxu1 %v1995_v2  ;;  %13106 = vmatprep.subr.mxu0 %v1978_v3  ;;  %v3861_v2 = vcombine.high %v3853_v56, %v3853_v56  ;;  %v1948_v3 = vld [vmem:[%s15167_s26 + $0x3400] sm:$0xff] }
 0x3cc   : > { %13141 = vmatprep.subr.mxu1 %v2010_v4  ;;  %13107 = vmatpush3.msra.mxu0 %v1962_v5  ;;  %v1980_v4 = vld [vmem:[%s15167_s26 + $0x3500] sm:$0xff]  ;;  %v3862_v5 = vcombine.high %v3860_v61, %v3860_v61 }
 0x3cd   : > { %13142 = vmatpush3.msra.mxu1 %v1994_v6  ;;  %13108 = vmatprep.subr.mxu0 %v1977_v7  ;;  %v2043_v6 = vld [vmem:[%s15167_s26 + $0x36f8] sm:$0xff] }
 0x3ce   : > { %13143 = vmatprep.subr.mxu1 %v2009_v8  ;;  %13109 = vmatpush3.msra.mxu0 %v1961_v9  ;;  %v2075_v7 = vld [vmem:[%s15167_s26 + $0x37f8] sm:$0xff] }
 0x3cf   : > { %13144 = vmatpush3.msra.mxu1 %v1993_v10  ;;  %13110 = vmatprep.subr.mxu0 %v1976_v11  ;;  %v2027_v8 = vld [vmem:[%s15167_s26 + $0x3678] sm:$0xff]  ;;  %v2042_v10 = vld [vmem:[%s15167_s26 + $0x36f0] sm:$0xff] }
 0x3d0   : > { %13145 = vmatprep.subr.mxu1 %v2008_v12  ;;  %13111 = vmatpush3.msra.mxu0 %v1960_v13  ;;  %v2059_v9 = vld [vmem:[%s15167_s26 + $0x3778] sm:$0xff]  ;;  %v2074_v11 = vld [vmem:[%s15167_s26 + $0x37f0] sm:$0xff] }
 0x3d1   : > { %13146 = vmatpush3.msra.mxu1 %v1992_v14  ;;  %13112 = vmatprep.subr.mxu0 %v1975_v15  ;;  %v2026_v12 = vld [vmem:[%s15167_s26 + $0x3670] sm:$0xff]  ;;  %v2041_v14 = vld [vmem:[%s15167_s26 + $0x36e8] sm:$0xff] }
 0x3d2   : > { %13147 = vmatprep.subr.mxu1 %v2007_v16  ;;  %13113 = vmatpush3.msra.mxu0 %v1959_v17  ;;  %v2058_v13 = vld [vmem:[%s15167_s26 + $0x3770] sm:$0xff]  ;;  %v2073_v15 = vld [vmem:[%s15167_s26 + $0x37e8] sm:$0xff] }
 0x3d3   : > { %13148 = vmatpush3.msra.mxu1 %v1991_v18  ;;  %13114 = vmatprep.subr.mxu0 %v1974_v19  ;;  %v2025_v16 = vld [vmem:[%s15167_s26 + $0x3668] sm:$0xff]  ;;  %v2040_v18 = vld [vmem:[%s15167_s26 + $0x36e0] sm:$0xff] }
 0x3d4   : > { %13149 = vmatprep.subr.mxu1 %v2006_v20  ;;  %13115 = vmatpush3.msra.mxu0 %v1958_v21  ;;  %v2057_v17 = vld [vmem:[%s15167_s26 + $0x3768] sm:$0xff]  ;;  %v2072_v19 = vld [vmem:[%s15167_s26 + $0x37e0] sm:$0xff] }
 0x3d5   : > { %13150 = vmatpush3.msra.mxu1 %v1990_v22  ;;  %13116 = vmatprep.subr.mxu0 %v1973_v23  ;;  %v2024_v20 = vld [vmem:[%s15167_s26 + $0x3660] sm:$0xff]  ;;  %v2039_v22 = vld [vmem:[%s15167_s26 + $0x36d8] sm:$0xff] }
 0x3d6   : > { %13151 = vmatprep.subr.mxu1 %v2005_v24  ;;  %13117 = vmatpush3.msra.mxu0 %v1957_v25  ;;  %v2056_v21 = vld [vmem:[%s15167_s26 + $0x3760] sm:$0xff]  ;;  %v2071_v23 = vld [vmem:[%s15167_s26 + $0x37d8] sm:$0xff] }
 0x3d7   : > { %13152 = vmatpush3.msra.mxu1 %v1989_v26  ;;  %13118 = vmatprep.subr.mxu0 %v1972_v27  ;;  %v2023_v24 = vld [vmem:[%s15167_s26 + $0x3658] sm:$0xff]  ;;  %v2038_v26 = vld [vmem:[%s15167_s26 + $0x36d0] sm:$0xff] }
 0x3d8   : > { %13153 = vmatprep.subr.mxu1 %v2004_v28  ;;  %13119 = vmatpush3.msra.mxu0 %v1956_v29  ;;  %v2055_v25 = vld [vmem:[%s15167_s26 + $0x3758] sm:$0xff]  ;;  %v2070_v27 = vld [vmem:[%s15167_s26 + $0x37d0] sm:$0xff] }
 0x3d9   : > { %13154 = vmatpush3.msra.mxu1 %v1988_v30  ;;  %13120 = vmatprep.subr.mxu0 %v1971_v31  ;;  %v2022_v28 = vld [vmem:[%s15167_s26 + $0x3650] sm:$0xff]  ;;  %v2037_v30 = vld [vmem:[%s15167_s26 + $0x36c8] sm:$0xff] }
 0x3da   : > { %13155 = vmatprep.subr.mxu1 %v2003_v32  ;;  %13121 = vmatpush3.msra.mxu0 %v1955_v33  ;;  %v2054_v29 = vld [vmem:[%s15167_s26 + $0x3750] sm:$0xff]  ;;  %v2069_v31 = vld [vmem:[%s15167_s26 + $0x37c8] sm:$0xff] }
 0x3db   : > { %13156 = vmatpush3.msra.mxu1 %v1987_v34  ;;  %13122 = vmatprep.subr.mxu0 %v1970_v35  ;;  %v2021_v32 = vld [vmem:[%s15167_s26 + $0x3648] sm:$0xff]  ;;  %v2036_v34 = vld [vmem:[%s15167_s26 + $0x36c0] sm:$0xff] }
 0x3dc   : > { %13157 = vmatprep.subr.mxu1 %v2002_v36  ;;  %13123 = vmatpush3.msra.mxu0 %v1954_v37  ;;  %v2053_v33 = vld [vmem:[%s15167_s26 + $0x3748] sm:$0xff]  ;;  %v2068_v35 = vld [vmem:[%s15167_s26 + $0x37c0] sm:$0xff] }
 0x3dd   : > { %13158 = vmatpush3.msra.mxu1 %v1986_v38  ;;  %13124 = vmatprep.subr.mxu0 %v1969_v39  ;;  %v2020_v36 = vld [vmem:[%s15167_s26 + $0x3640] sm:$0xff]  ;;  %v2035_v38 = vld [vmem:[%s15167_s26 + $0x36b8] sm:$0xff] }
 0x3de   : > { %13159 = vmatprep.subr.mxu1 %v2001_v40  ;;  %13125 = vmatpush3.msra.mxu0 %v1953_v41  ;;  %v2052_v37 = vld [vmem:[%s15167_s26 + $0x3740] sm:$0xff]  ;;  %v2067_v39 = vld [vmem:[%s15167_s26 + $0x37b8] sm:$0xff] }
 0x3df   : > { %13160 = vmatpush3.msra.mxu1 %v1985_v42  ;;  %13126 = vmatprep.subr.mxu0 %v1968_v44  ;;  %v2019_v40 = vld [vmem:[%s15167_s26 + $0x3638] sm:$0xff]  ;;  %v2034_v42 = vld [vmem:[%s15167_s26 + $0x36b0] sm:$0xff] }
 0x3e0   : > { %13161 = vmatprep.subr.mxu1 %v2000_v45  ;;  %13127 = vmatpush3.msra.mxu0 %v1952_v46  ;;  %v2051_v41 = vld [vmem:[%s15167_s26 + $0x3738] sm:$0xff]  ;;  %v2018_v44 = vld [vmem:[%s15167_s26 + $0x3630] sm:$0xff]  ;;  %v2033_v46 = vld [vmem:[%s15167_s26 + $0x36a8] sm:$0xff] }
 0x3e1   : > { %13162 = vmatpush3.msra.mxu1 %v1984_v47  ;;  %13128 = vmatprep.subr.mxu0 %v1967_v48  ;;  %v2050_v45 = vld [vmem:[%s15167_s26 + $0x3730] sm:$0xff]  ;;  %v2065_v47 = vld [vmem:[%s15167_s26 + $0x37a8] sm:$0xff] }
 0x3e2   : > { %13163 = vmatprep.subr.mxu1 %v1999_v49  ;;  %13129 = vmatpush3.msra.mxu0 %v1951_v51  ;;  %v2017_v48 = vld [vmem:[%s15167_s26 + $0x3628] sm:$0xff]  ;;  %v2032_v51 = vld [vmem:[%s15167_s26 + $0x36a0] sm:$0xff] }
 0x3e3   : > { %13164 = vmatpush3.msra.mxu1 %v1983_v53  ;;  %13130 = vmatprep.subr.mxu0 %v1966_v54  ;;  %v2049_v49 = vld [vmem:[%s15167_s26 + $0x3728] sm:$0xff]  ;;  %v2064_v53 = vld [vmem:[%s15167_s26 + $0x37a0] sm:$0xff] }
 0x3e4   : > { %13165 = vmatprep.subr.mxu1 %v1998_v55  ;;  %13131 = vmatpush3.msra.mxu0 %v1950_v57  ;;  %v2016_v54 = vld [vmem:[%s15167_s26 + $0x3620] sm:$0xff]  ;;  %v2063_v57 = vld [vmem:[%s15167_s26 + $0x3798] sm:$0xff] }
 0x3e5   : > { %13166 = vmatpush3.msra.mxu1 %v1982_v58  ;;  %13132 = vmatprep.subr.mxu0 %v1965_v59  ;;  %v2048_v55 = vld [vmem:[%s15167_s26 + $0x3720] sm:$0xff]  ;;  %v3863_v58 = vcombine.high %v263_v50, %v263_v50  ;;  %v2015_v59 = vld [vmem:[%s15167_s26 + $0x3618] sm:$0xff] }
 0x3e6   : > { %13167 = vmatprep.subr.mxu1 %v1997_v60  ;;  %13133 = vmatpush3.msra.mxu0 %v1949_v62  ;;  %v2047_v60 = vld [vmem:[%s15167_s26 + $0x3718] sm:$0xff]  ;;  %v2062_v62 = vld [vmem:[%s15167_s26 + $0x3790] sm:$0xff] }
 0x3e7   : > { %13168 = vmatpush3.msra.mxu1 %v1981_v63  ;;  %13134 = vmatprep.subr.mxu0 %v1964_v0  ;;  %v3870_v63 = vrot.slane %v263_v50, %v15226_v52  ;;  %v2014_v0 = vld [vmem:[%s15167_s26 + $0x3610] sm:$0xff] }
 0x3e8   : > { %13169 = vmatprep.subr.mxu1 %v1996_v1  ;;  %13135 = vmatpush3.msra.mxu0 %v1948_v3  ;;  %v2046_v1 = vld [vmem:[%s15167_s26 + $0x3710] sm:$0xff]  ;;  %v2061_v3 = vld [vmem:[%s15167_s26 + $0x3788] sm:$0xff] }
 0x3e9   : > { %8116 = vmatprep.mubr.f32.mxu0 %v3861_v2  ;;  %13170 = vmatpush3.msra.mxu1 %v1980_v4  ;;  %v2029_v2 = vld [vmem:[%s15167_s26 + $0x3688] sm:$0xff]  ;;  %v3877_v4 = vrot.slane %v3863_v58, %v15226_v52  ;;  %v2130_v50 = vld [vmem:[%s15167_s26 + $0x39b0] sm:$0xff]  ;;  %v264_v58 = vld [vmem:[%s15161_s29 + $0xe0] sm:$0xff] }
 0x3ea   : > { %8117 = vmatmul.mubr.f32.vlgmr.msra.gmra.mxu0 %v3853_v56  ;;  %8186 = vmatprep.mubr.f32.mxu1 %v3862_v5  ;;  %v2031_v56 = vld [vmem:[%s15167_s26 + $0x3698] sm:$0xff]  ;;  %v2013_v5 = vld [vmem:[%s15167_s26 + $0x3608] sm:$0xff] }
 0x3eb   : > { %13174 = vmatprep.subr.mxu0 %v2043_v6  ;;  %13209 = vmatprep.subr.mxu1 %v2075_v7  ;;  %v2045_v6 = vld [vmem:[%s15167_s26 + $0x3708] sm:$0xff]  ;;  %v2028_v7 = vld [vmem:[%s15167_s26 + $0x3680] sm:$0xff] }
 0x3ec   : > { %8187 = vmatmul.mubr.f32.vlgmr.msra.gmra.mxu1 %v3860_v61  ;;  %13175 = vmatpush3.msra.mxu0 %v2027_v8  ;;  %v2030_v61 = vld [vmem:[%s15167_s26 + $0x3690] sm:$0xff]  ;;  %v2060_v8 = vld [vmem:[%s15167_s26 + $0x3780] sm:$0xff] }
 0x3ed   : > { %13210 = vmatpush3.msra.mxu1 %v2059_v9  ;;  %13176 = vmatprep.subr.mxu0 %v2042_v10  ;;  %v3878_v9 = vcombine.high %v3870_v63, %v3870_v63  ;;  %v2012_v10 = vld [vmem:[%s15167_s26 + $0x3600] sm:$0xff] }
 0x3ee   : > { %13211 = vmatprep.subr.mxu1 %v2074_v11  ;;  %13177 = vmatpush3.msra.mxu0 %v2026_v12  ;;  %v2044_v11 = vld [vmem:[%s15167_s26 + $0x3700] sm:$0xff]  ;;  %v3879_v12 = vcombine.high %v3877_v4, %v3877_v4 }
 0x3ef   : > { %13212 = vmatpush3.msra.mxu1 %v2058_v13  ;;  %13178 = vmatprep.subr.mxu0 %v2041_v14  ;;  %v2107_v13 = vld [vmem:[%s15167_s26 + $0x38f8] sm:$0xff] }
 0x3f0   : > { %13213 = vmatprep.subr.mxu1 %v2073_v15  ;;  %13179 = vmatpush3.msra.mxu0 %v2025_v16  ;;  %v2139_v14 = vld [vmem:[%s15167_s26 + $0x39f8] sm:$0xff] }
 0x3f1   : > { %13214 = vmatpush3.msra.mxu1 %v2057_v17  ;;  %13180 = vmatprep.subr.mxu0 %v2040_v18  ;;  %v2091_v15 = vld [vmem:[%s15167_s26 + $0x3878] sm:$0xff]  ;;  %v2106_v17 = vld [vmem:[%s15167_s26 + $0x38f0] sm:$0xff] }
 0x3f2   : > { %13215 = vmatprep.subr.mxu1 %v2072_v19  ;;  %13181 = vmatpush3.msra.mxu0 %v2024_v20  ;;  %v2123_v16 = vld [vmem:[%s15167_s26 + $0x3978] sm:$0xff]  ;;  %v2138_v18 = vld [vmem:[%s15167_s26 + $0x39f0] sm:$0xff] }
 0x3f3   : > { %13216 = vmatpush3.msra.mxu1 %v2056_v21  ;;  %13182 = vmatprep.subr.mxu0 %v2039_v22  ;;  %v2090_v19 = vld [vmem:[%s15167_s26 + $0x3870] sm:$0xff]  ;;  %v2105_v21 = vld [vmem:[%s15167_s26 + $0x38e8] sm:$0xff] }
 0x3f4   : > { %13217 = vmatprep.subr.mxu1 %v2071_v23  ;;  %13183 = vmatpush3.msra.mxu0 %v2023_v24  ;;  %v2122_v20 = vld [vmem:[%s15167_s26 + $0x3970] sm:$0xff]  ;;  %v2137_v22 = vld [vmem:[%s15167_s26 + $0x39e8] sm:$0xff] }
 0x3f5   : > { %13218 = vmatpush3.msra.mxu1 %v2055_v25  ;;  %13184 = vmatprep.subr.mxu0 %v2038_v26  ;;  %v2089_v23 = vld [vmem:[%s15167_s26 + $0x3868] sm:$0xff]  ;;  %v2104_v25 = vld [vmem:[%s15167_s26 + $0x38e0] sm:$0xff] }
 0x3f6   : > { %13219 = vmatprep.subr.mxu1 %v2070_v27  ;;  %13185 = vmatpush3.msra.mxu0 %v2022_v28  ;;  %v2121_v24 = vld [vmem:[%s15167_s26 + $0x3968] sm:$0xff]  ;;  %v2136_v26 = vld [vmem:[%s15167_s26 + $0x39e0] sm:$0xff] }
 0x3f7   : > { %13220 = vmatpush3.msra.mxu1 %v2054_v29  ;;  %13186 = vmatprep.subr.mxu0 %v2037_v30  ;;  %v2088_v27 = vld [vmem:[%s15167_s26 + $0x3860] sm:$0xff]  ;;  %v2103_v29 = vld [vmem:[%s15167_s26 + $0x38d8] sm:$0xff] }
 0x3f8   : > { %13221 = vmatprep.subr.mxu1 %v2069_v31  ;;  %13187 = vmatpush3.msra.mxu0 %v2021_v32  ;;  %v2120_v28 = vld [vmem:[%s15167_s26 + $0x3960] sm:$0xff]  ;;  %v2135_v30 = vld [vmem:[%s15167_s26 + $0x39d8] sm:$0xff] }
 0x3f9   : > { %13222 = vmatpush3.msra.mxu1 %v2053_v33  ;;  %13188 = vmatprep.subr.mxu0 %v2036_v34  ;;  %v2087_v31 = vld [vmem:[%s15167_s26 + $0x3858] sm:$0xff]  ;;  %v2102_v33 = vld [vmem:[%s15167_s26 + $0x38d0] sm:$0xff] }
 0x3fa   : > { %13223 = vmatprep.subr.mxu1 %v2068_v35  ;;  %13189 = vmatpush3.msra.mxu0 %v2020_v36  ;;  %v2119_v32 = vld [vmem:[%s15167_s26 + $0x3958] sm:$0xff]  ;;  %v2134_v34 = vld [vmem:[%s15167_s26 + $0x39d0] sm:$0xff] }
 0x3fb   : > { %13224 = vmatpush3.msra.mxu1 %v2052_v37  ;;  %13190 = vmatprep.subr.mxu0 %v2035_v38  ;;  %v2086_v35 = vld [vmem:[%s15167_s26 + $0x3850] sm:$0xff]  ;;  %v2101_v37 = vld [vmem:[%s15167_s26 + $0x38c8] sm:$0xff] }
 0x3fc   : > { %13225 = vmatprep.subr.mxu1 %v2067_v39  ;;  %13191 = vmatpush3.msra.mxu0 %v2019_v40  ;;  %v2118_v36 = vld [vmem:[%s15167_s26 + $0x3950] sm:$0xff]  ;;  %v2133_v38 = vld [vmem:[%s15167_s26 + $0x39c8] sm:$0xff] }
 0x3fd   : > { %13226 = vmatpush3.msra.mxu1 %v2051_v41  ;;  %13192 = vmatprep.subr.mxu0 %v2034_v42  ;;  %v2085_v39 = vld [vmem:[%s15167_s26 + $0x3848] sm:$0xff]  ;;  %v2100_v41 = vld [vmem:[%s15167_s26 + $0x38c0] sm:$0xff] }
 0x3fe   : > { %13227 = vmatprep.subr.mxu1 %v2066_v43  ;;  %13193 = vmatpush3.msra.mxu0 %v2018_v44  ;;  %v2117_v40 = vld [vmem:[%s15167_s26 + $0x3948] sm:$0xff]  ;;  %v2132_v42 = vld [vmem:[%s15167_s26 + $0x39c0] sm:$0xff] }
 0x3ff   : > { %13228 = vmatpush3.msra.mxu1 %v2050_v45  ;;  %13194 = vmatprep.subr.mxu0 %v2033_v46  ;;  %v2084_v43 = vld [vmem:[%s15167_s26 + $0x3840] sm:$0xff]  ;;  %v2099_v45 = vld [vmem:[%s15167_s26 + $0x38b8] sm:$0xff] }
 0x400   : > { %13229 = vmatprep.subr.mxu1 %v2065_v47  ;;  %13195 = vmatpush3.msra.mxu0 %v2017_v48  ;;  %v2116_v44 = vld [vmem:[%s15167_s26 + $0x3940] sm:$0xff]  ;;  %v2131_v46 = vld [vmem:[%s15167_s26 + $0x39b8] sm:$0xff] }
 0x401   : > { %13230 = vmatpush3.msra.mxu1 %v2049_v49  ;;  %13196 = vmatprep.subr.mxu0 %v2032_v51  ;;  %v2083_v47 = vld [vmem:[%s15167_s26 + $0x3838] sm:$0xff]  ;;  %v2098_v49 = vld [vmem:[%s15167_s26 + $0x38b0] sm:$0xff] }
 0x402   : > { %13231 = vmatprep.subr.mxu1 %v2064_v53  ;;  %13197 = vmatpush3.msra.mxu0 %v2016_v54  ;;  %v2115_v48 = vld [vmem:[%s15167_s26 + $0x3938] sm:$0xff]  ;;  %v2082_v51 = vld [vmem:[%s15167_s26 + $0x3830] sm:$0xff]  ;;  %v2097_v54 = vld [vmem:[%s15167_s26 + $0x38a8] sm:$0xff] }
 0x403   : > { %13232 = vmatpush3.msra.mxu1 %v2048_v55  ;;  %13198 = vmatprep.subr.mxu0 %v2031_v56  ;;  %v2114_v53 = vld [vmem:[%s15167_s26 + $0x3930] sm:$0xff]  ;;  %v2129_v55 = vld [vmem:[%s15167_s26 + $0x39a8] sm:$0xff] }
 0x404   : > { %13233 = vmatprep.subr.mxu1 %v2063_v57  ;;  %13199 = vmatpush3.msra.mxu0 %v2015_v59  ;;  %v2081_v56 = vld [vmem:[%s15167_s26 + $0x3828] sm:$0xff]  ;;  %v2096_v59 = vld [vmem:[%s15167_s26 + $0x38a0] sm:$0xff] }
 0x405   : > { %13234 = vmatpush3.msra.mxu1 %v2047_v60  ;;  %13200 = vmatprep.subr.mxu0 %v2030_v61  ;;  %v2113_v57 = vld [vmem:[%s15167_s26 + $0x3928] sm:$0xff]  ;;  %v2128_v60 = vld [vmem:[%s15167_s26 + $0x39a0] sm:$0xff] }
 0x406   : > { %13235 = vmatprep.subr.mxu1 %v2062_v62  ;;  %13201 = vmatpush3.msra.mxu0 %v2014_v0  ;;  %v2080_v61 = vld [vmem:[%s15167_s26 + $0x3820] sm:$0xff]  ;;  %v2127_v0 = vld [vmem:[%s15167_s26 + $0x3998] sm:$0xff] }
 0x407   : > { %13236 = vmatpush3.msra.mxu1 %v2046_v1  ;;  %13202 = vmatprep.subr.mxu0 %v2029_v2  ;;  %v2112_v62 = vld [vmem:[%s15167_s26 + $0x3920] sm:$0xff]  ;;  %v3880_v1 = vcombine.high %v264_v58, %v264_v58  ;;  %v2079_v2 = vld [vmem:[%s15167_s26 + $0x3818] sm:$0xff] }
 0x408   : > { %13237 = vmatprep.subr.mxu1 %v2061_v3  ;;  %13203 = vmatpush3.msra.mxu0 %v2013_v5  ;;  %v2111_v3 = vld [vmem:[%s15167_s26 + $0x3918] sm:$0xff]  ;;  %v2126_v5 = vld [vmem:[%s15167_s26 + $0x3990] sm:$0xff] }
 0x409   : > { %13238 = vmatpush3.msra.mxu1 %v2045_v6  ;;  %13204 = vmatprep.subr.mxu0 %v2028_v7  ;;  %v3887_v6 = vrot.slane %v264_v58, %v15226_v52  ;;  %v2078_v7 = vld [vmem:[%s15167_s26 + $0x3810] sm:$0xff] }
 0x40a   : > { %13239 = vmatprep.subr.mxu1 %v2060_v8  ;;  %13205 = vmatpush3.msra.mxu0 %v2012_v10  ;;  %v2110_v8 = vld [vmem:[%s15167_s26 + $0x3910] sm:$0xff]  ;;  %v2125_v10 = vld [vmem:[%s15167_s26 + $0x3988] sm:$0xff] }
 0x40b   : > { %8256 = vmatprep.mubr.f32.mxu0 %v3878_v9  ;;  %13240 = vmatpush3.msra.mxu1 %v2044_v11  ;;  %v2093_v9 = vld [vmem:[%s15167_s26 + $0x3888] sm:$0xff]  ;;  %v3894_v11 = vrot.slane %v3880_v1, %v15226_v52  ;;  %v2194_v58 = vld [vmem:[%s15167_s26 + $0x3bb0] sm:$0xff] }
 0x40c   : > { %8257 = vmatmul.mubr.f32.vlgmr.msra.gmra.mxu0 %v3870_v63  ;;  %8326 = vmatprep.mubr.f32.mxu1 %v3879_v12  ;;  %v2095_v63 = vld [vmem:[%s15167_s26 + $0x3898] sm:$0xff]  ;;  %v2077_v12 = vld [vmem:[%s15167_s26 + $0x3808] sm:$0xff] }
 0x40d   : > { %13244 = vmatprep.subr.mxu0 %v2107_v13  ;;  %13279 = vmatprep.subr.mxu1 %v2139_v14  ;;  %v2109_v13 = vld [vmem:[%s15167_s26 + $0x3908] sm:$0xff]  ;;  %v2092_v14 = vld [vmem:[%s15167_s26 + $0x3880] sm:$0xff] }
 0x40e   : > { %8327 = vmatmul.mubr.f32.vlgmr.msra.gmra.mxu1 %v3877_v4  ;;  %13245 = vmatpush3.msra.mxu0 %v2091_v15  ;;  %v2094_v4 = vld [vmem:[%s15167_s26 + $0x3890] sm:$0xff]  ;;  %v2124_v15 = vld [vmem:[%s15167_s26 + $0x3980] sm:$0xff]  ;;  %v265_v1 = vld [vmem:[%s15161_s29 + $0xe8] sm:$0xff] }
 0x40f   : > { %13280 = vmatpush3.msra.mxu1 %v2123_v16  ;;  %13246 = vmatprep.subr.mxu0 %v2106_v17  ;;  %v3895_v16 = vcombine.high %v3887_v6, %v3887_v6  ;;  %v2076_v17 = vld [vmem:[%s15167_s26 + $0x3800] sm:$0xff] }
 0x410   : > { %13281 = vmatprep.subr.mxu1 %v2138_v18  ;;  %13247 = vmatpush3.msra.mxu0 %v2090_v19  ;;  %v2108_v18 = vld [vmem:[%s15167_s26 + $0x3900] sm:$0xff]  ;;  %v3896_v19 = vcombine.high %v3894_v11, %v3894_v11 }
 0x411   : > { %13282 = vmatpush3.msra.mxu1 %v2122_v20  ;;  %13248 = vmatprep.subr.mxu0 %v2105_v21  ;;  %v2171_v20 = vld [vmem:[%s15167_s26 + $0x3af8] sm:$0xff] }
 0x412   : > { %13283 = vmatprep.subr.mxu1 %v2137_v22  ;;  %13249 = vmatpush3.msra.mxu0 %v2089_v23  ;;  %v2203_v21 = vld [vmem:[%s15167_s26 + $0x3bf8] sm:$0xff] }
 0x413   : > { %13284 = vmatpush3.msra.mxu1 %v2121_v24  ;;  %13250 = vmatprep.subr.mxu0 %v2104_v25  ;;  %v2155_v22 = vld [vmem:[%s15167_s26 + $0x3a78] sm:$0xff]  ;;  %v2170_v24 = vld [vmem:[%s15167_s26 + $0x3af0] sm:$0xff] }
 0x414   : > { %13285 = vmatprep.subr.mxu1 %v2136_v26  ;;  %13251 = vmatpush3.msra.mxu0 %v2088_v27  ;;  %v2187_v23 = vld [vmem:[%s15167_s26 + $0x3b78] sm:$0xff]  ;;  %v2202_v25 = vld [vmem:[%s15167_s26 + $0x3bf0] sm:$0xff] }
 0x415   : > { %13286 = vmatpush3.msra.mxu1 %v2120_v28  ;;  %13252 = vmatprep.subr.mxu0 %v2103_v29  ;;  %v2154_v26 = vld [vmem:[%s15167_s26 + $0x3a70] sm:$0xff]  ;;  %v2169_v28 = vld [vmem:[%s15167_s26 + $0x3ae8] sm:$0xff] }
 0x416   : > { %13287 = vmatprep.subr.mxu1 %v2135_v30  ;;  %13253 = vmatpush3.msra.mxu0 %v2087_v31  ;;  %v2186_v27 = vld [vmem:[%s15167_s26 + $0x3b70] sm:$0xff]  ;;  %v2201_v29 = vld [vmem:[%s15167_s26 + $0x3be8] sm:$0xff] }
 0x417   : > { %13288 = vmatpush3.msra.mxu1 %v2119_v32  ;;  %13254 = vmatprep.subr.mxu0 %v2102_v33  ;;  %v2153_v30 = vld [vmem:[%s15167_s26 + $0x3a68] sm:$0xff]  ;;  %v2168_v32 = vld [vmem:[%s15167_s26 + $0x3ae0] sm:$0xff] }
 0x418   : > { %13289 = vmatprep.subr.mxu1 %v2134_v34  ;;  %13255 = vmatpush3.msra.mxu0 %v2086_v35  ;;  %v2185_v31 = vld [vmem:[%s15167_s26 + $0x3b68] sm:$0xff]  ;;  %v2200_v33 = vld [vmem:[%s15167_s26 + $0x3be0] sm:$0xff] }
 0x419   : > { %13290 = vmatpush3.msra.mxu1 %v2118_v36  ;;  %13256 = vmatprep.subr.mxu0 %v2101_v37  ;;  %v2152_v34 = vld [vmem:[%s15167_s26 + $0x3a60] sm:$0xff]  ;;  %v2167_v36 = vld [vmem:[%s15167_s26 + $0x3ad8] sm:$0xff] }
 0x41a   : > { %13291 = vmatprep.subr.mxu1 %v2133_v38  ;;  %13257 = vmatpush3.msra.mxu0 %v2085_v39  ;;  %v2184_v35 = vld [vmem:[%s15167_s26 + $0x3b60] sm:$0xff]  ;;  %v2199_v37 = vld [vmem:[%s15167_s26 + $0x3bd8] sm:$0xff] }
 0x41b   : > { %13292 = vmatpush3.msra.mxu1 %v2117_v40  ;;  %13258 = vmatprep.subr.mxu0 %v2100_v41  ;;  %v2151_v38 = vld [vmem:[%s15167_s26 + $0x3a58] sm:$0xff]  ;;  %v2166_v40 = vld [vmem:[%s15167_s26 + $0x3ad0] sm:$0xff] }
 0x41c   : > { %13293 = vmatprep.subr.mxu1 %v2132_v42  ;;  %13259 = vmatpush3.msra.mxu0 %v2084_v43  ;;  %v2183_v39 = vld [vmem:[%s15167_s26 + $0x3b58] sm:$0xff]  ;;  %v2198_v41 = vld [vmem:[%s15167_s26 + $0x3bd0] sm:$0xff] }
 0x41d   : > { %13294 = vmatpush3.msra.mxu1 %v2116_v44  ;;  %13260 = vmatprep.subr.mxu0 %v2099_v45  ;;  %v2150_v42 = vld [vmem:[%s15167_s26 + $0x3a50] sm:$0xff]  ;;  %v2165_v44 = vld [vmem:[%s15167_s26 + $0x3ac8] sm:$0xff] }
 0x41e   : > { %13295 = vmatprep.subr.mxu1 %v2131_v46  ;;  %13261 = vmatpush3.msra.mxu0 %v2083_v47  ;;  %v2182_v43 = vld [vmem:[%s15167_s26 + $0x3b50] sm:$0xff]  ;;  %v2197_v45 = vld [vmem:[%s15167_s26 + $0x3bc8] sm:$0xff] }
 0x41f   : > { %13296 = vmatpush3.msra.mxu1 %v2115_v48  ;;  %13262 = vmatprep.subr.mxu0 %v2098_v49  ;;  %v2149_v46 = vld [vmem:[%s15167_s26 + $0x3a48] sm:$0xff]  ;;  %v2164_v48 = vld [vmem:[%s15167_s26 + $0x3ac0] sm:$0xff] }
 0x420   : > { %13297 = vmatprep.subr.mxu1 %v2130_v50  ;;  %13263 = vmatpush3.msra.mxu0 %v2082_v51  ;;  %v2181_v47 = vld [vmem:[%s15167_s26 + $0x3b48] sm:$0xff]  ;;  %v2196_v49 = vld [vmem:[%s15167_s26 + $0x3bc0] sm:$0xff] }
 0x421   : > { %13298 = vmatpush3.msra.mxu1 %v2114_v53  ;;  %13264 = vmatprep.subr.mxu0 %v2097_v54  ;;  %v2148_v50 = vld [vmem:[%s15167_s26 + $0x3a40] sm:$0xff]  ;;  %v2163_v53 = vld [vmem:[%s15167_s26 + $0x3ab8] sm:$0xff] }
 0x422   : > { %13299 = vmatprep.subr.mxu1 %v2129_v55  ;;  %13265 = vmatpush3.msra.mxu0 %v2081_v56  ;;  %v2180_v51 = vld [vmem:[%s15167_s26 + $0x3b40] sm:$0xff]  ;;  %v2195_v54 = vld [vmem:[%s15167_s26 + $0x3bb8] sm:$0xff] }
 0x423   : > { %13300 = vmatpush3.msra.mxu1 %v2113_v57  ;;  %13266 = vmatprep.subr.mxu0 %v2096_v59  ;;  %v2147_v55 = vld [vmem:[%s15167_s26 + $0x3a38] sm:$0xff]  ;;  %v2162_v57 = vld [vmem:[%s15167_s26 + $0x3ab0] sm:$0xff] }
 0x424   : > { %13301 = vmatprep.subr.mxu1 %v2128_v60  ;;  %13267 = vmatpush3.msra.mxu0 %v2080_v61  ;;  %v2179_v56 = vld [vmem:[%s15167_s26 + $0x3b38] sm:$0xff]  ;;  %v2146_v59 = vld [vmem:[%s15167_s26 + $0x3a30] sm:$0xff]  ;;  %v2161_v61 = vld [vmem:[%s15167_s26 + $0x3aa8] sm:$0xff] }
 0x425   : > { %13302 = vmatpush3.msra.mxu1 %v2112_v62  ;;  %13268 = vmatprep.subr.mxu0 %v2095_v63  ;;  %v2178_v60 = vld [vmem:[%s15167_s26 + $0x3b30] sm:$0xff]  ;;  %v2193_v62 = vld [vmem:[%s15167_s26 + $0x3ba8] sm:$0xff] }
 0x426   : > { %13303 = vmatprep.subr.mxu1 %v2127_v0  ;;  %13269 = vmatpush3.msra.mxu0 %v2079_v2  ;;  %v2145_v63 = vld [vmem:[%s15167_s26 + $0x3a28] sm:$0xff]  ;;  %v2160_v2 = vld [vmem:[%s15167_s26 + $0x3aa0] sm:$0xff] }
 0x427   : > { %13304 = vmatpush3.msra.mxu1 %v2111_v3  ;;  %13270 = vmatprep.subr.mxu0 %v2094_v4  ;;  %v2177_v0 = vld [vmem:[%s15167_s26 + $0x3b28] sm:$0xff]  ;;  %v2192_v3 = vld [vmem:[%s15167_s26 + $0x3ba0] sm:$0xff] }
 0x428   : > { %13305 = vmatprep.subr.mxu1 %v2126_v5  ;;  %13271 = vmatpush3.msra.mxu0 %v2078_v7  ;;  %v2144_v4 = vld [vmem:[%s15167_s26 + $0x3a20] sm:$0xff]  ;;  %v2191_v7 = vld [vmem:[%s15167_s26 + $0x3b98] sm:$0xff] }
 0x429   : > { %13306 = vmatpush3.msra.mxu1 %v2110_v8  ;;  %13272 = vmatprep.subr.mxu0 %v2093_v9  ;;  %v2176_v5 = vld [vmem:[%s15167_s26 + $0x3b20] sm:$0xff]  ;;  %v3897_v8 = vcombine.high %v265_v1, %v265_v1  ;;  %v2143_v9 = vld [vmem:[%s15167_s26 + $0x3a18] sm:$0xff] }
 0x42a   : > { %13307 = vmatprep.subr.mxu1 %v2125_v10  ;;  %13273 = vmatpush3.msra.mxu0 %v2077_v12  ;;  %v2175_v10 = vld [vmem:[%s15167_s26 + $0x3b18] sm:$0xff]  ;;  %v2190_v12 = vld [vmem:[%s15167_s26 + $0x3b90] sm:$0xff] }
 0x42b   : > { %13308 = vmatpush3.msra.mxu1 %v2109_v13  ;;  %13274 = vmatprep.subr.mxu0 %v2092_v14  ;;  %v3904_v13 = vrot.slane %v265_v1, %v15226_v52  ;;  %v2142_v14 = vld [vmem:[%s15167_s26 + $0x3a10] sm:$0xff] }
 0x42c   : > { %13309 = vmatprep.subr.mxu1 %v2124_v15  ;;  %13275 = vmatpush3.msra.mxu0 %v2076_v17  ;;  %v2174_v15 = vld [vmem:[%s15167_s26 + $0x3b10] sm:$0xff]  ;;  %v2189_v17 = vld [vmem:[%s15167_s26 + $0x3b88] sm:$0xff] }
 0x42d   : > { %8396 = vmatprep.mubr.f32.mxu0 %v3895_v16  ;;  %13310 = vmatpush3.msra.mxu1 %v2108_v18  ;;  %v2157_v16 = vld [vmem:[%s15167_s26 + $0x3a88] sm:$0xff]  ;;  %v3911_v18 = vrot.slane %v3897_v8, %v15226_v52  ;;  %v2258_v1 = vld [vmem:[%s15167_s26 + $0x3db0] sm:$0xff] }
 0x42e   : > { %8397 = vmatmul.mubr.f32.vlgmr.msra.gmra.mxu0 %v3887_v6  ;;  %8466 = vmatprep.mubr.f32.mxu1 %v3896_v19  ;;  %v2159_v6 = vld [vmem:[%s15167_s26 + $0x3a98] sm:$0xff]  ;;  %v2141_v19 = vld [vmem:[%s15167_s26 + $0x3a08] sm:$0xff]  ;;  %v266_v8 = vld [vmem:[%s15161_s29 + $0xf0] sm:$0xff] }
 0x42f   : > { %13314 = vmatprep.subr.mxu0 %v2171_v20  ;;  %13349 = vmatprep.subr.mxu1 %v2203_v21  ;;  %v2173_v20 = vld [vmem:[%s15167_s26 + $0x3b08] sm:$0xff]  ;;  %v2156_v21 = vld [vmem:[%s15167_s26 + $0x3a80] sm:$0xff] }
 0x430   : > { %8467 = vmatmul.mubr.f32.vlgmr.msra.gmra.mxu1 %v3894_v11  ;;  %13315 = vmatpush3.msra.mxu0 %v2155_v22  ;;  %v2158_v11 = vld [vmem:[%s15167_s26 + $0x3a90] sm:$0xff]  ;;  %v2188_v22 = vld [vmem:[%s15167_s26 + $0x3b80] sm:$0xff] }
 0x431   : > { %13350 = vmatpush3.msra.mxu1 %v2187_v23  ;;  %13316 = vmatprep.subr.mxu0 %v2170_v24  ;;  %v3912_v23 = vcombine.high %v3904_v13, %v3904_v13  ;;  %v2140_v24 = vld [vmem:[%s15167_s26 + $0x3a00] sm:$0xff] }
 0x432   : > { %13351 = vmatprep.subr.mxu1 %v2202_v25  ;;  %13317 = vmatpush3.msra.mxu0 %v2154_v26  ;;  %v2172_v25 = vld [vmem:[%s15167_s26 + $0x3b00] sm:$0xff]  ;;  %v3913_v26 = vcombine.high %v3911_v18, %v3911_v18 }
 0x433   : > { %13352 = vmatpush3.msra.mxu1 %v2186_v27  ;;  %13318 = vmatprep.subr.mxu0 %v2169_v28  ;;  %v2235_v27 = vld [vmem:[%s15167_s26 + $0x3cf8] sm:$0xff] }
 0x434   : > { %13353 = vmatprep.subr.mxu1 %v2201_v29  ;;  %13319 = vmatpush3.msra.mxu0 %v2153_v30  ;;  %v2267_v28 = vld [vmem:[%s15167_s26 + $0x3df8] sm:$0xff] }
 0x435   : > { %13354 = vmatpush3.msra.mxu1 %v2185_v31  ;;  %13320 = vmatprep.subr.mxu0 %v2168_v32  ;;  %v2219_v29 = vld [vmem:[%s15167_s26 + $0x3c78] sm:$0xff]  ;;  %v2234_v31 = vld [vmem:[%s15167_s26 + $0x3cf0] sm:$0xff] }
 0x436   : > { %13355 = vmatprep.subr.mxu1 %v2200_v33  ;;  %13321 = vmatpush3.msra.mxu0 %v2152_v34  ;;  %v2251_v30 = vld [vmem:[%s15167_s26 + $0x3d78] sm:$0xff]  ;;  %v2266_v32 = vld [vmem:[%s15167_s26 + $0x3df0] sm:$0xff] }
 0x437   : > { %13356 = vmatpush3.msra.mxu1 %v2184_v35  ;;  %13322 = vmatprep.subr.mxu0 %v2167_v36  ;;  %v2218_v33 = vld [vmem:[%s15167_s26 + $0x3c70] sm:$0xff]  ;;  %v2233_v35 = vld [vmem:[%s15167_s26 + $0x3ce8] sm:$0xff] }
 0x438   : > { %13357 = vmatprep.subr.mxu1 %v2199_v37  ;;  %13323 = vmatpush3.msra.mxu0 %v2151_v38  ;;  %v2250_v34 = vld [vmem:[%s15167_s26 + $0x3d70] sm:$0xff]  ;;  %v2265_v36 = vld [vmem:[%s15167_s26 + $0x3de8] sm:$0xff] }
 0x439   : > { %13358 = vmatpush3.msra.mxu1 %v2183_v39  ;;  %13324 = vmatprep.subr.mxu0 %v2166_v40  ;;  %v2217_v37 = vld [vmem:[%s15167_s26 + $0x3c68] sm:$0xff]  ;;  %v2232_v39 = vld [vmem:[%s15167_s26 + $0x3ce0] sm:$0xff] }
 0x43a   : > { %13359 = vmatprep.subr.mxu1 %v2198_v41  ;;  %13325 = vmatpush3.msra.mxu0 %v2150_v42  ;;  %v2249_v38 = vld [vmem:[%s15167_s26 + $0x3d68] sm:$0xff]  ;;  %v2264_v40 = vld [vmem:[%s15167_s26 + $0x3de0] sm:$0xff] }
 0x43b   : > { %13360 = vmatpush3.msra.mxu1 %v2182_v43  ;;  %13326 = vmatprep.subr.mxu0 %v2165_v44  ;;  %v2216_v41 = vld [vmem:[%s15167_s26 + $0x3c60] sm:$0xff]  ;;  %v2231_v43 = vld [vmem:[%s15167_s26 + $0x3cd8] sm:$0xff] }
 0x43c   : > { %13361 = vmatprep.subr.mxu1 %v2197_v45  ;;  %13327 = vmatpush3.msra.mxu0 %v2149_v46  ;;  %v2248_v42 = vld [vmem:[%s15167_s26 + $0x3d60] sm:$0xff]  ;;  %v2263_v44 = vld [vmem:[%s15167_s26 + $0x3dd8] sm:$0xff] }
 0x43d   : > { %13362 = vmatpush3.msra.mxu1 %v2181_v47  ;;  %13328 = vmatprep.subr.mxu0 %v2164_v48  ;;  %v2215_v45 = vld [vmem:[%s15167_s26 + $0x3c58] sm:$0xff]  ;;  %v2230_v47 = vld [vmem:[%s15167_s26 + $0x3cd0] sm:$0xff] }
 0x43e   : > { %13363 = vmatprep.subr.mxu1 %v2196_v49  ;;  %13329 = vmatpush3.msra.mxu0 %v2148_v50  ;;  %v2247_v46 = vld [vmem:[%s15167_s26 + $0x3d58] sm:$0xff]  ;;  %v2262_v48 = vld [vmem:[%s15167_s26 + $0x3dd0] sm:$0xff] }
 0x43f   : > { %13364 = vmatpush3.msra.mxu1 %v2180_v51  ;;  %13330 = vmatprep.subr.mxu0 %v2163_v53  ;;  %v2214_v49 = vld [vmem:[%s15167_s26 + $0x3c50] sm:$0xff]  ;;  %v2229_v51 = vld [vmem:[%s15167_s26 + $0x3cc8] sm:$0xff] }
 0x440   : > { %13365 = vmatprep.subr.mxu1 %v2195_v54  ;;  %13331 = vmatpush3.msra.mxu0 %v2147_v55  ;;  %v2246_v50 = vld [vmem:[%s15167_s26 + $0x3d50] sm:$0xff]  ;;  %v2261_v53 = vld [vmem:[%s15167_s26 + $0x3dc8] sm:$0xff] }
 0x441   : > { %13366 = vmatpush3.msra.mxu1 %v2179_v56  ;;  %13332 = vmatprep.subr.mxu0 %v2162_v57  ;;  %v2213_v54 = vld [vmem:[%s15167_s26 + $0x3c48] sm:$0xff]  ;;  %v2228_v56 = vld [vmem:[%s15167_s26 + $0x3cc0] sm:$0xff] }
 0x442   : > { %13367 = vmatprep.subr.mxu1 %v2194_v58  ;;  %13333 = vmatpush3.msra.mxu0 %v2146_v59  ;;  %v2245_v55 = vld [vmem:[%s15167_s26 + $0x3d48] sm:$0xff]  ;;  %v2260_v57 = vld [vmem:[%s15167_s26 + $0x3dc0] sm:$0xff] }
 0x443   : > { %13368 = vmatpush3.msra.mxu1 %v2178_v60  ;;  %13334 = vmatprep.subr.mxu0 %v2161_v61  ;;  %v2212_v58 = vld [vmem:[%s15167_s26 + $0x3c40] sm:$0xff]  ;;  %v2227_v60 = vld [vmem:[%s15167_s26 + $0x3cb8] sm:$0xff] }
 0x444   : > { %13369 = vmatprep.subr.mxu1 %v2193_v62  ;;  %13335 = vmatpush3.msra.mxu0 %v2145_v63  ;;  %v2244_v59 = vld [vmem:[%s15167_s26 + $0x3d40] sm:$0xff]  ;;  %v2259_v61 = vld [vmem:[%s15167_s26 + $0x3db8] sm:$0xff] }
 0x445   : > { %13370 = vmatpush3.msra.mxu1 %v2177_v0  ;;  %13336 = vmatprep.subr.mxu0 %v2160_v2  ;;  %v2211_v62 = vld [vmem:[%s15167_s26 + $0x3c38] sm:$0xff]  ;;  %v2226_v0 = vld [vmem:[%s15167_s26 + $0x3cb0] sm:$0xff] }
 0x446   : > { %13371 = vmatprep.subr.mxu1 %v2192_v3  ;;  %13337 = vmatpush3.msra.mxu0 %v2144_v4  ;;  %v2243_v63 = vld [vmem:[%s15167_s26 + $0x3d38] sm:$0xff]  ;;  %v2210_v2 = vld [vmem:[%s15167_s26 + $0x3c30] sm:$0xff]  ;;  %v2225_v4 = vld [vmem:[%s15167_s26 + $0x3ca8] sm:$0xff] }
 0x447   : > { %13372 = vmatpush3.msra.mxu1 %v2176_v5  ;;  %13338 = vmatprep.subr.mxu0 %v2159_v6  ;;  %v2242_v3 = vld [vmem:[%s15167_s26 + $0x3d30] sm:$0xff]  ;;  %v2257_v5 = vld [vmem:[%s15167_s26 + $0x3da8] sm:$0xff] }
 0x448   : > { %13373 = vmatprep.subr.mxu1 %v2191_v7  ;;  %13339 = vmatpush3.msra.mxu0 %v2143_v9  ;;  %v2209_v6 = vld [vmem:[%s15167_s26 + $0x3c28] sm:$0xff]  ;;  %v2224_v9 = vld [vmem:[%s15167_s26 + $0x3ca0] sm:$0xff] }
 0x449   : > { %13374 = vmatpush3.msra.mxu1 %v2175_v10  ;;  %13340 = vmatprep.subr.mxu0 %v2158_v11  ;;  %v2241_v7 = vld [vmem:[%s15167_s26 + $0x3d28] sm:$0xff]  ;;  %v2256_v10 = vld [vmem:[%s15167_s26 + $0x3da0] sm:$0xff] }
 0x44a   : > { %13375 = vmatprep.subr.mxu1 %v2190_v12  ;;  %13341 = vmatpush3.msra.mxu0 %v2142_v14  ;;  %v2208_v11 = vld [vmem:[%s15167_s26 + $0x3c20] sm:$0xff]  ;;  %v2255_v14 = vld [vmem:[%s15167_s26 + $0x3d98] sm:$0xff] }
 0x44b   : > { %13376 = vmatpush3.msra.mxu1 %v2174_v15  ;;  %13342 = vmatprep.subr.mxu0 %v2157_v16  ;;  %v2240_v12 = vld [vmem:[%s15167_s26 + $0x3d20] sm:$0xff]  ;;  %v3914_v15 = vcombine.high %v266_v8, %v266_v8  ;;  %v2207_v16 = vld [vmem:[%s15167_s26 + $0x3c18] sm:$0xff] }
 0x44c   : > { %13377 = vmatprep.subr.mxu1 %v2189_v17  ;;  %13343 = vmatpush3.msra.mxu0 %v2141_v19  ;;  %v2239_v17 = vld [vmem:[%s15167_s26 + $0x3d18] sm:$0xff]  ;;  %v2254_v19 = vld [vmem:[%s15167_s26 + $0x3d90] sm:$0xff] }
 0x44d   : > { %13378 = vmatpush3.msra.mxu1 %v2173_v20  ;;  %13344 = vmatprep.subr.mxu0 %v2156_v21  ;;  %v3921_v20 = vrot.slane %v266_v8, %v15226_v52  ;;  %v2206_v21 = vld [vmem:[%s15167_s26 + $0x3c10] sm:$0xff] }
 0x44e   : > { %13379 = vmatprep.subr.mxu1 %v2188_v22  ;;  %13345 = vmatpush3.msra.mxu0 %v2140_v24  ;;  %v2238_v22 = vld [vmem:[%s15167_s26 + $0x3d10] sm:$0xff]  ;;  %v2253_v24 = vld [vmem:[%s15167_s26 + $0x3d88] sm:$0xff] }
 0x44f   : > { %8536 = vmatprep.mubr.f32.mxu0 %v3912_v23  ;;  %13380 = vmatpush3.msra.mxu1 %v2172_v25  ;;  %v2221_v23 = vld [vmem:[%s15167_s26 + $0x3c88] sm:$0xff]  ;;  %v3928_v25 = vrot.slane %v3914_v15, %v15226_v52  ;;  %v2322_v8 = vld [vmem:[%s15167_s26 + $0x3fb0] sm:$0xff]  ;;  %v267_v15 = vld [vmem:[%s15161_s29 + $0xf8] sm:$0xff] }
 0x450   : > { %8537 = vmatmul.mubr.f32.vlgmr.msra.gmra.mxu0 %v3904_v13  ;;  %8606 = vmatprep.mubr.f32.mxu1 %v3913_v26  ;;  %v2223_v13 = vld [vmem:[%s15167_s26 + $0x3c98] sm:$0xff]  ;;  %v2205_v26 = vld [vmem:[%s15167_s26 + $0x3c08] sm:$0xff] }
 0x451   : > { %13384 = vmatprep.subr.mxu0 %v2235_v27  ;;  %13419 = vmatprep.subr.mxu1 %v2267_v28  ;;  %v2237_v27 = vld [vmem:[%s15167_s26 + $0x3d08] sm:$0xff]  ;;  %v2220_v28 = vld [vmem:[%s15167_s26 + $0x3c80] sm:$0xff] }
 0x452   : > { %8607 = vmatmul.mubr.f32.vlgmr.msra.gmra.mxu1 %v3911_v18  ;;  %13385 = vmatpush3.msra.mxu0 %v2219_v29  ;;  %v2222_v18 = vld [vmem:[%s15167_s26 + $0x3c90] sm:$0xff]  ;;  %v2252_v29 = vld [vmem:[%s15167_s26 + $0x3d80] sm:$0xff] }
 0x453   : > { %13420 = vmatpush3.msra.mxu1 %v2251_v30  ;;  %13386 = vmatprep.subr.mxu0 %v2234_v31  ;;  %v3929_v30 = vcombine.high %v3921_v20, %v3921_v20  ;;  %v2204_v31 = vld [vmem:[%s15167_s26 + $0x3c00] sm:$0xff] }
 0x454   : > { %13421 = vmatprep.subr.mxu1 %v2266_v32  ;;  %13387 = vmatpush3.msra.mxu0 %v2218_v33  ;;  %v2236_v32 = vld [vmem:[%s15167_s26 + $0x3d00] sm:$0xff]  ;;  %v3930_v33 = vcombine.high %v3928_v25, %v3928_v25 }
 0x455   : > { %13422 = vmatpush3.msra.mxu1 %v2250_v34  ;;  %13388 = vmatprep.subr.mxu0 %v2233_v35  ;;  %v2299_v34 = vld [vmem:[%s15167_s26 + $0x3ef8] sm:$0xff] }
 0x456   : > { %13423 = vmatprep.subr.mxu1 %v2265_v36  ;;  %13389 = vmatpush3.msra.mxu0 %v2217_v37  ;;  %v2331_v35 = vld [vmem:[%s15167_s26 + $0x3ff8] sm:$0xff] }
 0x457   : > { %13424 = vmatpush3.msra.mxu1 %v2249_v38  ;;  %13390 = vmatprep.subr.mxu0 %v2232_v39  ;;  %v2283_v36 = vld [vmem:[%s15167_s26 + $0x3e78] sm:$0xff]  ;;  %v2298_v38 = vld [vmem:[%s15167_s26 + $0x3ef0] sm:$0xff] }
 0x458   : > { %13425 = vmatprep.subr.mxu1 %v2264_v40  ;;  %13391 = vmatpush3.msra.mxu0 %v2216_v41  ;;  %v2315_v37 = vld [vmem:[%s15167_s26 + $0x3f78] sm:$0xff]  ;;  %v2330_v39 = vld [vmem:[%s15167_s26 + $0x3ff0] sm:$0xff] }
 0x459   : > { %13426 = vmatpush3.msra.mxu1 %v2248_v42  ;;  %13392 = vmatprep.subr.mxu0 %v2231_v43  ;;  %v2282_v40 = vld [vmem:[%s15167_s26 + $0x3e70] sm:$0xff]  ;;  %v2297_v42 = vld [vmem:[%s15167_s26 + $0x3ee8] sm:$0xff] }
 0x45a   : > { %13427 = vmatprep.subr.mxu1 %v2263_v44  ;;  %13393 = vmatpush3.msra.mxu0 %v2215_v45  ;;  %v2314_v41 = vld [vmem:[%s15167_s26 + $0x3f70] sm:$0xff]  ;;  %v2329_v43 = vld [vmem:[%s15167_s26 + $0x3fe8] sm:$0xff] }
 0x45b   : > { %13428 = vmatpush3.msra.mxu1 %v2247_v46  ;;  %13394 = vmatprep.subr.mxu0 %v2230_v47  ;;  %v2281_v44 = vld [vmem:[%s15167_s26 + $0x3e68] sm:$0xff]  ;;  %v2296_v46 = vld [vmem:[%s15167_s26 + $0x3ee0] sm:$0xff] }
 0x45c   : > { %13429 = vmatprep.subr.mxu1 %v2262_v48  ;;  %13395 = vmatpush3.msra.mxu0 %v2214_v49  ;;  %v2313_v45 = vld [vmem:[%s15167_s26 + $0x3f68] sm:$0xff]  ;;  %v2328_v47 = vld [vmem:[%s15167_s26 + $0x3fe0] sm:$0xff] }
 0x45d   : > { %13430 = vmatpush3.msra.mxu1 %v2246_v50  ;;  %13396 = vmatprep.subr.mxu0 %v2229_v51  ;;  %v2280_v48 = vld [vmem:[%s15167_s26 + $0x3e60] sm:$0xff]  ;;  %v2295_v50 = vld [vmem:[%s15167_s26 + $0x3ed8] sm:$0xff] }
 0x45e   : > { %13431 = vmatprep.subr.mxu1 %v2261_v53  ;;  %13397 = vmatpush3.msra.mxu0 %v2213_v54  ;;  %v2312_v49 = vld [vmem:[%s15167_s26 + $0x3f60] sm:$0xff]  ;;  %v2327_v51 = vld [vmem:[%s15167_s26 + $0x3fd8] sm:$0xff] }
 0x45f   : > { %13432 = vmatpush3.msra.mxu1 %v2245_v55  ;;  %13398 = vmatprep.subr.mxu0 %v2228_v56  ;;  %v2279_v53 = vld [vmem:[%s15167_s26 + $0x3e58] sm:$0xff]  ;;  %v2294_v55 = vld [vmem:[%s15167_s26 + $0x3ed0] sm:$0xff] }
 0x460   : > { %13433 = vmatprep.subr.mxu1 %v2260_v57  ;;  %13399 = vmatpush3.msra.mxu0 %v2212_v58  ;;  %v2311_v54 = vld [vmem:[%s15167_s26 + $0x3f58] sm:$0xff]  ;;  %v2326_v56 = vld [vmem:[%s15167_s26 + $0x3fd0] sm:$0xff] }
 0x461   : > { %13434 = vmatpush3.msra.mxu1 %v2244_v59  ;;  %13400 = vmatprep.subr.mxu0 %v2227_v60  ;;  %v2278_v57 = vld [vmem:[%s15167_s26 + $0x3e50] sm:$0xff]  ;;  %v2293_v59 = vld [vmem:[%s15167_s26 + $0x3ec8] sm:$0xff] }
 0x462   : > { %13435 = vmatprep.subr.mxu1 %v2259_v61  ;;  %13401 = vmatpush3.msra.mxu0 %v2211_v62  ;;  %v2310_v58 = vld [vmem:[%s15167_s26 + $0x3f50] sm:$0xff]  ;;  %v2325_v60 = vld [vmem:[%s15167_s26 + $0x3fc8] sm:$0xff] }
 0x463   : > { %13436 = vmatpush3.msra.mxu1 %v2243_v63  ;;  %13402 = vmatprep.subr.mxu0 %v2226_v0  ;;  %v2277_v61 = vld [vmem:[%s15167_s26 + $0x3e48] sm:$0xff]  ;;  %v2292_v63 = vld [vmem:[%s15167_s26 + $0x3ec0] sm:$0xff] }
 0x464   : > { %13437 = vmatprep.subr.mxu1 %v2258_v1  ;;  %13403 = vmatpush3.msra.mxu0 %v2210_v2  ;;  %v2309_v62 = vld [vmem:[%s15167_s26 + $0x3f48] sm:$0xff]  ;;  %v2324_v0 = vld [vmem:[%s15167_s26 + $0x3fc0] sm:$0xff] }
 0x465   : > { %13438 = vmatpush3.msra.mxu1 %v2242_v3  ;;  %13404 = vmatprep.subr.mxu0 %v2225_v4  ;;  %v2276_v1 = vld [vmem:[%s15167_s26 + $0x3e40] sm:$0xff]  ;;  %v2291_v3 = vld [vmem:[%s15167_s26 + $0x3eb8] sm:$0xff] }
 0x466   : > { %13439 = vmatprep.subr.mxu1 %v2257_v5  ;;  %13405 = vmatpush3.msra.mxu0 %v2209_v6  ;;  %v2308_v2 = vld [vmem:[%s15167_s26 + $0x3f40] sm:$0xff]  ;;  %v2323_v4 = vld [vmem:[%s15167_s26 + $0x3fb8] sm:$0xff] }
 0x467   : > { %13440 = vmatpush3.msra.mxu1 %v2241_v7  ;;  %13406 = vmatprep.subr.mxu0 %v2224_v9  ;;  %v2275_v5 = vld [vmem:[%s15167_s26 + $0x3e38] sm:$0xff]  ;;  %v2290_v7 = vld [vmem:[%s15167_s26 + $0x3eb0] sm:$0xff] }
 0x468   : > { %13441 = vmatprep.subr.mxu1 %v2256_v10  ;;  %13407 = vmatpush3.msra.mxu0 %v2208_v11  ;;  %v2307_v6 = vld [vmem:[%s15167_s26 + $0x3f38] sm:$0xff]  ;;  %v2274_v9 = vld [vmem:[%s15167_s26 + $0x3e30] sm:$0xff]  ;;  %v2289_v11 = vld [vmem:[%s15167_s26 + $0x3ea8] sm:$0xff] }
 0x469   : > { %13442 = vmatpush3.msra.mxu1 %v2240_v12  ;;  %13408 = vmatprep.subr.mxu0 %v2223_v13  ;;  %v2306_v10 = vld [vmem:[%s15167_s26 + $0x3f30] sm:$0xff]  ;;  %v2321_v12 = vld [vmem:[%s15167_s26 + $0x3fa8] sm:$0xff] }
 0x46a   : > { %13443 = vmatprep.subr.mxu1 %v2255_v14  ;;  %13409 = vmatpush3.msra.mxu0 %v2207_v16  ;;  %v2273_v13 = vld [vmem:[%s15167_s26 + $0x3e28] sm:$0xff]  ;;  %v2288_v16 = vld [vmem:[%s15167_s26 + $0x3ea0] sm:$0xff] }
 0x46b   : > { %13444 = vmatpush3.msra.mxu1 %v2239_v17  ;;  %13410 = vmatprep.subr.mxu0 %v2222_v18  ;;  %v2305_v14 = vld [vmem:[%s15167_s26 + $0x3f28] sm:$0xff]  ;;  %v2320_v17 = vld [vmem:[%s15167_s26 + $0x3fa0] sm:$0xff] }
 0x46c   : > { %13445 = vmatprep.subr.mxu1 %v2254_v19  ;;  %13411 = vmatpush3.msra.mxu0 %v2206_v21  ;;  %v2272_v18 = vld [vmem:[%s15167_s26 + $0x3e20] sm:$0xff]  ;;  %v2319_v21 = vld [vmem:[%s15167_s26 + $0x3f98] sm:$0xff] }
 0x46d   : > { %13446 = vmatpush3.msra.mxu1 %v2238_v22  ;;  %13412 = vmatprep.subr.mxu0 %v2221_v23  ;;  %v2304_v19 = vld [vmem:[%s15167_s26 + $0x3f20] sm:$0xff]  ;;  %v3931_v22 = vcombine.high %v267_v15, %v267_v15  ;;  %v2271_v23 = vld [vmem:[%s15167_s26 + $0x3e18] sm:$0xff] }
 0x46e   : > { %13447 = vmatprep.subr.mxu1 %v2253_v24  ;;  %13413 = vmatpush3.msra.mxu0 %v2205_v26  ;;  %v2303_v24 = vld [vmem:[%s15167_s26 + $0x3f18] sm:$0xff]  ;;  %v2318_v26 = vld [vmem:[%s15167_s26 + $0x3f90] sm:$0xff] }
 0x46f   : > { %13448 = vmatpush3.msra.mxu1 %v2237_v27  ;;  %13414 = vmatprep.subr.mxu0 %v2220_v28  ;;  %v3938_v27 = vrot.slane %v267_v15, %v15226_v52  ;;  %v2270_v28 = vld [vmem:[%s15167_s26 + $0x3e10] sm:$0xff] }
 0x470   : > { %13449 = vmatprep.subr.mxu1 %v2252_v29  ;;  %13415 = vmatpush3.msra.mxu0 %v2204_v31  ;;  %v2302_v29 = vld [vmem:[%s15167_s26 + $0x3f10] sm:$0xff]  ;;  %v2317_v31 = vld [vmem:[%s15167_s26 + $0x3f88] sm:$0xff] }
 0x471   : > { %8676 = vmatprep.mubr.f32.mxu0 %v3929_v30  ;;  %13450 = vmatpush3.msra.mxu1 %v2236_v32  ;;  %v2285_v30 = vld [vmem:[%s15167_s26 + $0x3e88] sm:$0xff]  ;;  %v3945_v32 = vrot.slane %v3931_v22, %v15226_v52  ;;  %v2386_v15 = vld [vmem:[%s15167_s26 + $0x41b0] sm:$0xff]  ;;  %v268_v22 = vld [vmem:[%s15161_s29 + $0x100] sm:$0xff] }
 0x472   : > { %8677 = vmatmul.mubr.f32.vlgmr.msra.gmra.mxu0 %v3921_v20  ;;  %8746 = vmatprep.mubr.f32.mxu1 %v3930_v33  ;;  %v2287_v20 = vld [vmem:[%s15167_s26 + $0x3e98] sm:$0xff]  ;;  %v2269_v33 = vld [vmem:[%s15167_s26 + $0x3e08] sm:$0xff] }
 0x473   : > { %13454 = vmatprep.subr.mxu0 %v2299_v34  ;;  %13489 = vmatprep.subr.mxu1 %v2331_v35  ;;  %v2301_v34 = vld [vmem:[%s15167_s26 + $0x3f08] sm:$0xff]  ;;  %v2284_v35 = vld [vmem:[%s15167_s26 + $0x3e80] sm:$0xff] }
 0x474   : > { %8747 = vmatmul.mubr.f32.vlgmr.msra.gmra.mxu1 %v3928_v25  ;;  %13455 = vmatpush3.msra.mxu0 %v2283_v36  ;;  %v2286_v25 = vld [vmem:[%s15167_s26 + $0x3e90] sm:$0xff]  ;;  %v2316_v36 = vld [vmem:[%s15167_s26 + $0x3f80] sm:$0xff] }
 0x475   : > { %13490 = vmatpush3.msra.mxu1 %v2315_v37  ;;  %13456 = vmatprep.subr.mxu0 %v2298_v38  ;;  %v3946_v37 = vcombine.high %v3938_v27, %v3938_v27  ;;  %v2268_v38 = vld [vmem:[%s15167_s26 + $0x3e00] sm:$0xff] }
 0x476   : > { %13491 = vmatprep.subr.mxu1 %v2330_v39  ;;  %13457 = vmatpush3.msra.mxu0 %v2282_v40  ;;  %v2300_v39 = vld [vmem:[%s15167_s26 + $0x3f00] sm:$0xff]  ;;  %v3947_v40 = vcombine.high %v3945_v32, %v3945_v32 }
 0x477   : > { %13492 = vmatpush3.msra.mxu1 %v2314_v41  ;;  %13458 = vmatprep.subr.mxu0 %v2297_v42  ;;  %v2363_v41 = vld [vmem:[%s15167_s26 + $0x40f8] sm:$0xff] }
 0x478   : > { %13493 = vmatprep.subr.mxu1 %v2329_v43  ;;  %13459 = vmatpush3.msra.mxu0 %v2281_v44  ;;  %v2395_v42 = vld [vmem:[%s15167_s26 + $0x41f8] sm:$0xff] }
 0x479   : > { %13494 = vmatpush3.msra.mxu1 %v2313_v45  ;;  %13460 = vmatprep.subr.mxu0 %v2296_v46  ;;  %v2347_v43 = vld [vmem:[%s15167_s26 + $0x4078] sm:$0xff]  ;;  %v2362_v45 = vld [vmem:[%s15167_s26 + $0x40f0] sm:$0xff] }
 0x47a   : > { %13495 = vmatprep.subr.mxu1 %v2328_v47  ;;  %13461 = vmatpush3.msra.mxu0 %v2280_v48  ;;  %v2379_v44 = vld [vmem:[%s15167_s26 + $0x4178] sm:$0xff]  ;;  %v2394_v46 = vld [vmem:[%s15167_s26 + $0x41f0] sm:$0xff] }
 0x47b   : > { %13496 = vmatpush3.msra.mxu1 %v2312_v49  ;;  %13462 = vmatprep.subr.mxu0 %v2295_v50  ;;  %v2346_v47 = vld [vmem:[%s15167_s26 + $0x4070] sm:$0xff]  ;;  %v2361_v49 = vld [vmem:[%s15167_s26 + $0x40e8] sm:$0xff] }
 0x47c   : > { %13497 = vmatprep.subr.mxu1 %v2327_v51  ;;  %13463 = vmatpush3.msra.mxu0 %v2279_v53  ;;  %v2378_v48 = vld [vmem:[%s15167_s26 + $0x4170] sm:$0xff]  ;;  %v2393_v50 = vld [vmem:[%s15167_s26 + $0x41e8] sm:$0xff] }
 0x47d   : > { %13498 = vmatpush3.msra.mxu1 %v2311_v54  ;;  %13464 = vmatprep.subr.mxu0 %v2294_v55  ;;  %v2345_v51 = vld [vmem:[%s15167_s26 + $0x4068] sm:$0xff]  ;;  %v2360_v54 = vld [vmem:[%s15167_s26 + $0x40e0] sm:$0xff] }
 0x47e   : > { %13499 = vmatprep.subr.mxu1 %v2326_v56  ;;  %13465 = vmatpush3.msra.mxu0 %v2278_v57  ;;  %v2377_v53 = vld [vmem:[%s15167_s26 + $0x4168] sm:$0xff]  ;;  %v2392_v55 = vld [vmem:[%s15167_s26 + $0x41e0] sm:$0xff] }
 0x47f   : > { %13500 = vmatpush3.msra.mxu1 %v2310_v58  ;;  %13466 = vmatprep.subr.mxu0 %v2293_v59  ;;  %v2344_v56 = vld [vmem:[%s15167_s26 + $0x4060] sm:$0xff]  ;;  %v2359_v58 = vld [vmem:[%s15167_s26 + $0x40d8] sm:$0xff] }
 0x480   : > { %13501 = vmatprep.subr.mxu1 %v2325_v60  ;;  %13467 = vmatpush3.msra.mxu0 %v2277_v61  ;;  %v2376_v57 = vld [vmem:[%s15167_s26 + $0x4160] sm:$0xff]  ;;  %v2391_v59 = vld [vmem:[%s15167_s26 + $0x41d8] sm:$0xff] }
 0x481   : > { %13502 = vmatpush3.msra.mxu1 %v2309_v62  ;;  %13468 = vmatprep.subr.mxu0 %v2292_v63  ;;  %v2343_v60 = vld [vmem:[%s15167_s26 + $0x4058] sm:$0xff]  ;;  %v2358_v62 = vld [vmem:[%s15167_s26 + $0x40d0] sm:$0xff] }
 0x482   : > { %13503 = vmatprep.subr.mxu1 %v2324_v0  ;;  %13469 = vmatpush3.msra.mxu0 %v2276_v1  ;;  %v2375_v61 = vld [vmem:[%s15167_s26 + $0x4158] sm:$0xff]  ;;  %v2390_v63 = vld [vmem:[%s15167_s26 + $0x41d0] sm:$0xff] }
 0x483   : > { %13504 = vmatpush3.msra.mxu1 %v2308_v2  ;;  %13470 = vmatprep.subr.mxu0 %v2291_v3  ;;  %v2342_v0 = vld [vmem:[%s15167_s26 + $0x4050] sm:$0xff]  ;;  %v2357_v2 = vld [vmem:[%s15167_s26 + $0x40c8] sm:$0xff] }
 0x484   : > { %13505 = vmatprep.subr.mxu1 %v2323_v4  ;;  %13471 = vmatpush3.msra.mxu0 %v2275_v5  ;;  %v2374_v1 = vld [vmem:[%s15167_s26 + $0x4150] sm:$0xff]  ;;  %v2389_v3 = vld [vmem:[%s15167_s26 + $0x41c8] sm:$0xff] }
 0x485   : > { %13506 = vmatpush3.msra.mxu1 %v2307_v6  ;;  %13472 = vmatprep.subr.mxu0 %v2290_v7  ;;  %v2341_v4 = vld [vmem:[%s15167_s26 + $0x4048] sm:$0xff]  ;;  %v2356_v6 = vld [vmem:[%s15167_s26 + $0x40c0] sm:$0xff] }
 0x486   : > { %13507 = vmatprep.subr.mxu1 %v2322_v8  ;;  %13473 = vmatpush3.msra.mxu0 %v2274_v9  ;;  %v2373_v5 = vld [vmem:[%s15167_s26 + $0x4148] sm:$0xff]  ;;  %v2388_v7 = vld [vmem:[%s15167_s26 + $0x41c0] sm:$0xff] }
 0x487   : > { %13508 = vmatpush3.msra.mxu1 %v2306_v10  ;;  %13474 = vmatprep.subr.mxu0 %v2289_v11  ;;  %v2340_v8 = vld [vmem:[%s15167_s26 + $0x4040] sm:$0xff]  ;;  %v2355_v10 = vld [vmem:[%s15167_s26 + $0x40b8] sm:$0xff] }
 0x488   : > { %13509 = vmatprep.subr.mxu1 %v2321_v12  ;;  %13475 = vmatpush3.msra.mxu0 %v2273_v13  ;;  %v2372_v9 = vld [vmem:[%s15167_s26 + $0x4140] sm:$0xff]  ;;  %v2387_v11 = vld [vmem:[%s15167_s26 + $0x41b8] sm:$0xff] }
 0x489   : > { %13510 = vmatpush3.msra.mxu1 %v2305_v14  ;;  %13476 = vmatprep.subr.mxu0 %v2288_v16  ;;  %v2339_v12 = vld [vmem:[%s15167_s26 + $0x4038] sm:$0xff]  ;;  %v2354_v14 = vld [vmem:[%s15167_s26 + $0x40b0] sm:$0xff] }
 0x48a   : > { %13511 = vmatprep.subr.mxu1 %v2320_v17  ;;  %13477 = vmatpush3.msra.mxu0 %v2272_v18  ;;  %v2371_v13 = vld [vmem:[%s15167_s26 + $0x4138] sm:$0xff]  ;;  %v2338_v16 = vld [vmem:[%s15167_s26 + $0x4030] sm:$0xff]  ;;  %v2353_v18 = vld [vmem:[%s15167_s26 + $0x40a8] sm:$0xff] }
 0x48b   : > { %13512 = vmatpush3.msra.mxu1 %v2304_v19  ;;  %13478 = vmatprep.subr.mxu0 %v2287_v20  ;;  %v2370_v17 = vld [vmem:[%s15167_s26 + $0x4130] sm:$0xff]  ;;  %v2385_v19 = vld [vmem:[%s15167_s26 + $0x41a8] sm:$0xff] }
 0x48c   : > { %13513 = vmatprep.subr.mxu1 %v2319_v21  ;;  %13479 = vmatpush3.msra.mxu0 %v2271_v23  ;;  %v2337_v20 = vld [vmem:[%s15167_s26 + $0x4028] sm:$0xff]  ;;  %v2352_v23 = vld [vmem:[%s15167_s26 + $0x40a0] sm:$0xff] }
 0x48d   : > { %13514 = vmatpush3.msra.mxu1 %v2303_v24  ;;  %13480 = vmatprep.subr.mxu0 %v2286_v25  ;;  %v2369_v21 = vld [vmem:[%s15167_s26 + $0x4128] sm:$0xff]  ;;  %v2384_v24 = vld [vmem:[%s15167_s26 + $0x41a0] sm:$0xff] }
 0x48e   : > { %13515 = vmatprep.subr.mxu1 %v2318_v26  ;;  %13481 = vmatpush3.msra.mxu0 %v2270_v28  ;;  %v2336_v25 = vld [vmem:[%s15167_s26 + $0x4020] sm:$0xff]  ;;  %v2383_v28 = vld [vmem:[%s15167_s26 + $0x4198] sm:$0xff] }
 0x48f   : > { %13516 = vmatpush3.msra.mxu1 %v2302_v29  ;;  %13482 = vmatprep.subr.mxu0 %v2285_v30  ;;  %v2368_v26 = vld [vmem:[%s15167_s26 + $0x4120] sm:$0xff]  ;;  %v3948_v29 = vcombine.high %v268_v22, %v268_v22  ;;  %v2335_v30 = vld [vmem:[%s15167_s26 + $0x4018] sm:$0xff] }
 0x490   : > { %13517 = vmatprep.subr.mxu1 %v2317_v31  ;;  %13483 = vmatpush3.msra.mxu0 %v2269_v33  ;;  %v2367_v31 = vld [vmem:[%s15167_s26 + $0x4118] sm:$0xff]  ;;  %v2382_v33 = vld [vmem:[%s15167_s26 + $0x4190] sm:$0xff] }
 0x491   : > { %13518 = vmatpush3.msra.mxu1 %v2301_v34  ;;  %13484 = vmatprep.subr.mxu0 %v2284_v35  ;;  %v3955_v34 = vrot.slane %v268_v22, %v15226_v52  ;;  %v2334_v35 = vld [vmem:[%s15167_s26 + $0x4010] sm:$0xff] }
 0x492   : > { %13519 = vmatprep.subr.mxu1 %v2316_v36  ;;  %13485 = vmatpush3.msra.mxu0 %v2268_v38  ;;  %v2366_v36 = vld [vmem:[%s15167_s26 + $0x4110] sm:$0xff]  ;;  %v2381_v38 = vld [vmem:[%s15167_s26 + $0x4188] sm:$0xff] }
 0x493   : > { %8816 = vmatprep.mubr.f32.mxu0 %v3946_v37  ;;  %13520 = vmatpush3.msra.mxu1 %v2300_v39  ;;  %v2349_v37 = vld [vmem:[%s15167_s26 + $0x4088] sm:$0xff]  ;;  %v3962_v39 = vrot.slane %v3948_v29, %v15226_v52  ;;  %v2450_v22 = vld [vmem:[%s15167_s26 + $0x43b0] sm:$0xff] }
 0x494   : > { %8817 = vmatmul.mubr.f32.vlgmr.msra.gmra.mxu0 %v3938_v27  ;;  %8886 = vmatprep.mubr.f32.mxu1 %v3947_v40  ;;  %v2351_v27 = vld [vmem:[%s15167_s26 + $0x4098] sm:$0xff]  ;;  %v2333_v40 = vld [vmem:[%s15167_s26 + $0x4008] sm:$0xff] }
 0x495   : > { %13524 = vmatprep.subr.mxu0 %v2363_v41  ;;  %13559 = vmatprep.subr.mxu1 %v2395_v42  ;;  %v2365_v41 = vld [vmem:[%s15167_s26 + $0x4108] sm:$0xff]  ;;  %v2348_v42 = vld [vmem:[%s15167_s26 + $0x4080] sm:$0xff] }
 0x496   : > { %8887 = vmatmul.mubr.f32.vlgmr.msra.gmra.mxu1 %v3945_v32  ;;  %13525 = vmatpush3.msra.mxu0 %v2347_v43  ;;  %v2350_v32 = vld [vmem:[%s15167_s26 + $0x4090] sm:$0xff]  ;;  %v2380_v43 = vld [vmem:[%s15167_s26 + $0x4180] sm:$0xff]  ;;  %v269_v29 = vld [vmem:[%s15161_s29 + $0x108] sm:$0xff] }
 0x497   : > { %13560 = vmatpush3.msra.mxu1 %v2379_v44  ;;  %13526 = vmatprep.subr.mxu0 %v2362_v45  ;;  %v3963_v44 = vcombine.high %v3955_v34, %v3955_v34  ;;  %v2332_v45 = vld [vmem:[%s15167_s26 + $0x4000] sm:$0xff] }
 0x498   : > { %13561 = vmatprep.subr.mxu1 %v2394_v46  ;;  %13527 = vmatpush3.msra.mxu0 %v2346_v47  ;;  %v2364_v46 = vld [vmem:[%s15167_s26 + $0x4100] sm:$0xff]  ;;  %v3964_v47 = vcombine.high %v3962_v39, %v3962_v39 }
 0x499   : > { %13562 = vmatpush3.msra.mxu1 %v2378_v48  ;;  %13528 = vmatprep.subr.mxu0 %v2361_v49  ;;  %v2427_v48 = vld [vmem:[%s15167_s26 + $0x42f8] sm:$0xff] }
 0x49a   : > { %13563 = vmatprep.subr.mxu1 %v2393_v50  ;;  %13529 = vmatpush3.msra.mxu0 %v2345_v51  ;;  %v2459_v49 = vld [vmem:[%s15167_s26 + $0x43f8] sm:$0xff] }
 0x49b   : > { %13564 = vmatpush3.msra.mxu1 %v2377_v53  ;;  %13530 = vmatprep.subr.mxu0 %v2360_v54  ;;  %v2411_v50 = vld [vmem:[%s15167_s26 + $0x4278] sm:$0xff]  ;;  %v2426_v53 = vld [vmem:[%s15167_s26 + $0x42f0] sm:$0xff] }
 0x49c   : > { %13565 = vmatprep.subr.mxu1 %v2392_v55  ;;  %13531 = vmatpush3.msra.mxu0 %v2344_v56  ;;  %v2443_v51 = vld [vmem:[%s15167_s26 + $0x4378] sm:$0xff]  ;;  %v2458_v54 = vld [vmem:[%s15167_s26 + $0x43f0] sm:$0xff] }
 0x49d   : > { %13566 = vmatpush3.msra.mxu1 %v2376_v57  ;;  %13532 = vmatprep.subr.mxu0 %v2359_v58  ;;  %v2410_v55 = vld [vmem:[%s15167_s26 + $0x4270] sm:$0xff]  ;;  %v2425_v57 = vld [vmem:[%s15167_s26 + $0x42e8] sm:$0xff] }
 0x49e   : > { %13567 = vmatprep.subr.mxu1 %v2391_v59  ;;  %13533 = vmatpush3.msra.mxu0 %v2343_v60  ;;  %v2442_v56 = vld [vmem:[%s15167_s26 + $0x4370] sm:$0xff]  ;;  %v2457_v58 = vld [vmem:[%s15167_s26 + $0x43e8] sm:$0xff] }
 0x49f   : > { %13568 = vmatpush3.msra.mxu1 %v2375_v61  ;;  %13534 = vmatprep.subr.mxu0 %v2358_v62  ;;  %v2409_v59 = vld [vmem:[%s15167_s26 + $0x4268] sm:$0xff]  ;;  %v2424_v61 = vld [vmem:[%s15167_s26 + $0x42e0] sm:$0xff] }
 0x4a0   : > { %13569 = vmatprep.subr.mxu1 %v2390_v63  ;;  %13535 = vmatpush3.msra.mxu0 %v2342_v0  ;;  %v2441_v60 = vld [vmem:[%s15167_s26 + $0x4368] sm:$0xff]  ;;  %v2456_v62 = vld [vmem:[%s15167_s26 + $0x43e0] sm:$0xff] }
 0x4a1   : > { %13570 = vmatpush3.msra.mxu1 %v2374_v1  ;;  %13536 = vmatprep.subr.mxu0 %v2357_v2  ;;  %v2408_v63 = vld [vmem:[%s15167_s26 + $0x4260] sm:$0xff]  ;;  %v2423_v1 = vld [vmem:[%s15167_s26 + $0x42d8] sm:$0xff] }
 0x4a2   : > { %13571 = vmatprep.subr.mxu1 %v2389_v3  ;;  %13537 = vmatpush3.msra.mxu0 %v2341_v4  ;;  %v2440_v0 = vld [vmem:[%s15167_s26 + $0x4360] sm:$0xff]  ;;  %v2455_v2 = vld [vmem:[%s15167_s26 + $0x43d8] sm:$0xff] }
 0x4a3   : > { %13572 = vmatpush3.msra.mxu1 %v2373_v5  ;;  %13538 = vmatprep.subr.mxu0 %v2356_v6  ;;  %v2407_v3 = vld [vmem:[%s15167_s26 + $0x4258] sm:$0xff]  ;;  %v2422_v5 = vld [vmem:[%s15167_s26 + $0x42d0] sm:$0xff] }
 0x4a4   : > { %13573 = vmatprep.subr.mxu1 %v2388_v7  ;;  %13539 = vmatpush3.msra.mxu0 %v2340_v8  ;;  %v2439_v4 = vld [vmem:[%s15167_s26 + $0x4358] sm:$0xff]  ;;  %v2454_v6 = vld [vmem:[%s15167_s26 + $0x43d0] sm:$0xff] }
 0x4a5   : > { %13574 = vmatpush3.msra.mxu1 %v2372_v9  ;;  %13540 = vmatprep.subr.mxu0 %v2355_v10  ;;  %v2406_v7 = vld [vmem:[%s15167_s26 + $0x4250] sm:$0xff]  ;;  %v2421_v9 = vld [vmem:[%s15167_s26 + $0x42c8] sm:$0xff] }
 0x4a6   : > { %13575 = vmatprep.subr.mxu1 %v2387_v11  ;;  %13541 = vmatpush3.msra.mxu0 %v2339_v12  ;;  %v2438_v8 = vld [vmem:[%s15167_s26 + $0x4350] sm:$0xff]  ;;  %v2453_v10 = vld [vmem:[%s15167_s26 + $0x43c8] sm:$0xff] }
 0x4a7   : > { %13576 = vmatpush3.msra.mxu1 %v2371_v13  ;;  %13542 = vmatprep.subr.mxu0 %v2354_v14  ;;  %v2405_v11 = vld [vmem:[%s15167_s26 + $0x4248] sm:$0xff]  ;;  %v2420_v13 = vld [vmem:[%s15167_s26 + $0x42c0] sm:$0xff] }
 0x4a8   : > { %13577 = vmatprep.subr.mxu1 %v2386_v15  ;;  %13543 = vmatpush3.msra.mxu0 %v2338_v16  ;;  %v2437_v12 = vld [vmem:[%s15167_s26 + $0x4348] sm:$0xff]  ;;  %v2452_v14 = vld [vmem:[%s15167_s26 + $0x43c0] sm:$0xff] }
 0x4a9   : > { %13578 = vmatpush3.msra.mxu1 %v2370_v17  ;;  %13544 = vmatprep.subr.mxu0 %v2353_v18  ;;  %v2404_v15 = vld [vmem:[%s15167_s26 + $0x4240] sm:$0xff]  ;;  %v2419_v17 = vld [vmem:[%s15167_s26 + $0x42b8] sm:$0xff] }
 0x4aa   : > { %13579 = vmatprep.subr.mxu1 %v2385_v19  ;;  %13545 = vmatpush3.msra.mxu0 %v2337_v20  ;;  %v2436_v16 = vld [vmem:[%s15167_s26 + $0x4340] sm:$0xff]  ;;  %v2451_v18 = vld [vmem:[%s15167_s26 + $0x43b8] sm:$0xff] }
 0x4ab   : > { %13580 = vmatpush3.msra.mxu1 %v2369_v21  ;;  %13546 = vmatprep.subr.mxu0 %v2352_v23  ;;  %v2403_v19 = vld [vmem:[%s15167_s26 + $0x4238] sm:$0xff]  ;;  %v2418_v21 = vld [vmem:[%s15167_s26 + $0x42b0] sm:$0xff] }
 0x4ac   : > { %13581 = vmatprep.subr.mxu1 %v2384_v24  ;;  %13547 = vmatpush3.msra.mxu0 %v2336_v25  ;;  %v2435_v20 = vld [vmem:[%s15167_s26 + $0x4338] sm:$0xff]  ;;  %v2402_v23 = vld [vmem:[%s15167_s26 + $0x4230] sm:$0xff]  ;;  %v2417_v25 = vld [vmem:[%s15167_s26 + $0x42a8] sm:$0xff] }
 0x4ad   : > { %13582 = vmatpush3.msra.mxu1 %v2368_v26  ;;  %13548 = vmatprep.subr.mxu0 %v2351_v27  ;;  %v2434_v24 = vld [vmem:[%s15167_s26 + $0x4330] sm:$0xff]  ;;  %v2449_v26 = vld [vmem:[%s15167_s26 + $0x43a8] sm:$0xff] }
 0x4ae   : > { %13583 = vmatprep.subr.mxu1 %v2383_v28  ;;  %13549 = vmatpush3.msra.mxu0 %v2335_v30  ;;  %v2401_v27 = vld [vmem:[%s15167_s26 + $0x4228] sm:$0xff]  ;;  %v2416_v30 = vld [vmem:[%s15167_s26 + $0x42a0] sm:$0xff] }
 0x4af   : > { %13584 = vmatpush3.msra.mxu1 %v2367_v31  ;;  %13550 = vmatprep.subr.mxu0 %v2350_v32  ;;  %v2433_v28 = vld [vmem:[%s15167_s26 + $0x4328] sm:$0xff]  ;;  %v2448_v31 = vld [vmem:[%s15167_s26 + $0x43a0] sm:$0xff] }
 0x4b0   : > { %13585 = vmatprep.subr.mxu1 %v2382_v33  ;;  %13551 = vmatpush3.msra.mxu0 %v2334_v35  ;;  %v2400_v32 = vld [vmem:[%s15167_s26 + $0x4220] sm:$0xff]  ;;  %v2447_v35 = vld [vmem:[%s15167_s26 + $0x4398] sm:$0xff] }
 0x4b1   : > { %13586 = vmatpush3.msra.mxu1 %v2366_v36  ;;  %13552 = vmatprep.subr.mxu0 %v2349_v37  ;;  %v2432_v33 = vld [vmem:[%s15167_s26 + $0x4320] sm:$0xff]  ;;  %v3965_v36 = vcombine.high %v269_v29, %v269_v29  ;;  %v2399_v37 = vld [vmem:[%s15167_s26 + $0x4218] sm:$0xff] }
 0x4b2   : > { %13587 = vmatprep.subr.mxu1 %v2381_v38  ;;  %13553 = vmatpush3.msra.mxu0 %v2333_v40  ;;  %v2431_v38 = vld [vmem:[%s15167_s26 + $0x4318] sm:$0xff]  ;;  %v2446_v40 = vld [vmem:[%s15167_s26 + $0x4390] sm:$0xff] }
 0x4b3   : > { %13588 = vmatpush3.msra.mxu1 %v2365_v41  ;;  %13554 = vmatprep.subr.mxu0 %v2348_v42  ;;  %v3972_v41 = vrot.slane %v269_v29, %v15226_v52  ;;  %v2398_v42 = vld [vmem:[%s15167_s26 + $0x4210] sm:$0xff] }
 0x4b4   : > { %13589 = vmatprep.subr.mxu1 %v2380_v43  ;;  %13555 = vmatpush3.msra.mxu0 %v2332_v45  ;;  %v2430_v43 = vld [vmem:[%s15167_s26 + $0x4310] sm:$0xff]  ;;  %v2445_v45 = vld [vmem:[%s15167_s26 + $0x4388] sm:$0xff] }
 0x4b5   : > { %8956 = vmatprep.mubr.f32.mxu0 %v3963_v44  ;;  %13590 = vmatpush3.msra.mxu1 %v2364_v46  ;;  %v2413_v44 = vld [vmem:[%s15167_s26 + $0x4288] sm:$0xff]  ;;  %v3979_v46 = vrot.slane %v3965_v36, %v15226_v52  ;;  %v2514_v29 = vld [vmem:[%s15167_s26 + $0x45b0] sm:$0xff] }
 0x4b6   : > { %8957 = vmatmul.mubr.f32.vlgmr.msra.gmra.mxu0 %v3955_v34  ;;  %9026 = vmatprep.mubr.f32.mxu1 %v3964_v47  ;;  %v2415_v34 = vld [vmem:[%s15167_s26 + $0x4298] sm:$0xff]  ;;  %v2397_v47 = vld [vmem:[%s15167_s26 + $0x4208] sm:$0xff]  ;;  %v270_v36 = vld [vmem:[%s15161_s29 + $0x110] sm:$0xff] }
 0x4b7   : > { %13594 = vmatprep.subr.mxu0 %v2427_v48  ;;  %13629 = vmatprep.subr.mxu1 %v2459_v49  ;;  %v2429_v48 = vld [vmem:[%s15167_s26 + $0x4308] sm:$0xff]  ;;  %v2412_v49 = vld [vmem:[%s15167_s26 + $0x4280] sm:$0xff] }
 0x4b8   : > { %9027 = vmatmul.mubr.f32.vlgmr.msra.gmra.mxu1 %v3962_v39  ;;  %13595 = vmatpush3.msra.mxu0 %v2411_v50  ;;  %v2414_v39 = vld [vmem:[%s15167_s26 + $0x4290] sm:$0xff]  ;;  %v2444_v50 = vld [vmem:[%s15167_s26 + $0x4380] sm:$0xff] }
 0x4b9   : > { %13630 = vmatpush3.msra.mxu1 %v2443_v51  ;;  %13596 = vmatprep.subr.mxu0 %v2426_v53  ;;  %v3980_v51 = vcombine.high %v3972_v41, %v3972_v41  ;;  %v2396_v53 = vld [vmem:[%s15167_s26 + $0x4200] sm:$0xff] }
 0x4ba   : > { %13631 = vmatprep.subr.mxu1 %v2458_v54  ;;  %13597 = vmatpush3.msra.mxu0 %v2410_v55  ;;  %v2428_v54 = vld [vmem:[%s15167_s26 + $0x4300] sm:$0xff]  ;;  %v3981_v55 = vcombine.high %v3979_v46, %v3979_v46 }
 0x4bb   : > { %13632 = vmatpush3.msra.mxu1 %v2442_v56  ;;  %13598 = vmatprep.subr.mxu0 %v2425_v57  ;;  %v2491_v56 = vld [vmem:[%s15167_s26 + $0x44f8] sm:$0xff] }
 0x4bc   : > { %13633 = vmatprep.subr.mxu1 %v2457_v58  ;;  %13599 = vmatpush3.msra.mxu0 %v2409_v59  ;;  %v2523_v57 = vld [vmem:[%s15167_s26 + $0x45f8] sm:$0xff] }
 0x4bd   : > { %13634 = vmatpush3.msra.mxu1 %v2441_v60  ;;  %13600 = vmatprep.subr.mxu0 %v2424_v61  ;;  %v2475_v58 = vld [vmem:[%s15167_s26 + $0x4478] sm:$0xff]  ;;  %v2490_v60 = vld [vmem:[%s15167_s26 + $0x44f0] sm:$0xff] }
 0x4be   : > { %13635 = vmatprep.subr.mxu1 %v2456_v62  ;;  %13601 = vmatpush3.msra.mxu0 %v2408_v63  ;;  %v2507_v59 = vld [vmem:[%s15167_s26 + $0x4578] sm:$0xff]  ;;  %v2522_v61 = vld [vmem:[%s15167_s26 + $0x45f0] sm:$0xff] }
 0x4bf   : > { %13636 = vmatpush3.msra.mxu1 %v2440_v0  ;;  %13602 = vmatprep.subr.mxu0 %v2423_v1  ;;  %v2474_v62 = vld [vmem:[%s15167_s26 + $0x4470] sm:$0xff]  ;;  %v2489_v0 = vld [vmem:[%s15167_s26 + $0x44e8] sm:$0xff] }
 0x4c0   : > { %13637 = vmatprep.subr.mxu1 %v2455_v2  ;;  %13603 = vmatpush3.msra.mxu0 %v2407_v3  ;;  %v2506_v63 = vld [vmem:[%s15167_s26 + $0x4570] sm:$0xff]  ;;  %v2521_v1 = vld [vmem:[%s15167_s26 + $0x45e8] sm:$0xff] }
 0x4c1   : > { %13638 = vmatpush3.msra.mxu1 %v2439_v4  ;;  %13604 = vmatprep.subr.mxu0 %v2422_v5  ;;  %v2473_v2 = vld [vmem:[%s15167_s26 + $0x4468] sm:$0xff]  ;;  %v2488_v4 = vld [vmem:[%s15167_s26 + $0x44e0] sm:$0xff] }
 0x4c2   : > { %13639 = vmatprep.subr.mxu1 %v2454_v6  ;;  %13605 = vmatpush3.msra.mxu0 %v2406_v7  ;;  %v2505_v3 = vld [vmem:[%s15167_s26 + $0x4568] sm:$0xff]  ;;  %v2520_v5 = vld [vmem:[%s15167_s26 + $0x45e0] sm:$0xff] }
 0x4c3   : > { %13640 = vmatpush3.msra.mxu1 %v2438_v8  ;;  %13606 = vmatprep.subr.mxu0 %v2421_v9  ;;  %v2472_v6 = vld [vmem:[%s15167_s26 + $0x4460] sm:$0xff]  ;;  %v2487_v8 = vld [vmem:[%s15167_s26 + $0x44d8] sm:$0xff] }
 0x4c4   : > { %13641 = vmatprep.subr.mxu1 %v2453_v10  ;;  %13607 = vmatpush3.msra.mxu0 %v2405_v11  ;;  %v2504_v7 = vld [vmem:[%s15167_s26 + $0x4560] sm:$0xff]  ;;  %v2519_v9 = vld [vmem:[%s15167_s26 + $0x45d8] sm:$0xff] }
 0x4c5   : > { %13642 = vmatpush3.msra.mxu1 %v2437_v12  ;;  %13608 = vmatprep.subr.mxu0 %v2420_v13  ;;  %v2471_v10 = vld [vmem:[%s15167_s26 + $0x4458] sm:$0xff]  ;;  %v2486_v12 = vld [vmem:[%s15167_s26 + $0x44d0] sm:$0xff] }
 0x4c6   : > { %13643 = vmatprep.subr.mxu1 %v2452_v14  ;;  %13609 = vmatpush3.msra.mxu0 %v2404_v15  ;;  %v2503_v11 = vld [vmem:[%s15167_s26 + $0x4558] sm:$0xff]  ;;  %v2518_v13 = vld [vmem:[%s15167_s26 + $0x45d0] sm:$0xff] }
 0x4c7   : > { %13644 = vmatpush3.msra.mxu1 %v2436_v16  ;;  %13610 = vmatprep.subr.mxu0 %v2419_v17  ;;  %v2470_v14 = vld [vmem:[%s15167_s26 + $0x4450] sm:$0xff]  ;;  %v2485_v16 = vld [vmem:[%s15167_s26 + $0x44c8] sm:$0xff] }
 0x4c8   : > { %13645 = vmatprep.subr.mxu1 %v2451_v18  ;;  %13611 = vmatpush3.msra.mxu0 %v2403_v19  ;;  %v2502_v15 = vld [vmem:[%s15167_s26 + $0x4550] sm:$0xff]  ;;  %v2517_v17 = vld [vmem:[%s15167_s26 + $0x45c8] sm:$0xff] }
 0x4c9   : > { %13646 = vmatpush3.msra.mxu1 %v2435_v20  ;;  %13612 = vmatprep.subr.mxu0 %v2418_v21  ;;  %v2469_v18 = vld [vmem:[%s15167_s26 + $0x4448] sm:$0xff]  ;;  %v2484_v20 = vld [vmem:[%s15167_s26 + $0x44c0] sm:$0xff] }
 0x4ca   : > { %13647 = vmatprep.subr.mxu1 %v2450_v22  ;;  %13613 = vmatpush3.msra.mxu0 %v2402_v23  ;;  %v2501_v19 = vld [vmem:[%s15167_s26 + $0x4548] sm:$0xff]  ;;  %v2516_v21 = vld [vmem:[%s15167_s26 + $0x45c0] sm:$0xff] }
 0x4cb   : > { %13648 = vmatpush3.msra.mxu1 %v2434_v24  ;;  %13614 = vmatprep.subr.mxu0 %v2417_v25  ;;  %v2468_v22 = vld [vmem:[%s15167_s26 + $0x4440] sm:$0xff]  ;;  %v2483_v24 = vld [vmem:[%s15167_s26 + $0x44b8] sm:$0xff] }
 0x4cc   : > { %13649 = vmatprep.subr.mxu1 %v2449_v26  ;;  %13615 = vmatpush3.msra.mxu0 %v2401_v27  ;;  %v2500_v23 = vld [vmem:[%s15167_s26 + $0x4540] sm:$0xff]  ;;  %v2515_v25 = vld [vmem:[%s15167_s26 + $0x45b8] sm:$0xff] }
 0x4cd   : > { %13650 = vmatpush3.msra.mxu1 %v2433_v28  ;;  %13616 = vmatprep.subr.mxu0 %v2416_v30  ;;  %v2467_v26 = vld [vmem:[%s15167_s26 + $0x4438] sm:$0xff]  ;;  %v2482_v28 = vld [vmem:[%s15167_s26 + $0x44b0] sm:$0xff] }
 0x4ce   : > { %13651 = vmatprep.subr.mxu1 %v2448_v31  ;;  %13617 = vmatpush3.msra.mxu0 %v2400_v32  ;;  %v2499_v27 = vld [vmem:[%s15167_s26 + $0x4538] sm:$0xff]  ;;  %v2466_v30 = vld [vmem:[%s15167_s26 + $0x4430] sm:$0xff]  ;;  %v2481_v32 = vld [vmem:[%s15167_s26 + $0x44a8] sm:$0xff] }
 0x4cf   : > { %13652 = vmatpush3.msra.mxu1 %v2432_v33  ;;  %13618 = vmatprep.subr.mxu0 %v2415_v34  ;;  %v2498_v31 = vld [vmem:[%s15167_s26 + $0x4530] sm:$0xff]  ;;  %v2513_v33 = vld [vmem:[%s15167_s26 + $0x45a8] sm:$0xff] }
 0x4d0   : > { %13653 = vmatprep.subr.mxu1 %v2447_v35  ;;  %13619 = vmatpush3.msra.mxu0 %v2399_v37  ;;  %v2465_v34 = vld [vmem:[%s15167_s26 + $0x4428] sm:$0xff]  ;;  %v2480_v37 = vld [vmem:[%s15167_s26 + $0x44a0] sm:$0xff] }
 0x4d1   : > { %13654 = vmatpush3.msra.mxu1 %v2431_v38  ;;  %13620 = vmatprep.subr.mxu0 %v2414_v39  ;;  %v2497_v35 = vld [vmem:[%s15167_s26 + $0x4528] sm:$0xff]  ;;  %v2512_v38 = vld [vmem:[%s15167_s26 + $0x45a0] sm:$0xff] }
 0x4d2   : > { %13655 = vmatprep.subr.mxu1 %v2446_v40  ;;  %13621 = vmatpush3.msra.mxu0 %v2398_v42  ;;  %v2464_v39 = vld [vmem:[%s15167_s26 + $0x4420] sm:$0xff]  ;;  %v2511_v42 = vld [vmem:[%s15167_s26 + $0x4598] sm:$0xff] }
 0x4d3   : > { %13656 = vmatpush3.msra.mxu1 %v2430_v43  ;;  %13622 = vmatprep.subr.mxu0 %v2413_v44  ;;  %v2496_v40 = vld [vmem:[%s15167_s26 + $0x4520] sm:$0xff]  ;;  %v3982_v43 = vcombine.high %v270_v36, %v270_v36  ;;  %v2463_v44 = vld [vmem:[%s15167_s26 + $0x4418] sm:$0xff] }
 0x4d4   : > { %13657 = vmatprep.subr.mxu1 %v2445_v45  ;;  %13623 = vmatpush3.msra.mxu0 %v2397_v47  ;;  %v2495_v45 = vld [vmem:[%s15167_s26 + $0x4518] sm:$0xff]  ;;  %v2510_v47 = vld [vmem:[%s15167_s26 + $0x4590] sm:$0xff] }
 0x4d5   : > { %13658 = vmatpush3.msra.mxu1 %v2429_v48  ;;  %13624 = vmatprep.subr.mxu0 %v2412_v49  ;;  %v3989_v48 = vrot.slane %v270_v36, %v15226_v52  ;;  %v2462_v49 = vld [vmem:[%s15167_s26 + $0x4410] sm:$0xff] }
 0x4d6   : > { %13659 = vmatprep.subr.mxu1 %v2444_v50  ;;  %13625 = vmatpush3.msra.mxu0 %v2396_v53  ;;  %v2494_v50 = vld [vmem:[%s15167_s26 + $0x4510] sm:$0xff]  ;;  %v2509_v53 = vld [vmem:[%s15167_s26 + $0x4588] sm:$0xff] }
 0x4d7   : > { %9096 = vmatprep.mubr.f32.mxu0 %v3980_v51  ;;  %13660 = vmatpush3.msra.mxu1 %v2428_v54  ;;  %v2477_v51 = vld [vmem:[%s15167_s26 + $0x4488] sm:$0xff]  ;;  %v3996_v54 = vrot.slane %v3982_v43, %v15226_v52  ;;  %v2578_v36 = vld [vmem:[%s15167_s26 + $0x47b0] sm:$0xff]  ;;  %v271_v43 = vld [vmem:[%s15161_s29 + $0x118] sm:$0xff] }
 0x4d8   : > { %9097 = vmatmul.mubr.f32.vlgmr.msra.gmra.mxu0 %v3972_v41  ;;  %9166 = vmatprep.mubr.f32.mxu1 %v3981_v55  ;;  %v2479_v41 = vld [vmem:[%s15167_s26 + $0x4498] sm:$0xff]  ;;  %v2461_v55 = vld [vmem:[%s15167_s26 + $0x4408] sm:$0xff] }
 0x4d9   : > { %13664 = vmatprep.subr.mxu0 %v2491_v56  ;;  %13699 = vmatprep.subr.mxu1 %v2523_v57  ;;  %v2493_v56 = vld [vmem:[%s15167_s26 + $0x4508] sm:$0xff]  ;;  %v2476_v57 = vld [vmem:[%s15167_s26 + $0x4480] sm:$0xff] }
 0x4da   : > { %9167 = vmatmul.mubr.f32.vlgmr.msra.gmra.mxu1 %v3979_v46  ;;  %13665 = vmatpush3.msra.mxu0 %v2475_v58  ;;  %v2478_v46 = vld [vmem:[%s15167_s26 + $0x4490] sm:$0xff]  ;;  %v2508_v58 = vld [vmem:[%s15167_s26 + $0x4580] sm:$0xff] }
 0x4db   : > { %13700 = vmatpush3.msra.mxu1 %v2507_v59  ;;  %13666 = vmatprep.subr.mxu0 %v2490_v60  ;;  %v3997_v59 = vcombine.high %v3989_v48, %v3989_v48  ;;  %v2460_v60 = vld [vmem:[%s15167_s26 + $0x4400] sm:$0xff] }
 0x4dc   : > { %13701 = vmatprep.subr.mxu1 %v2522_v61  ;;  %13667 = vmatpush3.msra.mxu0 %v2474_v62  ;;  %v2492_v61 = vld [vmem:[%s15167_s26 + $0x4500] sm:$0xff]  ;;  %v3998_v62 = vcombine.high %v3996_v54, %v3996_v54 }
 0x4dd   : > { %13702 = vmatpush3.msra.mxu1 %v2506_v63  ;;  %13668 = vmatprep.subr.mxu0 %v2489_v0  ;;  %v2555_v63 = vld [vmem:[%s15167_s26 + $0x46f8] sm:$0xff] }
 0x4de   : > { %13703 = vmatprep.subr.mxu1 %v2521_v1  ;;  %13669 = vmatpush3.msra.mxu0 %v2473_v2  ;;  %v2587_v0 = vld [vmem:[%s15167_s26 + $0x47f8] sm:$0xff] }
 0x4df   : > { %13704 = vmatpush3.msra.mxu1 %v2505_v3  ;;  %13670 = vmatprep.subr.mxu0 %v2488_v4  ;;  %v2539_v1 = vld [vmem:[%s15167_s26 + $0x4678] sm:$0xff]  ;;  %v2554_v3 = vld [vmem:[%s15167_s26 + $0x46f0] sm:$0xff] }
 0x4e0   : > { %13705 = vmatprep.subr.mxu1 %v2520_v5  ;;  %13671 = vmatpush3.msra.mxu0 %v2472_v6  ;;  %v2571_v2 = vld [vmem:[%s15167_s26 + $0x4778] sm:$0xff]  ;;  %v2586_v4 = vld [vmem:[%s15167_s26 + $0x47f0] sm:$0xff] }
 0x4e1   : > { %13706 = vmatpush3.msra.mxu1 %v2504_v7  ;;  %13672 = vmatprep.subr.mxu0 %v2487_v8  ;;  %v2538_v5 = vld [vmem:[%s15167_s26 + $0x4670] sm:$0xff]  ;;  %v2553_v7 = vld [vmem:[%s15167_s26 + $0x46e8] sm:$0xff] }
 0x4e2   : > { %13707 = vmatprep.subr.mxu1 %v2519_v9  ;;  %13673 = vmatpush3.msra.mxu0 %v2471_v10  ;;  %v2570_v6 = vld [vmem:[%s15167_s26 + $0x4770] sm:$0xff]  ;;  %v2585_v8 = vld [vmem:[%s15167_s26 + $0x47e8] sm:$0xff] }
 0x4e3   : > { %13708 = vmatpush3.msra.mxu1 %v2503_v11  ;;  %13674 = vmatprep.subr.mxu0 %v2486_v12  ;;  %v2537_v9 = vld [vmem:[%s15167_s26 + $0x4668] sm:$0xff]  ;;  %v2552_v11 = vld [vmem:[%s15167_s26 + $0x46e0] sm:$0xff] }
 0x4e4   : > { %13709 = vmatprep.subr.mxu1 %v2518_v13  ;;  %13675 = vmatpush3.msra.mxu0 %v2470_v14  ;;  %v2569_v10 = vld [vmem:[%s15167_s26 + $0x4768] sm:$0xff]  ;;  %v2584_v12 = vld [vmem:[%s15167_s26 + $0x47e0] sm:$0xff] }
 0x4e5   : > { %13710 = vmatpush3.msra.mxu1 %v2502_v15  ;;  %13676 = vmatprep.subr.mxu0 %v2485_v16  ;;  %v2536_v13 = vld [vmem:[%s15167_s26 + $0x4660] sm:$0xff]  ;;  %v2551_v15 = vld [vmem:[%s15167_s26 + $0x46d8] sm:$0xff] }
 0x4e6   : > { %13711 = vmatprep.subr.mxu1 %v2517_v17  ;;  %13677 = vmatpush3.msra.mxu0 %v2469_v18  ;;  %v2568_v14 = vld [vmem:[%s15167_s26 + $0x4760] sm:$0xff]  ;;  %v2583_v16 = vld [vmem:[%s15167_s26 + $0x47d8] sm:$0xff] }
 0x4e7   : > { %13712 = vmatpush3.msra.mxu1 %v2501_v19  ;;  %13678 = vmatprep.subr.mxu0 %v2484_v20  ;;  %v2535_v17 = vld [vmem:[%s15167_s26 + $0x4658] sm:$0xff]  ;;  %v2550_v19 = vld [vmem:[%s15167_s26 + $0x46d0] sm:$0xff] }
 0x4e8   : > { %13713 = vmatprep.subr.mxu1 %v2516_v21  ;;  %13679 = vmatpush3.msra.mxu0 %v2468_v22  ;;  %v2567_v18 = vld [vmem:[%s15167_s26 + $0x4758] sm:$0xff]  ;;  %v2582_v20 = vld [vmem:[%s15167_s26 + $0x47d0] sm:$0xff] }
 0x4e9   : > { %13714 = vmatpush3.msra.mxu1 %v2500_v23  ;;  %13680 = vmatprep.subr.mxu0 %v2483_v24  ;;  %v2534_v21 = vld [vmem:[%s15167_s26 + $0x4650] sm:$0xff]  ;;  %v2549_v23 = vld [vmem:[%s15167_s26 + $0x46c8] sm:$0xff] }
 0x4ea   : > { %13715 = vmatprep.subr.mxu1 %v2515_v25  ;;  %13681 = vmatpush3.msra.mxu0 %v2467_v26  ;;  %v2566_v22 = vld [vmem:[%s15167_s26 + $0x4750] sm:$0xff]  ;;  %v2581_v24 = vld [vmem:[%s15167_s26 + $0x47c8] sm:$0xff] }
 0x4eb   : > { %13716 = vmatpush3.msra.mxu1 %v2499_v27  ;;  %13682 = vmatprep.subr.mxu0 %v2482_v28  ;;  %v2533_v25 = vld [vmem:[%s15167_s26 + $0x4648] sm:$0xff]  ;;  %v2548_v27 = vld [vmem:[%s15167_s26 + $0x46c0] sm:$0xff] }
 0x4ec   : > { %13717 = vmatprep.subr.mxu1 %v2514_v29  ;;  %13683 = vmatpush3.msra.mxu0 %v2466_v30  ;;  %v2565_v26 = vld [vmem:[%s15167_s26 + $0x4748] sm:$0xff]  ;;  %v2580_v28 = vld [vmem:[%s15167_s26 + $0x47c0] sm:$0xff] }
 0x4ed   : > { %13718 = vmatpush3.msra.mxu1 %v2498_v31  ;;  %13684 = vmatprep.subr.mxu0 %v2481_v32  ;;  %v2532_v29 = vld [vmem:[%s15167_s26 + $0x4640] sm:$0xff]  ;;  %v2547_v31 = vld [vmem:[%s15167_s26 + $0x46b8] sm:$0xff] }
 0x4ee   : > { %13719 = vmatprep.subr.mxu1 %v2513_v33  ;;  %13685 = vmatpush3.msra.mxu0 %v2465_v34  ;;  %v2564_v30 = vld [vmem:[%s15167_s26 + $0x4740] sm:$0xff]  ;;  %v2579_v32 = vld [vmem:[%s15167_s26 + $0x47b8] sm:$0xff] }
 0x4ef   : > { %13720 = vmatpush3.msra.mxu1 %v2497_v35  ;;  %13686 = vmatprep.subr.mxu0 %v2480_v37  ;;  %v2531_v33 = vld [vmem:[%s15167_s26 + $0x4638] sm:$0xff]  ;;  %v2546_v35 = vld [vmem:[%s15167_s26 + $0x46b0] sm:$0xff] }
 0x4f0   : > { %13721 = vmatprep.subr.mxu1 %v2512_v38  ;;  %13687 = vmatpush3.msra.mxu0 %v2464_v39  ;;  %v2563_v34 = vld [vmem:[%s15167_s26 + $0x4738] sm:$0xff]  ;;  %v2530_v37 = vld [vmem:[%s15167_s26 + $0x4630] sm:$0xff]  ;;  %v2545_v39 = vld [vmem:[%s15167_s26 + $0x46a8] sm:$0xff] }
 0x4f1   : > { %13722 = vmatpush3.msra.mxu1 %v2496_v40  ;;  %13688 = vmatprep.subr.mxu0 %v2479_v41  ;;  %v2562_v38 = vld [vmem:[%s15167_s26 + $0x4730] sm:$0xff]  ;;  %v2577_v40 = vld [vmem:[%s15167_s26 + $0x47a8] sm:$0xff] }
 0x4f2   : > { %13723 = vmatprep.subr.mxu1 %v2511_v42  ;;  %13689 = vmatpush3.msra.mxu0 %v2463_v44  ;;  %v2529_v41 = vld [vmem:[%s15167_s26 + $0x4628] sm:$0xff]  ;;  %v2544_v44 = vld [vmem:[%s15167_s26 + $0x46a0] sm:$0xff] }
 0x4f3   : > { %13724 = vmatpush3.msra.mxu1 %v2495_v45  ;;  %13690 = vmatprep.subr.mxu0 %v2478_v46  ;;  %v2561_v42 = vld [vmem:[%s15167_s26 + $0x4728] sm:$0xff]  ;;  %v2576_v45 = vld [vmem:[%s15167_s26 + $0x47a0] sm:$0xff] }
 0x4f4   : > { %13725 = vmatprep.subr.mxu1 %v2510_v47  ;;  %13691 = vmatpush3.msra.mxu0 %v2462_v49  ;;  %v2528_v46 = vld [vmem:[%s15167_s26 + $0x4620] sm:$0xff]  ;;  %v2575_v49 = vld [vmem:[%s15167_s26 + $0x4798] sm:$0xff] }
 0x4f5   : > { %13726 = vmatpush3.msra.mxu1 %v2494_v50  ;;  %13692 = vmatprep.subr.mxu0 %v2477_v51  ;;  %v2560_v47 = vld [vmem:[%s15167_s26 + $0x4720] sm:$0xff]  ;;  %v3999_v50 = vcombine.high %v271_v43, %v271_v43  ;;  %v2527_v51 = vld [vmem:[%s15167_s26 + $0x4618] sm:$0xff] }
 0x4f6   : > { %13727 = vmatprep.subr.mxu1 %v2509_v53  ;;  %13693 = vmatpush3.msra.mxu0 %v2461_v55  ;;  %v2559_v53 = vld [vmem:[%s15167_s26 + $0x4718] sm:$0xff]  ;;  %v2574_v55 = vld [vmem:[%s15167_s26 + $0x4790] sm:$0xff] }
 0x4f7   : > { %13728 = vmatpush3.msra.mxu1 %v2493_v56  ;;  %13694 = vmatprep.subr.mxu0 %v2476_v57  ;;  %v4006_v56 = vrot.slane %v271_v43, %v15226_v52  ;;  %v2526_v57 = vld [vmem:[%s15167_s26 + $0x4610] sm:$0xff] }
 0x4f8   : > { %13729 = vmatprep.subr.mxu1 %v2508_v58  ;;  %13695 = vmatpush3.msra.mxu0 %v2460_v60  ;;  %v2558_v58 = vld [vmem:[%s15167_s26 + $0x4710] sm:$0xff]  ;;  %v2573_v60 = vld [vmem:[%s15167_s26 + $0x4788] sm:$0xff] }
 0x4f9   : > { %9236 = vmatprep.mubr.f32.mxu0 %v3997_v59  ;;  %13730 = vmatpush3.msra.mxu1 %v2492_v61  ;;  %v2541_v59 = vld [vmem:[%s15167_s26 + $0x4688] sm:$0xff]  ;;  %v4013_v61 = vrot.slane %v3999_v50, %v15226_v52  ;;  %v2642_v43 = vld [vmem:[%s15167_s26 + $0x49b0] sm:$0xff]  ;;  %v272_v50 = vld [vmem:[%s15161_s29 + $0x120] sm:$0xff] }
 0x4fa   : > { %9237 = vmatmul.mubr.f32.vlgmr.msra.gmra.mxu0 %v3989_v48  ;;  %9306 = vmatprep.mubr.f32.mxu1 %v3998_v62  ;;  %v2543_v48 = vld [vmem:[%s15167_s26 + $0x4698] sm:$0xff]  ;;  %v2525_v62 = vld [vmem:[%s15167_s26 + $0x4608] sm:$0xff] }
 0x4fb   : > { %13734 = vmatprep.subr.mxu0 %v2555_v63  ;;  %13769 = vmatprep.subr.mxu1 %v2587_v0  ;;  %v2557_v63 = vld [vmem:[%s15167_s26 + $0x4708] sm:$0xff]  ;;  %v2540_v0 = vld [vmem:[%s15167_s26 + $0x4680] sm:$0xff] }
 0x4fc   : > { %9307 = vmatmul.mubr.f32.vlgmr.msra.gmra.mxu1 %v3996_v54  ;;  %13735 = vmatpush3.msra.mxu0 %v2539_v1  ;;  %v2542_v54 = vld [vmem:[%s15167_s26 + $0x4690] sm:$0xff]  ;;  %v2572_v1 = vld [vmem:[%s15167_s26 + $0x4780] sm:$0xff] }
 0x4fd   : > { %13770 = vmatpush3.msra.mxu1 %v2571_v2  ;;  %13736 = vmatprep.subr.mxu0 %v2554_v3  ;;  %v4014_v2 = vcombine.high %v4006_v56, %v4006_v56  ;;  %v2524_v3 = vld [vmem:[%s15167_s26 + $0x4600] sm:$0xff] }
 0x4fe   : > { %13771 = vmatprep.subr.mxu1 %v2586_v4  ;;  %13737 = vmatpush3.msra.mxu0 %v2538_v5  ;;  %v2556_v4 = vld [vmem:[%s15167_s26 + $0x4700] sm:$0xff]  ;;  %v4015_v5 = vcombine.high %v4013_v61, %v4013_v61 }
 0x4ff   : > { %13772 = vmatpush3.msra.mxu1 %v2570_v6  ;;  %13738 = vmatprep.subr.mxu0 %v2553_v7  ;;  %v2619_v6 = vld [vmem:[%s15167_s26 + $0x48f8] sm:$0xff] }
 0x500   : > { %13773 = vmatprep.subr.mxu1 %v2585_v8  ;;  %13739 = vmatpush3.msra.mxu0 %v2537_v9  ;;  %v2651_v7 = vld [vmem:[%s15167_s26 + $0x49f8] sm:$0xff] }
 0x501   : > { %13774 = vmatpush3.msra.mxu1 %v2569_v10  ;;  %13740 = vmatprep.subr.mxu0 %v2552_v11  ;;  %v2603_v8 = vld [vmem:[%s15167_s26 + $0x4878] sm:$0xff]  ;;  %v2618_v10 = vld [vmem:[%s15167_s26 + $0x48f0] sm:$0xff] }
 0x502   : > { %13775 = vmatprep.subr.mxu1 %v2584_v12  ;;  %13741 = vmatpush3.msra.mxu0 %v2536_v13  ;;  %v2635_v9 = vld [vmem:[%s15167_s26 + $0x4978] sm:$0xff]  ;;  %v2650_v11 = vld [vmem:[%s15167_s26 + $0x49f0] sm:$0xff] }
 0x503   : > { %13776 = vmatpush3.msra.mxu1 %v2568_v14  ;;  %13742 = vmatprep.subr.mxu0 %v2551_v15  ;;  %v2602_v12 = vld [vmem:[%s15167_s26 + $0x4870] sm:$0xff]  ;;  %v2617_v14 = vld [vmem:[%s15167_s26 + $0x48e8] sm:$0xff] }
 0x504   : > { %13777 = vmatprep.subr.mxu1 %v2583_v16  ;;  %13743 = vmatpush3.msra.mxu0 %v2535_v17  ;;  %v2634_v13 = vld [vmem:[%s15167_s26 + $0x4970] sm:$0xff]  ;;  %v2649_v15 = vld [vmem:[%s15167_s26 + $0x49e8] sm:$0xff] }
 0x505   : > { %13778 = vmatpush3.msra.mxu1 %v2567_v18  ;;  %13744 = vmatprep.subr.mxu0 %v2550_v19  ;;  %v2601_v16 = vld [vmem:[%s15167_s26 + $0x4868] sm:$0xff]  ;;  %v2616_v18 = vld [vmem:[%s15167_s26 + $0x48e0] sm:$0xff] }
 0x506   : > { %13779 = vmatprep.subr.mxu1 %v2582_v20  ;;  %13745 = vmatpush3.msra.mxu0 %v2534_v21  ;;  %v2633_v17 = vld [vmem:[%s15167_s26 + $0x4968] sm:$0xff]  ;;  %v2648_v19 = vld [vmem:[%s15167_s26 + $0x49e0] sm:$0xff] }
 0x507   : > { %13780 = vmatpush3.msra.mxu1 %v2566_v22  ;;  %13746 = vmatprep.subr.mxu0 %v2549_v23  ;;  %v2600_v20 = vld [vmem:[%s15167_s26 + $0x4860] sm:$0xff]  ;;  %v2615_v22 = vld [vmem:[%s15167_s26 + $0x48d8] sm:$0xff] }
 0x508   : > { %13781 = vmatprep.subr.mxu1 %v2581_v24  ;;  %13747 = vmatpush3.msra.mxu0 %v2533_v25  ;;  %v2632_v21 = vld [vmem:[%s15167_s26 + $0x4960] sm:$0xff]  ;;  %v2647_v23 = vld [vmem:[%s15167_s26 + $0x49d8] sm:$0xff] }
 0x509   : > { %13782 = vmatpush3.msra.mxu1 %v2565_v26  ;;  %13748 = vmatprep.subr.mxu0 %v2548_v27  ;;  %v2599_v24 = vld [vmem:[%s15167_s26 + $0x4858] sm:$0xff]  ;;  %v2614_v26 = vld [vmem:[%s15167_s26 + $0x48d0] sm:$0xff] }
 0x50a   : > { %13783 = vmatprep.subr.mxu1 %v2580_v28  ;;  %13749 = vmatpush3.msra.mxu0 %v2532_v29  ;;  %v2631_v25 = vld [vmem:[%s15167_s26 + $0x4958] sm:$0xff]  ;;  %v2646_v27 = vld [vmem:[%s15167_s26 + $0x49d0] sm:$0xff] }
 0x50b   : > { %13784 = vmatpush3.msra.mxu1 %v2564_v30  ;;  %13750 = vmatprep.subr.mxu0 %v2547_v31  ;;  %v2598_v28 = vld [vmem:[%s15167_s26 + $0x4850] sm:$0xff]  ;;  %v2613_v30 = vld [vmem:[%s15167_s26 + $0x48c8] sm:$0xff] }
 0x50c   : > { %13785 = vmatprep.subr.mxu1 %v2579_v32  ;;  %13751 = vmatpush3.msra.mxu0 %v2531_v33  ;;  %v2630_v29 = vld [vmem:[%s15167_s26 + $0x4950] sm:$0xff]  ;;  %v2645_v31 = vld [vmem:[%s15167_s26 + $0x49c8] sm:$0xff] }
 0x50d   : > { %13786 = vmatpush3.msra.mxu1 %v2563_v34  ;;  %13752 = vmatprep.subr.mxu0 %v2546_v35  ;;  %v2597_v32 = vld [vmem:[%s15167_s26 + $0x4848] sm:$0xff]  ;;  %v2612_v34 = vld [vmem:[%s15167_s26 + $0x48c0] sm:$0xff] }
 0x50e   : > { %13787 = vmatprep.subr.mxu1 %v2578_v36  ;;  %13753 = vmatpush3.msra.mxu0 %v2530_v37  ;;  %v2629_v33 = vld [vmem:[%s15167_s26 + $0x4948] sm:$0xff]  ;;  %v2644_v35 = vld [vmem:[%s15167_s26 + $0x49c0] sm:$0xff] }
 0x50f   : > { %13788 = vmatpush3.msra.mxu1 %v2562_v38  ;;  %13754 = vmatprep.subr.mxu0 %v2545_v39  ;;  %v2596_v36 = vld [vmem:[%s15167_s26 + $0x4840] sm:$0xff]  ;;  %v2611_v38 = vld [vmem:[%s15167_s26 + $0x48b8] sm:$0xff] }
 0x510   : > { %13789 = vmatprep.subr.mxu1 %v2577_v40  ;;  %13755 = vmatpush3.msra.mxu0 %v2529_v41  ;;  %v2628_v37 = vld [vmem:[%s15167_s26 + $0x4940] sm:$0xff]  ;;  %v2643_v39 = vld [vmem:[%s15167_s26 + $0x49b8] sm:$0xff] }
 0x511   : > { %13790 = vmatpush3.msra.mxu1 %v2561_v42  ;;  %13756 = vmatprep.subr.mxu0 %v2544_v44  ;;  %v2595_v40 = vld [vmem:[%s15167_s26 + $0x4838] sm:$0xff]  ;;  %v2610_v42 = vld [vmem:[%s15167_s26 + $0x48b0] sm:$0xff] }
 0x512   : > { %13791 = vmatprep.subr.mxu1 %v2576_v45  ;;  %13757 = vmatpush3.msra.mxu0 %v2528_v46  ;;  %v2627_v41 = vld [vmem:[%s15167_s26 + $0x4938] sm:$0xff]  ;;  %v2594_v44 = vld [vmem:[%s15167_s26 + $0x4830] sm:$0xff]  ;;  %v2609_v46 = vld [vmem:[%s15167_s26 + $0x48a8] sm:$0xff] }
 0x513   : > { %13792 = vmatpush3.msra.mxu1 %v2560_v47  ;;  %13758 = vmatprep.subr.mxu0 %v2543_v48  ;;  %v2626_v45 = vld [vmem:[%s15167_s26 + $0x4930] sm:$0xff]  ;;  %v2641_v47 = vld [vmem:[%s15167_s26 + $0x49a8] sm:$0xff] }
 0x514   : > { %13793 = vmatprep.subr.mxu1 %v2575_v49  ;;  %13759 = vmatpush3.msra.mxu0 %v2527_v51  ;;  %v2593_v48 = vld [vmem:[%s15167_s26 + $0x4828] sm:$0xff]  ;;  %v2608_v51 = vld [vmem:[%s15167_s26 + $0x48a0] sm:$0xff] }
 0x515   : > { %13794 = vmatpush3.msra.mxu1 %v2559_v53  ;;  %13760 = vmatprep.subr.mxu0 %v2542_v54  ;;  %v2625_v49 = vld [vmem:[%s15167_s26 + $0x4928] sm:$0xff]  ;;  %v2640_v53 = vld [vmem:[%s15167_s26 + $0x49a0] sm:$0xff] }
 0x516   : > { %13795 = vmatprep.subr.mxu1 %v2574_v55  ;;  %13761 = vmatpush3.msra.mxu0 %v2526_v57  ;;  %v2592_v54 = vld [vmem:[%s15167_s26 + $0x4820] sm:$0xff]  ;;  %v2639_v57 = vld [vmem:[%s15167_s26 + $0x4998] sm:$0xff] }
 0x517   : > { %13796 = vmatpush3.msra.mxu1 %v2558_v58  ;;  %13762 = vmatprep.subr.mxu0 %v2541_v59  ;;  %v2624_v55 = vld [vmem:[%s15167_s26 + $0x4920] sm:$0xff]  ;;  %v4016_v58 = vcombine.high %v272_v50, %v272_v50  ;;  %v2591_v59 = vld [vmem:[%s15167_s26 + $0x4818] sm:$0xff] }
 0x518   : > { %13797 = vmatprep.subr.mxu1 %v2573_v60  ;;  %13763 = vmatpush3.msra.mxu0 %v2525_v62  ;;  %v2623_v60 = vld [vmem:[%s15167_s26 + $0x4918] sm:$0xff]  ;;  %v2638_v62 = vld [vmem:[%s15167_s26 + $0x4990] sm:$0xff] }
 0x519   : > { %13798 = vmatpush3.msra.mxu1 %v2557_v63  ;;  %13764 = vmatprep.subr.mxu0 %v2540_v0  ;;  %v4023_v63 = vrot.slane %v272_v50, %v15226_v52  ;;  %v2590_v0 = vld [vmem:[%s15167_s26 + $0x4810] sm:$0xff] }
 0x51a   : > { %13799 = vmatprep.subr.mxu1 %v2572_v1  ;;  %13765 = vmatpush3.msra.mxu0 %v2524_v3  ;;  %v2622_v1 = vld [vmem:[%s15167_s26 + $0x4910] sm:$0xff]  ;;  %v2637_v3 = vld [vmem:[%s15167_s26 + $0x4988] sm:$0xff] }
 0x51b   : > { %9376 = vmatprep.mubr.f32.mxu0 %v4014_v2  ;;  %13800 = vmatpush3.msra.mxu1 %v2556_v4  ;;  %v2605_v2 = vld [vmem:[%s15167_s26 + $0x4888] sm:$0xff]  ;;  %v4030_v4 = vrot.slane %v4016_v58, %v15226_v52  ;;  %v2706_v50 = vld [vmem:[%s15167_s26 + $0x4bb0] sm:$0xff] }
 0x51c   : > { %9377 = vmatmul.mubr.f32.vlgmr.msra.gmra.mxu0 %v4006_v56  ;;  %9446 = vmatprep.mubr.f32.mxu1 %v4015_v5  ;;  %v2607_v56 = vld [vmem:[%s15167_s26 + $0x4898] sm:$0xff]  ;;  %v2589_v5 = vld [vmem:[%s15167_s26 + $0x4808] sm:$0xff] }
 0x51d   : > { %13804 = vmatprep.subr.mxu0 %v2619_v6  ;;  %13839 = vmatprep.subr.mxu1 %v2651_v7  ;;  %v2621_v6 = vld [vmem:[%s15167_s26 + $0x4908] sm:$0xff]  ;;  %v2604_v7 = vld [vmem:[%s15167_s26 + $0x4880] sm:$0xff] }
 0x51e   : > { %9447 = vmatmul.mubr.f32.vlgmr.msra.gmra.mxu1 %v4013_v61  ;;  %13805 = vmatpush3.msra.mxu0 %v2603_v8  ;;  %v2606_v61 = vld [vmem:[%s15167_s26 + $0x4890] sm:$0xff]  ;;  %v2636_v8 = vld [vmem:[%s15167_s26 + $0x4980] sm:$0xff]  ;;  %v273_v58 = vld [vmem:[%s15161_s29 + $0x128] sm:$0xff] }
 0x51f   : > { %13840 = vmatpush3.msra.mxu1 %v2635_v9  ;;  %13806 = vmatprep.subr.mxu0 %v2618_v10  ;;  %v4031_v9 = vcombine.high %v4023_v63, %v4023_v63  ;;  %v2588_v10 = vld [vmem:[%s15167_s26 + $0x4800] sm:$0xff] }
 0x520   : > { %13841 = vmatprep.subr.mxu1 %v2650_v11  ;;  %13807 = vmatpush3.msra.mxu0 %v2602_v12  ;;  %v2620_v11 = vld [vmem:[%s15167_s26 + $0x4900] sm:$0xff]  ;;  %v4032_v12 = vcombine.high %v4030_v4, %v4030_v4 }
 0x521   : > { %13842 = vmatpush3.msra.mxu1 %v2634_v13  ;;  %13808 = vmatprep.subr.mxu0 %v2617_v14  ;;  %v2683_v13 = vld [vmem:[%s15167_s26 + $0x4af8] sm:$0xff] }
 0x522   : > { %13843 = vmatprep.subr.mxu1 %v2649_v15  ;;  %13809 = vmatpush3.msra.mxu0 %v2601_v16  ;;  %v2715_v14 = vld [vmem:[%s15167_s26 + $0x4bf8] sm:$0xff] }
 0x523   : > { %13844 = vmatpush3.msra.mxu1 %v2633_v17  ;;  %13810 = vmatprep.subr.mxu0 %v2616_v18  ;;  %v2667_v15 = vld [vmem:[%s15167_s26 + $0x4a78] sm:$0xff]  ;;  %v2682_v17 = vld [vmem:[%s15167_s26 + $0x4af0] sm:$0xff] }
 0x524   : > { %13845 = vmatprep.subr.mxu1 %v2648_v19  ;;  %13811 = vmatpush3.msra.mxu0 %v2600_v20  ;;  %v2699_v16 = vld [vmem:[%s15167_s26 + $0x4b78] sm:$0xff]  ;;  %v2714_v18 = vld [vmem:[%s15167_s26 + $0x4bf0] sm:$0xff] }
 0x525   : > { %13846 = vmatpush3.msra.mxu1 %v2632_v21  ;;  %13812 = vmatprep.subr.mxu0 %v2615_v22  ;;  %v2666_v19 = vld [vmem:[%s15167_s26 + $0x4a70] sm:$0xff]  ;;  %v2681_v21 = vld [vmem:[%s15167_s26 + $0x4ae8] sm:$0xff] }
 0x526   : > { %13847 = vmatprep.subr.mxu1 %v2647_v23  ;;  %13813 = vmatpush3.msra.mxu0 %v2599_v24  ;;  %v2698_v20 = vld [vmem:[%s15167_s26 + $0x4b70] sm:$0xff]  ;;  %v2713_v22 = vld [vmem:[%s15167_s26 + $0x4be8] sm:$0xff] }
 0x527   : > { %13848 = vmatpush3.msra.mxu1 %v2631_v25  ;;  %13814 = vmatprep.subr.mxu0 %v2614_v26  ;;  %v2665_v23 = vld [vmem:[%s15167_s26 + $0x4a68] sm:$0xff]  ;;  %v2680_v25 = vld [vmem:[%s15167_s26 + $0x4ae0] sm:$0xff] }
 0x528   : > { %13849 = vmatprep.subr.mxu1 %v2646_v27  ;;  %13815 = vmatpush3.msra.mxu0 %v2598_v28  ;;  %v2697_v24 = vld [vmem:[%s15167_s26 + $0x4b68] sm:$0xff]  ;;  %v2712_v26 = vld [vmem:[%s15167_s26 + $0x4be0] sm:$0xff] }
 0x529   : > { %13850 = vmatpush3.msra.mxu1 %v2630_v29  ;;  %13816 = vmatprep.subr.mxu0 %v2613_v30  ;;  %v2664_v27 = vld [vmem:[%s15167_s26 + $0x4a60] sm:$0xff]  ;;  %v2679_v29 = vld [vmem:[%s15167_s26 + $0x4ad8] sm:$0xff] }
 0x52a   : > { %13851 = vmatprep.subr.mxu1 %v2645_v31  ;;  %13817 = vmatpush3.msra.mxu0 %v2597_v32  ;;  %v2696_v28 = vld [vmem:[%s15167_s26 + $0x4b60] sm:$0xff]  ;;  %v2711_v30 = vld [vmem:[%s15167_s26 + $0x4bd8] sm:$0xff] }
 0x52b   : > { %13852 = vmatpush3.msra.mxu1 %v2629_v33  ;;  %13818 = vmatprep.subr.mxu0 %v2612_v34  ;;  %v2663_v31 = vld [vmem:[%s15167_s26 + $0x4a58] sm:$0xff]  ;;  %v2678_v33 = vld [vmem:[%s15167_s26 + $0x4ad0] sm:$0xff] }
 0x52c   : > { %13853 = vmatprep.subr.mxu1 %v2644_v35  ;;  %13819 = vmatpush3.msra.mxu0 %v2596_v36  ;;  %v2695_v32 = vld [vmem:[%s15167_s26 + $0x4b58] sm:$0xff]  ;;  %v2710_v34 = vld [vmem:[%s15167_s26 + $0x4bd0] sm:$0xff] }
 0x52d   : > { %13854 = vmatpush3.msra.mxu1 %v2628_v37  ;;  %13820 = vmatprep.subr.mxu0 %v2611_v38  ;;  %v2662_v35 = vld [vmem:[%s15167_s26 + $0x4a50] sm:$0xff]  ;;  %v2677_v37 = vld [vmem:[%s15167_s26 + $0x4ac8] sm:$0xff] }
 0x52e   : > { %13855 = vmatprep.subr.mxu1 %v2643_v39  ;;  %13821 = vmatpush3.msra.mxu0 %v2595_v40  ;;  %v2694_v36 = vld [vmem:[%s15167_s26 + $0x4b50] sm:$0xff]  ;;  %v2709_v38 = vld [vmem:[%s15167_s26 + $0x4bc8] sm:$0xff] }
 0x52f   : > { %13856 = vmatpush3.msra.mxu1 %v2627_v41  ;;  %13822 = vmatprep.subr.mxu0 %v2610_v42  ;;  %v2661_v39 = vld [vmem:[%s15167_s26 + $0x4a48] sm:$0xff]  ;;  %v2676_v41 = vld [vmem:[%s15167_s26 + $0x4ac0] sm:$0xff] }
 0x530   : > { %13857 = vmatprep.subr.mxu1 %v2642_v43  ;;  %13823 = vmatpush3.msra.mxu0 %v2594_v44  ;;  %v2693_v40 = vld [vmem:[%s15167_s26 + $0x4b48] sm:$0xff]  ;;  %v2708_v42 = vld [vmem:[%s15167_s26 + $0x4bc0] sm:$0xff] }
 0x531   : > { %13858 = vmatpush3.msra.mxu1 %v2626_v45  ;;  %13824 = vmatprep.subr.mxu0 %v2609_v46  ;;  %v2660_v43 = vld [vmem:[%s15167_s26 + $0x4a40] sm:$0xff]  ;;  %v2675_v45 = vld [vmem:[%s15167_s26 + $0x4ab8] sm:$0xff] }
 0x532   : > { %13859 = vmatprep.subr.mxu1 %v2641_v47  ;;  %13825 = vmatpush3.msra.mxu0 %v2593_v48  ;;  %v2692_v44 = vld [vmem:[%s15167_s26 + $0x4b40] sm:$0xff]  ;;  %v2707_v46 = vld [vmem:[%s15167_s26 + $0x4bb8] sm:$0xff] }
 0x533   : > { %13860 = vmatpush3.msra.mxu1 %v2625_v49  ;;  %13826 = vmatprep.subr.mxu0 %v2608_v51  ;;  %v2659_v47 = vld [vmem:[%s15167_s26 + $0x4a38] sm:$0xff]  ;;  %v2674_v49 = vld [vmem:[%s15167_s26 + $0x4ab0] sm:$0xff] }
 0x534   : > { %13861 = vmatprep.subr.mxu1 %v2640_v53  ;;  %13827 = vmatpush3.msra.mxu0 %v2592_v54  ;;  %v2691_v48 = vld [vmem:[%s15167_s26 + $0x4b38] sm:$0xff]  ;;  %v2658_v51 = vld [vmem:[%s15167_s26 + $0x4a30] sm:$0xff]  ;;  %v2673_v54 = vld [vmem:[%s15167_s26 + $0x4aa8] sm:$0xff] }
 0x535   : > { %13862 = vmatpush3.msra.mxu1 %v2624_v55  ;;  %13828 = vmatprep.subr.mxu0 %v2607_v56  ;;  %v2690_v53 = vld [vmem:[%s15167_s26 + $0x4b30] sm:$0xff]  ;;  %v2705_v55 = vld [vmem:[%s15167_s26 + $0x4ba8] sm:$0xff] }
 0x536   : > { %13863 = vmatprep.subr.mxu1 %v2639_v57  ;;  %13829 = vmatpush3.msra.mxu0 %v2591_v59  ;;  %v2657_v56 = vld [vmem:[%s15167_s26 + $0x4a28] sm:$0xff]  ;;  %v2672_v59 = vld [vmem:[%s15167_s26 + $0x4aa0] sm:$0xff] }
 0x537   : > { %13864 = vmatpush3.msra.mxu1 %v2623_v60  ;;  %13830 = vmatprep.subr.mxu0 %v2606_v61  ;;  %v2689_v57 = vld [vmem:[%s15167_s26 + $0x4b28] sm:$0xff]  ;;  %v2704_v60 = vld [vmem:[%s15167_s26 + $0x4ba0] sm:$0xff] }
 0x538   : > { %13865 = vmatprep.subr.mxu1 %v2638_v62  ;;  %13831 = vmatpush3.msra.mxu0 %v2590_v0  ;;  %v2656_v61 = vld [vmem:[%s15167_s26 + $0x4a20] sm:$0xff]  ;;  %v2703_v0 = vld [vmem:[%s15167_s26 + $0x4b98] sm:$0xff] }
 0x539   : > { %13866 = vmatpush3.msra.mxu1 %v2622_v1  ;;  %13832 = vmatprep.subr.mxu0 %v2605_v2  ;;  %v2688_v62 = vld [vmem:[%s15167_s26 + $0x4b20] sm:$0xff]  ;;  %v4033_v1 = vcombine.high %v273_v58, %v273_v58  ;;  %v2655_v2 = vld [vmem:[%s15167_s26 + $0x4a18] sm:$0xff] }
 0x53a   : > { %13867 = vmatprep.subr.mxu1 %v2637_v3  ;;  %13833 = vmatpush3.msra.mxu0 %v2589_v5  ;;  %v2687_v3 = vld [vmem:[%s15167_s26 + $0x4b18] sm:$0xff]  ;;  %v2702_v5 = vld [vmem:[%s15167_s26 + $0x4b90] sm:$0xff] }
 0x53b   : > { %13868 = vmatpush3.msra.mxu1 %v2621_v6  ;;  %13834 = vmatprep.subr.mxu0 %v2604_v7  ;;  %v4040_v6 = vrot.slane %v273_v58, %v15226_v52  ;;  %v2654_v7 = vld [vmem:[%s15167_s26 + $0x4a10] sm:$0xff] }
 0x53c   : > { %13869 = vmatprep.subr.mxu1 %v2636_v8  ;;  %13835 = vmatpush3.msra.mxu0 %v2588_v10  ;;  %v2686_v8 = vld [vmem:[%s15167_s26 + $0x4b10] sm:$0xff]  ;;  %v2701_v10 = vld [vmem:[%s15167_s26 + $0x4b88] sm:$0xff] }
 0x53d   : > { %9516 = vmatprep.mubr.f32.mxu0 %v4031_v9  ;;  %13870 = vmatpush3.msra.mxu1 %v2620_v11  ;;  %v2669_v9 = vld [vmem:[%s15167_s26 + $0x4a88] sm:$0xff]  ;;  %v4047_v11 = vrot.slane %v4033_v1, %v15226_v52  ;;  %v2770_v58 = vld [vmem:[%s15167_s26 + $0x4db0] sm:$0xff] }
 0x53e   : > { %9517 = vmatmul.mubr.f32.vlgmr.msra.gmra.mxu0 %v4023_v63  ;;  %9586 = vmatprep.mubr.f32.mxu1 %v4032_v12  ;;  %v2671_v63 = vld [vmem:[%s15167_s26 + $0x4a98] sm:$0xff]  ;;  %v2653_v12 = vld [vmem:[%s15167_s26 + $0x4a08] sm:$0xff]  ;;  %v274_v1 = vld [vmem:[%s15161_s29 + $0x130] sm:$0xff] }
 0x53f   : > { %13874 = vmatprep.subr.mxu0 %v2683_v13  ;;  %13909 = vmatprep.subr.mxu1 %v2715_v14  ;;  %v2685_v13 = vld [vmem:[%s15167_s26 + $0x4b08] sm:$0xff]  ;;  %v2668_v14 = vld [vmem:[%s15167_s26 + $0x4a80] sm:$0xff] }
 0x540   : > { %9587 = vmatmul.mubr.f32.vlgmr.msra.gmra.mxu1 %v4030_v4  ;;  %13875 = vmatpush3.msra.mxu0 %v2667_v15  ;;  %v2670_v4 = vld [vmem:[%s15167_s26 + $0x4a90] sm:$0xff]  ;;  %v2700_v15 = vld [vmem:[%s15167_s26 + $0x4b80] sm:$0xff] }
 0x541   : > { %13910 = vmatpush3.msra.mxu1 %v2699_v16  ;;  %13876 = vmatprep.subr.mxu0 %v2682_v17  ;;  %v4048_v16 = vcombine.high %v4040_v6, %v4040_v6  ;;  %v2652_v17 = vld [vmem:[%s15167_s26 + $0x4a00] sm:$0xff] }
 0x542   : > { %13911 = vmatprep.subr.mxu1 %v2714_v18  ;;  %13877 = vmatpush3.msra.mxu0 %v2666_v19  ;;  %v2684_v18 = vld [vmem:[%s15167_s26 + $0x4b00] sm:$0xff]  ;;  %v4049_v19 = vcombine.high %v4047_v11, %v4047_v11 }
 0x543   : > { %13912 = vmatpush3.msra.mxu1 %v2698_v20  ;;  %13878 = vmatprep.subr.mxu0 %v2681_v21  ;;  %v2747_v20 = vld [vmem:[%s15167_s26 + $0x4cf8] sm:$0xff] }
 0x544   : > { %13913 = vmatprep.subr.mxu1 %v2713_v22  ;;  %13879 = vmatpush3.msra.mxu0 %v2665_v23  ;;  %v2779_v21 = vld [vmem:[%s15167_s26 + $0x4df8] sm:$0xff] }
 0x545   : > { %13914 = vmatpush3.msra.mxu1 %v2697_v24  ;;  %13880 = vmatprep.subr.mxu0 %v2680_v25  ;;  %v2731_v22 = vld [vmem:[%s15167_s26 + $0x4c78] sm:$0xff]  ;;  %v2746_v24 = vld [vmem:[%s15167_s26 + $0x4cf0] sm:$0xff] }
 0x546   : > { %13915 = vmatprep.subr.mxu1 %v2712_v26  ;;  %13881 = vmatpush3.msra.mxu0 %v2664_v27  ;;  %v2763_v23 = vld [vmem:[%s15167_s26 + $0x4d78] sm:$0xff]  ;;  %v2778_v25 = vld [vmem:[%s15167_s26 + $0x4df0] sm:$0xff] }
 0x547   : > { %13916 = vmatpush3.msra.mxu1 %v2696_v28  ;;  %13882 = vmatprep.subr.mxu0 %v2679_v29  ;;  %v2730_v26 = vld [vmem:[%s15167_s26 + $0x4c70] sm:$0xff]  ;;  %v2745_v28 = vld [vmem:[%s15167_s26 + $0x4ce8] sm:$0xff] }
 0x548   : > { %13917 = vmatprep.subr.mxu1 %v2711_v30  ;;  %13883 = vmatpush3.msra.mxu0 %v2663_v31  ;;  %v2762_v27 = vld [vmem:[%s15167_s26 + $0x4d70] sm:$0xff]  ;;  %v2777_v29 = vld [vmem:[%s15167_s26 + $0x4de8] sm:$0xff] }
 0x549   : > { %13918 = vmatpush3.msra.mxu1 %v2695_v32  ;;  %13884 = vmatprep.subr.mxu0 %v2678_v33  ;;  %v2729_v30 = vld [vmem:[%s15167_s26 + $0x4c68] sm:$0xff]  ;;  %v2744_v32 = vld [vmem:[%s15167_s26 + $0x4ce0] sm:$0xff] }
 0x54a   : > { %13919 = vmatprep.subr.mxu1 %v2710_v34  ;;  %13885 = vmatpush3.msra.mxu0 %v2662_v35  ;;  %v2761_v31 = vld [vmem:[%s15167_s26 + $0x4d68] sm:$0xff]  ;;  %v2776_v33 = vld [vmem:[%s15167_s26 + $0x4de0] sm:$0xff] }
 0x54b   : > { %13920 = vmatpush3.msra.mxu1 %v2694_v36  ;;  %13886 = vmatprep.subr.mxu0 %v2677_v37  ;;  %v2728_v34 = vld [vmem:[%s15167_s26 + $0x4c60] sm:$0xff]  ;;  %v2743_v36 = vld [vmem:[%s15167_s26 + $0x4cd8] sm:$0xff] }
 0x54c   : > { %13921 = vmatprep.subr.mxu1 %v2709_v38  ;;  %13887 = vmatpush3.msra.mxu0 %v2661_v39  ;;  %v2760_v35 = vld [vmem:[%s15167_s26 + $0x4d60] sm:$0xff]  ;;  %v2775_v37 = vld [vmem:[%s15167_s26 + $0x4dd8] sm:$0xff] }
 0x54d   : > { %13922 = vmatpush3.msra.mxu1 %v2693_v40  ;;  %13888 = vmatprep.subr.mxu0 %v2676_v41  ;;  %v2727_v38 = vld [vmem:[%s15167_s26 + $0x4c58] sm:$0xff]  ;;  %v2742_v40 = vld [vmem:[%s15167_s26 + $0x4cd0] sm:$0xff] }
 0x54e   : > { %13923 = vmatprep.subr.mxu1 %v2708_v42  ;;  %13889 = vmatpush3.msra.mxu0 %v2660_v43  ;;  %v2759_v39 = vld [vmem:[%s15167_s26 + $0x4d58] sm:$0xff]  ;;  %v2774_v41 = vld [vmem:[%s15167_s26 + $0x4dd0] sm:$0xff] }
 0x54f   : > { %13924 = vmatpush3.msra.mxu1 %v2692_v44  ;;  %13890 = vmatprep.subr.mxu0 %v2675_v45  ;;  %v2726_v42 = vld [vmem:[%s15167_s26 + $0x4c50] sm:$0xff]  ;;  %v2741_v44 = vld [vmem:[%s15167_s26 + $0x4cc8] sm:$0xff] }
 0x550   : > { %13925 = vmatprep.subr.mxu1 %v2707_v46  ;;  %13891 = vmatpush3.msra.mxu0 %v2659_v47  ;;  %v2758_v43 = vld [vmem:[%s15167_s26 + $0x4d50] sm:$0xff]  ;;  %v2773_v45 = vld [vmem:[%s15167_s26 + $0x4dc8] sm:$0xff] }
 0x551   : > { %13926 = vmatpush3.msra.mxu1 %v2691_v48  ;;  %13892 = vmatprep.subr.mxu0 %v2674_v49  ;;  %v2725_v46 = vld [vmem:[%s15167_s26 + $0x4c48] sm:$0xff]  ;;  %v2740_v48 = vld [vmem:[%s15167_s26 + $0x4cc0] sm:$0xff] }
 0x552   : > { %13927 = vmatprep.subr.mxu1 %v2706_v50  ;;  %13893 = vmatpush3.msra.mxu0 %v2658_v51  ;;  %v2757_v47 = vld [vmem:[%s15167_s26 + $0x4d48] sm:$0xff]  ;;  %v2772_v49 = vld [vmem:[%s15167_s26 + $0x4dc0] sm:$0xff] }
 0x553   : > { %13928 = vmatpush3.msra.mxu1 %v2690_v53  ;;  %13894 = vmatprep.subr.mxu0 %v2673_v54  ;;  %v2724_v50 = vld [vmem:[%s15167_s26 + $0x4c40] sm:$0xff]  ;;  %v2739_v53 = vld [vmem:[%s15167_s26 + $0x4cb8] sm:$0xff] }
 0x554   : > { %13929 = vmatprep.subr.mxu1 %v2705_v55  ;;  %13895 = vmatpush3.msra.mxu0 %v2657_v56  ;;  %v2756_v51 = vld [vmem:[%s15167_s26 + $0x4d40] sm:$0xff]  ;;  %v2771_v54 = vld [vmem:[%s15167_s26 + $0x4db8] sm:$0xff] }
 0x555   : > { %13930 = vmatpush3.msra.mxu1 %v2689_v57  ;;  %13896 = vmatprep.subr.mxu0 %v2672_v59  ;;  %v2723_v55 = vld [vmem:[%s15167_s26 + $0x4c38] sm:$0xff]  ;;  %v2738_v57 = vld [vmem:[%s15167_s26 + $0x4cb0] sm:$0xff] }
 0x556   : > { %13931 = vmatprep.subr.mxu1 %v2704_v60  ;;  %13897 = vmatpush3.msra.mxu0 %v2656_v61  ;;  %v2755_v56 = vld [vmem:[%s15167_s26 + $0x4d38] sm:$0xff]  ;;  %v2722_v59 = vld [vmem:[%s15167_s26 + $0x4c30] sm:$0xff]  ;;  %v2737_v61 = vld [vmem:[%s15167_s26 + $0x4ca8] sm:$0xff] }
 0x557   : > { %13932 = vmatpush3.msra.mxu1 %v2688_v62  ;;  %13898 = vmatprep.subr.mxu0 %v2671_v63  ;;  %v2754_v60 = vld [vmem:[%s15167_s26 + $0x4d30] sm:$0xff]  ;;  %v2769_v62 = vld [vmem:[%s15167_s26 + $0x4da8] sm:$0xff] }
 0x558   : > { %13933 = vmatprep.subr.mxu1 %v2703_v0  ;;  %13899 = vmatpush3.msra.mxu0 %v2655_v2  ;;  %v2721_v63 = vld [vmem:[%s15167_s26 + $0x4c28] sm:$0xff]  ;;  %v2736_v2 = vld [vmem:[%s15167_s26 + $0x4ca0] sm:$0xff] }
 0x559   : > { %13934 = vmatpush3.msra.mxu1 %v2687_v3  ;;  %13900 = vmatprep.subr.mxu0 %v2670_v4  ;;  %v2753_v0 = vld [vmem:[%s15167_s26 + $0x4d28] sm:$0xff]  ;;  %v2768_v3 = vld [vmem:[%s15167_s26 + $0x4da0] sm:$0xff] }
 0x55a   : > { %13935 = vmatprep.subr.mxu1 %v2702_v5  ;;  %13901 = vmatpush3.msra.mxu0 %v2654_v7  ;;  %v2720_v4 = vld [vmem:[%s15167_s26 + $0x4c20] sm:$0xff]  ;;  %v2767_v7 = vld [vmem:[%s15167_s26 + $0x4d98] sm:$0xff] }
 0x55b   : > { %13936 = vmatpush3.msra.mxu1 %v2686_v8  ;;  %13902 = vmatprep.subr.mxu0 %v2669_v9  ;;  %v2752_v5 = vld [vmem:[%s15167_s26 + $0x4d20] sm:$0xff]  ;;  %v4050_v8 = vcombine.high %v274_v1, %v274_v1  ;;  %v2719_v9 = vld [vmem:[%s15167_s26 + $0x4c18] sm:$0xff] }
 0x55c   : > { %13937 = vmatprep.subr.mxu1 %v2701_v10  ;;  %13903 = vmatpush3.msra.mxu0 %v2653_v12  ;;  %v2751_v10 = vld [vmem:[%s15167_s26 + $0x4d18] sm:$0xff]  ;;  %v2766_v12 = vld [vmem:[%s15167_s26 + $0x4d90] sm:$0xff] }
 0x55d   : > { %13938 = vmatpush3.msra.mxu1 %v2685_v13  ;;  %13904 = vmatprep.subr.mxu0 %v2668_v14  ;;  %v4057_v13 = vrot.slane %v274_v1, %v15226_v52  ;;  %v2718_v14 = vld [vmem:[%s15167_s26 + $0x4c10] sm:$0xff] }
 0x55e   : > { %13939 = vmatprep.subr.mxu1 %v2700_v15  ;;  %13905 = vmatpush3.msra.mxu0 %v2652_v17  ;;  %v2750_v15 = vld [vmem:[%s15167_s26 + $0x4d10] sm:$0xff]  ;;  %v2765_v17 = vld [vmem:[%s15167_s26 + $0x4d88] sm:$0xff] }
 0x55f   : > { %9656 = vmatprep.mubr.f32.mxu0 %v4048_v16  ;;  %13940 = vmatpush3.msra.mxu1 %v2684_v18  ;;  %v2733_v16 = vld [vmem:[%s15167_s26 + $0x4c88] sm:$0xff]  ;;  %v4064_v18 = vrot.slane %v4050_v8, %v15226_v52  ;;  %v2834_v1 = vld [vmem:[%s15167_s26 + $0x4fb0] sm:$0xff]  ;;  %v275_v8 = vld [vmem:[%s15161_s29 + $0x138] sm:$0xff] }
 0x560   : > { %9657 = vmatmul.mubr.f32.vlgmr.msra.gmra.mxu0 %v4040_v6  ;;  %9726 = vmatprep.mubr.f32.mxu1 %v4049_v19  ;;  %v2735_v6 = vld [vmem:[%s15167_s26 + $0x4c98] sm:$0xff]  ;;  %v2717_v19 = vld [vmem:[%s15167_s26 + $0x4c08] sm:$0xff] }
 0x561   : > { %13944 = vmatprep.subr.mxu0 %v2747_v20  ;;  %13979 = vmatprep.subr.mxu1 %v2779_v21  ;;  %v2749_v20 = vld [vmem:[%s15167_s26 + $0x4d08] sm:$0xff]  ;;  %v2732_v21 = vld [vmem:[%s15167_s26 + $0x4c80] sm:$0xff] }
 0x562   : > { %9727 = vmatmul.mubr.f32.vlgmr.msra.gmra.mxu1 %v4047_v11  ;;  %13945 = vmatpush3.msra.mxu0 %v2731_v22  ;;  %v2734_v11 = vld [vmem:[%s15167_s26 + $0x4c90] sm:$0xff]  ;;  %v2764_v22 = vld [vmem:[%s15167_s26 + $0x4d80] sm:$0xff] }
 0x563   : > { %13980 = vmatpush3.msra.mxu1 %v2763_v23  ;;  %13946 = vmatprep.subr.mxu0 %v2746_v24  ;;  %v4065_v23 = vcombine.high %v4057_v13, %v4057_v13  ;;  %v2716_v24 = vld [vmem:[%s15167_s26 + $0x4c00] sm:$0xff] }
 0x564   : > { %13981 = vmatprep.subr.mxu1 %v2778_v25  ;;  %13947 = vmatpush3.msra.mxu0 %v2730_v26  ;;  %v2748_v25 = vld [vmem:[%s15167_s26 + $0x4d00] sm:$0xff]  ;;  %v4066_v26 = vcombine.high %v4064_v18, %v4064_v18 }
 0x565   : > { %13982 = vmatpush3.msra.mxu1 %v2762_v27  ;;  %13948 = vmatprep.subr.mxu0 %v2745_v28  ;;  %v2811_v27 = vld [vmem:[%s15167_s26 + $0x4ef8] sm:$0xff] }
 0x566   : > { %13983 = vmatprep.subr.mxu1 %v2777_v29  ;;  %13949 = vmatpush3.msra.mxu0 %v2729_v30  ;;  %v2843_v28 = vld [vmem:[%s15167_s26 + $0x4ff8] sm:$0xff] }
 0x567   : > { %13984 = vmatpush3.msra.mxu1 %v2761_v31  ;;  %13950 = vmatprep.subr.mxu0 %v2744_v32  ;;  %v2795_v29 = vld [vmem:[%s15167_s26 + $0x4e78] sm:$0xff]  ;;  %v2810_v31 = vld [vmem:[%s15167_s26 + $0x4ef0] sm:$0xff] }
 0x568   : > { %13985 = vmatprep.subr.mxu1 %v2776_v33  ;;  %13951 = vmatpush3.msra.mxu0 %v2728_v34  ;;  %v2827_v30 = vld [vmem:[%s15167_s26 + $0x4f78] sm:$0xff]  ;;  %v2842_v32 = vld [vmem:[%s15167_s26 + $0x4ff0] sm:$0xff] }
 0x569   : > { %13986 = vmatpush3.msra.mxu1 %v2760_v35  ;;  %13952 = vmatprep.subr.mxu0 %v2743_v36  ;;  %v2794_v33 = vld [vmem:[%s15167_s26 + $0x4e70] sm:$0xff]  ;;  %v2809_v35 = vld [vmem:[%s15167_s26 + $0x4ee8] sm:$0xff] }
 0x56a   : > { %13987 = vmatprep.subr.mxu1 %v2775_v37  ;;  %13953 = vmatpush3.msra.mxu0 %v2727_v38  ;;  %v2826_v34 = vld [vmem:[%s15167_s26 + $0x4f70] sm:$0xff]  ;;  %v2841_v36 = vld [vmem:[%s15167_s26 + $0x4fe8] sm:$0xff] }
 0x56b   : > { %13988 = vmatpush3.msra.mxu1 %v2759_v39  ;;  %13954 = vmatprep.subr.mxu0 %v2742_v40  ;;  %v2793_v37 = vld [vmem:[%s15167_s26 + $0x4e68] sm:$0xff]  ;;  %v2808_v39 = vld [vmem:[%s15167_s26 + $0x4ee0] sm:$0xff] }
 0x56c   : > { %13989 = vmatprep.subr.mxu1 %v2774_v41  ;;  %13955 = vmatpush3.msra.mxu0 %v2726_v42  ;;  %v2825_v38 = vld [vmem:[%s15167_s26 + $0x4f68] sm:$0xff]  ;;  %v2840_v40 = vld [vmem:[%s15167_s26 + $0x4fe0] sm:$0xff] }
 0x56d   : > { %13990 = vmatpush3.msra.mxu1 %v2758_v43  ;;  %13956 = vmatprep.subr.mxu0 %v2741_v44  ;;  %v2792_v41 = vld [vmem:[%s15167_s26 + $0x4e60] sm:$0xff]  ;;  %v2807_v43 = vld [vmem:[%s15167_s26 + $0x4ed8] sm:$0xff] }
 0x56e   : > { %13991 = vmatprep.subr.mxu1 %v2773_v45  ;;  %13957 = vmatpush3.msra.mxu0 %v2725_v46  ;;  %v2824_v42 = vld [vmem:[%s15167_s26 + $0x4f60] sm:$0xff]  ;;  %v2839_v44 = vld [vmem:[%s15167_s26 + $0x4fd8] sm:$0xff] }
 0x56f   : > { %13992 = vmatpush3.msra.mxu1 %v2757_v47  ;;  %13958 = vmatprep.subr.mxu0 %v2740_v48  ;;  %v2791_v45 = vld [vmem:[%s15167_s26 + $0x4e58] sm:$0xff]  ;;  %v2806_v47 = vld [vmem:[%s15167_s26 + $0x4ed0] sm:$0xff] }
 0x570   : > { %13993 = vmatprep.subr.mxu1 %v2772_v49  ;;  %13959 = vmatpush3.msra.mxu0 %v2724_v50  ;;  %v2823_v46 = vld [vmem:[%s15167_s26 + $0x4f58] sm:$0xff]  ;;  %v2838_v48 = vld [vmem:[%s15167_s26 + $0x4fd0] sm:$0xff] }
 0x571   : > { %13994 = vmatpush3.msra.mxu1 %v2756_v51  ;;  %13960 = vmatprep.subr.mxu0 %v2739_v53  ;;  %v2790_v49 = vld [vmem:[%s15167_s26 + $0x4e50] sm:$0xff]  ;;  %v2805_v51 = vld [vmem:[%s15167_s26 + $0x4ec8] sm:$0xff] }
 0x572   : > { %13995 = vmatprep.subr.mxu1 %v2771_v54  ;;  %13961 = vmatpush3.msra.mxu0 %v2723_v55  ;;  %v2822_v50 = vld [vmem:[%s15167_s26 + $0x4f50] sm:$0xff]  ;;  %v2837_v53 = vld [vmem:[%s15167_s26 + $0x4fc8] sm:$0xff] }
 0x573   : > { %13996 = vmatpush3.msra.mxu1 %v2755_v56  ;;  %13962 = vmatprep.subr.mxu0 %v2738_v57  ;;  %v2789_v54 = vld [vmem:[%s15167_s26 + $0x4e48] sm:$0xff]  ;;  %v2804_v56 = vld [vmem:[%s15167_s26 + $0x4ec0] sm:$0xff] }
 0x574   : > { %13997 = vmatprep.subr.mxu1 %v2770_v58  ;;  %13963 = vmatpush3.msra.mxu0 %v2722_v59  ;;  %v2821_v55 = vld [vmem:[%s15167_s26 + $0x4f48] sm:$0xff]  ;;  %v2836_v57 = vld [vmem:[%s15167_s26 + $0x4fc0] sm:$0xff] }
 0x575   : > { %13998 = vmatpush3.msra.mxu1 %v2754_v60  ;;  %13964 = vmatprep.subr.mxu0 %v2737_v61  ;;  %v2788_v58 = vld [vmem:[%s15167_s26 + $0x4e40] sm:$0xff]  ;;  %v2803_v60 = vld [vmem:[%s15167_s26 + $0x4eb8] sm:$0xff] }
 0x576   : > { %13999 = vmatprep.subr.mxu1 %v2769_v62  ;;  %13965 = vmatpush3.msra.mxu0 %v2721_v63  ;;  %v2820_v59 = vld [vmem:[%s15167_s26 + $0x4f40] sm:$0xff]  ;;  %v2835_v61 = vld [vmem:[%s15167_s26 + $0x4fb8] sm:$0xff] }
 0x577   : > { %14000 = vmatpush3.msra.mxu1 %v2753_v0  ;;  %13966 = vmatprep.subr.mxu0 %v2736_v2  ;;  %v2787_v62 = vld [vmem:[%s15167_s26 + $0x4e38] sm:$0xff]  ;;  %v2802_v0 = vld [vmem:[%s15167_s26 + $0x4eb0] sm:$0xff] }
 0x578   : > { %14001 = vmatprep.subr.mxu1 %v2768_v3  ;;  %13967 = vmatpush3.msra.mxu0 %v2720_v4  ;;  %v2819_v63 = vld [vmem:[%s15167_s26 + $0x4f38] sm:$0xff]  ;;  %v2786_v2 = vld [vmem:[%s15167_s26 + $0x4e30] sm:$0xff]  ;;  %v2801_v4 = vld [vmem:[%s15167_s26 + $0x4ea8] sm:$0xff] }
 0x579   : > { %14002 = vmatpush3.msra.mxu1 %v2752_v5  ;;  %13968 = vmatprep.subr.mxu0 %v2735_v6  ;;  %v2818_v3 = vld [vmem:[%s15167_s26 + $0x4f30] sm:$0xff]  ;;  %v2833_v5 = vld [vmem:[%s15167_s26 + $0x4fa8] sm:$0xff] }
 0x57a   : > { %14003 = vmatprep.subr.mxu1 %v2767_v7  ;;  %13969 = vmatpush3.msra.mxu0 %v2719_v9  ;;  %v2785_v6 = vld [vmem:[%s15167_s26 + $0x4e28] sm:$0xff]  ;;  %v2800_v9 = vld [vmem:[%s15167_s26 + $0x4ea0] sm:$0xff] }
 0x57b   : > { %14004 = vmatpush3.msra.mxu1 %v2751_v10  ;;  %13970 = vmatprep.subr.mxu0 %v2734_v11  ;;  %v2817_v7 = vld [vmem:[%s15167_s26 + $0x4f28] sm:$0xff]  ;;  %v2832_v10 = vld [vmem:[%s15167_s26 + $0x4fa0] sm:$0xff] }
 0x57c   : > { %14005 = vmatprep.subr.mxu1 %v2766_v12  ;;  %13971 = vmatpush3.msra.mxu0 %v2718_v14  ;;  %v2784_v11 = vld [vmem:[%s15167_s26 + $0x4e20] sm:$0xff]  ;;  %v2831_v14 = vld [vmem:[%s15167_s26 + $0x4f98] sm:$0xff] }
 0x57d   : > { %14006 = vmatpush3.msra.mxu1 %v2750_v15  ;;  %13972 = vmatprep.subr.mxu0 %v2733_v16  ;;  %v2816_v12 = vld [vmem:[%s15167_s26 + $0x4f20] sm:$0xff]  ;;  %v4067_v15 = vcombine.high %v275_v8, %v275_v8  ;;  %v2783_v16 = vld [vmem:[%s15167_s26 + $0x4e18] sm:$0xff] }
 0x57e   : > { %14007 = vmatprep.subr.mxu1 %v2765_v17  ;;  %13973 = vmatpush3.msra.mxu0 %v2717_v19  ;;  %v2815_v17 = vld [vmem:[%s15167_s26 + $0x4f18] sm:$0xff]  ;;  %v2830_v19 = vld [vmem:[%s15167_s26 + $0x4f90] sm:$0xff] }
 0x57f   : > { %14008 = vmatpush3.msra.mxu1 %v2749_v20  ;;  %13974 = vmatprep.subr.mxu0 %v2732_v21  ;;  %v4074_v20 = vrot.slane %v275_v8, %v15226_v52  ;;  %v2782_v21 = vld [vmem:[%s15167_s26 + $0x4e10] sm:$0xff] }
 0x580   : > { %14009 = vmatprep.subr.mxu1 %v2764_v22  ;;  %13975 = vmatpush3.msra.mxu0 %v2716_v24  ;;  %v2814_v22 = vld [vmem:[%s15167_s26 + $0x4f10] sm:$0xff]  ;;  %v2829_v24 = vld [vmem:[%s15167_s26 + $0x4f88] sm:$0xff] }
 0x581   : > { %9796 = vmatprep.mubr.f32.mxu0 %v4065_v23  ;;  %14010 = vmatpush3.msra.mxu1 %v2748_v25  ;;  %v2797_v23 = vld [vmem:[%s15167_s26 + $0x4e88] sm:$0xff]  ;;  %v4081_v25 = vrot.slane %v4067_v15, %v15226_v52  ;;  %v2898_v8 = vld [vmem:[%s15167_s26 + $0x51b0] sm:$0xff]  ;;  %v276_v15 = vld [vmem:[%s15161_s29 + $0x140] sm:$0xff] }
 0x582   : > { %9797 = vmatmul.mubr.f32.vlgmr.msra.gmra.mxu0 %v4057_v13  ;;  %9866 = vmatprep.mubr.f32.mxu1 %v4066_v26  ;;  %v2799_v13 = vld [vmem:[%s15167_s26 + $0x4e98] sm:$0xff]  ;;  %v2781_v26 = vld [vmem:[%s15167_s26 + $0x4e08] sm:$0xff] }
 0x583   : > { %14014 = vmatprep.subr.mxu0 %v2811_v27  ;;  %14049 = vmatprep.subr.mxu1 %v2843_v28  ;;  %v2813_v27 = vld [vmem:[%s15167_s26 + $0x4f08] sm:$0xff]  ;;  %v2796_v28 = vld [vmem:[%s15167_s26 + $0x4e80] sm:$0xff] }
 0x584   : > { %9867 = vmatmul.mubr.f32.vlgmr.msra.gmra.mxu1 %v4064_v18  ;;  %14015 = vmatpush3.msra.mxu0 %v2795_v29  ;;  %v2798_v18 = vld [vmem:[%s15167_s26 + $0x4e90] sm:$0xff]  ;;  %v2828_v29 = vld [vmem:[%s15167_s26 + $0x4f80] sm:$0xff] }
 0x585   : > { %14050 = vmatpush3.msra.mxu1 %v2827_v30  ;;  %14016 = vmatprep.subr.mxu0 %v2810_v31  ;;  %v4082_v30 = vcombine.high %v4074_v20, %v4074_v20  ;;  %v2780_v31 = vld [vmem:[%s15167_s26 + $0x4e00] sm:$0xff] }
 0x586   : > { %14051 = vmatprep.subr.mxu1 %v2842_v32  ;;  %14017 = vmatpush3.msra.mxu0 %v2794_v33  ;;  %v2812_v32 = vld [vmem:[%s15167_s26 + $0x4f00] sm:$0xff]  ;;  %v4083_v33 = vcombine.high %v4081_v25, %v4081_v25 }
 0x587   : > { %14052 = vmatpush3.msra.mxu1 %v2826_v34  ;;  %14018 = vmatprep.subr.mxu0 %v2809_v35  ;;  %v2875_v34 = vld [vmem:[%s15167_s26 + $0x50f8] sm:$0xff] }
 0x588   : > { %14053 = vmatprep.subr.mxu1 %v2841_v36  ;;  %14019 = vmatpush3.msra.mxu0 %v2793_v37  ;;  %v2907_v35 = vld [vmem:[%s15167_s26 + $0x51f8] sm:$0xff] }
 0x589   : > { %14054 = vmatpush3.msra.mxu1 %v2825_v38  ;;  %14020 = vmatprep.subr.mxu0 %v2808_v39  ;;  %v2859_v36 = vld [vmem:[%s15167_s26 + $0x5078] sm:$0xff]  ;;  %v2874_v38 = vld [vmem:[%s15167_s26 + $0x50f0] sm:$0xff] }
 0x58a   : > { %14055 = vmatprep.subr.mxu1 %v2840_v40  ;;  %14021 = vmatpush3.msra.mxu0 %v2792_v41  ;;  %v2891_v37 = vld [vmem:[%s15167_s26 + $0x5178] sm:$0xff]  ;;  %v2906_v39 = vld [vmem:[%s15167_s26 + $0x51f0] sm:$0xff] }
 0x58b   : > { %14056 = vmatpush3.msra.mxu1 %v2824_v42  ;;  %14022 = vmatprep.subr.mxu0 %v2807_v43  ;;  %v2858_v40 = vld [vmem:[%s15167_s26 + $0x5070] sm:$0xff]  ;;  %v2873_v42 = vld [vmem:[%s15167_s26 + $0x50e8] sm:$0xff] }
 0x58c   : > { %14057 = vmatprep.subr.mxu1 %v2839_v44  ;;  %14023 = vmatpush3.msra.mxu0 %v2791_v45  ;;  %v2890_v41 = vld [vmem:[%s15167_s26 + $0x5170] sm:$0xff]  ;;  %v2905_v43 = vld [vmem:[%s15167_s26 + $0x51e8] sm:$0xff] }
 0x58d   : > { %14058 = vmatpush3.msra.mxu1 %v2823_v46  ;;  %14024 = vmatprep.subr.mxu0 %v2806_v47  ;;  %v2857_v44 = vld [vmem:[%s15167_s26 + $0x5068] sm:$0xff]  ;;  %v2872_v46 = vld [vmem:[%s15167_s26 + $0x50e0] sm:$0xff] }
 0x58e   : > { %14059 = vmatprep.subr.mxu1 %v2838_v48  ;;  %14025 = vmatpush3.msra.mxu0 %v2790_v49  ;;  %v2889_v45 = vld [vmem:[%s15167_s26 + $0x5168] sm:$0xff]  ;;  %v2904_v47 = vld [vmem:[%s15167_s26 + $0x51e0] sm:$0xff] }
 0x58f   : > { %14060 = vmatpush3.msra.mxu1 %v2822_v50  ;;  %14026 = vmatprep.subr.mxu0 %v2805_v51  ;;  %v2856_v48 = vld [vmem:[%s15167_s26 + $0x5060] sm:$0xff]  ;;  %v2871_v50 = vld [vmem:[%s15167_s26 + $0x50d8] sm:$0xff] }
 0x590   : > { %14061 = vmatprep.subr.mxu1 %v2837_v53  ;;  %14027 = vmatpush3.msra.mxu0 %v2789_v54  ;;  %v2888_v49 = vld [vmem:[%s15167_s26 + $0x5160] sm:$0xff]  ;;  %v2903_v51 = vld [vmem:[%s15167_s26 + $0x51d8] sm:$0xff] }
 0x591   : > { %14062 = vmatpush3.msra.mxu1 %v2821_v55  ;;  %14028 = vmatprep.subr.mxu0 %v2804_v56  ;;  %v2855_v53 = vld [vmem:[%s15167_s26 + $0x5058] sm:$0xff]  ;;  %v2870_v55 = vld [vmem:[%s15167_s26 + $0x50d0] sm:$0xff] }
 0x592   : > { %14063 = vmatprep.subr.mxu1 %v2836_v57  ;;  %14029 = vmatpush3.msra.mxu0 %v2788_v58  ;;  %v2887_v54 = vld [vmem:[%s15167_s26 + $0x5158] sm:$0xff]  ;;  %v2902_v56 = vld [vmem:[%s15167_s26 + $0x51d0] sm:$0xff] }
 0x593   : > { %14064 = vmatpush3.msra.mxu1 %v2820_v59  ;;  %14030 = vmatprep.subr.mxu0 %v2803_v60  ;;  %v2854_v57 = vld [vmem:[%s15167_s26 + $0x5050] sm:$0xff]  ;;  %v2869_v59 = vld [vmem:[%s15167_s26 + $0x50c8] sm:$0xff] }
 0x594   : > { %14065 = vmatprep.subr.mxu1 %v2835_v61  ;;  %14031 = vmatpush3.msra.mxu0 %v2787_v62  ;;  %v2886_v58 = vld [vmem:[%s15167_s26 + $0x5150] sm:$0xff]  ;;  %v2901_v60 = vld [vmem:[%s15167_s26 + $0x51c8] sm:$0xff] }
 0x595   : > { %14066 = vmatpush3.msra.mxu1 %v2819_v63  ;;  %14032 = vmatprep.subr.mxu0 %v2802_v0  ;;  %v2853_v61 = vld [vmem:[%s15167_s26 + $0x5048] sm:$0xff]  ;;  %v2868_v63 = vld [vmem:[%s15167_s26 + $0x50c0] sm:$0xff] }
 0x596   : > { %14067 = vmatprep.subr.mxu1 %v2834_v1  ;;  %14033 = vmatpush3.msra.mxu0 %v2786_v2  ;;  %v2885_v62 = vld [vmem:[%s15167_s26 + $0x5148] sm:$0xff]  ;;  %v2900_v0 = vld [vmem:[%s15167_s26 + $0x51c0] sm:$0xff] }
 0x597   : > { %14068 = vmatpush3.msra.mxu1 %v2818_v3  ;;  %14034 = vmatprep.subr.mxu0 %v2801_v4  ;;  %v2852_v1 = vld [vmem:[%s15167_s26 + $0x5040] sm:$0xff]  ;;  %v2867_v3 = vld [vmem:[%s15167_s26 + $0x50b8] sm:$0xff] }
 0x598   : > { %14069 = vmatprep.subr.mxu1 %v2833_v5  ;;  %14035 = vmatpush3.msra.mxu0 %v2785_v6  ;;  %v2884_v2 = vld [vmem:[%s15167_s26 + $0x5140] sm:$0xff]  ;;  %v2899_v4 = vld [vmem:[%s15167_s26 + $0x51b8] sm:$0xff] }
 0x599   : > { %14070 = vmatpush3.msra.mxu1 %v2817_v7  ;;  %14036 = vmatprep.subr.mxu0 %v2800_v9  ;;  %v2851_v5 = vld [vmem:[%s15167_s26 + $0x5038] sm:$0xff]  ;;  %v2866_v7 = vld [vmem:[%s15167_s26 + $0x50b0] sm:$0xff] }
 0x59a   : > { %14071 = vmatprep.subr.mxu1 %v2832_v10  ;;  %14037 = vmatpush3.msra.mxu0 %v2784_v11  ;;  %v2883_v6 = vld [vmem:[%s15167_s26 + $0x5138] sm:$0xff]  ;;  %v2850_v9 = vld [vmem:[%s15167_s26 + $0x5030] sm:$0xff]  ;;  %v2865_v11 = vld [vmem:[%s15167_s26 + $0x50a8] sm:$0xff] }
 0x59b   : > { %14072 = vmatpush3.msra.mxu1 %v2816_v12  ;;  %14038 = vmatprep.subr.mxu0 %v2799_v13  ;;  %v2882_v10 = vld [vmem:[%s15167_s26 + $0x5130] sm:$0xff]  ;;  %v2897_v12 = vld [vmem:[%s15167_s26 + $0x51a8] sm:$0xff] }
 0x59c   : > { %14073 = vmatprep.subr.mxu1 %v2831_v14  ;;  %14039 = vmatpush3.msra.mxu0 %v2783_v16  ;;  %v2849_v13 = vld [vmem:[%s15167_s26 + $0x5028] sm:$0xff]  ;;  %v2864_v16 = vld [vmem:[%s15167_s26 + $0x50a0] sm:$0xff] }
 0x59d   : > { %14074 = vmatpush3.msra.mxu1 %v2815_v17  ;;  %14040 = vmatprep.subr.mxu0 %v2798_v18  ;;  %v2881_v14 = vld [vmem:[%s15167_s26 + $0x5128] sm:$0xff]  ;;  %v2896_v17 = vld [vmem:[%s15167_s26 + $0x51a0] sm:$0xff] }
 0x59e   : > { %14075 = vmatprep.subr.mxu1 %v2830_v19  ;;  %14041 = vmatpush3.msra.mxu0 %v2782_v21  ;;  %v2848_v18 = vld [vmem:[%s15167_s26 + $0x5020] sm:$0xff]  ;;  %v2895_v21 = vld [vmem:[%s15167_s26 + $0x5198] sm:$0xff] }
 0x59f   : > { %14076 = vmatpush3.msra.mxu1 %v2814_v22  ;;  %14042 = vmatprep.subr.mxu0 %v2797_v23  ;;  %v2880_v19 = vld [vmem:[%s15167_s26 + $0x5120] sm:$0xff]  ;;  %v4084_v22 = vcombine.high %v276_v15, %v276_v15  ;;  %v2847_v23 = vld [vmem:[%s15167_s26 + $0x5018] sm:$0xff] }
 0x5a0   : > { %14077 = vmatprep.subr.mxu1 %v2829_v24  ;;  %14043 = vmatpush3.msra.mxu0 %v2781_v26  ;;  %v2879_v24 = vld [vmem:[%s15167_s26 + $0x5118] sm:$0xff]  ;;  %v2894_v26 = vld [vmem:[%s15167_s26 + $0x5190] sm:$0xff] }
 0x5a1   : > { %14078 = vmatpush3.msra.mxu1 %v2813_v27  ;;  %14044 = vmatprep.subr.mxu0 %v2796_v28  ;;  %v4091_v27 = vrot.slane %v276_v15, %v15226_v52  ;;  %v2846_v28 = vld [vmem:[%s15167_s26 + $0x5010] sm:$0xff] }
 0x5a2   : > { %14079 = vmatprep.subr.mxu1 %v2828_v29  ;;  %14045 = vmatpush3.msra.mxu0 %v2780_v31  ;;  %v2878_v29 = vld [vmem:[%s15167_s26 + $0x5110] sm:$0xff]  ;;  %v2893_v31 = vld [vmem:[%s15167_s26 + $0x5188] sm:$0xff] }
 0x5a3   : > { %9936 = vmatprep.mubr.f32.mxu0 %v4082_v30  ;;  %14080 = vmatpush3.msra.mxu1 %v2812_v32  ;;  %v2861_v30 = vld [vmem:[%s15167_s26 + $0x5088] sm:$0xff]  ;;  %v4098_v32 = vrot.slane %v4084_v22, %v15226_v52  ;;  %v2962_v15 = vld [vmem:[%s15167_s26 + $0x53b0] sm:$0xff] }
 0x5a4   : > { %9937 = vmatmul.mubr.f32.vlgmr.msra.gmra.mxu0 %v4074_v20  ;;  %10006 = vmatprep.mubr.f32.mxu1 %v4083_v33  ;;  %v2863_v20 = vld [vmem:[%s15167_s26 + $0x5098] sm:$0xff]  ;;  %v2845_v33 = vld [vmem:[%s15167_s26 + $0x5008] sm:$0xff] }
 0x5a5   : > { %14084 = vmatprep.subr.mxu0 %v2875_v34  ;;  %14119 = vmatprep.subr.mxu1 %v2907_v35  ;;  %v2877_v34 = vld [vmem:[%s15167_s26 + $0x5108] sm:$0xff]  ;;  %v2860_v35 = vld [vmem:[%s15167_s26 + $0x5080] sm:$0xff] }
 0x5a6   : > { %10007 = vmatmul.mubr.f32.vlgmr.msra.gmra.mxu1 %v4081_v25  ;;  %14085 = vmatpush3.msra.mxu0 %v2859_v36  ;;  %v2862_v25 = vld [vmem:[%s15167_s26 + $0x5090] sm:$0xff]  ;;  %v2892_v36 = vld [vmem:[%s15167_s26 + $0x5180] sm:$0xff]  ;;  %v277_v22 = vld [vmem:[%s15161_s29 + $0x148] sm:$0xff] }
 0x5a7   : > { %14120 = vmatpush3.msra.mxu1 %v2891_v37  ;;  %14086 = vmatprep.subr.mxu0 %v2874_v38  ;;  %v4099_v37 = vcombine.high %v4091_v27, %v4091_v27  ;;  %v2844_v38 = vld [vmem:[%s15167_s26 + $0x5000] sm:$0xff] }
 0x5a8   : > { %14121 = vmatprep.subr.mxu1 %v2906_v39  ;;  %14087 = vmatpush3.msra.mxu0 %v2858_v40  ;;  %v2876_v39 = vld [vmem:[%s15167_s26 + $0x5100] sm:$0xff]  ;;  %v4100_v40 = vcombine.high %v4098_v32, %v4098_v32 }
 0x5a9   : > { %14122 = vmatpush3.msra.mxu1 %v2890_v41  ;;  %14088 = vmatprep.subr.mxu0 %v2873_v42  ;;  %v2939_v41 = vld [vmem:[%s15167_s26 + $0x52f8] sm:$0xff] }
 0x5aa   : > { %14123 = vmatprep.subr.mxu1 %v2905_v43  ;;  %14089 = vmatpush3.msra.mxu0 %v2857_v44  ;;  %v2971_v42 = vld [vmem:[%s15167_s26 + $0x53f8] sm:$0xff] }
 0x5ab   : > { %14124 = vmatpush3.msra.mxu1 %v2889_v45  ;;  %14090 = vmatprep.subr.mxu0 %v2872_v46  ;;  %v2923_v43 = vld [vmem:[%s15167_s26 + $0x5278] sm:$0xff]  ;;  %v2938_v45 = vld [vmem:[%s15167_s26 + $0x52f0] sm:$0xff] }
 0x5ac   : > { %14125 = vmatprep.subr.mxu1 %v2904_v47  ;;  %14091 = vmatpush3.msra.mxu0 %v2856_v48  ;;  %v2955_v44 = vld [vmem:[%s15167_s26 + $0x5378] sm:$0xff]  ;;  %v2970_v46 = vld [vmem:[%s15167_s26 + $0x53f0] sm:$0xff] }
 0x5ad   : > { %14126 = vmatpush3.msra.mxu1 %v2888_v49  ;;  %14092 = vmatprep.subr.mxu0 %v2871_v50  ;;  %v2922_v47 = vld [vmem:[%s15167_s26 + $0x5270] sm:$0xff]  ;;  %v2937_v49 = vld [vmem:[%s15167_s26 + $0x52e8] sm:$0xff] }
 0x5ae   : > { %14127 = vmatprep.subr.mxu1 %v2903_v51  ;;  %14093 = vmatpush3.msra.mxu0 %v2855_v53  ;;  %v2954_v48 = vld [vmem:[%s15167_s26 + $0x5370] sm:$0xff]  ;;  %v2969_v50 = vld [vmem:[%s15167_s26 + $0x53e8] sm:$0xff] }
 0x5af   : > { %14128 = vmatpush3.msra.mxu1 %v2887_v54  ;;  %14094 = vmatprep.subr.mxu0 %v2870_v55  ;;  %v2921_v51 = vld [vmem:[%s15167_s26 + $0x5268] sm:$0xff]  ;;  %v2936_v54 = vld [vmem:[%s15167_s26 + $0x52e0] sm:$0xff] }
 0x5b0   : > { %14129 = vmatprep.subr.mxu1 %v2902_v56  ;;  %14095 = vmatpush3.msra.mxu0 %v2854_v57  ;;  %v2953_v53 = vld [vmem:[%s15167_s26 + $0x5368] sm:$0xff]  ;;  %v2968_v55 = vld [vmem:[%s15167_s26 + $0x53e0] sm:$0xff] }
 0x5b1   : > { %14130 = vmatpush3.msra.mxu1 %v2886_v58  ;;  %14096 = vmatprep.subr.mxu0 %v2869_v59  ;;  %v2920_v56 = vld [vmem:[%s15167_s26 + $0x5260] sm:$0xff]  ;;  %v2935_v58 = vld [vmem:[%s15167_s26 + $0x52d8] sm:$0xff] }
 0x5b2   : > { %14131 = vmatprep.subr.mxu1 %v2901_v60  ;;  %14097 = vmatpush3.msra.mxu0 %v2853_v61  ;;  %v2952_v57 = vld [vmem:[%s15167_s26 + $0x5360] sm:$0xff]  ;;  %v2967_v59 = vld [vmem:[%s15167_s26 + $0x53d8] sm:$0xff] }
 0x5b3   : > { %14132 = vmatpush3.msra.mxu1 %v2885_v62  ;;  %14098 = vmatprep.subr.mxu0 %v2868_v63  ;;  %v2919_v60 = vld [vmem:[%s15167_s26 + $0x5258] sm:$0xff]  ;;  %v2934_v62 = vld [vmem:[%s15167_s26 + $0x52d0] sm:$0xff] }
 0x5b4   : > { %14133 = vmatprep.subr.mxu1 %v2900_v0  ;;  %14099 = vmatpush3.msra.mxu0 %v2852_v1  ;;  %v2951_v61 = vld [vmem:[%s15167_s26 + $0x5358] sm:$0xff]  ;;  %v2966_v63 = vld [vmem:[%s15167_s26 + $0x53d0] sm:$0xff] }
 0x5b5   : > { %14134 = vmatpush3.msra.mxu1 %v2884_v2  ;;  %14100 = vmatprep.subr.mxu0 %v2867_v3  ;;  %v2918_v0 = vld [vmem:[%s15167_s26 + $0x5250] sm:$0xff]  ;;  %v2933_v2 = vld [vmem:[%s15167_s26 + $0x52c8] sm:$0xff] }
 0x5b6   : > { %14135 = vmatprep.subr.mxu1 %v2899_v4  ;;  %14101 = vmatpush3.msra.mxu0 %v2851_v5  ;;  %v2950_v1 = vld [vmem:[%s15167_s26 + $0x5350] sm:$0xff]  ;;  %v2965_v3 = vld [vmem:[%s15167_s26 + $0x53c8] sm:$0xff] }
 0x5b7   : > { %14136 = vmatpush3.msra.mxu1 %v2883_v6  ;;  %14102 = vmatprep.subr.mxu0 %v2866_v7  ;;  %v2917_v4 = vld [vmem:[%s15167_s26 + $0x5248] sm:$0xff]  ;;  %v2932_v6 = vld [vmem:[%s15167_s26 + $0x52c0] sm:$0xff] }
 0x5b8   : > { %14137 = vmatprep.subr.mxu1 %v2898_v8  ;;  %14103 = vmatpush3.msra.mxu0 %v2850_v9  ;;  %v2949_v5 = vld [vmem:[%s15167_s26 + $0x5348] sm:$0xff]  ;;  %v2964_v7 = vld [vmem:[%s15167_s26 + $0x53c0] sm:$0xff] }
 0x5b9   : > { %14138 = vmatpush3.msra.mxu1 %v2882_v10  ;;  %14104 = vmatprep.subr.mxu0 %v2865_v11  ;;  %v2916_v8 = vld [vmem:[%s15167_s26 + $0x5240] sm:$0xff]  ;;  %v2931_v10 = vld [vmem:[%s15167_s26 + $0x52b8] sm:$0xff] }
 0x5ba   : > { %14139 = vmatprep.subr.mxu1 %v2897_v12  ;;  %14105 = vmatpush3.msra.mxu0 %v2849_v13  ;;  %v2948_v9 = vld [vmem:[%s15167_s26 + $0x5340] sm:$0xff]  ;;  %v2963_v11 = vld [vmem:[%s15167_s26 + $0x53b8] sm:$0xff] }
 0x5bb   : > { %14140 = vmatpush3.msra.mxu1 %v2881_v14  ;;  %14106 = vmatprep.subr.mxu0 %v2864_v16  ;;  %v2915_v12 = vld [vmem:[%s15167_s26 + $0x5238] sm:$0xff]  ;;  %v2930_v14 = vld [vmem:[%s15167_s26 + $0x52b0] sm:$0xff] }
 0x5bc   : > { %14141 = vmatprep.subr.mxu1 %v2896_v17  ;;  %14107 = vmatpush3.msra.mxu0 %v2848_v18  ;;  %v2947_v13 = vld [vmem:[%s15167_s26 + $0x5338] sm:$0xff]  ;;  %v2914_v16 = vld [vmem:[%s15167_s26 + $0x5230] sm:$0xff]  ;;  %v2929_v18 = vld [vmem:[%s15167_s26 + $0x52a8] sm:$0xff] }
 0x5bd   : > { %14142 = vmatpush3.msra.mxu1 %v2880_v19  ;;  %14108 = vmatprep.subr.mxu0 %v2863_v20  ;;  %v2946_v17 = vld [vmem:[%s15167_s26 + $0x5330] sm:$0xff]  ;;  %v2961_v19 = vld [vmem:[%s15167_s26 + $0x53a8] sm:$0xff] }
 0x5be   : > { %14143 = vmatprep.subr.mxu1 %v2895_v21  ;;  %14109 = vmatpush3.msra.mxu0 %v2847_v23  ;;  %v2913_v20 = vld [vmem:[%s15167_s26 + $0x5228] sm:$0xff]  ;;  %v2928_v23 = vld [vmem:[%s15167_s26 + $0x52a0] sm:$0xff] }
 0x5bf   : > { %14144 = vmatpush3.msra.mxu1 %v2879_v24  ;;  %14110 = vmatprep.subr.mxu0 %v2862_v25  ;;  %v2945_v21 = vld [vmem:[%s15167_s26 + $0x5328] sm:$0xff]  ;;  %v2960_v24 = vld [vmem:[%s15167_s26 + $0x53a0] sm:$0xff] }
 0x5c0   : > { %14145 = vmatprep.subr.mxu1 %v2894_v26  ;;  %14111 = vmatpush3.msra.mxu0 %v2846_v28  ;;  %v2912_v25 = vld [vmem:[%s15167_s26 + $0x5220] sm:$0xff]  ;;  %v2959_v28 = vld [vmem:[%s15167_s26 + $0x5398] sm:$0xff] }
 0x5c1   : > { %14146 = vmatpush3.msra.mxu1 %v2878_v29  ;;  %14112 = vmatprep.subr.mxu0 %v2861_v30  ;;  %v2944_v26 = vld [vmem:[%s15167_s26 + $0x5320] sm:$0xff]  ;;  %v4101_v29 = vcombine.high %v277_v22, %v277_v22  ;;  %v2911_v30 = vld [vmem:[%s15167_s26 + $0x5218] sm:$0xff] }
 0x5c2   : > { %14147 = vmatprep.subr.mxu1 %v2893_v31  ;;  %14113 = vmatpush3.msra.mxu0 %v2845_v33  ;;  %v2943_v31 = vld [vmem:[%s15167_s26 + $0x5318] sm:$0xff]  ;;  %v2958_v33 = vld [vmem:[%s15167_s26 + $0x5390] sm:$0xff] }
 0x5c3   : > { %14148 = vmatpush3.msra.mxu1 %v2877_v34  ;;  %14114 = vmatprep.subr.mxu0 %v2860_v35  ;;  %v4108_v34 = vrot.slane %v277_v22, %v15226_v52  ;;  %v2910_v35 = vld [vmem:[%s15167_s26 + $0x5210] sm:$0xff] }
 0x5c4   : > { %14149 = vmatprep.subr.mxu1 %v2892_v36  ;;  %14115 = vmatpush3.msra.mxu0 %v2844_v38  ;;  %v2942_v36 = vld [vmem:[%s15167_s26 + $0x5310] sm:$0xff]  ;;  %v2957_v38 = vld [vmem:[%s15167_s26 + $0x5388] sm:$0xff] }
 0x5c5   : > { %10076 = vmatprep.mubr.f32.mxu0 %v4099_v37  ;;  %14150 = vmatpush3.msra.mxu1 %v2876_v39  ;;  %v2925_v37 = vld [vmem:[%s15167_s26 + $0x5288] sm:$0xff]  ;;  %v4115_v39 = vrot.slane %v4101_v29, %v15226_v52  ;;  %v3026_v22 = vld [vmem:[%s15167_s26 + $0x55b0] sm:$0xff] }
 0x5c6   : > { %10077 = vmatmul.mubr.f32.vlgmr.msra.gmra.mxu0 %v4091_v27  ;;  %10146 = vmatprep.mubr.f32.mxu1 %v4100_v40  ;;  %v2927_v27 = vld [vmem:[%s15167_s26 + $0x5298] sm:$0xff]  ;;  %v2909_v40 = vld [vmem:[%s15167_s26 + $0x5208] sm:$0xff]  ;;  %v278_v29 = vld [vmem:[%s15161_s29 + $0x150] sm:$0xff] }
 0x5c7   : > { %14154 = vmatprep.subr.mxu0 %v2939_v41  ;;  %14189 = vmatprep.subr.mxu1 %v2971_v42  ;;  %v2941_v41 = vld [vmem:[%s15167_s26 + $0x5308] sm:$0xff]  ;;  %v2924_v42 = vld [vmem:[%s15167_s26 + $0x5280] sm:$0xff] }
 0x5c8   : > { %10147 = vmatmul.mubr.f32.vlgmr.msra.gmra.mxu1 %v4098_v32  ;;  %14155 = vmatpush3.msra.mxu0 %v2923_v43  ;;  %v2926_v32 = vld [vmem:[%s15167_s26 + $0x5290] sm:$0xff]  ;;  %v2956_v43 = vld [vmem:[%s15167_s26 + $0x5380] sm:$0xff] }
 0x5c9   : > { %14190 = vmatpush3.msra.mxu1 %v2955_v44  ;;  %14156 = vmatprep.subr.mxu0 %v2938_v45  ;;  %v4116_v44 = vcombine.high %v4108_v34, %v4108_v34  ;;  %v2908_v45 = vld [vmem:[%s15167_s26 + $0x5200] sm:$0xff] }
 0x5ca   : > { %14191 = vmatprep.subr.mxu1 %v2970_v46  ;;  %14157 = vmatpush3.msra.mxu0 %v2922_v47  ;;  %v2940_v46 = vld [vmem:[%s15167_s26 + $0x5300] sm:$0xff]  ;;  %v4117_v47 = vcombine.high %v4115_v39, %v4115_v39 }
 0x5cb   : > { %14192 = vmatpush3.msra.mxu1 %v2954_v48  ;;  %14158 = vmatprep.subr.mxu0 %v2937_v49  ;;  %v3003_v48 = vld [vmem:[%s15167_s26 + $0x54f8] sm:$0xff] }
 0x5cc   : > { %14193 = vmatprep.subr.mxu1 %v2969_v50  ;;  %14159 = vmatpush3.msra.mxu0 %v2921_v51  ;;  %v3035_v49 = vld [vmem:[%s15167_s26 + $0x55f8] sm:$0xff] }
 0x5cd   : > { %14194 = vmatpush3.msra.mxu1 %v2953_v53  ;;  %14160 = vmatprep.subr.mxu0 %v2936_v54  ;;  %v2987_v50 = vld [vmem:[%s15167_s26 + $0x5478] sm:$0xff]  ;;  %v3002_v53 = vld [vmem:[%s15167_s26 + $0x54f0] sm:$0xff] }
 0x5ce   : > { %14195 = vmatprep.subr.mxu1 %v2968_v55  ;;  %14161 = vmatpush3.msra.mxu0 %v2920_v56  ;;  %v3019_v51 = vld [vmem:[%s15167_s26 + $0x5578] sm:$0xff]  ;;  %v3034_v54 = vld [vmem:[%s15167_s26 + $0x55f0] sm:$0xff] }
 0x5cf   : > { %14196 = vmatpush3.msra.mxu1 %v2952_v57  ;;  %14162 = vmatprep.subr.mxu0 %v2935_v58  ;;  %v2986_v55 = vld [vmem:[%s15167_s26 + $0x5470] sm:$0xff]  ;;  %v3001_v57 = vld [vmem:[%s15167_s26 + $0x54e8] sm:$0xff] }
 0x5d0   : > { %14197 = vmatprep.subr.mxu1 %v2967_v59  ;;  %14163 = vmatpush3.msra.mxu0 %v2919_v60  ;;  %v3018_v56 = vld [vmem:[%s15167_s26 + $0x5570] sm:$0xff]  ;;  %v3033_v58 = vld [vmem:[%s15167_s26 + $0x55e8] sm:$0xff] }
 0x5d1   : > { %14198 = vmatpush3.msra.mxu1 %v2951_v61  ;;  %14164 = vmatprep.subr.mxu0 %v2934_v62  ;;  %v2985_v59 = vld [vmem:[%s15167_s26 + $0x5468] sm:$0xff]  ;;  %v3000_v61 = vld [vmem:[%s15167_s26 + $0x54e0] sm:$0xff] }
 0x5d2   : > { %14199 = vmatprep.subr.mxu1 %v2966_v63  ;;  %14165 = vmatpush3.msra.mxu0 %v2918_v0  ;;  %v3017_v60 = vld [vmem:[%s15167_s26 + $0x5568] sm:$0xff]  ;;  %v3032_v62 = vld [vmem:[%s15167_s26 + $0x55e0] sm:$0xff] }
 0x5d3   : > { %14200 = vmatpush3.msra.mxu1 %v2950_v1  ;;  %14166 = vmatprep.subr.mxu0 %v2933_v2  ;;  %v2984_v63 = vld [vmem:[%s15167_s26 + $0x5460] sm:$0xff]  ;;  %v2999_v1 = vld [vmem:[%s15167_s26 + $0x54d8] sm:$0xff] }
 0x5d4   : > { %14201 = vmatprep.subr.mxu1 %v2965_v3  ;;  %14167 = vmatpush3.msra.mxu0 %v2917_v4  ;;  %v3016_v0 = vld [vmem:[%s15167_s26 + $0x5560] sm:$0xff]  ;;  %v3031_v2 = vld [vmem:[%s15167_s26 + $0x55d8] sm:$0xff] }
 0x5d5   : > { %14202 = vmatpush3.msra.mxu1 %v2949_v5  ;;  %14168 = vmatprep.subr.mxu0 %v2932_v6  ;;  %v2983_v3 = vld [vmem:[%s15167_s26 + $0x5458] sm:$0xff]  ;;  %v2998_v5 = vld [vmem:[%s15167_s26 + $0x54d0] sm:$0xff] }
 0x5d6   : > { %14203 = vmatprep.subr.mxu1 %v2964_v7  ;;  %14169 = vmatpush3.msra.mxu0 %v2916_v8  ;;  %v3015_v4 = vld [vmem:[%s15167_s26 + $0x5558] sm:$0xff]  ;;  %v3030_v6 = vld [vmem:[%s15167_s26 + $0x55d0] sm:$0xff] }
 0x5d7   : > { %14204 = vmatpush3.msra.mxu1 %v2948_v9  ;;  %14170 = vmatprep.subr.mxu0 %v2931_v10  ;;  %v2982_v7 = vld [vmem:[%s15167_s26 + $0x5450] sm:$0xff]  ;;  %v2997_v9 = vld [vmem:[%s15167_s26 + $0x54c8] sm:$0xff] }
 0x5d8   : > { %14205 = vmatprep.subr.mxu1 %v2963_v11  ;;  %14171 = vmatpush3.msra.mxu0 %v2915_v12  ;;  %v3014_v8 = vld [vmem:[%s15167_s26 + $0x5550] sm:$0xff]  ;;  %v3029_v10 = vld [vmem:[%s15167_s26 + $0x55c8] sm:$0xff] }
 0x5d9   : > { %14206 = vmatpush3.msra.mxu1 %v2947_v13  ;;  %14172 = vmatprep.subr.mxu0 %v2930_v14  ;;  %v2981_v11 = vld [vmem:[%s15167_s26 + $0x5448] sm:$0xff]  ;;  %v2996_v13 = vld [vmem:[%s15167_s26 + $0x54c0] sm:$0xff] }
 0x5da   : > { %14207 = vmatprep.subr.mxu1 %v2962_v15  ;;  %14173 = vmatpush3.msra.mxu0 %v2914_v16  ;;  %v3013_v12 = vld [vmem:[%s15167_s26 + $0x5548] sm:$0xff]  ;;  %v3028_v14 = vld [vmem:[%s15167_s26 + $0x55c0] sm:$0xff] }
 0x5db   : > { %14208 = vmatpush3.msra.mxu1 %v2946_v17  ;;  %14174 = vmatprep.subr.mxu0 %v2929_v18  ;;  %v2980_v15 = vld [vmem:[%s15167_s26 + $0x5440] sm:$0xff]  ;;  %v2995_v17 = vld [vmem:[%s15167_s26 + $0x54b8] sm:$0xff] }
 0x5dc   : > { %14209 = vmatprep.subr.mxu1 %v2961_v19  ;;  %14175 = vmatpush3.msra.mxu0 %v2913_v20  ;;  %v3012_v16 = vld [vmem:[%s15167_s26 + $0x5540] sm:$0xff]  ;;  %v3027_v18 = vld [vmem:[%s15167_s26 + $0x55b8] sm:$0xff] }
 0x5dd   : > { %14210 = vmatpush3.msra.mxu1 %v2945_v21  ;;  %14176 = vmatprep.subr.mxu0 %v2928_v23  ;;  %v2979_v19 = vld [vmem:[%s15167_s26 + $0x5438] sm:$0xff]  ;;  %v2994_v21 = vld [vmem:[%s15167_s26 + $0x54b0] sm:$0xff] }
 0x5de   : > { %14211 = vmatprep.subr.mxu1 %v2960_v24  ;;  %14177 = vmatpush3.msra.mxu0 %v2912_v25  ;;  %v3011_v20 = vld [vmem:[%s15167_s26 + $0x5538] sm:$0xff]  ;;  %v2978_v23 = vld [vmem:[%s15167_s26 + $0x5430] sm:$0xff]  ;;  %v2993_v25 = vld [vmem:[%s15167_s26 + $0x54a8] sm:$0xff] }
 0x5df   : > { %14212 = vmatpush3.msra.mxu1 %v2944_v26  ;;  %14178 = vmatprep.subr.mxu0 %v2927_v27  ;;  %v3010_v24 = vld [vmem:[%s15167_s26 + $0x5530] sm:$0xff]  ;;  %v3025_v26 = vld [vmem:[%s15167_s26 + $0x55a8] sm:$0xff] }
 0x5e0   : > { %14213 = vmatprep.subr.mxu1 %v2959_v28  ;;  %14179 = vmatpush3.msra.mxu0 %v2911_v30  ;;  %v2977_v27 = vld [vmem:[%s15167_s26 + $0x5428] sm:$0xff]  ;;  %v2992_v30 = vld [vmem:[%s15167_s26 + $0x54a0] sm:$0xff] }
 0x5e1   : > { %14214 = vmatpush3.msra.mxu1 %v2943_v31  ;;  %14180 = vmatprep.subr.mxu0 %v2926_v32  ;;  %v3009_v28 = vld [vmem:[%s15167_s26 + $0x5528] sm:$0xff]  ;;  %v3024_v31 = vld [vmem:[%s15167_s26 + $0x55a0] sm:$0xff] }
 0x5e2   : > { %14215 = vmatprep.subr.mxu1 %v2958_v33  ;;  %14181 = vmatpush3.msra.mxu0 %v2910_v35  ;;  %v2976_v32 = vld [vmem:[%s15167_s26 + $0x5420] sm:$0xff]  ;;  %v3023_v35 = vld [vmem:[%s15167_s26 + $0x5598] sm:$0xff] }
 0x5e3   : > { %14216 = vmatpush3.msra.mxu1 %v2942_v36  ;;  %14182 = vmatprep.subr.mxu0 %v2925_v37  ;;  %v3008_v33 = vld [vmem:[%s15167_s26 + $0x5520] sm:$0xff]  ;;  %v4118_v36 = vcombine.high %v278_v29, %v278_v29  ;;  %v2975_v37 = vld [vmem:[%s15167_s26 + $0x5418] sm:$0xff] }
 0x5e4   : > { %14217 = vmatprep.subr.mxu1 %v2957_v38  ;;  %14183 = vmatpush3.msra.mxu0 %v2909_v40  ;;  %v3007_v38 = vld [vmem:[%s15167_s26 + $0x5518] sm:$0xff]  ;;  %v3022_v40 = vld [vmem:[%s15167_s26 + $0x5590] sm:$0xff] }
 0x5e5   : > { %14218 = vmatpush3.msra.mxu1 %v2941_v41  ;;  %14184 = vmatprep.subr.mxu0 %v2924_v42  ;;  %v4125_v41 = vrot.slane %v278_v29, %v15226_v52  ;;  %v2974_v42 = vld [vmem:[%s15167_s26 + $0x5410] sm:$0xff] }
 0x5e6   : > { %14219 = vmatprep.subr.mxu1 %v2956_v43  ;;  %14185 = vmatpush3.msra.mxu0 %v2908_v45  ;;  %v3006_v43 = vld [vmem:[%s15167_s26 + $0x5510] sm:$0xff]  ;;  %v3021_v45 = vld [vmem:[%s15167_s26 + $0x5588] sm:$0xff] }
 0x5e7   : > { %10216 = vmatprep.mubr.f32.mxu0 %v4116_v44  ;;  %14220 = vmatpush3.msra.mxu1 %v2940_v46  ;;  %v2989_v44 = vld [vmem:[%s15167_s26 + $0x5488] sm:$0xff]  ;;  %v4132_v46 = vrot.slane %v4118_v36, %v15226_v52  ;;  %v3090_v29 = vld [vmem:[%s15167_s26 + $0x57b0] sm:$0xff]  ;;  %v279_v36 = vld [vmem:[%s15161_s29 + $0x158] sm:$0xff] }
 0x5e8   : > { %10217 = vmatmul.mubr.f32.vlgmr.msra.gmra.mxu0 %v4108_v34  ;;  %10286 = vmatprep.mubr.f32.mxu1 %v4117_v47  ;;  %v2991_v34 = vld [vmem:[%s15167_s26 + $0x5498] sm:$0xff]  ;;  %v2973_v47 = vld [vmem:[%s15167_s26 + $0x5408] sm:$0xff] }
 0x5e9   : > { %14224 = vmatprep.subr.mxu0 %v3003_v48  ;;  %14259 = vmatprep.subr.mxu1 %v3035_v49  ;;  %v3005_v48 = vld [vmem:[%s15167_s26 + $0x5508] sm:$0xff]  ;;  %v2988_v49 = vld [vmem:[%s15167_s26 + $0x5480] sm:$0xff] }
 0x5ea   : > { %10287 = vmatmul.mubr.f32.vlgmr.msra.gmra.mxu1 %v4115_v39  ;;  %14225 = vmatpush3.msra.mxu0 %v2987_v50  ;;  %v2990_v39 = vld [vmem:[%s15167_s26 + $0x5490] sm:$0xff]  ;;  %v3020_v50 = vld [vmem:[%s15167_s26 + $0x5580] sm:$0xff] }
 0x5eb   : > { %14260 = vmatpush3.msra.mxu1 %v3019_v51  ;;  %14226 = vmatprep.subr.mxu0 %v3002_v53  ;;  %v4133_v51 = vcombine.high %v4125_v41, %v4125_v41  ;;  %v2972_v53 = vld [vmem:[%s15167_s26 + $0x5400] sm:$0xff] }
 0x5ec   : > { %14261 = vmatprep.subr.mxu1 %v3034_v54  ;;  %14227 = vmatpush3.msra.mxu0 %v2986_v55  ;;  %v3004_v54 = vld [vmem:[%s15167_s26 + $0x5500] sm:$0xff]  ;;  %v4134_v55 = vcombine.high %v4132_v46, %v4132_v46 }
 0x5ed   : > { %14262 = vmatpush3.msra.mxu1 %v3018_v56  ;;  %14228 = vmatprep.subr.mxu0 %v3001_v57  ;;  %v3067_v56 = vld [vmem:[%s15167_s26 + $0x56f8] sm:$0xff] }
 0x5ee   : > { %14263 = vmatprep.subr.mxu1 %v3033_v58  ;;  %14229 = vmatpush3.msra.mxu0 %v2985_v59  ;;  %v3099_v57 = vld [vmem:[%s15167_s26 + $0x57f8] sm:$0xff] }
 0x5ef   : > { %14264 = vmatpush3.msra.mxu1 %v3017_v60  ;;  %14230 = vmatprep.subr.mxu0 %v3000_v61  ;;  %v3051_v58 = vld [vmem:[%s15167_s26 + $0x5678] sm:$0xff]  ;;  %v3066_v60 = vld [vmem:[%s15167_s26 + $0x56f0] sm:$0xff] }
 0x5f0   : > { %14265 = vmatprep.subr.mxu1 %v3032_v62  ;;  %14231 = vmatpush3.msra.mxu0 %v2984_v63  ;;  %v3083_v59 = vld [vmem:[%s15167_s26 + $0x5778] sm:$0xff]  ;;  %v3098_v61 = vld [vmem:[%s15167_s26 + $0x57f0] sm:$0xff] }
 0x5f1   : > { %14266 = vmatpush3.msra.mxu1 %v3016_v0  ;;  %14232 = vmatprep.subr.mxu0 %v2999_v1  ;;  %v3050_v62 = vld [vmem:[%s15167_s26 + $0x5670] sm:$0xff]  ;;  %v3065_v0 = vld [vmem:[%s15167_s26 + $0x56e8] sm:$0xff] }
 0x5f2   : > { %14267 = vmatprep.subr.mxu1 %v3031_v2  ;;  %14233 = vmatpush3.msra.mxu0 %v2983_v3  ;;  %v3082_v63 = vld [vmem:[%s15167_s26 + $0x5770] sm:$0xff]  ;;  %v3097_v1 = vld [vmem:[%s15167_s26 + $0x57e8] sm:$0xff] }
 0x5f3   : > { %14268 = vmatpush3.msra.mxu1 %v3015_v4  ;;  %14234 = vmatprep.subr.mxu0 %v2998_v5  ;;  %v3049_v2 = vld [vmem:[%s15167_s26 + $0x5668] sm:$0xff]  ;;  %v3064_v4 = vld [vmem:[%s15167_s26 + $0x56e0] sm:$0xff] }
 0x5f4   : > { %14269 = vmatprep.subr.mxu1 %v3030_v6  ;;  %14235 = vmatpush3.msra.mxu0 %v2982_v7  ;;  %v3081_v3 = vld [vmem:[%s15167_s26 + $0x5768] sm:$0xff]  ;;  %v3096_v5 = vld [vmem:[%s15167_s26 + $0x57e0] sm:$0xff] }
 0x5f5   : > { %14270 = vmatpush3.msra.mxu1 %v3014_v8  ;;  %14236 = vmatprep.subr.mxu0 %v2997_v9  ;;  %v3048_v6 = vld [vmem:[%s15167_s26 + $0x5660] sm:$0xff]  ;;  %v3063_v8 = vld [vmem:[%s15167_s26 + $0x56d8] sm:$0xff] }
 0x5f6   : > { %14271 = vmatprep.subr.mxu1 %v3029_v10  ;;  %14237 = vmatpush3.msra.mxu0 %v2981_v11  ;;  %v3080_v7 = vld [vmem:[%s15167_s26 + $0x5760] sm:$0xff]  ;;  %v3095_v9 = vld [vmem:[%s15167_s26 + $0x57d8] sm:$0xff] }
 0x5f7   : > { %14272 = vmatpush3.msra.mxu1 %v3013_v12  ;;  %14238 = vmatprep.subr.mxu0 %v2996_v13  ;;  %v3047_v10 = vld [vmem:[%s15167_s26 + $0x5658] sm:$0xff]  ;;  %v3062_v12 = vld [vmem:[%s15167_s26 + $0x56d0] sm:$0xff] }
 0x5f8   : > { %14273 = vmatprep.subr.mxu1 %v3028_v14  ;;  %14239 = vmatpush3.msra.mxu0 %v2980_v15  ;;  %v3079_v11 = vld [vmem:[%s15167_s26 + $0x5758] sm:$0xff]  ;;  %v3094_v13 = vld [vmem:[%s15167_s26 + $0x57d0] sm:$0xff] }
 0x5f9   : > { %14274 = vmatpush3.msra.mxu1 %v3012_v16  ;;  %14240 = vmatprep.subr.mxu0 %v2995_v17  ;;  %v3046_v14 = vld [vmem:[%s15167_s26 + $0x5650] sm:$0xff]  ;;  %v3061_v16 = vld [vmem:[%s15167_s26 + $0x56c8] sm:$0xff] }
 0x5fa   : > { %14275 = vmatprep.subr.mxu1 %v3027_v18  ;;  %14241 = vmatpush3.msra.mxu0 %v2979_v19  ;;  %v3078_v15 = vld [vmem:[%s15167_s26 + $0x5750] sm:$0xff]  ;;  %v3093_v17 = vld [vmem:[%s15167_s26 + $0x57c8] sm:$0xff] }
 0x5fb   : > { %14276 = vmatpush3.msra.mxu1 %v3011_v20  ;;  %14242 = vmatprep.subr.mxu0 %v2994_v21  ;;  %v3045_v18 = vld [vmem:[%s15167_s26 + $0x5648] sm:$0xff]  ;;  %v3060_v20 = vld [vmem:[%s15167_s26 + $0x56c0] sm:$0xff] }
 0x5fc   : > { %14277 = vmatprep.subr.mxu1 %v3026_v22  ;;  %14243 = vmatpush3.msra.mxu0 %v2978_v23  ;;  %v3077_v19 = vld [vmem:[%s15167_s26 + $0x5748] sm:$0xff]  ;;  %v3092_v21 = vld [vmem:[%s15167_s26 + $0x57c0] sm:$0xff] }
 0x5fd   : > { %14278 = vmatpush3.msra.mxu1 %v3010_v24  ;;  %14244 = vmatprep.subr.mxu0 %v2993_v25  ;;  %v3044_v22 = vld [vmem:[%s15167_s26 + $0x5640] sm:$0xff]  ;;  %v3059_v24 = vld [vmem:[%s15167_s26 + $0x56b8] sm:$0xff] }
 0x5fe   : > { %14279 = vmatprep.subr.mxu1 %v3025_v26  ;;  %14245 = vmatpush3.msra.mxu0 %v2977_v27  ;;  %v3076_v23 = vld [vmem:[%s15167_s26 + $0x5740] sm:$0xff]  ;;  %v3091_v25 = vld [vmem:[%s15167_s26 + $0x57b8] sm:$0xff] }
 0x5ff   : > { %14280 = vmatpush3.msra.mxu1 %v3009_v28  ;;  %14246 = vmatprep.subr.mxu0 %v2992_v30  ;;  %v3043_v26 = vld [vmem:[%s15167_s26 + $0x5638] sm:$0xff]  ;;  %v3058_v28 = vld [vmem:[%s15167_s26 + $0x56b0] sm:$0xff] }
 0x600   : > { %14281 = vmatprep.subr.mxu1 %v3024_v31  ;;  %14247 = vmatpush3.msra.mxu0 %v2976_v32  ;;  %v3075_v27 = vld [vmem:[%s15167_s26 + $0x5738] sm:$0xff]  ;;  %v3042_v30 = vld [vmem:[%s15167_s26 + $0x5630] sm:$0xff]  ;;  %v3057_v32 = vld [vmem:[%s15167_s26 + $0x56a8] sm:$0xff] }
 0x601   : > { %14282 = vmatpush3.msra.mxu1 %v3008_v33  ;;  %14248 = vmatprep.subr.mxu0 %v2991_v34  ;;  %v3074_v31 = vld [vmem:[%s15167_s26 + $0x5730] sm:$0xff]  ;;  %v3089_v33 = vld [vmem:[%s15167_s26 + $0x57a8] sm:$0xff] }
 0x602   : > { %14283 = vmatprep.subr.mxu1 %v3023_v35  ;;  %14249 = vmatpush3.msra.mxu0 %v2975_v37  ;;  %v3041_v34 = vld [vmem:[%s15167_s26 + $0x5628] sm:$0xff]  ;;  %v3056_v37 = vld [vmem:[%s15167_s26 + $0x56a0] sm:$0xff] }
 0x603   : > { %14284 = vmatpush3.msra.mxu1 %v3007_v38  ;;  %14250 = vmatprep.subr.mxu0 %v2990_v39  ;;  %v3073_v35 = vld [vmem:[%s15167_s26 + $0x5728] sm:$0xff]  ;;  %v3088_v38 = vld [vmem:[%s15167_s26 + $0x57a0] sm:$0xff] }
 0x604   : > { %14285 = vmatprep.subr.mxu1 %v3022_v40  ;;  %14251 = vmatpush3.msra.mxu0 %v2974_v42  ;;  %v3040_v39 = vld [vmem:[%s15167_s26 + $0x5620] sm:$0xff]  ;;  %v3087_v42 = vld [vmem:[%s15167_s26 + $0x5798] sm:$0xff] }
 0x605   : > { %14286 = vmatpush3.msra.mxu1 %v3006_v43  ;;  %14252 = vmatprep.subr.mxu0 %v2989_v44  ;;  %v3072_v40 = vld [vmem:[%s15167_s26 + $0x5720] sm:$0xff]  ;;  %v4135_v43 = vcombine.high %v279_v36, %v279_v36  ;;  %v3039_v44 = vld [vmem:[%s15167_s26 + $0x5618] sm:$0xff] }
 0x606   : > { %14287 = vmatprep.subr.mxu1 %v3021_v45  ;;  %14253 = vmatpush3.msra.mxu0 %v2973_v47  ;;  %v3071_v45 = vld [vmem:[%s15167_s26 + $0x5718] sm:$0xff]  ;;  %v3086_v47 = vld [vmem:[%s15167_s26 + $0x5790] sm:$0xff] }
 0x607   : > { %14288 = vmatpush3.msra.mxu1 %v3005_v48  ;;  %14254 = vmatprep.subr.mxu0 %v2988_v49  ;;  %v4142_v48 = vrot.slane %v279_v36, %v15226_v52  ;;  %v3038_v49 = vld [vmem:[%s15167_s26 + $0x5610] sm:$0xff] }
 0x608   : > { %14289 = vmatprep.subr.mxu1 %v3020_v50  ;;  %14255 = vmatpush3.msra.mxu0 %v2972_v53  ;;  %v3070_v50 = vld [vmem:[%s15167_s26 + $0x5710] sm:$0xff]  ;;  %v3085_v53 = vld [vmem:[%s15167_s26 + $0x5788] sm:$0xff] }
 0x609   : > { %10356 = vmatprep.mubr.f32.mxu0 %v4133_v51  ;;  %14290 = vmatpush3.msra.mxu1 %v3004_v54  ;;  %v3053_v51 = vld [vmem:[%s15167_s26 + $0x5688] sm:$0xff]  ;;  %v4149_v54 = vrot.slane %v4135_v43, %v15226_v52  ;;  %v3154_v36 = vld [vmem:[%s15167_s26 + $0x59b0] sm:$0xff]  ;;  %v280_v43 = vld [vmem:[%s15161_s29 + $0x160] sm:$0xff] }
 0x60a   : > { %10357 = vmatmul.mubr.f32.vlgmr.msra.gmra.mxu0 %v4125_v41  ;;  %10426 = vmatprep.mubr.f32.mxu1 %v4134_v55  ;;  %v3055_v41 = vld [vmem:[%s15167_s26 + $0x5698] sm:$0xff]  ;;  %v3037_v55 = vld [vmem:[%s15167_s26 + $0x5608] sm:$0xff] }
 0x60b   : > { %14294 = vmatprep.subr.mxu0 %v3067_v56  ;;  %14329 = vmatprep.subr.mxu1 %v3099_v57  ;;  %v3069_v56 = vld [vmem:[%s15167_s26 + $0x5708] sm:$0xff]  ;;  %v3052_v57 = vld [vmem:[%s15167_s26 + $0x5680] sm:$0xff] }
 0x60c   : > { %10427 = vmatmul.mubr.f32.vlgmr.msra.gmra.mxu1 %v4132_v46  ;;  %14295 = vmatpush3.msra.mxu0 %v3051_v58  ;;  %v3054_v46 = vld [vmem:[%s15167_s26 + $0x5690] sm:$0xff]  ;;  %v3084_v58 = vld [vmem:[%s15167_s26 + $0x5780] sm:$0xff] }
 0x60d   : > { %14330 = vmatpush3.msra.mxu1 %v3083_v59  ;;  %14296 = vmatprep.subr.mxu0 %v3066_v60  ;;  %v4150_v59 = vcombine.high %v4142_v48, %v4142_v48  ;;  %v3036_v60 = vld [vmem:[%s15167_s26 + $0x5600] sm:$0xff] }
 0x60e   : > { %14331 = vmatprep.subr.mxu1 %v3098_v61  ;;  %14297 = vmatpush3.msra.mxu0 %v3050_v62  ;;  %v3068_v61 = vld [vmem:[%s15167_s26 + $0x5700] sm:$0xff]  ;;  %v4151_v62 = vcombine.high %v4149_v54, %v4149_v54 }
 0x60f   : > { %14332 = vmatpush3.msra.mxu1 %v3082_v63  ;;  %14298 = vmatprep.subr.mxu0 %v3065_v0  ;;  %v3131_v63 = vld [vmem:[%s15167_s26 + $0x58f8] sm:$0xff] }
 0x610   : > { %14333 = vmatprep.subr.mxu1 %v3097_v1  ;;  %14299 = vmatpush3.msra.mxu0 %v3049_v2  ;;  %v3163_v0 = vld [vmem:[%s15167_s26 + $0x59f8] sm:$0xff] }
 0x611   : > { %14334 = vmatpush3.msra.mxu1 %v3081_v3  ;;  %14300 = vmatprep.subr.mxu0 %v3064_v4  ;;  %v3115_v1 = vld [vmem:[%s15167_s26 + $0x5878] sm:$0xff]  ;;  %v3130_v3 = vld [vmem:[%s15167_s26 + $0x58f0] sm:$0xff] }
 0x612   : > { %14335 = vmatprep.subr.mxu1 %v3096_v5  ;;  %14301 = vmatpush3.msra.mxu0 %v3048_v6  ;;  %v3147_v2 = vld [vmem:[%s15167_s26 + $0x5978] sm:$0xff]  ;;  %v3162_v4 = vld [vmem:[%s15167_s26 + $0x59f0] sm:$0xff] }
 0x613   : > { %14336 = vmatpush3.msra.mxu1 %v3080_v7  ;;  %14302 = vmatprep.subr.mxu0 %v3063_v8  ;;  %v3114_v5 = vld [vmem:[%s15167_s26 + $0x5870] sm:$0xff]  ;;  %v3129_v7 = vld [vmem:[%s15167_s26 + $0x58e8] sm:$0xff] }
 0x614   : > { %14337 = vmatprep.subr.mxu1 %v3095_v9  ;;  %14303 = vmatpush3.msra.mxu0 %v3047_v10  ;;  %v3146_v6 = vld [vmem:[%s15167_s26 + $0x5970] sm:$0xff]  ;;  %v3161_v8 = vld [vmem:[%s15167_s26 + $0x59e8] sm:$0xff] }
 0x615   : > { %14338 = vmatpush3.msra.mxu1 %v3079_v11  ;;  %14304 = vmatprep.subr.mxu0 %v3062_v12  ;;  %v3113_v9 = vld [vmem:[%s15167_s26 + $0x5868] sm:$0xff]  ;;  %v3128_v11 = vld [vmem:[%s15167_s26 + $0x58e0] sm:$0xff] }
 0x616   : > { %14339 = vmatprep.subr.mxu1 %v3094_v13  ;;  %14305 = vmatpush3.msra.mxu0 %v3046_v14  ;;  %v3145_v10 = vld [vmem:[%s15167_s26 + $0x5968] sm:$0xff]  ;;  %v3160_v12 = vld [vmem:[%s15167_s26 + $0x59e0] sm:$0xff] }
 0x617   : > { %14340 = vmatpush3.msra.mxu1 %v3078_v15  ;;  %14306 = vmatprep.subr.mxu0 %v3061_v16  ;;  %v3112_v13 = vld [vmem:[%s15167_s26 + $0x5860] sm:$0xff]  ;;  %v3127_v15 = vld [vmem:[%s15167_s26 + $0x58d8] sm:$0xff] }
 0x618   : > { %14341 = vmatprep.subr.mxu1 %v3093_v17  ;;  %14307 = vmatpush3.msra.mxu0 %v3045_v18  ;;  %v3144_v14 = vld [vmem:[%s15167_s26 + $0x5960] sm:$0xff]  ;;  %v3159_v16 = vld [vmem:[%s15167_s26 + $0x59d8] sm:$0xff] }
 0x619   : > { %14342 = vmatpush3.msra.mxu1 %v3077_v19  ;;  %14308 = vmatprep.subr.mxu0 %v3060_v20  ;;  %v3111_v17 = vld [vmem:[%s15167_s26 + $0x5858] sm:$0xff]  ;;  %v3126_v19 = vld [vmem:[%s15167_s26 + $0x58d0] sm:$0xff] }
 0x61a   : > { %14343 = vmatprep.subr.mxu1 %v3092_v21  ;;  %14309 = vmatpush3.msra.mxu0 %v3044_v22  ;;  %v3143_v18 = vld [vmem:[%s15167_s26 + $0x5958] sm:$0xff]  ;;  %v3158_v20 = vld [vmem:[%s15167_s26 + $0x59d0] sm:$0xff] }
 0x61b   : > { %14344 = vmatpush3.msra.mxu1 %v3076_v23  ;;  %14310 = vmatprep.subr.mxu0 %v3059_v24  ;;  %v3110_v21 = vld [vmem:[%s15167_s26 + $0x5850] sm:$0xff]  ;;  %v3125_v23 = vld [vmem:[%s15167_s26 + $0x58c8] sm:$0xff] }
 0x61c   : > { %14345 = vmatprep.subr.mxu1 %v3091_v25  ;;  %14311 = vmatpush3.msra.mxu0 %v3043_v26  ;;  %v3142_v22 = vld [vmem:[%s15167_s26 + $0x5950] sm:$0xff]  ;;  %v3157_v24 = vld [vmem:[%s15167_s26 + $0x59c8] sm:$0xff] }
 0x61d   : > { %14346 = vmatpush3.msra.mxu1 %v3075_v27  ;;  %14312 = vmatprep.subr.mxu0 %v3058_v28  ;;  %v3109_v25 = vld [vmem:[%s15167_s26 + $0x5848] sm:$0xff]  ;;  %v3124_v27 = vld [vmem:[%s15167_s26 + $0x58c0] sm:$0xff] }
 0x61e   : > { %14347 = vmatprep.subr.mxu1 %v3090_v29  ;;  %14313 = vmatpush3.msra.mxu0 %v3042_v30  ;;  %v3141_v26 = vld [vmem:[%s15167_s26 + $0x5948] sm:$0xff]  ;;  %v3156_v28 = vld [vmem:[%s15167_s26 + $0x59c0] sm:$0xff] }
 0x61f   : > { %14348 = vmatpush3.msra.mxu1 %v3074_v31  ;;  %14314 = vmatprep.subr.mxu0 %v3057_v32  ;;  %v3108_v29 = vld [vmem:[%s15167_s26 + $0x5840] sm:$0xff]  ;;  %v3123_v31 = vld [vmem:[%s15167_s26 + $0x58b8] sm:$0xff] }
 0x620   : > { %14349 = vmatprep.subr.mxu1 %v3089_v33  ;;  %14315 = vmatpush3.msra.mxu0 %v3041_v34  ;;  %v3140_v30 = vld [vmem:[%s15167_s26 + $0x5940] sm:$0xff]  ;;  %v3155_v32 = vld [vmem:[%s15167_s26 + $0x59b8] sm:$0xff] }
 0x621   : > { %14350 = vmatpush3.msra.mxu1 %v3073_v35  ;;  %14316 = vmatprep.subr.mxu0 %v3056_v37  ;;  %v3107_v33 = vld [vmem:[%s15167_s26 + $0x5838] sm:$0xff]  ;;  %v3122_v35 = vld [vmem:[%s15167_s26 + $0x58b0] sm:$0xff] }
 0x622   : > { %14351 = vmatprep.subr.mxu1 %v3088_v38  ;;  %14317 = vmatpush3.msra.mxu0 %v3040_v39  ;;  %v3139_v34 = vld [vmem:[%s15167_s26 + $0x5938] sm:$0xff]  ;;  %v3106_v37 = vld [vmem:[%s15167_s26 + $0x5830] sm:$0xff]  ;;  %v3121_v39 = vld [vmem:[%s15167_s26 + $0x58a8] sm:$0xff] }
 0x623   : > { %14352 = vmatpush3.msra.mxu1 %v3072_v40  ;;  %14318 = vmatprep.subr.mxu0 %v3055_v41  ;;  %v3138_v38 = vld [vmem:[%s15167_s26 + $0x5930] sm:$0xff]  ;;  %v3153_v40 = vld [vmem:[%s15167_s26 + $0x59a8] sm:$0xff] }
 0x624   : > { %14353 = vmatprep.subr.mxu1 %v3087_v42  ;;  %14319 = vmatpush3.msra.mxu0 %v3039_v44  ;;  %v3105_v41 = vld [vmem:[%s15167_s26 + $0x5828] sm:$0xff]  ;;  %v3120_v44 = vld [vmem:[%s15167_s26 + $0x58a0] sm:$0xff] }
 0x625   : > { %14354 = vmatpush3.msra.mxu1 %v3071_v45  ;;  %14320 = vmatprep.subr.mxu0 %v3054_v46  ;;  %v3137_v42 = vld [vmem:[%s15167_s26 + $0x5928] sm:$0xff]  ;;  %v3152_v45 = vld [vmem:[%s15167_s26 + $0x59a0] sm:$0xff] }
 0x626   : > { %14355 = vmatprep.subr.mxu1 %v3086_v47  ;;  %14321 = vmatpush3.msra.mxu0 %v3038_v49  ;;  %v3104_v46 = vld [vmem:[%s15167_s26 + $0x5820] sm:$0xff]  ;;  %v3151_v49 = vld [vmem:[%s15167_s26 + $0x5998] sm:$0xff] }
 0x627   : > { %14356 = vmatpush3.msra.mxu1 %v3070_v50  ;;  %14322 = vmatprep.subr.mxu0 %v3053_v51  ;;  %v3136_v47 = vld [vmem:[%s15167_s26 + $0x5920] sm:$0xff]  ;;  %v4152_v50 = vcombine.high %v280_v43, %v280_v43  ;;  %v3103_v51 = vld [vmem:[%s15167_s26 + $0x5818] sm:$0xff] }
 0x628   : > { %14357 = vmatprep.subr.mxu1 %v3085_v53  ;;  %14323 = vmatpush3.msra.mxu0 %v3037_v55  ;;  %v3135_v53 = vld [vmem:[%s15167_s26 + $0x5918] sm:$0xff]  ;;  %v3150_v55 = vld [vmem:[%s15167_s26 + $0x5990] sm:$0xff] }
 0x629   : > { %14358 = vmatpush3.msra.mxu1 %v3069_v56  ;;  %14324 = vmatprep.subr.mxu0 %v3052_v57  ;;  %v4159_v56 = vrot.slane %v280_v43, %v15226_v52  ;;  %v3102_v57 = vld [vmem:[%s15167_s26 + $0x5810] sm:$0xff]  ;;  %v3187_v43 = vld [vmem:[%s15167_s26 + $0x5ab8] sm:$0xff] }
 0x62a   : > { %14359 = vmatprep.subr.mxu1 %v3084_v58  ;;  %14325 = vmatpush3.msra.mxu0 %v3036_v60  ;;  %v3134_v58 = vld [vmem:[%s15167_s26 + $0x5910] sm:$0xff]  ;;  %v3149_v60 = vld [vmem:[%s15167_s26 + $0x5988] sm:$0xff] }
 0x62b   : > { %10496 = vmatprep.mubr.f32.mxu0 %v4150_v59  ;;  %14360 = vmatpush3.msra.mxu1 %v3068_v61  ;;  %v3117_v59 = vld [vmem:[%s15167_s26 + $0x5888] sm:$0xff]  ;;  %v4166_v61 = vrot.slane %v4152_v50, %v15226_v52  ;;  %v3218_v50 = vld [vmem:[%s15167_s26 + $0x5bb0] sm:$0xff] }
 0x62c   : > { %10497 = vmatmul.mubr.f32.vlgmr.msra.gmra.mxu0 %v4142_v48  ;;  %10566 = vmatprep.mubr.f32.mxu1 %v4151_v62  ;;  %v3119_v48 = vld [vmem:[%s15167_s26 + $0x5898] sm:$0xff]  ;;  %v3101_v62 = vld [vmem:[%s15167_s26 + $0x5808] sm:$0xff] }
 0x62d   : > { %14364 = vmatprep.subr.mxu0 %v3131_v63  ;;  %14399 = vmatprep.subr.mxu1 %v3163_v0  ;;  %v3133_v63 = vld [vmem:[%s15167_s26 + $0x5908] sm:$0xff]  ;;  %v3116_v0 = vld [vmem:[%s15167_s26 + $0x5880] sm:$0xff] }
 0x62e   : > { %10567 = vmatmul.mubr.f32.vlgmr.msra.gmra.mxu1 %v4149_v54  ;;  %14365 = vmatpush3.msra.mxu0 %v3115_v1  ;;  %v3118_v54 = vld [vmem:[%s15167_s26 + $0x5890] sm:$0xff]  ;;  %v3148_v1 = vld [vmem:[%s15167_s26 + $0x5980] sm:$0xff] }
 0x62f   : > { %14400 = vmatpush3.msra.mxu1 %v3147_v2  ;;  %14366 = vmatprep.subr.mxu0 %v3130_v3  ;;  %v4167_v2 = vcombine.high %v4159_v56, %v4159_v56  ;;  %v3100_v3 = vld [vmem:[%s15167_s26 + $0x5800] sm:$0xff] }
 0x630   : > { %14401 = vmatprep.subr.mxu1 %v3162_v4  ;;  %14367 = vmatpush3.msra.mxu0 %v3114_v5  ;;  %v3132_v4 = vld [vmem:[%s15167_s26 + $0x5900] sm:$0xff]  ;;  %v4168_v5 = vcombine.high %v4166_v61, %v4166_v61 }
 0x631   : > { %14402 = vmatpush3.msra.mxu1 %v3146_v6  ;;  %14368 = vmatprep.subr.mxu0 %v3129_v7  ;;  %v3195_v6 = vld [vmem:[%s15167_s26 + $0x5af8] sm:$0xff] }
 0x632   : > { %14403 = vmatprep.subr.mxu1 %v3161_v8  ;;  %14369 = vmatpush3.msra.mxu0 %v3113_v9  ;;  %v3227_v7 = vld [vmem:[%s15167_s26 + $0x5bf8] sm:$0xff] }
 0x633   : > { %14404 = vmatpush3.msra.mxu1 %v3145_v10  ;;  %14370 = vmatprep.subr.mxu0 %v3128_v11  ;;  %v3179_v8 = vld [vmem:[%s15167_s26 + $0x5a78] sm:$0xff]  ;;  %v3194_v10 = vld [vmem:[%s15167_s26 + $0x5af0] sm:$0xff] }
 0x634   : > { %14405 = vmatprep.subr.mxu1 %v3160_v12  ;;  %14371 = vmatpush3.msra.mxu0 %v3112_v13  ;;  %v3211_v9 = vld [vmem:[%s15167_s26 + $0x5b78] sm:$0xff]  ;;  %v3226_v11 = vld [vmem:[%s15167_s26 + $0x5bf0] sm:$0xff] }
 0x635   : > { %14406 = vmatpush3.msra.mxu1 %v3144_v14  ;;  %14372 = vmatprep.subr.mxu0 %v3127_v15  ;;  %v3178_v12 = vld [vmem:[%s15167_s26 + $0x5a70] sm:$0xff]  ;;  %v3193_v14 = vld [vmem:[%s15167_s26 + $0x5ae8] sm:$0xff] }
 0x636   : > { %14407 = vmatprep.subr.mxu1 %v3159_v16  ;;  %14373 = vmatpush3.msra.mxu0 %v3111_v17  ;;  %v3210_v13 = vld [vmem:[%s15167_s26 + $0x5b70] sm:$0xff]  ;;  %v3225_v15 = vld [vmem:[%s15167_s26 + $0x5be8] sm:$0xff] }
 0x637   : > { %14408 = vmatpush3.msra.mxu1 %v3143_v18  ;;  %14374 = vmatprep.subr.mxu0 %v3126_v19  ;;  %v3177_v16 = vld [vmem:[%s15167_s26 + $0x5a68] sm:$0xff]  ;;  %v3192_v18 = vld [vmem:[%s15167_s26 + $0x5ae0] sm:$0xff] }
 0x638   : > { %14409 = vmatprep.subr.mxu1 %v3158_v20  ;;  %14375 = vmatpush3.msra.mxu0 %v3110_v21  ;;  %v3209_v17 = vld [vmem:[%s15167_s26 + $0x5b68] sm:$0xff]  ;;  %v3224_v19 = vld [vmem:[%s15167_s26 + $0x5be0] sm:$0xff] }
 0x639   : > { %14410 = vmatpush3.msra.mxu1 %v3142_v22  ;;  %14376 = vmatprep.subr.mxu0 %v3125_v23  ;;  %v3176_v20 = vld [vmem:[%s15167_s26 + $0x5a60] sm:$0xff]  ;;  %v11316_v22 = vpop.f32.mrf.mxu0  ;;  %v3191_v23 = vld [vmem:[%s15167_s26 + $0x5ad8] sm:$0xff] }
 0x63a   : > { %14411 = vmatprep.subr.mxu1 %v3157_v24  ;;  %14377 = vmatpush3.msra.mxu0 %v3109_v25  ;;  %v3208_v21 = vld [vmem:[%s15167_s26 + $0x5b60] sm:$0xff]  ;;  %v3223_v24 = vld [vmem:[%s15167_s26 + $0x5bd8] sm:$0xff] }
 0x63b   : > { %14412 = vmatpush3.msra.mxu1 %v3141_v26  ;;  %14378 = vmatprep.subr.mxu0 %v3124_v27  ;;  %v3175_v25 = vld [vmem:[%s15167_s26 + $0x5a58] sm:$0xff]  ;;  %v3190_v27 = vld [vmem:[%s15167_s26 + $0x5ad0] sm:$0xff] }
 0x63c   : > { %14413 = vmatprep.subr.mxu1 %v3156_v28  ;;  %14379 = vmatpush3.msra.mxu0 %v3108_v29  ;;  %v3207_v26 = vld [vmem:[%s15167_s26 + $0x5b58] sm:$0xff]  ;;  %v3222_v28 = vld [vmem:[%s15167_s26 + $0x5bd0] sm:$0xff] }
 0x63d   : > { %14414 = vmatpush3.msra.mxu1 %v3140_v30  ;;  %14380 = vmatprep.subr.mxu0 %v3123_v31  ;;  %v3174_v29 = vld [vmem:[%s15167_s26 + $0x5a50] sm:$0xff]  ;;  %v11351_v31 = vpop.f32.mrf.mxu1 }
 0x63e   : > { %14415 = vmatprep.subr.mxu1 %v3155_v32  ;;  %14381 = vmatpush3.msra.mxu0 %v3107_v33  ;;  %v3206_v30 = vld [vmem:[%s15167_s26 + $0x5b50] sm:$0xff]  ;;  %v11317_v32 = vpop.f32.mrf.mxu0  ;;  %v3189_v33 = vld [vmem:[%s15167_s26 + $0x5ac8] sm:$0xff] }
 0x63f   : > { %14416 = vmatpush3.msra.mxu1 %v3139_v34  ;;  %14382 = vmatprep.subr.mxu0 %v3122_v35  ;;  %v3221_v34 = vld [vmem:[%s15167_s26 + $0x5bc8] sm:$0xff] }
 0x640   : > { %14417 = vmatprep.subr.mxu1 %v3154_v36  ;;  %14383 = vmatpush3.msra.mxu0 %v3106_v37  ;;  %v3173_v35 = vld [vmem:[%s15167_s26 + $0x5a48] sm:$0xff]  ;;  %v11386_v37 = vpop.f32.mrf.mxu0 }
 0x641   : > { %14418 = vmatpush3.msra.mxu1 %v3138_v38  ;;  %14384 = vmatprep.subr.mxu0 %v3121_v39  ;;  %v3205_v36 = vld [vmem:[%s15167_s26 + $0x5b48] sm:$0xff]  ;;  %v3188_v38 = vld [vmem:[%s15167_s26 + $0x5ac0] sm:$0xff] }
 0x642   : > { %14419 = vmatprep.subr.mxu1 %v3153_v40  ;;  %14385 = vmatpush3.msra.mxu0 %v3105_v41  ;;  %v3220_v39 = vld [vmem:[%s15167_s26 + $0x5bc0] sm:$0xff] }
 0x643   : > { %14420 = vmatpush3.msra.mxu1 %v3137_v42  ;;  %14386 = vmatprep.subr.mxu0 %v3120_v44  ;;  %v3172_v40 = vld [vmem:[%s15167_s26 + $0x5a40] sm:$0xff]  ;;  %v11352_v42 = vpop.f32.mrf.mxu1  ;;  %v3219_v44 = vld [vmem:[%s15167_s26 + $0x5bb8] sm:$0xff] }
 0x644   : > { %14421 = vmatprep.subr.mxu1 %v3152_v45  ;;  %14387 = vmatpush3.msra.mxu0 %v3104_v46  ;;  %v3204_v41 = vld [vmem:[%s15167_s26 + $0x5b40] sm:$0xff]  ;;  %v3171_v45 = vld [vmem:[%s15167_s26 + $0x5a38] sm:$0xff] }
 0x645   : > { %14422 = vmatpush3.msra.mxu1 %v3136_v47  ;;  %14388 = vmatprep.subr.mxu0 %v3119_v48  ;;  %v3203_v46 = vld [vmem:[%s15167_s26 + $0x5b38] sm:$0xff]  ;;  %v11421_v47 = vpop.f32.mrf.mxu1  ;;  %v11387_v48 = vpop.f32.mrf.mxu0 }
 0x646   : > { %14423 = vmatprep.subr.mxu1 %v3151_v49  ;;  %14389 = vmatpush3.msra.mxu0 %v3103_v51  ;;  %v3186_v49 = vld [vmem:[%s15167_s26 + $0x5ab0] sm:$0xff]  ;;  %v11318_v51 = vadd.f32 %v11317_v32, %v11316_v22  ;;  %v3181_v22 = vld [vmem:[%s15167_s26 + $0x5a88] sm:$0xff] }
 0x647   : > { %14424 = vmatpush3.msra.mxu1 %v3135_v53  ;;  %14390 = vmatprep.subr.mxu0 %v3118_v54  ;;  %v11353_v53 = vadd.f32 %v11352_v42, %v11351_v31  ;;  %v3170_v54 = vld [vmem:[%s15167_s26 + $0x5a30] sm:$0xff]  ;;  %v3212_v31 = vld [vmem:[%s15167_s26 + $0x5b80] sm:$0xff]  ;;  %v3291_v42 = vld [vmem:[%s15167_s26 + $0x5df8] sm:$0xff] }
 0x648   : > { %14425 = vmatprep.subr.mxu1 %v3150_v55  ;;  %14391 = vmatpush3.msra.mxu0 %v3102_v57  ;;  %v3202_v55 = vld [vmem:[%s15167_s26 + $0x5b30] sm:$0xff]  ;;  %v3185_v57 = vld [vmem:[%s15167_s26 + $0x5aa8] sm:$0xff] }
 0x649   : > { %14426 = vmatpush3.msra.mxu1 %v3134_v58  ;;  %14392 = vmatprep.subr.mxu0 %v3117_v59  ;;  %v3217_v58 = vld [vmem:[%s15167_s26 + $0x5ba8] sm:$0xff]  ;;  %v11388_v59 = vadd.f32 %v11387_v48, %v11386_v37  ;;  %v3196_v37 = vld [vmem:[%s15167_s26 + $0x5b00] sm:$0xff]  ;;  %v3258_v48 = vld [vmem:[%s15167_s26 + $0x5cf0] sm:$0xff] }
 0x64a   : > { %14427 = vmatprep.subr.mxu1 %v3149_v60  ;;  %14393 = vmatpush3.msra.mxu0 %v3101_v62  ;;  %v3169_v60 = vld [vmem:[%s15167_s26 + $0x5a28] sm:$0xff] }
 0x64b   : > { %14428 = vmatpush3.msra.mxu1 %v3133_v63  ;;  %14394 = vmatprep.subr.mxu0 %v3116_v0  ;;  %v281_v62 = vld [vmem:[%s15161_s29 + $0x168] sm:$0xff]  ;;  %v11422_v63 = vpop.f32.mrf.mxu1  ;;  %v3184_v0 = vld [vmem:[%s15167_s26 + $0x5aa0] sm:$0xff] }
 0x64c   : > { %14429 = vmatprep.subr.mxu1 %v3148_v1  ;;  %14395 = vmatpush3.msra.mxu0 %v3100_v3  ;;  %v3216_v1 = vld [vmem:[%s15167_s26 + $0x5ba0] sm:$0xff] }
 0x64d   : > { %10636 = vmatprep.mubr.f32.mxu0 %v4167_v2  ;;  %14430 = vmatpush3.msra.mxu1 %v3132_v4  ;;  %v4549_v2 = vadd.f32 %v11353_v53, %v11318_v51  ;;  %v3168_v3 = vld [vmem:[%s15167_s26 + $0x5a20] sm:$0xff]  ;;  %v3242_v53 = vld [vmem:[%s15167_s26 + $0x5c70] sm:$0xff] }
 0x64e   : > { %10637 = vmatmul.mubr.f32.vlgmr.msra.gmra.mxu0 %v4159_v56  ;;  %10706 = vmatprep.mubr.f32.mxu1 %v4168_v5  ;;  %v11456_v56 = vpop.f32.mrf.mxu0  ;;  %v3200_v4 = vld [vmem:[%s15167_s26 + $0x5b20] sm:$0xff]  ;;  %v11491_v5 = vpop.f32.mrf.mxu1 }
 0x64f   : > { %14434 = vmatprep.subr.mxu0 %v3195_v6  ;;  %14469 = vmatprep.subr.mxu1 %v3227_v7  ;;  %v3183_v7 = vld [vmem:[%s15167_s26 + $0x5a98] sm:$0xff] }
 0x650   : > { %10707 = vmatmul.mubr.f32.vlgmr.msra.gmra.mxu1 %v4166_v61  ;;  %14435 = vmatpush3.msra.mxu0 %v3179_v8  ;;  %v3201_v61 = vld [vmem:[%s15167_s26 + $0x5b28] sm:$0xff]  ;;  %v11457_v6 = vpop.f32.mrf.mxu0  ;;  %v3215_v8 = vld [vmem:[%s15167_s26 + $0x5b98] sm:$0xff] }
 0x651   : > { %14470 = vmatpush3.msra.mxu1 %v3211_v9  ;;  %14436 = vmatprep.subr.mxu0 %v3194_v10  ;;  %v4169_v9 = vcombine.high %v281_v62, %v281_v62  ;;  %v4619_v10 = vadd.f32 %v11388_v59, %v4549_v2  ;;  %v3241_v59 = vld [vmem:[%s15167_s26 + $0x5c68] sm:$0xff]  ;;  %v3272_v2 = vld [vmem:[%s15167_s26 + $0x5d60] sm:$0xff] }
 0x652   : > { %14471 = vmatprep.subr.mxu1 %v3226_v11  ;;  %14437 = vmatpush3.msra.mxu0 %v3178_v12  ;;  %v11423_v11 = vadd.f32 %v11422_v63, %v11421_v47  ;;  %v3167_v12 = vld [vmem:[%s15167_s26 + $0x5a18] sm:$0xff]  ;;  %v3288_v63 = vld [vmem:[%s15167_s26 + $0x5de0] sm:$0xff] }
 0x653   : > { %14472 = vmatpush3.msra.mxu1 %v3210_v13  ;;  %14438 = vmatprep.subr.mxu0 %v3193_v14  ;;  %v3199_v13 = vld [vmem:[%s15167_s26 + $0x5b18] sm:$0xff]  ;;  %v11526_v14 = vpop.f32.mrf.mxu0 }
 0x654   : > { %14473 = vmatprep.subr.mxu1 %v3225_v15  ;;  %14439 = vmatpush3.msra.mxu0 %v3177_v16  ;;  %v3182_v15 = vld [vmem:[%s15167_s26 + $0x5a90] sm:$0xff] }
 0x655   : > { %14474 = vmatpush3.msra.mxu1 %v3209_v17  ;;  %14440 = vmatprep.subr.mxu0 %v3192_v18  ;;  %v3214_v16 = vld [vmem:[%s15167_s26 + $0x5b90] sm:$0xff]  ;;  %v4176_v17 = vrot.slane %v281_v62, %v15226_v52  ;;  %v11458_v18 = vadd.f32 %v11457_v6, %v11456_v56  ;;  %v3257_v56 = vld [vmem:[%s15167_s26 + $0x5ce8] sm:$0xff]  ;;  %v3256_v62 = vld [vmem:[%s15167_s26 + $0x5ce0] sm:$0xff] }
 0x656   : > { %14475 = vmatprep.subr.mxu1 %v3224_v19  ;;  %14441 = vmatpush3.msra.mxu0 %v3176_v20  ;;  %v3166_v19 = vld [vmem:[%s15167_s26 + $0x5a10] sm:$0xff]  ;;  %v3287_v6 = vld [vmem:[%s15167_s26 + $0x5dd8] sm:$0xff] }
 0x657   : > { %14476 = vmatpush3.msra.mxu1 %v3208_v21  ;;  %14442 = vmatprep.subr.mxu0 %v3191_v23  ;;  %v3198_v20 = vld [vmem:[%s15167_s26 + $0x5b10] sm:$0xff]  ;;  %v11492_v21 = vpop.f32.mrf.mxu1  ;;  %v3213_v23 = vld [vmem:[%s15167_s26 + $0x5b88] sm:$0xff]  ;;  %v4184_v32 = vcombine.high %v4176_v17, %v4176_v17 }
 0x658   : > { %14477 = vmatprep.subr.mxu1 %v3223_v24  ;;  %14443 = vmatpush3.msra.mxu0 %v3175_v25  ;;  %v4183_v24 = vrot.slane %v4169_v9, %v15226_v52  ;;  %v4689_v25 = vadd.f32 %v11423_v11, %v4619_v10  ;;  %v3239_v9 = vld [vmem:[%s15167_s26 + $0x5c58] sm:$0xff] }
 0x659   : > { %14478 = vmatpush3.msra.mxu1 %v3207_v26  ;;  %14444 = vmatprep.subr.mxu0 %v3190_v27  ;;  %v3165_v26 = vld [vmem:[%s15167_s26 + $0x5a08] sm:$0xff]  ;;  %v3271_v10 = vld [vmem:[%s15167_s26 + $0x5d58] sm:$0xff] }
 0x65a   : > { %14479 = vmatprep.subr.mxu1 %v3222_v28  ;;  %14445 = vmatpush3.msra.mxu0 %v3174_v29  ;;  %v3197_v27 = vld [vmem:[%s15167_s26 + $0x5b08] sm:$0xff]  ;;  %v11561_v28 = vpop.f32.mrf.mxu1  ;;  %v11527_v29 = vpop.f32.mrf.mxu0 }
 0x65b   : > { %14480 = vmatpush3.msra.mxu1 %v3206_v30  ;;  %14446 = vmatprep.subr.mxu0 %v3189_v33  ;;  %v3180_v30 = vld [vmem:[%s15167_s26 + $0x5a80] sm:$0xff]  ;;  %v4759_v33 = vadd.f32 %v11458_v18, %v4689_v25  ;;  %v3253_v18 = vld [vmem:[%s15167_s26 + $0x5cc8] sm:$0xff] }
 0x65c   : > { %14481 = vmatprep.subr.mxu1 %v3221_v34  ;;  %14447 = vmatpush3.msra.mxu0 %v3173_v35  ;;  %v11493_v34 = vadd.f32 %v11492_v21, %v11491_v5  ;;  %v3164_v35 = vld [vmem:[%s15167_s26 + $0x5a00] sm:$0xff]  ;;  %v3255_v5 = vld [vmem:[%s15167_s26 + $0x5cd8] sm:$0xff]  ;;  %v3237_v21 = vld [vmem:[%s15167_s26 + $0x5c48] sm:$0xff] }
 0x65d   : > { %14482 = vmatpush3.msra.mxu1 %v3205_v36  ;;  %14448 = vmatprep.subr.mxu0 %v3188_v38  ;;  %v11596_v36 = vpop.f32.mrf.mxu0  ;;  %v4185_v38 = vcombine.high %v4183_v24, %v4183_v24  ;;  %v3252_v25 = vld [vmem:[%s15167_s26 + $0x5cc0] sm:$0xff] }
 0x65e   : > { %14483 = vmatprep.subr.mxu1 %v3220_v39  ;;  %14449 = vmatpush3.msra.mxu0 %v3172_v40  ;;  %v11528_v39 = vadd.f32 %v11527_v29, %v11526_v14  ;;  %v3259_v40 = vld [vmem:[%s15167_s26 + $0x5cf8] sm:$0xff]  ;;  %v3236_v29 = vld [vmem:[%s15167_s26 + $0x5c40] sm:$0xff] }
 0x65f   : > { %14484 = vmatpush3.msra.mxu1 %v3204_v41  ;;  %14450 = vmatprep.subr.mxu0 %v3187_v43  ;;  %v11562_v41 = vpop.f32.mrf.mxu1  ;;  %v4829_v43 = vadd.f32 %v11493_v34, %v4759_v33  ;;  %v11597_v47 = vpop.f32.mrf.mxu0  ;;  %v3283_v33 = vld [vmem:[%s15167_s26 + $0x5db8] sm:$0xff] }
 0x660   : > { %14485 = vmatprep.subr.mxu1 %v3219_v44  ;;  %14451 = vmatpush3.msra.mxu0 %v3171_v45  ;;  %v3243_v44 = vld [vmem:[%s15167_s26 + $0x5c78] sm:$0xff]  ;;  %v11563_v51 = vadd.f32 %v11562_v41, %v11561_v28  ;;  %v3234_v41 = vld [vmem:[%s15167_s26 + $0x5c30] sm:$0xff] }
 0x661   : > { %14486 = vmatpush3.msra.mxu1 %v3203_v46  ;;  %14452 = vmatprep.subr.mxu0 %v3186_v49  ;;  %v3275_v45 = vld [vmem:[%s15167_s26 + $0x5d78] sm:$0xff]  ;;  %v11631_v46 = vpop.f32.mrf.mxu1  ;;  %v3290_v49 = vld [vmem:[%s15167_s26 + $0x5df0] sm:$0xff] }
 0x662   : > { %14487 = vmatprep.subr.mxu1 %v3218_v50  ;;  %14453 = vmatpush3.msra.mxu0 %v3170_v54  ;;  %v4899_v50 = vadd.f32 %v11528_v39, %v4829_v43  ;;  %v3274_v54 = vld [vmem:[%s15167_s26 + $0x5d70] sm:$0xff] }
 0x663   : > { %14488 = vmatpush3.msra.mxu1 %v3202_v55  ;;  %14454 = vmatprep.subr.mxu0 %v3185_v57  ;;  %v11666_v55 = vpop.f32.mrf.mxu0  ;;  %v3289_v57 = vld [vmem:[%s15167_s26 + $0x5de8] sm:$0xff]  ;;  %v3282_v39 = vld [vmem:[%s15167_s26 + $0x5db0] sm:$0xff] }
 0x664   : > { %14489 = vmatprep.subr.mxu1 %v3217_v58  ;;  %14455 = vmatpush3.msra.mxu0 %v3169_v60  ;;  %v11598_v58 = vadd.f32 %v11597_v47, %v11596_v36  ;;  %v3273_v60 = vld [vmem:[%s15167_s26 + $0x5d68] sm:$0xff]  ;;  %v3267_v36 = vld [vmem:[%s15167_s26 + $0x5d38] sm:$0xff] }
 0x665   : > { %14490 = vmatpush3.msra.mxu1 %v3201_v61  ;;  %14456 = vmatprep.subr.mxu0 %v3184_v0  ;;  %v11632_v61 = vpop.f32.mrf.mxu1  ;;  %v4969_v0 = vadd.f32 %v11563_v51, %v4899_v50  ;;  %v3265_v50 = vld [vmem:[%s15167_s26 + $0x5d28] sm:$0xff]  ;;  %v282_v51 = vld [vmem:[%s15161_s29 + $0x170] sm:$0xff] }
 0x666   : > { %14491 = vmatprep.subr.mxu1 %v3216_v1  ;;  %14457 = vmatpush3.msra.mxu0 %v3168_v3  ;;  %v3240_v1 = vld [vmem:[%s15167_s26 + $0x5c60] sm:$0xff] }
 0x667   : > { %14492 = vmatpush3.msra.mxu1 %v3200_v4  ;;  %14458 = vmatprep.subr.mxu0 %v3183_v7  ;;  %v11701_v3 = vpop.f32.mrf.mxu1  ;;  %v11667_v4 = vpop.f32.mrf.mxu0  ;;  %v5039_v7 = vadd.f32 %v11598_v58, %v4969_v0  ;;  %v3264_v58 = vld [vmem:[%s15167_s26 + $0x5d20] sm:$0xff]  ;;  %v3231_v0 = vld [vmem:[%s15167_s26 + $0x5c18] sm:$0xff] }
 0x668   : > { %14493 = vmatprep.subr.mxu1 %v3215_v8  ;;  %14459 = vmatpush3.msra.mxu0 %v3167_v12  ;;  %v11633_v8 = vadd.f32 %v11632_v61, %v11631_v46  ;;  %v3254_v12 = vld [vmem:[%s15167_s26 + $0x5cd0] sm:$0xff]  ;;  %v11668_v14 = vadd.f32 %v11667_v4, %v11666_v55  ;;  %v3281_v46 = vld [vmem:[%s15167_s26 + $0x5da8] sm:$0xff]  ;;  %v3280_v55 = vld [vmem:[%s15167_s26 + $0x5da0] sm:$0xff] }
 0x669   : > { %14494 = vmatpush3.msra.mxu1 %v3199_v13  ;;  %14460 = vmatprep.subr.mxu0 %v3182_v15  ;;  %v11736_v11 = vpop.f32.mrf.mxu0  ;;  %v3286_v13 = vld [vmem:[%s15167_s26 + $0x5dd0] sm:$0xff]  ;;  %v3279_v61 = vld [vmem:[%s15167_s26 + $0x5d98] sm:$0xff] }
 0x66a   : > { %14495 = vmatprep.subr.mxu1 %v3214_v16  ;;  %14461 = vmatpush3.msra.mxu0 %v3166_v19  ;;  %v3238_v15 = vld [vmem:[%s15167_s26 + $0x5c50] sm:$0xff]  ;;  %v3285_v19 = vld [vmem:[%s15167_s26 + $0x5dc8] sm:$0xff] }
 0x66b   : > { %14496 = vmatpush3.msra.mxu1 %v3198_v20  ;;  %14462 = vmatprep.subr.mxu0 %v3181_v22  ;;  %v3270_v16 = vld [vmem:[%s15167_s26 + $0x5d50] sm:$0xff]  ;;  %v5109_v20 = vadd.f32 %v11633_v8, %v5039_v7  ;;  %v3269_v22 = vld [vmem:[%s15167_s26 + $0x5d48] sm:$0xff] }
 0x66c   : > { %14497 = vmatprep.subr.mxu1 %v3213_v23  ;;  %14463 = vmatpush3.msra.mxu0 %v3165_v26  ;;  %v3284_v26 = vld [vmem:[%s15167_s26 + $0x5dc0] sm:$0xff]  ;;  %v3246_v4 = vld [vmem:[%s15167_s26 + $0x5c90] sm:$0xff] }
 0x66d   : > { %14498 = vmatpush3.msra.mxu1 %v3197_v27  ;;  %14464 = vmatprep.subr.mxu0 %v3180_v30  ;;  %v5179_v27 = vadd.f32 %v11668_v14, %v5109_v20  ;;  %v3268_v30 = vld [vmem:[%s15167_s26 + $0x5d40] sm:$0xff] }
 0x66e   : > { %14499 = vmatprep.subr.mxu1 %v3212_v31  ;;  %14465 = vmatpush3.msra.mxu0 %v3164_v35  ;;  %v3235_v35 = vld [vmem:[%s15167_s26 + $0x5c38] sm:$0xff]  ;;  %v3276_v20 = vld [vmem:[%s15167_s26 + $0x5d80] sm:$0xff] }
 0x66f   : > { %10776 = vmatprep.mubr.f32.mxu0 %v4184_v32  ;;  %14500 = vmatpush3.msra.mxu1 %v3196_v37  ;;  %v3251_v32 = vld [vmem:[%s15167_s26 + $0x5cb8] sm:$0xff] }
 0x670   : > { %10777 = vmatmul.mubr.f32.vlgmr.msra.gmra.mxu0 %v4176_v17  ;;  %10846 = vmatprep.mubr.f32.mxu1 %v4185_v38  ;;  %v11702_v17 = vpop.f32.mrf.mxu1  ;;  %v3250_v38 = vld [vmem:[%s15167_s26 + $0x5cb0] sm:$0xff] }
 0x671   : > { %14504 = vmatprep.subr.mxu0 %v3259_v40  ;;  %14539 = vmatprep.subr.mxu1 %v3291_v42  ;;  %v11703_v28 = vadd.f32 %v11702_v17, %v11701_v3  ;;  %v3266_v42 = vld [vmem:[%s15167_s26 + $0x5d30] sm:$0xff]  ;;  %v3261_v17 = vld [vmem:[%s15167_s26 + $0x5d08] sm:$0xff] }
 0x672   : > { %10847 = vmatmul.mubr.f32.vlgmr.msra.gmra.mxu1 %v4183_v24  ;;  %14505 = vmatpush3.msra.mxu0 %v3243_v44  ;;  %v11771_v23 = vpop.f32.mrf.mxu1  ;;  %v11737_v24 = vpop.f32.mrf.mxu0 }
 0x673   : > { %14540 = vmatpush3.msra.mxu1 %v3275_v45  ;;  %14506 = vmatprep.subr.mxu0 %v3258_v48  ;;  %v11738_v34 = vadd.f32 %v11737_v24, %v11736_v11  ;;  %v5249_v40 = vadd.f32 %v11703_v28, %v5179_v27  ;;  %v3249_v45 = vld [vmem:[%s15167_s26 + $0x5ca8] sm:$0xff] }
 0x674   : > { %14541 = vmatprep.subr.mxu1 %v3290_v49  ;;  %14507 = vmatpush3.msra.mxu0 %v3242_v53  ;;  %v11806_v31 = vpop.f32.mrf.mxu0  ;;  %v11772_v37 = vpop.f32.mrf.mxu1  ;;  %v3233_v49 = vld [vmem:[%s15167_s26 + $0x5c28] sm:$0xff] }
 0x675   : > { %14542 = vmatpush3.msra.mxu1 %v3274_v54  ;;  %14508 = vmatprep.subr.mxu0 %v3257_v56  ;;  %v5319_v47 = vadd.f32 %v11738_v34, %v5249_v40  ;;  %v11773_v48 = vadd.f32 %v11772_v37, %v11771_v23  ;;  %v3248_v54 = vld [vmem:[%s15167_s26 + $0x5ca0] sm:$0xff]  ;;  %v3307_v34 = vld [vmem:[%s15167_s26 + $0x5e78] sm:$0xff]  ;;  %v3322_v37 = vld [vmem:[%s15167_s26 + $0x5ef0] sm:$0xff] }
 0x676   : > { %14543 = vmatprep.subr.mxu1 %v3289_v57  ;;  %14509 = vmatpush3.msra.mxu0 %v3241_v59  ;;  %v11841_v43 = vpop.f32.mrf.mxu1  ;;  %v11807_v44 = vpop.f32.mrf.mxu0  ;;  %v3232_v57 = vld [vmem:[%s15167_s26 + $0x5c20] sm:$0xff]  ;;  %v3306_v40 = vld [vmem:[%s15167_s26 + $0x5e70] sm:$0xff] }
 0x677   : > { %14544 = vmatpush3.msra.mxu1 %v3273_v60  ;;  %14510 = vmatprep.subr.mxu0 %v3256_v62  ;;  %v11808_v56 = vadd.f32 %v11807_v44, %v11806_v31  ;;  %v3247_v60 = vld [vmem:[%s15167_s26 + $0x5c98] sm:$0xff]  ;;  %v4186_v62 = vcombine.high %v282_v51, %v282_v51  ;;  %v3228_v23 = vld [vmem:[%s15167_s26 + $0x5c00] sm:$0xff]  ;;  %v3321_v44 = vld [vmem:[%s15167_s26 + $0x5ee8] sm:$0xff] }
 0x678   : > { %14545 = vmatprep.subr.mxu1 %v3288_v63  ;;  %14511 = vmatpush3.msra.mxu0 %v3240_v1  ;;  %v11876_v53 = vpop.f32.mrf.mxu0  ;;  %v11842_v59 = vpop.f32.mrf.mxu1  ;;  %v5389_v63 = vadd.f32 %v11773_v48, %v5319_v47  ;;  %v3263_v1 = vld [vmem:[%s15167_s26 + $0x5d18] sm:$0xff]  ;;  %v3305_v48 = vld [vmem:[%s15167_s26 + $0x5e68] sm:$0xff] }
 0x679   : > { %14546 = vmatpush3.msra.mxu1 %v3272_v2  ;;  %14512 = vmatprep.subr.mxu0 %v3255_v5  ;;  %v3278_v5 = vld [vmem:[%s15167_s26 + $0x5d90] sm:$0xff]  ;;  %v11843_v8 = vadd.f32 %v11842_v59, %v11841_v43  ;;  %v4200_v14 = vrot.slane %v4186_v62, %v15226_v52  ;;  %v3351_v59 = vld [vmem:[%s15167_s26 + $0x5fd8] sm:$0xff] }
 0x67a   : > { %14547 = vmatprep.subr.mxu1 %v3287_v6  ;;  %14513 = vmatpush3.msra.mxu0 %v3239_v9  ;;  %v11911_v2 = vpop.f32.mrf.mxu1  ;;  %v11877_v3 = vpop.f32.mrf.mxu0  ;;  %v4193_v6 = vrot.slane %v282_v51, %v15226_v52  ;;  %v5459_v7 = vadd.f32 %v11808_v56, %v5389_v63  ;;  %v3230_v9 = vld [vmem:[%s15167_s26 + $0x5c10] sm:$0xff]  ;;  %v3320_v51 = vld [vmem:[%s15167_s26 + $0x5ee0] sm:$0xff]  ;;  %v3335_v62 = vld [vmem:[%s15167_s26 + $0x5f58] sm:$0xff] }
 0x67b   : > { %14548 = vmatpush3.msra.mxu1 %v3271_v10  ;;  %14514 = vmatprep.subr.mxu0 %v3254_v12  ;;  %v3262_v10 = vld [vmem:[%s15167_s26 + $0x5d10] sm:$0xff]  ;;  %v3245_v12 = vld [vmem:[%s15167_s26 + $0x5c88] sm:$0xff]  ;;  %v4202_v27 = vcombine.high %v4200_v14, %v4200_v14  ;;  %v3336_v56 = vld [vmem:[%s15167_s26 + $0x5f60] sm:$0xff] }
 0x67c   : > { %14549 = vmatprep.subr.mxu1 %v3286_v13  ;;  %14515 = vmatpush3.msra.mxu0 %v3238_v15  ;;  %v11946_v11 = vpop.f32.mrf.mxu0  ;;  %v3277_v13 = vld [vmem:[%s15167_s26 + $0x5d88] sm:$0xff]  ;;  %v11878_v15 = vadd.f32 %v11877_v3, %v11876_v53  ;;  %v3352_v53 = vld [vmem:[%s15167_s26 + $0x5fe0] sm:$0xff] }
 0x67d   : > { %14550 = vmatpush3.msra.mxu1 %v3270_v16  ;;  %14516 = vmatprep.subr.mxu0 %v3253_v18  ;;  %v3229_v16 = vld [vmem:[%s15167_s26 + $0x5c08] sm:$0xff]  ;;  %v11912_v18 = vpop.f32.mrf.mxu1 }
 0x67e   : > { %14551 = vmatprep.subr.mxu1 %v3285_v19  ;;  %14517 = vmatpush3.msra.mxu0 %v3237_v21  ;;  %v3244_v19 = vld [vmem:[%s15167_s26 + $0x5c80] sm:$0xff]  ;;  %v4201_v21 = vcombine.high %v4193_v6, %v4193_v6 }
 0x67f   : > { %14552 = vmatpush3.msra.mxu1 %v3269_v22  ;;  %14518 = vmatprep.subr.mxu0 %v3252_v25  ;;  %v5529_v22 = vadd.f32 %v11843_v8, %v5459_v7  ;;  %v11981_v24 = vpop.f32.mrf.mxu1  ;;  %v11947_v25 = vpop.f32.mrf.mxu0  ;;  %v3317_v8 = vld [vmem:[%s15167_s26 + $0x5ec8] sm:$0xff] }
 0x680   : > { %14553 = vmatprep.subr.mxu1 %v3284_v26  ;;  %14519 = vmatpush3.msra.mxu0 %v3236_v29  ;;  %v3260_v26 = vld [vmem:[%s15167_s26 + $0x5d00] sm:$0xff]  ;;  %v11913_v29 = vadd.f32 %v11912_v18, %v11911_v2  ;;  %v3350_v2 = vld [vmem:[%s15167_s26 + $0x5fd0] sm:$0xff] }
 0x681   : > { %14554 = vmatpush3.msra.mxu1 %v3268_v30  ;;  %14520 = vmatprep.subr.mxu0 %v3251_v32  ;;  %v5599_v28 = vadd.f32 %v11878_v15, %v5529_v22  ;;  %v3323_v30 = vld [vmem:[%s15167_s26 + $0x5ef8] sm:$0xff]  ;;  %v12016_v31 = vpop.f32.mrf.mxu0  ;;  %v3348_v15 = vld [vmem:[%s15167_s26 + $0x5fc0] sm:$0xff] }
 0x682   : > { %14555 = vmatprep.subr.mxu1 %v3283_v33  ;;  %14521 = vmatpush3.msra.mxu0 %v3235_v35  ;;  %v3355_v32 = vld [vmem:[%s15167_s26 + $0x5ff8] sm:$0xff]  ;;  %v11948_v33 = vadd.f32 %v11947_v25, %v11946_v11  ;;  %v3301_v11 = vld [vmem:[%s15167_s26 + $0x5e48] sm:$0xff]  ;;  %v3332_v18 = vld [vmem:[%s15167_s26 + $0x5f40] sm:$0xff] }
 0x683   : > { %14556 = vmatpush3.msra.mxu1 %v3267_v36  ;;  %14522 = vmatprep.subr.mxu0 %v3250_v38  ;;  %v3339_v35 = vld [vmem:[%s15167_s26 + $0x5f78] sm:$0xff]  ;;  %v11982_v36 = vpop.f32.mrf.mxu1  ;;  %v3354_v38 = vld [vmem:[%s15167_s26 + $0x5ff0] sm:$0xff]  ;;  %v12017_v43 = vpop.f32.mrf.mxu0 }
 0x684   : > { %14557 = vmatprep.subr.mxu1 %v3282_v39  ;;  %14523 = vmatpush3.msra.mxu0 %v3234_v41  ;;  %v5669_v39 = vadd.f32 %v11913_v29, %v5599_v28  ;;  %v3338_v41 = vld [vmem:[%s15167_s26 + $0x5f70] sm:$0xff]  ;;  %v11983_v47 = vadd.f32 %v11982_v36, %v11981_v24  ;;  %v3347_v22 = vld [vmem:[%s15167_s26 + $0x5fb8] sm:$0xff] }
 0x685   : > { %14558 = vmatpush3.msra.mxu1 %v3266_v42  ;;  %14524 = vmatprep.subr.mxu0 %v3249_v45  ;;  %v12051_v42 = vpop.f32.mrf.mxu1  ;;  %v3353_v45 = vld [vmem:[%s15167_s26 + $0x5fe8] sm:$0xff]  ;;  %v3299_v25 = vld [vmem:[%s15167_s26 + $0x5e38] sm:$0xff]  ;;  %v3314_v28 = vld [vmem:[%s15167_s26 + $0x5eb0] sm:$0xff] }
 0x686   : > { %14559 = vmatprep.subr.mxu1 %v3281_v46  ;;  %14525 = vmatpush3.msra.mxu0 %v3233_v49  ;;  %v5739_v46 = vadd.f32 %v11948_v33, %v5669_v39  ;;  %v3337_v49 = vld [vmem:[%s15167_s26 + $0x5f68] sm:$0xff]  ;;  %v3346_v29 = vld [vmem:[%s15167_s26 + $0x5fb0] sm:$0xff]  ;;  %v283_v36 = vld [vmem:[%s15161_s29 + $0x178] sm:$0xff] }
 0x687   : > { %14560 = vmatpush3.msra.mxu1 %v3265_v50  ;;  %14526 = vmatprep.subr.mxu0 %v3248_v54  ;;  %v12086_v50 = vpop.f32.mrf.mxu0  ;;  %v12018_v54 = vadd.f32 %v12017_v43, %v12016_v31  ;;  %v3298_v31 = vld [vmem:[%s15167_s26 + $0x5e30] sm:$0xff]  ;;  %v3329_v39 = vld [vmem:[%s15167_s26 + $0x5f28] sm:$0xff]  ;;  %v3344_v43 = vld [vmem:[%s15167_s26 + $0x5fa0] sm:$0xff] }
 0x688   : > { %14561 = vmatprep.subr.mxu1 %v3280_v55  ;;  %14527 = vmatpush3.msra.mxu0 %v3232_v57  ;;  %v3304_v55 = vld [vmem:[%s15167_s26 + $0x5e60] sm:$0xff]  ;;  %v12052_v57 = vpop.f32.mrf.mxu1 }
 0x689   : > { %14562 = vmatpush3.msra.mxu1 %v3264_v58  ;;  %14528 = vmatprep.subr.mxu0 %v3247_v60  ;;  %v3319_v58 = vld [vmem:[%s15167_s26 + $0x5ed8] sm:$0xff]  ;;  %v5809_v60 = vadd.f32 %v11983_v47, %v5739_v46  ;;  %v3296_v46 = vld [vmem:[%s15167_s26 + $0x5e20] sm:$0xff] }
 0x68a   : > { %14563 = vmatprep.subr.mxu1 %v3279_v61  ;;  %14529 = vmatpush3.msra.mxu0 %v3231_v0  ;;  %v3303_v61 = vld [vmem:[%s15167_s26 + $0x5e58] sm:$0xff]  ;;  %v12121_v63 = vpop.f32.mrf.mxu1  ;;  %v12087_v0 = vpop.f32.mrf.mxu0  ;;  %v3328_v47 = vld [vmem:[%s15167_s26 + $0x5f20] sm:$0xff] }
 0x68b   : > { %14564 = vmatpush3.msra.mxu1 %v3263_v1  ;;  %14530 = vmatprep.subr.mxu0 %v3246_v4  ;;  %v3318_v1 = vld [vmem:[%s15167_s26 + $0x5ed0] sm:$0xff]  ;;  %v5879_v3 = vadd.f32 %v12018_v54, %v5809_v60  ;;  %v12053_v4 = vadd.f32 %v12052_v57, %v12051_v42  ;;  %v3312_v42 = vld [vmem:[%s15167_s26 + $0x5ea0] sm:$0xff]  ;;  %v3295_v54 = vld [vmem:[%s15167_s26 + $0x5e18] sm:$0xff] }
 0x68c   : > { %14565 = vmatprep.subr.mxu1 %v3278_v5  ;;  %14531 = vmatpush3.msra.mxu0 %v3230_v9  ;;  %v3302_v5 = vld [vmem:[%s15167_s26 + $0x5e50] sm:$0xff]  ;;  %v12156_v7 = vpop.f32.mrf.mxu0  ;;  %v3349_v9 = vld [vmem:[%s15167_s26 + $0x5fc8] sm:$0xff] }
 0x68d   : > { %14566 = vmatpush3.msra.mxu1 %v3262_v10  ;;  %14532 = vmatprep.subr.mxu0 %v3245_v12  ;;  %v12088_v10 = vadd.f32 %v12087_v0, %v12086_v50  ;;  %v3333_v12 = vld [vmem:[%s15167_s26 + $0x5f48] sm:$0xff]  ;;  %v3311_v50 = vld [vmem:[%s15167_s26 + $0x5e98] sm:$0xff]  ;;  %v3310_v57 = vld [vmem:[%s15167_s26 + $0x5e90] sm:$0xff] }
 0x68e   : > { %14567 = vmatprep.subr.mxu1 %v3277_v13  ;;  %14533 = vmatpush3.msra.mxu0 %v3229_v16  ;;  %v12122_v13 = vpop.f32.mrf.mxu1  ;;  %v5949_v16 = vadd.f32 %v12053_v4, %v5879_v3  ;;  %v3341_v3 = vld [vmem:[%s15167_s26 + $0x5f88] sm:$0xff] }
 0x68f   : > { %14568 = vmatpush3.msra.mxu1 %v3261_v17  ;;  %14534 = vmatprep.subr.mxu0 %v3244_v19  ;;  %v3300_v17 = vld [vmem:[%s15167_s26 + $0x5e40] sm:$0xff]  ;;  %v12123_v24 = vadd.f32 %v12122_v13, %v12121_v63 }
 0x690   : > { %14569 = vmatprep.subr.mxu1 %v3276_v20  ;;  %14535 = vmatpush3.msra.mxu0 %v3228_v23  ;;  %v12191_v19 = vpop.f32.mrf.mxu1  ;;  %v12157_v20 = vpop.f32.mrf.mxu0  ;;  %v6019_v23 = vadd.f32 %v12088_v10, %v5949_v16 }
 0x691   : > { %10916 = vmatprep.mubr.f32.mxu0 %v4201_v21  ;;  %14570 = vmatpush3.msra.mxu1 %v3260_v26  ;;  %v3315_v21 = vld [vmem:[%s15167_s26 + $0x5eb8] sm:$0xff] }
 0x692   : > { %10917 = vmatmul.mubr.f32.vlgmr.msra.gmra.mxu0 %v4193_v6  ;;  %10986 = vmatprep.mubr.f32.mxu1 %v4202_v27  ;;  %v3334_v6 = vld [vmem:[%s15167_s26 + $0x5f50] sm:$0xff]  ;;  %v3331_v26 = vld [vmem:[%s15167_s26 + $0x5f38] sm:$0xff]  ;;  %v12226_v27 = vpop.f32.mrf.mxu0  ;;  %v12192_v33 = vpop.f32.mrf.mxu1 }
 0x693   : > { %14574 = vmatprep.subr.mxu0 %v3323_v30  ;;  %14609 = vmatprep.subr.mxu1 %v3355_v32  ;;  %v12158_v30 = vadd.f32 %v12157_v20, %v12156_v7  ;;  %v3330_v32 = vld [vmem:[%s15167_s26 + $0x5f30] sm:$0xff]  ;;  %v3325_v7 = vld [vmem:[%s15167_s26 + $0x5f08] sm:$0xff] }
 0x694   : > { %10987 = vmatmul.mubr.f32.vlgmr.msra.gmra.mxu1 %v4200_v14  ;;  %14575 = vmatpush3.msra.mxu0 %v3307_v34  ;;  %v3316_v14 = vld [vmem:[%s15167_s26 + $0x5ec0] sm:$0xff]  ;;  %v3313_v34 = vld [vmem:[%s15167_s26 + $0x5ea8] sm:$0xff] }
 0x695   : > { %14610 = vmatpush3.msra.mxu1 %v3339_v35  ;;  %14576 = vmatprep.subr.mxu0 %v3322_v37  ;;  %v3345_v35 = vld [vmem:[%s15167_s26 + $0x5fa8] sm:$0xff]  ;;  %v6089_v37 = vadd.f32 %v12123_v24, %v6019_v23 }
 0x696   : > { %14611 = vmatprep.subr.mxu1 %v3354_v38  ;;  %14577 = vmatpush3.msra.mxu0 %v3306_v40  ;;  %v3297_v38 = vld [vmem:[%s15167_s26 + $0x5e28] sm:$0xff]  ;;  %v12261_v40 = vpop.f32.mrf.mxu1 }
 0x697   : > { %14612 = vmatpush3.msra.mxu1 %v3338_v41  ;;  %14578 = vmatprep.subr.mxu0 %v3321_v44  ;;  %v12227_v41 = vpop.f32.mrf.mxu0  ;;  %v6159_v44 = vadd.f32 %v12158_v30, %v6089_v37 }
 0x698   : > { %14613 = vmatprep.subr.mxu1 %v3353_v45  ;;  %14579 = vmatpush3.msra.mxu0 %v3305_v48  ;;  %v12193_v45 = vadd.f32 %v12192_v33, %v12191_v19  ;;  %v4203_v48 = vcombine.high %v283_v36, %v283_v36 }
 0x699   : > { %14614 = vmatpush3.msra.mxu1 %v3337_v49  ;;  %14580 = vmatprep.subr.mxu0 %v3320_v51  ;;  %v12296_v49 = vpop.f32.mrf.mxu0  ;;  %v3343_v51 = vld [vmem:[%s15167_s26 + $0x5f98] sm:$0xff] }
 0x69a   : > { %14615 = vmatprep.subr.mxu1 %v3352_v53  ;;  %14581 = vmatpush3.msra.mxu0 %v3304_v55  ;;  %v12228_v53 = vadd.f32 %v12227_v41, %v12226_v27  ;;  %v3327_v55 = vld [vmem:[%s15167_s26 + $0x5f18] sm:$0xff]  ;;  %v6229_v60 = vadd.f32 %v12193_v45, %v6159_v44  ;;  %v4217_v63 = vrot.slane %v4203_v48, %v15226_v52 }
 0x69b   : > { %14616 = vmatpush3.msra.mxu1 %v3336_v56  ;;  %14582 = vmatprep.subr.mxu0 %v3319_v58  ;;  %v12262_v56 = vpop.f32.mrf.mxu1  ;;  %v3342_v58 = vld [vmem:[%s15167_s26 + $0x5f90] sm:$0xff] }
 0x69c   : > { %14617 = vmatprep.subr.mxu1 %v3351_v59  ;;  %14583 = vmatpush3.msra.mxu0 %v3303_v61  ;;  %v4210_v59 = vrot.slane %v283_v36, %v15226_v52  ;;  %v3294_v61 = vld [vmem:[%s15167_s26 + $0x5e10] sm:$0xff]  ;;  %v6299_v4 = vadd.f32 %v12228_v53, %v6229_v60  ;;  %v3308_v52 = vld [vmem:[%s15167_s26 + $0x5e80] sm:$0xff]  ;;  %v4219_v13 = vcombine.high %v4217_v63, %v4217_v63 }
 0x69d   : > { %14618 = vmatpush3.msra.mxu1 %v3335_v62  ;;  %14584 = vmatprep.subr.mxu0 %v3318_v1  ;;  %v3326_v62 = vld [vmem:[%s15167_s26 + $0x5f10] sm:$0xff]  ;;  %v12331_v0 = vpop.f32.mrf.mxu1  ;;  %v12297_v1 = vpop.f32.mrf.mxu0 }
 0x69e   : > { %14619 = vmatprep.subr.mxu1 %v3350_v2  ;;  %14585 = vmatpush3.msra.mxu0 %v3302_v5  ;;  %v3309_v2 = vld [vmem:[%s15167_s26 + $0x5e88] sm:$0xff]  ;;  %v12263_v5 = vadd.f32 %v12262_v56, %v12261_v40  ;;  %v4218_v10 = vcombine.high %v4210_v59, %v4210_v59 }
 0x69f   : > { %14620 = vmatpush3.msra.mxu1 %v3334_v6  ;;  %14586 = vmatprep.subr.mxu0 %v3317_v8  ;;  %v3293_v6 = vld [vmem:[%s15167_s26 + $0x5e08] sm:$0xff]  ;;  %v12366_v8 = vpop.f32.mrf.mxu0 }
 0x6a0   : > { %14621 = vmatprep.subr.mxu1 %v3349_v9  ;;  %14587 = vmatpush3.msra.mxu0 %v3301_v11  ;;  %v3340_v9 = vld [vmem:[%s15167_s26 + $0x5f80] sm:$0xff]  ;;  %v12298_v11 = vadd.f32 %v12297_v1, %v12296_v49  ;;  %v6369_v16 = vadd.f32 %v12263_v5, %v6299_v4 }
 0x6a1   : > { %14622 = vmatpush3.msra.mxu1 %v3333_v12  ;;  %14588 = vmatprep.subr.mxu0 %v3316_v14  ;;  %v3292_v12 = vld [vmem:[%s15167_s26 + $0x5e00] sm:$0xff]  ;;  %v12332_v14 = vpop.f32.mrf.mxu1 }
 0x6a2   : > { %14623 = vmatprep.subr.mxu1 %v3348_v15  ;;  %14589 = vmatpush3.msra.mxu0 %v3300_v17  ;;  %v3324_v15 = vld [vmem:[%s15167_s26 + $0x5f00] sm:$0xff]  ;;  %v6439_v19 = vadd.f32 %v12298_v11, %v6369_v16  ;;  %v12333_v20 = vadd.f32 %v12332_v14, %v12331_v0 }
 0x6a3   : > { %14624 = vmatpush3.msra.mxu1 %v3332_v18  ;;  %14590 = vmatprep.subr.mxu0 %v3315_v21  ;;  %v12401_v17 = vpop.f32.mrf.mxu1  ;;  %v12367_v18 = vpop.f32.mrf.mxu0 }
 0x6a4   : > { %14625 = vmatprep.subr.mxu1 %v3347_v22  ;;  %14591 = vmatpush3.msra.mxu0 %v3299_v25  ;;  %v12368_v22 = vadd.f32 %v12367_v18, %v12366_v8  ;;  %v6509_v24 = vadd.f32 %v12333_v20, %v6439_v19 }
 0x6a5   : > { %14626 = vmatpush3.msra.mxu1 %v3331_v26  ;;  %14592 = vmatprep.subr.mxu0 %v3314_v28  ;;  %v12436_v21 = vpop.f32.mrf.mxu0  ;;  %v12402_v23 = vpop.f32.mrf.mxu1 }
 0x6a6   : > { %14627 = vmatprep.subr.mxu1 %v3346_v29  ;;  %14593 = vmatpush3.msra.mxu0 %v3298_v31  ;;  %v6579_v27 = vadd.f32 %v12368_v22, %v6509_v24  ;;  %v12403_v28 = vadd.f32 %v12402_v23, %v12401_v17 }
 0x6a7   : > { %14628 = vmatpush3.msra.mxu1 %v3330_v32  ;;  %14594 = vmatprep.subr.mxu0 %v3313_v34  ;;  %v12471_v25 = vpop.f32.mrf.mxu1  ;;  %v12437_v26 = vpop.f32.mrf.mxu0 }
 0x6a8   : > { %14629 = vmatprep.subr.mxu1 %v3345_v35  ;;  %14595 = vmatpush3.msra.mxu0 %v3297_v38  ;;  %v12438_v30 = vadd.f32 %v12437_v26, %v12436_v21  ;;  %v6649_v32 = vadd.f32 %v12403_v28, %v6579_v27 }
 0x6a9   : > { %14630 = vmatpush3.msra.mxu1 %v3329_v39  ;;  %14596 = vmatprep.subr.mxu0 %v3312_v42  ;;  %v12506_v29 = vpop.f32.mrf.mxu0  ;;  %v12472_v31 = vpop.f32.mrf.mxu1 }
 0x6aa   : > { %14631 = vmatprep.subr.mxu1 %v3344_v43  ;;  %14597 = vmatpush3.msra.mxu0 %v3296_v46  ;;  %v6719_v35 = vadd.f32 %v12438_v30, %v6649_v32  ;;  %v12473_v36 = vadd.f32 %v12472_v31, %v12471_v25 }
 0x6ab   : > { %14632 = vmatpush3.msra.mxu1 %v3328_v47  ;;  %14598 = vmatprep.subr.mxu0 %v3311_v50  ;;  %v12541_v33 = vpop.f32.mrf.mxu1  ;;  %v12507_v34 = vpop.f32.mrf.mxu0 }
 0x6ac   : > { %14633 = vmatprep.subr.mxu1 %v3343_v51  ;;  %14599 = vmatpush3.msra.mxu0 %v3295_v54  ;;  %v12508_v38 = vadd.f32 %v12507_v34, %v12506_v29  ;;  %v6789_v40 = vadd.f32 %v12473_v36, %v6719_v35 }
 0x6ad   : > { %14634 = vmatpush3.msra.mxu1 %v3327_v55  ;;  %14600 = vmatprep.subr.mxu0 %v3310_v57  ;;  %v12576_v37 = vpop.f32.mrf.mxu0  ;;  %v12542_v39 = vpop.f32.mrf.mxu1 }
 0x6ae   : > { %14635 = vmatprep.subr.mxu1 %v3342_v58  ;;  %14601 = vmatpush3.msra.mxu0 %v3294_v61  ;;  %v6859_v43 = vadd.f32 %v12508_v38, %v6789_v40  ;;  %v12543_v44 = vadd.f32 %v12542_v39, %v12541_v33 }
 0x6af   : > { %14636 = vmatpush3.msra.mxu1 %v3326_v62  ;;  %14602 = vmatprep.subr.mxu0 %v3309_v2  ;;  %v12611_v41 = vpop.f32.mrf.mxu1  ;;  %v12577_v42 = vpop.f32.mrf.mxu0 }
 0x6b0   : > { %14637 = vmatprep.subr.mxu1 %v3341_v3  ;;  %14603 = vmatpush3.msra.mxu0 %v3293_v6  ;;  %v12578_v46 = vadd.f32 %v12577_v42, %v12576_v37  ;;  %v6929_v48 = vadd.f32 %v12543_v44, %v6859_v43 }
 0x6b1   : > { %14638 = vmatpush3.msra.mxu1 %v3325_v7  ;;  %14604 = vmatprep.subr.mxu0 %v3308_v52  ;;  %v12646_v45 = vpop.f32.mrf.mxu0  ;;  %v12612_v47 = vpop.f32.mrf.mxu1 }
 0x6b2   : > { %14639 = vmatprep.subr.mxu1 %v3340_v9  ;;  %14605 = vmatpush3.msra.mxu0 %v3292_v12  ;;  %v6999_v51 = vadd.f32 %v12578_v46, %v6929_v48  ;;  %v12613_v53 = vadd.f32 %v12612_v47, %v12611_v41 }
 0x6b3   : > { %11056 = vmatprep.mubr.f32.mxu0 %v4218_v10  ;;  %14640 = vmatpush3.msra.mxu1 %v3324_v15  ;;  %v12681_v49 = vpop.f32.mrf.mxu1  ;;  %v12647_v50 = vpop.f32.mrf.mxu0 }
 0x6b4   : > { %11126 = vmatprep.mubr.f32.mxu1 %v4219_v13  ;;  %11057 = vmatmul.mubr.f32.vlgmr.msra.gmra.mxu0 %v4210_v59  ;;  %v12648_v55 = vadd.f32 %v12647_v50, %v12646_v45  ;;  %v7069_v57 = vadd.f32 %v12613_v53, %v6999_v51 }
 0x6b5   : > { %11127 = vmatmul.mubr.f32.vlgmr.msra.gmra.mxu1 %v4217_v63  ;;  %v12716_v54 = vpop.f32.mrf.mxu0  ;;  %v12682_v56 = vpop.f32.mrf.mxu1 }
 0x6b6   : > { %v7139_v60 = vadd.f32 %v12648_v55, %v7069_v57  ;;  %v12683_v61 = vadd.f32 %v12682_v56, %v12681_v49 }
 0x6b7   : > { %v12751_v58 = vpop.f32.mrf.mxu1  ;;  %v12717_v59 = vpop.f32.mrf.mxu0 }
 0x6b8   : > { %v12718_v63 = vadd.f32 %v12717_v59, %v12716_v54  ;;  %v7209_v1 = vadd.f32 %v12683_v61, %v7139_v60 }
 0x6b9   : > { %v12786_v62 = vpop.f32.mrf.mxu0  ;;  %v12752_v0 = vpop.f32.mrf.mxu1 }
 0x6ba   : > { %v7279_v4 = vadd.f32 %v12718_v63, %v7209_v1  ;;  %v12753_v5 = vadd.f32 %v12752_v0, %v12751_v58 }
 0x6bb   : > { %v12821_v2 = vpop.f32.mrf.mxu1  ;;  %v12787_v3 = vpop.f32.mrf.mxu0 }
 0x6bc   : > { %v12788_v7 = vadd.f32 %v12787_v3, %v12786_v62  ;;  %v7349_v52 = vadd.f32 %v12753_v5, %v7279_v4 }
 0x6bd   : > { %v12856_v6 = vpop.f32.mrf.mxu0  ;;  %v12822_v8 = vpop.f32.mrf.mxu1 }
 0x6be   : > { %v7419_v11 = vadd.f32 %v12788_v7, %v7349_v52  ;;  %v12823_v12 = vadd.f32 %v12822_v8, %v12821_v2 }
 0x6bf   : > { %v12891_v9 = vpop.f32.mrf.mxu1  ;;  %v12857_v10 = vpop.f32.mrf.mxu0 }
 0x6c0   : > { %v12858_v14 = vadd.f32 %v12857_v10, %v12856_v6  ;;  %v7489_v16 = vadd.f32 %v12823_v12, %v7419_v11 }
 0x6c1   : > { %v12926_v13 = vpop.f32.mrf.mxu0  ;;  %v12892_v15 = vpop.f32.mrf.mxu1 }
 0x6c2   : > { %v7559_v19 = vadd.f32 %v12858_v14, %v7489_v16  ;;  %v12893_v20 = vadd.f32 %v12892_v15, %v12891_v9 }
 0x6c3   : > { %v12961_v17 = vpop.f32.mrf.mxu1  ;;  %v12927_v18 = vpop.f32.mrf.mxu0 }
 0x6c4   : > { %v12928_v22 = vadd.f32 %v12927_v18, %v12926_v13  ;;  %v7629_v24 = vadd.f32 %v12893_v20, %v7559_v19 }
 0x6c5   : > { %v12996_v21 = vpop.f32.mrf.mxu0  ;;  %v12962_v23 = vpop.f32.mrf.mxu1 }
 0x6c6   : > { %v7699_v27 = vadd.f32 %v12928_v22, %v7629_v24  ;;  %v12963_v28 = vadd.f32 %v12962_v23, %v12961_v17 }
 0x6c7   : > { %v13031_v25 = vpop.f32.mrf.mxu1  ;;  %v12997_v26 = vpop.f32.mrf.mxu0 }
 0x6c8   : > { %v12998_v30 = vadd.f32 %v12997_v26, %v12996_v21  ;;  %v7769_v32 = vadd.f32 %v12963_v28, %v7699_v27 }
 0x6c9   : > { %v13066_v29 = vpop.f32.mrf.mxu0  ;;  %v13032_v31 = vpop.f32.mrf.mxu1 }
 0x6ca   : > { %v7839_v35 = vadd.f32 %v12998_v30, %v7769_v32  ;;  %v13033_v36 = vadd.f32 %v13032_v31, %v13031_v25 }
 0x6cb   : > { %v13101_v33 = vpop.f32.mrf.mxu1  ;;  %v13067_v34 = vpop.f32.mrf.mxu0 }
 0x6cc   : > { %v13068_v38 = vadd.f32 %v13067_v34, %v13066_v29  ;;  %v7909_v40 = vadd.f32 %v13033_v36, %v7839_v35 }
 0x6cd   : > { %v13136_v37 = vpop.f32.mrf.mxu0  ;;  %v13102_v39 = vpop.f32.mrf.mxu1 }
 0x6ce   : > { %v7979_v43 = vadd.f32 %v13068_v38, %v7909_v40  ;;  %v13103_v44 = vadd.f32 %v13102_v39, %v13101_v33 }
 0x6cf   : > { %v13171_v41 = vpop.f32.mrf.mxu1  ;;  %v13137_v42 = vpop.f32.mrf.mxu0 }
 0x6d0   : > { %v13138_v46 = vadd.f32 %v13137_v42, %v13136_v37  ;;  %v8049_v48 = vadd.f32 %v13103_v44, %v7979_v43 }
 0x6d1   : > { %v13206_v45 = vpop.f32.mrf.mxu0  ;;  %v13172_v47 = vpop.f32.mrf.mxu1 }
 0x6d2   : > { %v8119_v51 = vadd.f32 %v13138_v46, %v8049_v48  ;;  %v13173_v53 = vadd.f32 %v13172_v47, %v13171_v41 }
 0x6d3   : > { %v13241_v49 = vpop.f32.mrf.mxu1  ;;  %v13207_v50 = vpop.f32.mrf.mxu0 }
 0x6d4   : > { %v13208_v55 = vadd.f32 %v13207_v50, %v13206_v45  ;;  %v8189_v57 = vadd.f32 %v13173_v53, %v8119_v51 }
 0x6d5   : > { %v13276_v54 = vpop.f32.mrf.mxu0  ;;  %v13242_v56 = vpop.f32.mrf.mxu1 }
 0x6d6   : > { %v8259_v60 = vadd.f32 %v13208_v55, %v8189_v57  ;;  %v13243_v61 = vadd.f32 %v13242_v56, %v13241_v49 }
 0x6d7   : > { %v13311_v58 = vpop.f32.mrf.mxu1  ;;  %v13277_v59 = vpop.f32.mrf.mxu0 }
 0x6d8   : > { %v13278_v63 = vadd.f32 %v13277_v59, %v13276_v54  ;;  %v8329_v1 = vadd.f32 %v13243_v61, %v8259_v60 }
 0x6d9   : > { %v13346_v62 = vpop.f32.mrf.mxu0  ;;  %v13312_v0 = vpop.f32.mrf.mxu1 }
 0x6da   : > { %v8399_v4 = vadd.f32 %v13278_v63, %v8329_v1  ;;  %v13313_v5 = vadd.f32 %v13312_v0, %v13311_v58 }
 0x6db   : > { %v13381_v2 = vpop.f32.mrf.mxu1  ;;  %v13347_v3 = vpop.f32.mrf.mxu0 }
 0x6dc   : > { %v13348_v7 = vadd.f32 %v13347_v3, %v13346_v62  ;;  %v8469_v52 = vadd.f32 %v13313_v5, %v8399_v4 }
 0x6dd   : > { %v13416_v6 = vpop.f32.mrf.mxu0  ;;  %v13382_v8 = vpop.f32.mrf.mxu1 }
 0x6de   : > { %v8539_v11 = vadd.f32 %v13348_v7, %v8469_v52  ;;  %v13383_v12 = vadd.f32 %v13382_v8, %v13381_v2 }
 0x6df   : > { %v13451_v9 = vpop.f32.mrf.mxu1  ;;  %v13417_v10 = vpop.f32.mrf.mxu0 }
 0x6e0   : > { %v13418_v14 = vadd.f32 %v13417_v10, %v13416_v6  ;;  %v8609_v16 = vadd.f32 %v13383_v12, %v8539_v11 }
 0x6e1   : > { %v13486_v13 = vpop.f32.mrf.mxu0  ;;  %v13452_v15 = vpop.f32.mrf.mxu1 }
 0x6e2   : > { %v8679_v19 = vadd.f32 %v13418_v14, %v8609_v16  ;;  %v13453_v20 = vadd.f32 %v13452_v15, %v13451_v9 }
 0x6e3   : > { %v13521_v17 = vpop.f32.mrf.mxu1  ;;  %v13487_v18 = vpop.f32.mrf.mxu0 }
 0x6e4   : > { %v13488_v22 = vadd.f32 %v13487_v18, %v13486_v13  ;;  %v8749_v24 = vadd.f32 %v13453_v20, %v8679_v19 }
 0x6e5   : > { %v13556_v21 = vpop.f32.mrf.mxu0  ;;  %v13522_v23 = vpop.f32.mrf.mxu1 }
 0x6e6   : > { %v8819_v27 = vadd.f32 %v13488_v22, %v8749_v24  ;;  %v13523_v28 = vadd.f32 %v13522_v23, %v13521_v17 }
 0x6e7   : > { %v13591_v25 = vpop.f32.mrf.mxu1  ;;  %v13557_v26 = vpop.f32.mrf.mxu0 }
 0x6e8   : > { %v13558_v30 = vadd.f32 %v13557_v26, %v13556_v21  ;;  %v8889_v32 = vadd.f32 %v13523_v28, %v8819_v27 }
 0x6e9   : > { %v13626_v29 = vpop.f32.mrf.mxu0  ;;  %v13592_v31 = vpop.f32.mrf.mxu1 }
 0x6ea   : > { %v8959_v35 = vadd.f32 %v13558_v30, %v8889_v32  ;;  %v13593_v36 = vadd.f32 %v13592_v31, %v13591_v25 }
 0x6eb   : > { %v13661_v33 = vpop.f32.mrf.mxu1  ;;  %v13627_v34 = vpop.f32.mrf.mxu0 }
 0x6ec   : > { %v13628_v38 = vadd.f32 %v13627_v34, %v13626_v29  ;;  %v9029_v40 = vadd.f32 %v13593_v36, %v8959_v35 }
 0x6ed   : > { %v13696_v37 = vpop.f32.mrf.mxu0  ;;  %v13662_v39 = vpop.f32.mrf.mxu1 }
 0x6ee   : > { %v9099_v43 = vadd.f32 %v13628_v38, %v9029_v40  ;;  %v13663_v44 = vadd.f32 %v13662_v39, %v13661_v33 }
 0x6ef   : > { %v13731_v41 = vpop.f32.mrf.mxu1  ;;  %v13697_v42 = vpop.f32.mrf.mxu0 }
 0x6f0   : > { %v13698_v46 = vadd.f32 %v13697_v42, %v13696_v37  ;;  %v9169_v48 = vadd.f32 %v13663_v44, %v9099_v43 }
 0x6f1   : > { %v13766_v45 = vpop.f32.mrf.mxu0  ;;  %v13732_v47 = vpop.f32.mrf.mxu1 }
 0x6f2   : > { %v9239_v51 = vadd.f32 %v13698_v46, %v9169_v48  ;;  %v13733_v53 = vadd.f32 %v13732_v47, %v13731_v41 }
 0x6f3   : > { %v13801_v49 = vpop.f32.mrf.mxu1  ;;  %v13767_v50 = vpop.f32.mrf.mxu0 }
 0x6f4   : > { %v13768_v55 = vadd.f32 %v13767_v50, %v13766_v45  ;;  %v9309_v57 = vadd.f32 %v13733_v53, %v9239_v51 }
 0x6f5   : > { %v13836_v54 = vpop.f32.mrf.mxu0  ;;  %v13802_v56 = vpop.f32.mrf.mxu1 }
 0x6f6   : > { %v9379_v60 = vadd.f32 %v13768_v55, %v9309_v57  ;;  %v13803_v61 = vadd.f32 %v13802_v56, %v13801_v49 }
 0x6f7   : > { %v13871_v58 = vpop.f32.mrf.mxu1  ;;  %v13837_v59 = vpop.f32.mrf.mxu0 }
 0x6f8   : > { %v13838_v63 = vadd.f32 %v13837_v59, %v13836_v54  ;;  %v9449_v1 = vadd.f32 %v13803_v61, %v9379_v60 }
 0x6f9   : > { %v13906_v62 = vpop.f32.mrf.mxu0  ;;  %v13872_v0 = vpop.f32.mrf.mxu1 }
 0x6fa   : > { %v9519_v4 = vadd.f32 %v13838_v63, %v9449_v1  ;;  %v13873_v5 = vadd.f32 %v13872_v0, %v13871_v58 }
 0x6fb   : > { %v13941_v2 = vpop.f32.mrf.mxu1  ;;  %v13907_v3 = vpop.f32.mrf.mxu0 }
 0x6fc   : > { %v13908_v7 = vadd.f32 %v13907_v3, %v13906_v62  ;;  %v9589_v52 = vadd.f32 %v13873_v5, %v9519_v4 }
 0x6fd   : > { %v13976_v6 = vpop.f32.mrf.mxu0  ;;  %v13942_v8 = vpop.f32.mrf.mxu1 }
 0x6fe   : > { %v9659_v11 = vadd.f32 %v13908_v7, %v9589_v52  ;;  %v13943_v12 = vadd.f32 %v13942_v8, %v13941_v2 }
 0x6ff   : > { %v14011_v9 = vpop.f32.mrf.mxu1  ;;  %v13977_v10 = vpop.f32.mrf.mxu0 }
 0x700   : > { %v13978_v14 = vadd.f32 %v13977_v10, %v13976_v6  ;;  %v9729_v16 = vadd.f32 %v13943_v12, %v9659_v11 }
 0x701   : > { %v14046_v13 = vpop.f32.mrf.mxu0  ;;  %v14012_v15 = vpop.f32.mrf.mxu1 }
 0x702   : > { %v9799_v19 = vadd.f32 %v13978_v14, %v9729_v16  ;;  %v14013_v20 = vadd.f32 %v14012_v15, %v14011_v9 }
 0x703   : > { %v14081_v17 = vpop.f32.mrf.mxu1  ;;  %v14047_v18 = vpop.f32.mrf.mxu0 }
 0x704   : > { %v14048_v22 = vadd.f32 %v14047_v18, %v14046_v13  ;;  %v9869_v24 = vadd.f32 %v14013_v20, %v9799_v19 }
 0x705   : > { %v14116_v21 = vpop.f32.mrf.mxu0  ;;  %v14082_v23 = vpop.f32.mrf.mxu1 }
 0x706   : > { %v9939_v27 = vadd.f32 %v14048_v22, %v9869_v24  ;;  %v14083_v28 = vadd.f32 %v14082_v23, %v14081_v17 }
 0x707   : > { %v14151_v25 = vpop.f32.mrf.mxu1  ;;  %v14117_v26 = vpop.f32.mrf.mxu0 }
 0x708   : > { %v14118_v30 = vadd.f32 %v14117_v26, %v14116_v21  ;;  %v10009_v32 = vadd.f32 %v14083_v28, %v9939_v27  ;;  %v235_v26 = vld [vmem:[#allocation2] sm:$0x3] }
 0x709   : > { %v14186_v29 = vpop.f32.mrf.mxu0  ;;  %v14152_v31 = vpop.f32.mrf.mxu1 }
 0x70a   : > { %v10079_v35 = vadd.f32 %v14118_v30, %v10009_v32  ;;  %v14153_v36 = vadd.f32 %v14152_v31, %v14151_v25 }
 0x70b   : > { %v14221_v33 = vpop.f32.mrf.mxu1  ;;  %v14187_v34 = vpop.f32.mrf.mxu0 }
 0x70c   : > { %v14188_v38 = vadd.f32 %v14187_v34, %v14186_v29  ;;  %v10149_v40 = vadd.f32 %v14153_v36, %v10079_v35 }
 0x70d   : > { %v14256_v37 = vpop.f32.mrf.mxu0  ;;  %v14222_v39 = vpop.f32.mrf.mxu1 }
 0x70e   : > { %v10219_v43 = vadd.f32 %v14188_v38, %v10149_v40  ;;  %v14223_v44 = vadd.f32 %v14222_v39, %v14221_v33 }
 0x70f   : > { %v14291_v41 = vpop.f32.mrf.mxu1  ;;  %v14257_v42 = vpop.f32.mrf.mxu0 }
 0x710   : > { %v14258_v46 = vadd.f32 %v14257_v42, %v14256_v37  ;;  %v10289_v48 = vadd.f32 %v14223_v44, %v10219_v43 }
 0x711   : > { %v14326_v45 = vpop.f32.mrf.mxu0  ;;  %v14292_v47 = vpop.f32.mrf.mxu1 }
 0x712   : > { %v10359_v51 = vadd.f32 %v14258_v46, %v10289_v48  ;;  %v14293_v53 = vadd.f32 %v14292_v47, %v14291_v41 }
 0x713   : > { %v14361_v49 = vpop.f32.mrf.mxu1  ;;  %v14327_v50 = vpop.f32.mrf.mxu0 }
 0x714   : > { %v14328_v55 = vadd.f32 %v14327_v50, %v14326_v45  ;;  %v10429_v57 = vadd.f32 %v14293_v53, %v10359_v51 }
 0x715   : > { %v14396_v54 = vpop.f32.mrf.mxu0  ;;  %v14362_v56 = vpop.f32.mrf.mxu1 }
 0x716   : > { %v10499_v60 = vadd.f32 %v14328_v55, %v10429_v57  ;;  %v14363_v61 = vadd.f32 %v14362_v56, %v14361_v49 }
 0x717   : > { %v14431_v58 = vpop.f32.mrf.mxu1  ;;  %v14397_v59 = vpop.f32.mrf.mxu0 }
 0x718   : > { %v14398_v63 = vadd.f32 %v14397_v59, %v14396_v54  ;;  %v10569_v1 = vadd.f32 %v14363_v61, %v10499_v60 }
 0x719   : > { %v14432_v0 = vpop.f32.mrf.mxu1 }
 0x71a   : > { %v10639_v4 = vadd.f32 %v14398_v63, %v10569_v1  ;;  %v14433_v5 = vadd.f32 %v14432_v0, %v14431_v58 }
 0x71c   : > { %v10709_v52 = vadd.f32 %v14433_v5, %v10639_v4 }
 0x730   : > { %v14466_v62 = vpop.f32.mrf.mxu0 }
 0x732   : > { %v14501_v2 = vpop.f32.mrf.mxu1  ;;  %v14467_v3 = vpop.f32.mrf.mxu0 }
 0x733   : > { %v14468_v7 = vadd.f32 %v14467_v3, %v14466_v62 }
 0x734   : > { %v14502_v8 = vpop.f32.mrf.mxu1 }
 0x735   : > { %v10779_v11 = vadd.f32 %v14468_v7, %v10709_v52  ;;  %v14503_v12 = vadd.f32 %v14502_v8, %v14501_v2 }
 0x737   : > { %v10849_v15 = vadd.f32 %v14503_v12, %v10779_v11 }
 0x752   : > { %v14536_v6 = vpop.f32.mrf.mxu0 }
 0x754   : > { %v14571_v9 = vpop.f32.mrf.mxu1  ;;  %v14537_v10 = vpop.f32.mrf.mxu0 }
 0x755   : > { %v14538_v13 = vadd.f32 %v14537_v10, %v14536_v6 }
 0x756   : > { %v14572_v14 = vpop.f32.mrf.mxu1 }
 0x757   : > { %v10919_v16 = vadd.f32 %v14538_v13, %v10849_v15  ;;  %v14573_v17 = vadd.f32 %v14572_v14, %v14571_v9 }
 0x759   : > { %v10989_v22 = vadd.f32 %v14573_v17, %v10919_v16 }
 0x774   : > { %v14606_v18 = vpop.f32.mrf.mxu0 }
 0x775   : > { %v14641_v19 = vpop.f32.mrf.mxu1 }
 0x776   : > { %v14607_v20 = vpop.f32.mrf.mxu0 }
 0x777   : > { %v14642_v21 = vpop.f32.mrf.mxu1  ;;  %v14608_v23 = vadd.f32 %v14607_v20, %v14606_v18 }
 0x778   : > { %v14643_v25 = vadd.f32 %v14642_v21, %v14641_v19 }
 0x779   : > { %v11059_v24 = vadd.f32 %v14608_v23, %v10989_v22 }
 0x77b   : > { %v11129_v27 = vadd.f32 %v14643_v25, %v11059_v24  ;;  %11137 = sbr.rel (%p11277_p7) target bundleno = 1928 (0x788), region = 44 }
 0x77d   : > { %v11132_v28 = vadd.f32 %v11129_v27, %v235_v26 }
 0x77f   : > { %11133 = vst [vmem:[#allocation2] sm:$0x3] %v11132_v28 }
 0x786   : > { %v11138_v29 = vld [vmem:[#allocation2] sm:$0x3] }
 0x787   : > { %11139 = vst [vmem:[%s223_s21] sm:$0x3] %v11138_v29 }
 0x788 PF: > { %s11279_s28 = sshll.u32 %s14975_s16, 5  ;;  %s11154_s5 = sshll.u32 %s223_s21, 4  ;;  %s11155_s5 = int_to_ptr.vmem [resolvable:$true] %s11154_s5 }
 0x789   : > { %s11152_s3 = scalar_lea.hbm %s18460_s2, %s11279_s28  ;;  %s11141_s15 = scalar_lea.sflag [#allocation5], %s221_s18 }
 0x78a   : > { %s14863_s23 = scalar_lea.vmem %s11155_s5, 32  ;;  %s14995_s27 = smov [#allocation8]  }
 0x78b   : > { %p14864_p6 = scmp.ne.s32.totalorder %s11155_s5, %s14863_s23  ;;  %s14867_s12 = sshll.u32 %s14995_s27, 4  ;;  %s14868_s12 = int_to_ptr.vmem [resolvable:$false] %s14867_s12 }
 0x78c   : > { %s14869_s25 = scalar_lea.vmem %s14868_s12, 64  ;;  %p14870_p8 = scmp.lt.s32.totalorder %s11155_s5, %s14868_s12 }
 0x78d   : > { %p14865_p1 = pnand %p14864_p6, %p15104_p12  ;;  %p14871_p9 = scmp.lt.s32.totalorder %s14869_s25, %s14863_s23 }
 0x78f   : > { %p14866_p5 = pneg %p14865_p1  ;;  %p14872_p10 = por %p14871_p9, %p14870_p8 }
 0x791   : > { %p14873_p11 = pnand %p14872_p10, %p14866_p5 }
 0x793   : > { %14876 = shalt.err (!%p14873_p11)
}
 0x794   : > { %s14877_s16 = scalar_lea.hbm %s11152_s3, 32  ;;  %s14881_s7 = scalar_lea.hbm %s18460_s2, 64 }
 0x795   : > { %p14878_p13 = scmp.ne.s32.totalorder %s11152_s3, %s14877_s16  ;;  %p14882_p3 = scmp.lt.s32.totalorder %s11152_s3, %s18460_s2 }
 0x796   : > { %p14883_p7 = scmp.lt.s32.totalorder %s14881_s7, %s14877_s16 }
 0x797   : > { %p14879_p4 = pnand %p14878_p13, %p15104_p12 }
 0x798   : > { %p14884_p6 = por %p14883_p7, %p14882_p3 }
 0x799   : > { %p14880_p0 = pneg %p14879_p4 }
 0x79b   : > { %p14885_p1 = pnand %p14884_p6, %p14880_p0 }
 0x79d   : > { %14888 = shalt.err (!%p14885_p1)
}
 0x79e   : > { %14652 = dma.vmem_to_hbm [thread:$0]  (%p15104_p12), %s11155_s5, 32, %s11152_s3, %s11141_s15  }
 0x79f PF: > { %p14666_p5 = scmp.ge.s32.totalorder %s14987_s19, 2  ;;  %s11166_s18 = sand.u32 1, %s14947_s9  }
 0x7a0   : > { %s11167_s17 = scalar_lea.sflag [#allocation5], %s11166_s18 }
 0x7a1   : > { %p14662_p8 = pnand %p14666_p5, %p15116_p2 }
 0x7a3   : > { %p14663_p9 = pneg %p14662_p8 }
 0x7a5   : > { %14942 = dma.done.wait (%p14663_p9), %s11167_s17, 32  }
 0x7a6   : > { %14944 = vsyncadd (%p14663_p9), %s11167_s17, 4294967264  ;;  %s21_s19 = sadd.s32 1, %s14987_s19   ;;  %s18476_s8 = sld [smem:[#allocation16_spill]] }
 0x7a7   : > { %p18_p10 = scmp.ge.s32.totalorder %s21_s19, 10   ;;  %s18477_s15 = sld [smem:[#allocation12_spill]] }
 0x7a8   : > { %s18478_s16 = sld [smem:[#allocation13_spill]]  ;;  %s18481_s9 = smov %s14951_s10 }
 0x7a9   : > { %s18479_s17 = sld [smem:[#allocation14_spill]]  ;;  %s18482_s10 = smov %s14955_s11 }
 0x7aa   : > { %s18480_s18 = sld [smem:[#allocation15_spill]]  ;;  %s18483_s11 = smov %s15099_s6 }
 0x7ab   : > { %s18484_s12 = smov %s14963_s13  ;;  %s18485_s13 = smov %s14967_s14 }
 0x7ac   : > { %s18486_s14 = smov %s18476_s8  ;;  %20 = sbr.rel (!%p18_p10) target bundleno = 11 (0xb), region = 94 }
 0x7b1   :  { %11172 = vsyncpa [#allocation4], 1 }
 0x7b2   :  { %11174 = vsyncpa [#allocation4 + $0x1], 1 }
 0x7b3   :  { %11175 = vsyncpa [#allocation7], 1 }
 0x7b4   :  { %11177 = vsyncpa [#allocation7 + $0x1], 1 }
 0x7b5   :  { %11178 = vsyncpa [#allocation5], 1 }
 0x7b6   :  { %11180 = vsyncpa [#allocation5 + $0x1], 1 }

</bundles_post_ra>
